<compile_context>
chip_gen: v6e
topology: v6e:2x2x1
jax: 0.10.0
libtpu: 0.0.40
codegen_flags: <defaults>
</compile_context>

<pallas_src>
import functools
import math

import jax
import jax.numpy as jnp
from jax import lax
from jax.experimental import pallas as pl
from jax.experimental.pallas import tpu as pltpu


# ---------------------------------------------------------------------------
# Fused stage kernel: concat + pad + [conv3x3+BN+ReLU] x 2 for one image.
#
# Padded-flat geometry: the H*W image is stored contiguously inside a flat
# buffer of length Ls = H*W + 2*(W+1) at offset W+1; the zero prefix/suffix
# provide the top/bottom conv padding, and the two column masks kill the
# left/right column wrap of the shifted tap slices.  Tap (dy, dx) of the 3x3
# stencil is then the contiguous slice  buf[:, dy*W+dx : dy*W+dx + H*W].
# ---------------------------------------------------------------------------
def _stage_kernel(x_ref, s_ref, w1_ref, b1_ref, w2_ref, b2_ref, o_ref,
                  xpad_ref, hpad_ref, cols_ref, *, H, W, cx, cs, cmid):
    P = H * W                      # flat pixel axis (lane dim), no junk cols
    ring = W + 1                   # zero prefix / suffix length
    cin = cx + cs

    # Valid-column masks computed in-kernel (no mask DMA): a dx=0 (dx=2) tap
    # falls outside the image when the output column is 0 (W-1).
    col = lax.broadcasted_iota(jnp.int32, (1, P), 1) % W
    not_left = col != 0
    not_right = col != (W - 1)

    def stage_padded(dst_ref, slabs):
        # Zero ONLY the pad ring; the interior is fully overwritten by one
        # contiguous flat store per channel group (fused concat + zero-pad).
        zeros_ring = jnp.zeros((dst_ref.shape[0], ring), dst_ref.dtype)
        dst_ref[:, 0:ring] = zeros_ring
        dst_ref[:, ring + P:ring + P + ring] = zeros_ring
        row = 0
        for slab in slabs:
            c = slab.shape[0]
            dst_ref[row:row + c, ring:ring + P] = slab.astype(dst_ref.dtype)
            row += c

    def build_cols(src_ref, c):
        # Stage the 9 shifted tap slabs contiguously so the conv is a single
        # GEMM with contraction depth K = 9*c (instead of 9 narrow dots).
        for t in range(9):
            dy, dx = divmod(t, 3)
            off = dy * W + dx
            slab = src_ref[:, off:off + P]
            if dx == 0:
                slab = jnp.where(not_left, slab, jnp.zeros_like(slab))
            elif dx == 2:
                slab = jnp.where(not_right, slab, jnp.zeros_like(slab))
            cols_ref[t * c:(t + 1) * c, :] = slab

    # ---- conv1: input = concat([upsampled x, skip]) staged once in VMEM ----
    stage_padded(xpad_ref, [x_ref[0], s_ref[0]])
    build_cols(xpad_ref, cin)
    acc1 = jnp.dot(w1_ref[...], cols_ref[0:9 * cin, :],
                   preferred_element_type=jnp.float32)
    h = jnp.maximum(acc1 + b1_ref[...], 0.0)           # folded-BN shift + ReLU

    # ---- conv2: the intermediate never leaves VMEM -------------------------
    stage_padded(hpad_ref, [h])
    build_cols(hpad_ref, cmid)
    acc2 = jnp.dot(w2_ref[...], cols_ref[0:9 * cmid, :],
                   preferred_element_type=jnp.float32)
    o_ref[0] = jnp.maximum(acc2 + b2_ref[...], 0.0).astype(o_ref.dtype)


def _fused_stage(x_up, skip, params):
    """Basic_cnn_block('unet') on concat([x_up, skip], ch): NCHW -> NCHW."""
    N, cx, H, W = x_up.shape
    cs = skip.shape[1]
    cin = cx + cs
    cmid = params["b1"].shape[0]
    cout = params["b2"].shape[0]
    P = H * W
    Ls = P + 2 * (W + 1)
    cmax = max(cin, cmid)

    xf = x_up.reshape(N, cx, P)        # free metadata reshapes (no HBM copy)
    sf = skip.reshape(N, cs, P)

    out = pl.pallas_call(
        functools.partial(_stage_kernel, H=H, W=W, cx=cx, cs=cs, cmid=cmid),
        out_shape=jax.ShapeDtypeStruct((N, cout, P), jnp.bfloat16),
        grid_spec=pltpu.PrefetchScalarGridSpec(
            num_scalar_prefetch=0,
            grid=(N,),
            in_specs=[
                pl.BlockSpec((1, cx, P), lambda n: (n, 0, 0)),      # x (upsampled)
                pl.BlockSpec((1, cs, P), lambda n: (n, 0, 0)),      # skip
                pl.BlockSpec((cmid, 9 * cin), lambda n: (0, 0)),    # conv1 w (BN folded)
                pl.BlockSpec((cmid, 1), lambda n: (0, 0)),          # conv1 shift
                pl.BlockSpec((cout, 9 * cmid), lambda n: (0, 0)),   # conv2 w (BN folded)
                pl.BlockSpec((cout, 1), lambda n: (0, 0)),          # conv2 shift
            ],
            out_specs=pl.BlockSpec((1, cout, P), lambda n: (n, 0, 0)),
            scratch_shapes=[
                pltpu.VMEM((cin, Ls), jnp.bfloat16),                # padded conv1 input
                pltpu.VMEM((cmid, Ls), jnp.bfloat16),               # padded conv2 input
                pltpu.VMEM((9 * cmax, P), jnp.bfloat16),            # staged tap operand
            ],
        ),
        compiler_params=pltpu.CompilerParams(
            dimension_semantics=("parallel",),
            vmem_limit_bytes=32 * 1024 * 1024,
        ),
    )(xf, sf, params["w1"], params["b1"], params["w2"], params["b2"])

    return out.reshape(N, cout, H, W)


# ---------------------------------------------------------------------------
# nn.Upsample(scale_factor=2, mode='bilinear', align_corners=False):
# fixed 0.25/0.75 parity weights as shifted adds (exact PyTorch half-pixel
# semantics incl. edge clamping).  Kept as light XLA glue between kernels.
# ---------------------------------------------------------------------------
def _upsample2x_along(x, axis):
    n = x.shape[axis]
    prev = jnp.concatenate([lax.slice_in_dim(x, 0, 1, axis=axis),
                            lax.slice_in_dim(x, 0, n - 1, axis=axis)], axis=axis)
    nxt = jnp.concatenate([lax.slice_in_dim(x, 1, n, axis=axis),
                           lax.slice_in_dim(x, n - 1, n, axis=axis)], axis=axis)
    even = 0.25 * prev + 0.75 * x        # out[2i]   = 0.25*x[i-1] + 0.75*x[i]
    odd = 0.75 * x + 0.25 * nxt          # out[2i+1] = 0.75*x[i]   + 0.25*x[i+1]
    y = jnp.stack([even, odd], axis=axis + 1)
    shp = list(x.shape)
    shp[axis] = 2 * n
    return y.reshape(shp)


def upsample_bilinear_x2(x_nchw):
    dt = x_nchw.dtype
    x = x_nchw.astype(jnp.float32)
    return _upsample2x_along(_upsample2x_along(x, 2), 3).astype(dt)


# ---------------------------------------------------------------------------
# Parameter init (PyTorch-default-like); BN folded; weights stored bf16 in
# single-GEMM layout (Cout, 9*Cin) with column index k = (dy*3+dx)*Cin + c.
# ---------------------------------------------------------------------------
def _init_conv_bn_folded(key, cin, cout):
    kw, kb = jax.random.split(key)
    bound = 1.0 / math.sqrt(cin * 9)
    w = jax.random.uniform(kw, (cout, cin, 3, 3), jnp.float32, -bound, bound)
    b = jax.random.uniform(kb, (cout,), jnp.float32, -bound, bound)
    eps = 1e-5
    scale = 1.0 / math.sqrt(1.0 + eps)       # gamma / sqrt(running_var + eps)
    w_mat = jnp.transpose(w * scale, (0, 2, 3, 1)).reshape(cout, 9 * cin)
    shift = (scale * b).reshape(cout, 1)      # beta + scale*(bias - running_mean)
    return w_mat.astype(jnp.bfloat16), shift.astype(jnp.float32)


def init_basic_cnn_block(key, cin, cout):
    k1, k2 = jax.random.split(key)
    w1, b1 = _init_conv_bn_folded(k1, cin, cout)
    w2, b2 = _init_conv_bn_folded(k2, cout, cout)
    return {"w1": w1, "b1": b1, "w2": w2, "b2": b2}


def init_decoder(key, in_chans, out_chans):
    k4, k3, k2, k1 = jax.random.split(key, 4)
    return {
        "e_stage4": init_basic_cnn_block(k4, out_chans[4] + in_chans[4], in_chans[3]),
        "e_stage3": init_basic_cnn_block(k3, out_chans[3], in_chans[2]),
        "e_stage2": init_basic_cnn_block(k2, out_chans[2], in_chans[1]),
        "e_stage1": init_basic_cnn_block(k1, out_chans[1], in_chans[1]),
    }


# ---------------------------------------------------------------------------
# Decoder.forward (blk_cha='unet', bilinear=True); NCHW throughout, bf16
# inter-stage storage, f32 result.
# ---------------------------------------------------------------------------
def decoder_forward(params, x_bottm_nchw, skip_out_nchw):
    x = x_bottm_nchw.astype(jnp.bfloat16)
    skips = [s.astype(jnp.bfloat16) for s in skip_out_nchw]
    x = _fused_stage(upsample_bilinear_x2(x), skips[3], params["e_stage4"])
    x = _fused_stage(upsample_bilinear_x2(x), skips[2], params["e_stage3"])
    x = _fused_stage(upsample_bilinear_x2(x), skips[1], params["e_stage2"])
    x = _fused_stage(upsample_bilinear_x2(x), skips[0], params["e_stage1"])
    return upsample_bilinear_x2(x).astype(jnp.float32)


if __name__ == "__main__":
    key = jax.random.PRNGKey(0)
    # small channel config consistent with the module's indexing (needs [4]):
    in_chans = [4, 8, 8, 16, 16]
    out_chans = [8, 16, 24, 32, 16]

    kp, kx, k0, k1, k2, k3 = jax.random.split(key, 6)
    params = init_decoder(kp, in_chans, out_chans)

    N, H0, W0 = 2, 2, 2
    x_bottm = jax.random.normal(kx, (N, out_chans[4], H0, W0), jnp.float32)
    # skip_out channel counts implied by the concat + block in_chans arithmetic
    skip_out = [
        jax.random.normal(k0, (N, out_chans[1] - in_chans[1], 16 * H0, 16 * W0), jnp.float32),
        jax.random.normal(k1, (N, out_chans[2] - in_chans[2], 8 * H0, 8 * W0), jnp.float32),
        jax.random.normal(k2, (N, out_chans[3] - in_chans[3], 4 * H0, 4 * W0), jnp.float32),
        jax.random.normal(k3, (N, in_chans[4], 2 * H0, 2 * W0), jnp.float32),
    ]

    fwd = jax.jit(decoder_forward)
    y = fwd(params, x_bottm, skip_out)
    jax.block_until_ready(y)
    assert y.shape == (N, in_chans[1], 32 * H0, 32 * W0), y.shape
    assert bool(jnp.all(jnp.isfinite(y)))
    print("KERNEL_OK")
</pallas_src>

<mosaic_0001>
module attributes {stable_mosaic.version = 11 : i64} {
  func.func @_stage_kernel(%arg0: i32, %arg1: memref<1x16x16xbf16, #tpu.memory_space<vmem>>, %arg2: memref<1x16x16xbf16, #tpu.memory_space<vmem>>, %arg3: memref<16x288xbf16, #tpu.memory_space<vmem>>, %arg4: memref<16x1xf32, #tpu.memory_space<vmem>>, %arg5: memref<16x144xbf16, #tpu.memory_space<vmem>>, %arg6: memref<16x1xf32, #tpu.memory_space<vmem>>, %arg7: memref<1x16x16xbf16, #tpu.memory_space<vmem>>, %arg8: memref<32x26xbf16, #tpu.memory_space<vmem>>, %arg9: memref<16x26xbf16, #tpu.memory_space<vmem>>, %arg10: memref<288x16xbf16, #tpu.memory_space<vmem>>) attributes {dimension_semantics = [#tpu.dimension_semantics<parallel>], iteration_bounds = array<i64: 2>, scalar_prefetch = 0 : i64, scratch_operands = 3 : i64, tpu.core_type = #tpu.core_type<tc>, window_params = [{transform_indices = @transform_0, window_bounds = array<i64: 1, 16, 16>}, {transform_indices = @transform_1, window_bounds = array<i64: 1, 16, 16>}, {pipeline_mode = #tpu.pipeline_mode<synchronous>, transform_indices = @transform_2, window_bounds = array<i64: 16, 288>}, {pipeline_mode = #tpu.pipeline_mode<synchronous>, transform_indices = @transform_3, window_bounds = array<i64: 16, 1>}, {pipeline_mode = #tpu.pipeline_mode<synchronous>, transform_indices = @transform_4, window_bounds = array<i64: 16, 144>}, {pipeline_mode = #tpu.pipeline_mode<synchronous>, transform_indices = @transform_5, window_bounds = array<i64: 16, 1>}, {transform_indices = @transform_6, window_bounds = array<i64: 1, 16, 16>}]} {
    %0 = tpu.iota {dimensions = array<i32: 1>} : vector<1x16xi32>
    %c4_i32 = arith.constant 4 : i32
    %c0_i32 = arith.constant 0 : i32
    %1 = arith.cmpi eq, %c4_i32, %c0_i32 : i32
    %c1_i32 = arith.constant 1 : i32
    %2 = arith.select %1, %c1_i32, %c4_i32 : i32
    %3 = vector.broadcast %2 : i32 to vector<1x16xi32>
    %4 = arith.remsi %0, %3 : vector<1x16xi32>
    %c0_i32_0 = arith.constant 0 : i32
    %5 = vector.broadcast %c0_i32_0 : i32 to vector<1x16xi32>
    %6 = arith.cmpi ne, %4, %5 : vector<1x16xi32>
    %c0_i32_1 = arith.constant 0 : i32
    %7 = vector.broadcast %c0_i32_1 : i32 to vector<1x16xi32>
    %8 = arith.cmpi slt, %4, %7 : vector<1x16xi32>
    %c0_i32_2 = arith.constant 0 : i32
    %9 = arith.cmpi slt, %2, %c0_i32_2 : i32
    %10 = vector.broadcast %9 : i1 to vector<1x16xi1>
    %11 = vector.broadcast %10 : vector<1x16xi1> to vector<1x16xi1>
    %12 = arith.xori %8, %11 : vector<1x16xi1>
    %13 = arith.andi %12, %6 : vector<1x16xi1>
    %14 = vector.broadcast %2 : i32 to vector<1x16xi32>
    %15 = arith.addi %4, %14 : vector<1x16xi32>
    %16 = arith.select %13, %15, %4 : vector<1x16xi1>, vector<1x16xi32>
    %c0_i32_3 = arith.constant 0 : i32
    %17 = vector.broadcast %c0_i32_3 : i32 to vector<1x16xi32>
    %18 = arith.cmpi ne, %16, %17 : vector<1x16xi32>
    %c3_i32 = arith.constant 3 : i32
    %19 = vector.broadcast %c3_i32 : i32 to vector<1x16xi32>
    %20 = arith.cmpi ne, %16, %19 : vector<1x16xi32>
    %c0 = arith.constant 0 : index
    %c0_4 = arith.constant 0 : index
    %c0_5 = arith.constant 0 : index
    %21 = vector.load %arg1[%c0, %c0_4, %c0_5] : memref<1x16x16xbf16, #tpu.memory_space<vmem>>, vector<1x16x16xbf16>
    %22 = vector.shape_cast %21 : vector<1x16x16xbf16> to vector<16x16xbf16>
    %c0_6 = arith.constant 0 : index
    %c0_7 = arith.constant 0 : index
    %c0_8 = arith.constant 0 : index
    %23 = vector.load %arg2[%c0_6, %c0_7, %c0_8] : memref<1x16x16xbf16, #tpu.memory_space<vmem>>, vector<1x16x16xbf16>
    %24 = vector.shape_cast %23 : vector<1x16x16xbf16> to vector<16x16xbf16>
    %cst = arith.constant 0.000000e+00 : bf16
    %25 = vector.broadcast %cst : bf16 to vector<32x5xbf16>
    %c0_9 = arith.constant 0 : index
    %c0_10 = arith.constant 0 : index
    %26 = vector.load %arg8[%c0_9, %c0_10] : memref<32x26xbf16, #tpu.memory_space<vmem>>, vector<32x5xbf16>
    tpu.vector_store %arg8[%c0_9, %c0_10], %25 {strides = array<i32>} : memref<32x26xbf16, #tpu.memory_space<vmem>>, vector<32x5xbf16>,
    %c0_11 = arith.constant 0 : index
    %c21 = arith.constant 21 : index
    %27 = vector.load %arg8[%c0_11, %c21] : memref<32x26xbf16, #tpu.memory_space<vmem>>, vector<32x5xbf16>
    tpu.vector_store %arg8[%c0_11, %c21], %25 {strides = array<i32>} : memref<32x26xbf16, #tpu.memory_space<vmem>>, vector<32x5xbf16>,
    %c0_12 = arith.constant 0 : index
    %c5 = arith.constant 5 : index
    %28 = vector.load %arg8[%c0_12, %c5] : memref<32x26xbf16, #tpu.memory_space<vmem>>, vector<16x16xbf16>
    tpu.vector_store %arg8[%c0_12, %c5], %22 {strides = array<i32>} : memref<32x26xbf16, #tpu.memory_space<vmem>>, vector<16x16xbf16>,
    %c16 = arith.constant 16 : index
    %c5_13 = arith.constant 5 : index
    %29 = vector.load %arg8[%c16, %c5_13] : memref<32x26xbf16, #tpu.memory_space<vmem>>, vector<16x16xbf16>
    tpu.vector_store %arg8[%c16, %c5_13], %24 {strides = array<i32>} : memref<32x26xbf16, #tpu.memory_space<vmem>>, vector<16x16xbf16>,
    %c0_14 = arith.constant 0 : index
    %c0_15 = arith.constant 0 : index
    %30 = vector.load %arg8[%c0_14, %c0_15] : memref<32x26xbf16, #tpu.memory_space<vmem>>, vector<32x16xbf16>
    %cst_16 = arith.constant 0.000000e+00 : bf16
    %31 = vector.broadcast %cst_16 : bf16 to vector<32x16xbf16>
    %32 = vector.shape_cast %18 : vector<1x16xi1> to vector<1x16xi1>
    %33 = vector.broadcast %32 : vector<1x16xi1> to vector<32x16xi1>
    %34 = arith.select %33, %30, %31 : vector<32x16xi1>, vector<32x16xbf16>
    %c0_17 = arith.constant 0 : index
    %c0_18 = arith.constant 0 : index
    %35 = vector.load %arg10[%c0_17, %c0_18] : memref<288x16xbf16, #tpu.memory_space<vmem>>, vector<32x16xbf16>
    tpu.vector_store %arg10[%c0_17, %c0_18], %34 {strides = array<i32>} : memref<288x16xbf16, #tpu.memory_space<vmem>>, vector<32x16xbf16>,
    %c0_19 = arith.constant 0 : index
    %c1 = arith.constant 1 : index
    %36 = vector.load %arg8[%c0_19, %c1] : memref<32x26xbf16, #tpu.memory_space<vmem>>, vector<32x16xbf16>
    %c32 = arith.constant 32 : index
    %c0_20 = arith.constant 0 : index
    %37 = vector.load %arg10[%c32, %c0_20] : memref<288x16xbf16, #tpu.memory_space<vmem>>, vector<32x16xbf16>
    tpu.vector_store %arg10[%c32, %c0_20], %36 {strides = array<i32>} : memref<288x16xbf16, #tpu.memory_space<vmem>>, vector<32x16xbf16>,
    %c0_21 = arith.constant 0 : index
    %c2 = arith.constant 2 : index
    %38 = vector.load %arg8[%c0_21, %c2] : memref<32x26xbf16, #tpu.memory_space<vmem>>, vector<32x16xbf16>
    %cst_22 = arith.constant 0.000000e+00 : bf16
    %39 = vector.broadcast %cst_22 : bf16 to vector<32x16xbf16>
    %40 = vector.shape_cast %20 : vector<1x16xi1> to vector<1x16xi1>
    %41 = vector.broadcast %40 : vector<1x16xi1> to vector<32x16xi1>
    %42 = arith.select %41, %38, %39 : vector<32x16xi1>, vector<32x16xbf16>
    %c64 = arith.constant 64 : index
    %c0_23 = arith.constant 0 : index
    %43 = vector.load %arg10[%c64, %c0_23] : memref<288x16xbf16, #tpu.memory_space<vmem>>, vector<32x16xbf16>
    tpu.vector_store %arg10[%c64, %c0_23], %42 {strides = array<i32>} : memref<288x16xbf16, #tpu.memory_space<vmem>>, vector<32x16xbf16>,
    %c0_24 = arith.constant 0 : index
    %c4 = arith.constant 4 : index
    %44 = vector.load %arg8[%c0_24, %c4] : memref<32x26xbf16, #tpu.memory_space<vmem>>, vector<32x16xbf16>
    %cst_25 = arith.constant 0.000000e+00 : bf16
    %45 = vector.broadcast %cst_25 : bf16 to vector<32x16xbf16>
    %46 = vector.shape_cast %18 : vector<1x16xi1> to vector<1x16xi1>
    %47 = vector.broadcast %46 : vector<1x16xi1> to vector<32x16xi1>
    %48 = arith.select %47, %44, %45 : vector<32x16xi1>, vector<32x16xbf16>
    %c96 = arith.constant 96 : index
    %c0_26 = arith.constant 0 : index
    %49 = vector.load %arg10[%c96, %c0_26] : memref<288x16xbf16, #tpu.memory_space<vmem>>, vector<32x16xbf16>
    tpu.vector_store %arg10[%c96, %c0_26], %48 {strides = array<i32>} : memref<288x16xbf16, #tpu.memory_space<vmem>>, vector<32x16xbf16>,
    %c0_27 = arith.constant 0 : index
    %c5_28 = arith.constant 5 : index
    %50 = vector.load %arg8[%c0_27, %c5_28] : memref<32x26xbf16, #tpu.memory_space<vmem>>, vector<32x16xbf16>
    %c128 = arith.constant 128 : index
    %c0_29 = arith.constant 0 : index
    %51 = vector.load %arg10[%c128, %c0_29] : memref<288x16xbf16, #tpu.memory_space<vmem>>, vector<32x16xbf16>
    tpu.vector_store %arg10[%c128, %c0_29], %50 {strides = array<i32>} : memref<288x16xbf16, #tpu.memory_space<vmem>>, vector<32x16xbf16>,
    %c0_30 = arith.constant 0 : index
    %c6 = arith.constant 6 : index
    %52 = vector.load %arg8[%c0_30, %c6] : memref<32x26xbf16, #tpu.memory_space<vmem>>, vector<32x16xbf16>
    %cst_31 = arith.constant 0.000000e+00 : bf16
    %53 = vector.broadcast %cst_31 : bf16 to vector<32x16xbf16>
    %54 = vector.shape_cast %20 : vector<1x16xi1> to vector<1x16xi1>
    %55 = vector.broadcast %54 : vector<1x16xi1> to vector<32x16xi1>
    %56 = arith.select %55, %52, %53 : vector<32x16xi1>, vector<32x16xbf16>
    %c160 = arith.constant 160 : index
    %c0_32 = arith.constant 0 : index
    %57 = vector.load %arg10[%c160, %c0_32] : memref<288x16xbf16, #tpu.memory_space<vmem>>, vector<32x16xbf16>
    tpu.vector_store %arg10[%c160, %c0_32], %56 {strides = array<i32>} : memref<288x16xbf16, #tpu.memory_space<vmem>>, vector<32x16xbf16>,
    %c0_33 = arith.constant 0 : index
    %c8 = arith.constant 8 : index
    %58 = vector.load %arg8[%c0_33, %c8] : memref<32x26xbf16, #tpu.memory_space<vmem>>, vector<32x16xbf16>
    %cst_34 = arith.constant 0.000000e+00 : bf16
    %59 = vector.broadcast %cst_34 : bf16 to vector<32x16xbf16>
    %60 = vector.shape_cast %18 : vector<1x16xi1> to vector<1x16xi1>
    %61 = vector.broadcast %60 : vector<1x16xi1> to vector<32x16xi1>
    %62 = arith.select %61, %58, %59 : vector<32x16xi1>, vector<32x16xbf16>
    %c192 = arith.constant 192 : index
    %c0_35 = arith.constant 0 : index
    %63 = vector.load %arg10[%c192, %c0_35] : memref<288x16xbf16, #tpu.memory_space<vmem>>, vector<32x16xbf16>
    tpu.vector_store %arg10[%c192, %c0_35], %62 {strides = array<i32>} : memref<288x16xbf16, #tpu.memory_space<vmem>>, vector<32x16xbf16>,
    %c0_36 = arith.constant 0 : index
    %c9 = arith.constant 9 : index
    %64 = vector.load %arg8[%c0_36, %c9] : memref<32x26xbf16, #tpu.memory_space<vmem>>, vector<32x16xbf16>
    %c224 = arith.constant 224 : index
    %c0_37 = arith.constant 0 : index
    %65 = vector.load %arg10[%c224, %c0_37] : memref<288x16xbf16, #tpu.memory_space<vmem>>, vector<32x16xbf16>
    tpu.vector_store %arg10[%c224, %c0_37], %64 {strides = array<i32>} : memref<288x16xbf16, #tpu.memory_space<vmem>>, vector<32x16xbf16>,
    %c0_38 = arith.constant 0 : index
    %c10 = arith.constant 10 : index
    %66 = vector.load %arg8[%c0_38, %c10] : memref<32x26xbf16, #tpu.memory_space<vmem>>, vector<32x16xbf16>
    %cst_39 = arith.constant 0.000000e+00 : bf16
    %67 = vector.broadcast %cst_39 : bf16 to vector<32x16xbf16>
    %68 = vector.shape_cast %20 : vector<1x16xi1> to vector<1x16xi1>
    %69 = vector.broadcast %68 : vector<1x16xi1> to vector<32x16xi1>
    %70 = arith.select %69, %66, %67 : vector<32x16xi1>, vector<32x16xbf16>
    %c256 = arith.constant 256 : index
    %c0_40 = arith.constant 0 : index
    %71 = vector.load %arg10[%c256, %c0_40] : memref<288x16xbf16, #tpu.memory_space<vmem>>, vector<32x16xbf16>
    tpu.vector_store %arg10[%c256, %c0_40], %70 {strides = array<i32>} : memref<288x16xbf16, #tpu.memory_space<vmem>>, vector<32x16xbf16>,
    %c0_41 = arith.constant 0 : index
    %c0_42 = arith.constant 0 : index
    %72 = vector.load %arg3[%c0_41, %c0_42] : memref<16x288xbf16, #tpu.memory_space<vmem>>, vector<16x288xbf16>
    %c0_43 = arith.constant 0 : index
    %c0_44 = arith.constant 0 : index
    %73 = vector.load %arg10[%c0_43, %c0_44] : memref<288x16xbf16, #tpu.memory_space<vmem>>, vector<288x16xbf16>
    %cst_45 = arith.constant dense<0.000000e+00> : vector<16x16xf32>
    %74 = tpu.matmul %72, %73, %cst_45 {dimension_numbers = #tpu.dot_dimension_numbers<[1], [0], [0], [1], [0, 0, 1, 1], [], []>} : vector<16x288xbf16>, vector<288x16xbf16>, vector<16x16xf32> -> vector<16x16xf32>
    %c0_46 = arith.constant 0 : index
    %c0_47 = arith.constant 0 : index
    %75 = vector.load %arg4[%c0_46, %c0_47] : memref<16x1xf32, #tpu.memory_space<vmem>>, vector<16x1xf32>
    %76 = vector.broadcast %75 : vector<16x1xf32> to vector<16x16xf32>
    %77 = arith.addf %74, %76 : vector<16x16xf32>
    %cst_48 = arith.constant 0.000000e+00 : f32
    %78 = vector.broadcast %cst_48 : f32 to vector<16x16xf32>
    %79 = arith.maximumf %77, %78 : vector<16x16xf32>
    %cst_49 = arith.constant 0.000000e+00 : bf16
    %80 = vector.broadcast %cst_49 : bf16 to vector<16x5xbf16>
    %c0_50 = arith.constant 0 : index
    %c0_51 = arith.constant 0 : index
    %81 = vector.load %arg9[%c0_50, %c0_51] : memref<16x26xbf16, #tpu.memory_space<vmem>>, vector<16x5xbf16>
    tpu.vector_store %arg9[%c0_50, %c0_51], %80 {strides = array<i32>} : memref<16x26xbf16, #tpu.memory_space<vmem>>, vector<16x5xbf16>,
    %c0_52 = arith.constant 0 : index
    %c21_53 = arith.constant 21 : index
    %82 = vector.load %arg9[%c0_52, %c21_53] : memref<16x26xbf16, #tpu.memory_space<vmem>>, vector<16x5xbf16>
    tpu.vector_store %arg9[%c0_52, %c21_53], %80 {strides = array<i32>} : memref<16x26xbf16, #tpu.memory_space<vmem>>, vector<16x5xbf16>,
    %83 = arith.truncf %79 : vector<16x16xf32> to vector<16x16xbf16>
    %c0_54 = arith.constant 0 : index
    %c5_55 = arith.constant 5 : index
    %84 = vector.load %arg9[%c0_54, %c5_55] : memref<16x26xbf16, #tpu.memory_space<vmem>>, vector<16x16xbf16>
    tpu.vector_store %arg9[%c0_54, %c5_55], %83 {strides = array<i32>} : memref<16x26xbf16, #tpu.memory_space<vmem>>, vector<16x16xbf16>,
    %c0_56 = arith.constant 0 : index
    %c0_57 = arith.constant 0 : index
    %85 = vector.load %arg9[%c0_56, %c0_57] : memref<16x26xbf16, #tpu.memory_space<vmem>>, vector<16x16xbf16>
    %cst_58 = arith.constant 0.000000e+00 : bf16
    %86 = vector.broadcast %cst_58 : bf16 to vector<16x16xbf16>
    %87 = vector.shape_cast %18 : vector<1x16xi1> to vector<1x16xi1>
    %88 = vector.broadcast %87 : vector<1x16xi1> to vector<16x16xi1>
    %89 = arith.select %88, %85, %86 : vector<16x16xi1>, vector<16x16xbf16>
    %c0_59 = arith.constant 0 : index
    %c0_60 = arith.constant 0 : index
    %90 = vector.load %arg10[%c0_59, %c0_60] : memref<288x16xbf16, #tpu.memory_space<vmem>>, vector<16x16xbf16>
    tpu.vector_store %arg10[%c0_59, %c0_60], %89 {strides = array<i32>} : memref<288x16xbf16, #tpu.memory_space<vmem>>, vector<16x16xbf16>,
    %c0_61 = arith.constant 0 : index
    %c1_62 = arith.constant 1 : index
    %91 = vector.load %arg9[%c0_61, %c1_62] : memref<16x26xbf16, #tpu.memory_space<vmem>>, vector<16x16xbf16>
    %c16_63 = arith.constant 16 : index
    %c0_64 = arith.constant 0 : index
    %92 = vector.load %arg10[%c16_63, %c0_64] : memref<288x16xbf16, #tpu.memory_space<vmem>>, vector<16x16xbf16>
    tpu.vector_store %arg10[%c16_63, %c0_64], %91 {strides = array<i32>} : memref<288x16xbf16, #tpu.memory_space<vmem>>, vector<16x16xbf16>,
    %c0_65 = arith.constant 0 : index
    %c2_66 = arith.constant 2 : index
    %93 = vector.load %arg9[%c0_65, %c2_66] : memref<16x26xbf16, #tpu.memory_space<vmem>>, vector<16x16xbf16>
    %cst_67 = arith.constant 0.000000e+00 : bf16
    %94 = vector.broadcast %cst_67 : bf16 to vector<16x16xbf16>
    %95 = vector.shape_cast %20 : vector<1x16xi1> to vector<1x16xi1>
    %96 = vector.broadcast %95 : vector<1x16xi1> to vector<16x16xi1>
    %97 = arith.select %96, %93, %94 : vector<16x16xi1>, vector<16x16xbf16>
    %c32_68 = arith.constant 32 : index
    %c0_69 = arith.constant 0 : index
    %98 = vector.load %arg10[%c32_68, %c0_69] : memref<288x16xbf16, #tpu.memory_space<vmem>>, vector<16x16xbf16>
    tpu.vector_store %arg10[%c32_68, %c0_69], %97 {strides = array<i32>} : memref<288x16xbf16, #tpu.memory_space<vmem>>, vector<16x16xbf16>,
    %c0_70 = arith.constant 0 : index
    %c4_71 = arith.constant 4 : index
    %99 = vector.load %arg9[%c0_70, %c4_71] : memref<16x26xbf16, #tpu.memory_space<vmem>>, vector<16x16xbf16>
    %cst_72 = arith.constant 0.000000e+00 : bf16
    %100 = vector.broadcast %cst_72 : bf16 to vector<16x16xbf16>
    %101 = vector.shape_cast %18 : vector<1x16xi1> to vector<1x16xi1>
    %102 = vector.broadcast %101 : vector<1x16xi1> to vector<16x16xi1>
    %103 = arith.select %102, %99, %100 : vector<16x16xi1>, vector<16x16xbf16>
    %c48 = arith.constant 48 : index
    %c0_73 = arith.constant 0 : index
    %104 = vector.load %arg10[%c48, %c0_73] : memref<288x16xbf16, #tpu.memory_space<vmem>>, vector<16x16xbf16>
    tpu.vector_store %arg10[%c48, %c0_73], %103 {strides = array<i32>} : memref<288x16xbf16, #tpu.memory_space<vmem>>, vector<16x16xbf16>,
    %c0_74 = arith.constant 0 : index
    %c5_75 = arith.constant 5 : index
    %105 = vector.load %arg9[%c0_74, %c5_75] : memref<16x26xbf16, #tpu.memory_space<vmem>>, vector<16x16xbf16>
    %c64_76 = arith.constant 64 : index
    %c0_77 = arith.constant 0 : index
    %106 = vector.load %arg10[%c64_76, %c0_77] : memref<288x16xbf16, #tpu.memory_space<vmem>>, vector<16x16xbf16>
    tpu.vector_store %arg10[%c64_76, %c0_77], %105 {strides = array<i32>} : memref<288x16xbf16, #tpu.memory_space<vmem>>, vector<16x16xbf16>,
    %c0_78 = arith.constant 0 : index
    %c6_79 = arith.constant 6 : index
    %107 = vector.load %arg9[%c0_78, %c6_79] : memref<16x26xbf16, #tpu.memory_space<vmem>>, vector<16x16xbf16>
    %cst_80 = arith.constant 0.000000e+00 : bf16
    %108 = vector.broadcast %cst_80 : bf16 to vector<16x16xbf16>
    %109 = vector.shape_cast %20 : vector<1x16xi1> to vector<1x16xi1>
    %110 = vector.broadcast %109 : vector<1x16xi1> to vector<16x16xi1>
    %111 = arith.select %110, %107, %108 : vector<16x16xi1>, vector<16x16xbf16>
    %c80 = arith.constant 80 : index
    %c0_81 = arith.constant 0 : index
    %112 = vector.load %arg10[%c80, %c0_81] : memref<288x16xbf16, #tpu.memory_space<vmem>>, vector<16x16xbf16>
    tpu.vector_store %arg10[%c80, %c0_81], %111 {strides = array<i32>} : memref<288x16xbf16, #tpu.memory_space<vmem>>, vector<16x16xbf16>,
    %c0_82 = arith.constant 0 : index
    %c8_83 = arith.constant 8 : index
    %113 = vector.load %arg9[%c0_82, %c8_83] : memref<16x26xbf16, #tpu.memory_space<vmem>>, vector<16x16xbf16>
    %cst_84 = arith.constant 0.000000e+00 : bf16
    %114 = vector.broadcast %cst_84 : bf16 to vector<16x16xbf16>
    %115 = vector.shape_cast %18 : vector<1x16xi1> to vector<1x16xi1>
    %116 = vector.broadcast %115 : vector<1x16xi1> to vector<16x16xi1>
    %117 = arith.select %116, %113, %114 : vector<16x16xi1>, vector<16x16xbf16>
    %c96_85 = arith.constant 96 : index
    %c0_86 = arith.constant 0 : index
    %118 = vector.load %arg10[%c96_85, %c0_86] : memref<288x16xbf16, #tpu.memory_space<vmem>>, vector<16x16xbf16>
    tpu.vector_store %arg10[%c96_85, %c0_86], %117 {strides = array<i32>} : memref<288x16xbf16, #tpu.memory_space<vmem>>, vector<16x16xbf16>,
    %c0_87 = arith.constant 0 : index
    %c9_88 = arith.constant 9 : index
    %119 = vector.load %arg9[%c0_87, %c9_88] : memref<16x26xbf16, #tpu.memory_space<vmem>>, vector<16x16xbf16>
    %c112 = arith.constant 112 : index
    %c0_89 = arith.constant 0 : index
    %120 = vector.load %arg10[%c112, %c0_89] : memref<288x16xbf16, #tpu.memory_space<vmem>>, vector<16x16xbf16>
    tpu.vector_store %arg10[%c112, %c0_89], %119 {strides = array<i32>} : memref<288x16xbf16, #tpu.memory_space<vmem>>, vector<16x16xbf16>,
    %c0_90 = arith.constant 0 : index
    %c10_91 = arith.constant 10 : index
    %121 = vector.load %arg9[%c0_90, %c10_91] : memref<16x26xbf16, #tpu.memory_space<vmem>>, vector<16x16xbf16>
    %cst_92 = arith.constant 0.000000e+00 : bf16
    %122 = vector.broadcast %cst_92 : bf16 to vector<16x16xbf16>
    %123 = vector.shape_cast %20 : vector<1x16xi1> to vector<1x16xi1>
    %124 = vector.broadcast %123 : vector<1x16xi1> to vector<16x16xi1>
    %125 = arith.select %124, %121, %122 : vector<16x16xi1>, vector<16x16xbf16>
    %c128_93 = arith.constant 128 : index
    %c0_94 = arith.constant 0 : index
    %126 = vector.load %arg10[%c128_93, %c0_94] : memref<288x16xbf16, #tpu.memory_space<vmem>>, vector<16x16xbf16>
    tpu.vector_store %arg10[%c128_93, %c0_94], %125 {strides = array<i32>} : memref<288x16xbf16, #tpu.memory_space<vmem>>, vector<16x16xbf16>,
    %c0_95 = arith.constant 0 : index
    %c0_96 = arith.constant 0 : index
    %127 = vector.load %arg5[%c0_95, %c0_96] : memref<16x144xbf16, #tpu.memory_space<vmem>>, vector<16x144xbf16>
    %c0_97 = arith.constant 0 : index
    %c0_98 = arith.constant 0 : index
    %128 = vector.load %arg10[%c0_97, %c0_98] : memref<288x16xbf16, #tpu.memory_space<vmem>>, vector<144x16xbf16>
    %cst_99 = arith.constant dense<0.000000e+00> : vector<16x16xf32>
    %129 = tpu.matmul %127, %128, %cst_99 {dimension_numbers = #tpu.dot_dimension_numbers<[1], [0], [0], [1], [0, 0, 1, 1], [], []>} : vector<16x144xbf16>, vector<144x16xbf16>, vector<16x16xf32> -> vector<16x16xf32>
    %c0_100 = arith.constant 0 : index
    %c0_101 = arith.constant 0 : index
    %130 = vector.load %arg6[%c0_100, %c0_101] : memref<16x1xf32, #tpu.memory_space<vmem>>, vector<16x1xf32>
    %131 = vector.broadcast %130 : vector<16x1xf32> to vector<16x16xf32>
    %132 = arith.addf %129, %131 : vector<16x16xf32>
    %cst_102 = arith.constant 0.000000e+00 : f32
    %133 = vector.broadcast %cst_102 : f32 to vector<16x16xf32>
    %134 = arith.maximumf %132, %133 : vector<16x16xf32>
    %135 = arith.truncf %134 : vector<16x16xf32> to vector<16x16xbf16>
    %c0_103 = arith.constant 0 : index
    %c0_104 = arith.constant 0 : index
    %c0_105 = arith.constant 0 : index
    %136 = vector.load %arg7[%c0_103, %c0_104, %c0_105] : memref<1x16x16xbf16, #tpu.memory_space<vmem>>, vector<1x16x16xbf16>
    %137 = vector.shape_cast %136 : vector<1x16x16xbf16> to vector<16x16xbf16>
    %138 = vector.shape_cast %135 : vector<16x16xbf16> to vector<1x16x16xbf16>
    tpu.vector_store %arg7[%c0_103, %c0_104, %c0_105], %138 {strides = array<i32>} : memref<1x16x16xbf16, #tpu.memory_space<vmem>>, vector<1x16x16xbf16>,
    return
  }
  func.func @transform_0(%arg0: i32) -> (i32, i32, i32) {
    %c0_i32 = arith.constant 0 : i32
    %c0_i32_0 = arith.constant 0 : i32
    %c0_i32_1 = arith.constant 0 : i32
    return %arg0, %c0_i32, %c0_i32_0 : i32, i32, i32
  }
  func.func @transform_1(%arg0: i32) -> (i32, i32, i32) {
    %c0_i32 = arith.constant 0 : i32
    %c0_i32_0 = arith.constant 0 : i32
    %c0_i32_1 = arith.constant 0 : i32
    return %arg0, %c0_i32, %c0_i32_0 : i32, i32, i32
  }
  func.func @transform_2(%arg0: i32) -> (i32, i32) {
    %c0_i32 = arith.constant 0 : i32
    %c0_i32_0 = arith.constant 0 : i32
    %c0_i32_1 = arith.constant 0 : i32
    return %c0_i32, %c0_i32_0 : i32, i32
  }
  func.func @transform_3(%arg0: i32) -> (i32, i32) {
    %c0_i32 = arith.constant 0 : i32
    %c0_i32_0 = arith.constant 0 : i32
    %c0_i32_1 = arith.constant 0 : i32
    return %c0_i32, %c0_i32_0 : i32, i32
  }
  func.func @transform_4(%arg0: i32) -> (i32, i32) {
    %c0_i32 = arith.constant 0 : i32
    %c0_i32_0 = arith.constant 0 : i32
    %c0_i32_1 = arith.constant 0 : i32
    return %c0_i32, %c0_i32_0 : i32, i32
  }
  func.func @transform_5(%arg0: i32) -> (i32, i32) {
    %c0_i32 = arith.constant 0 : i32
    %c0_i32_0 = arith.constant 0 : i32
    %c0_i32_1 = arith.constant 0 : i32
    return %c0_i32, %c0_i32_0 : i32, i32
  }
  func.func @transform_6(%arg0: i32) -> (i32, i32, i32) {
    %c0_i32 = arith.constant 0 : i32
    %c0_i32_0 = arith.constant 0 : i32
    %c0_i32_1 = arith.constant 0 : i32
    return %arg0, %c0_i32, %c0_i32_0 : i32, i32, i32
  }
}

module attributes {stable_mosaic.version = 11 : i64} {
  func.func @_stage_kernel(%arg0: i32, %arg1: memref<1x16x64xbf16, #tpu.memory_space<vmem>>, %arg2: memref<1x16x64xbf16, #tpu.memory_space<vmem>>, %arg3: memref<8x288xbf16, #tpu.memory_space<vmem>>, %arg4: memref<8x1xf32, #tpu.memory_space<vmem>>, %arg5: memref<8x72xbf16, #tpu.memory_space<vmem>>, %arg6: memref<8x1xf32, #tpu.memory_space<vmem>>, %arg7: memref<1x8x64xbf16, #tpu.memory_space<vmem>>, %arg8: memref<32x82xbf16, #tpu.memory_space<vmem>>, %arg9: memref<8x82xbf16, #tpu.memory_space<vmem>>, %arg10: memref<288x64xbf16, #tpu.memory_space<vmem>>) attributes {dimension_semantics = [#tpu.dimension_semantics<parallel>], iteration_bounds = array<i64: 2>, scalar_prefetch = 0 : i64, scratch_operands = 3 : i64, tpu.core_type = #tpu.core_type<tc>, window_params = [{transform_indices = @transform_0, window_bounds = array<i64: 1, 16, 64>}, {transform_indices = @transform_1, window_bounds = array<i64: 1, 16, 64>}, {pipeline_mode = #tpu.pipeline_mode<synchronous>, transform_indices = @transform_2, window_bounds = array<i64: 8, 288>}, {pipeline_mode = #tpu.pipeline_mode<synchronous>, transform_indices = @transform_3, window_bounds = array<i64: 8, 1>}, {pipeline_mode = #tpu.pipeline_mode<synchronous>, transform_indices = @transform_4, window_bounds = array<i64: 8, 72>}, {pipeline_mode = #tpu.pipeline_mode<synchronous>, transform_indices = @transform_5, window_bounds = array<i64: 8, 1>}, {transform_indices = @transform_6, window_bounds = array<i64: 1, 8, 64>}]} {
    %0 = tpu.iota {dimensions = array<i32: 1>} : vector<1x64xi32>
    %c8_i32 = arith.constant 8 : i32
    %c0_i32 = arith.constant 0 : i32
    %1 = arith.cmpi eq, %c8_i32, %c0_i32 : i32
    %c1_i32 = arith.constant 1 : i32
    %2 = arith.select %1, %c1_i32, %c8_i32 : i32
    %3 = vector.broadcast %2 : i32 to vector<1x64xi32>
    %4 = arith.remsi %0, %3 : vector<1x64xi32>
    %c0_i32_0 = arith.constant 0 : i32
    %5 = vector.broadcast %c0_i32_0 : i32 to vector<1x64xi32>
    %6 = arith.cmpi ne, %4, %5 : vector<1x64xi32>
    %c0_i32_1 = arith.constant 0 : i32
    %7 = vector.broadcast %c0_i32_1 : i32 to vector<1x64xi32>
    %8 = arith.cmpi slt, %4, %7 : vector<1x64xi32>
    %c0_i32_2 = arith.constant 0 : i32
    %9 = arith.cmpi slt, %2, %c0_i32_2 : i32
    %10 = vector.broadcast %9 : i1 to vector<1x64xi1>
    %11 = vector.broadcast %10 : vector<1x64xi1> to vector<1x64xi1>
    %12 = arith.xori %8, %11 : vector<1x64xi1>
    %13 = arith.andi %12, %6 : vector<1x64xi1>
    %14 = vector.broadcast %2 : i32 to vector<1x64xi32>
    %15 = arith.addi %4, %14 : vector<1x64xi32>
    %16 = arith.select %13, %15, %4 : vector<1x64xi1>, vector<1x64xi32>
    %c0_i32_3 = arith.constant 0 : i32
    %17 = vector.broadcast %c0_i32_3 : i32 to vector<1x64xi32>
    %18 = arith.cmpi ne, %16, %17 : vector<1x64xi32>
    %c7_i32 = arith.constant 7 : i32
    %19 = vector.broadcast %c7_i32 : i32 to vector<1x64xi32>
    %20 = arith.cmpi ne, %16, %19 : vector<1x64xi32>
    %c0 = arith.constant 0 : index
    %c0_4 = arith.constant 0 : index
    %c0_5 = arith.constant 0 : index
    %21 = vector.load %arg1[%c0, %c0_4, %c0_5] : memref<1x16x64xbf16, #tpu.memory_space<vmem>>, vector<1x16x64xbf16>
    %22 = vector.shape_cast %21 : vector<1x16x64xbf16> to vector<16x64xbf16>
    %c0_6 = arith.constant 0 : index
    %c0_7 = arith.constant 0 : index
    %c0_8 = arith.constant 0 : index
    %23 = vector.load %arg2[%c0_6, %c0_7, %c0_8] : memref<1x16x64xbf16, #tpu.memory_space<vmem>>, vector<1x16x64xbf16>
    %24 = vector.shape_cast %23 : vector<1x16x64xbf16> to vector<16x64xbf16>
    %cst = arith.constant 0.000000e+00 : bf16
    %25 = vector.broadcast %cst : bf16 to vector<32x9xbf16>
    %c0_9 = arith.constant 0 : index
    %c0_10 = arith.constant 0 : index
    %26 = vector.load %arg8[%c0_9, %c0_10] : memref<32x82xbf16, #tpu.memory_space<vmem>>, vector<32x9xbf16>
    tpu.vector_store %arg8[%c0_9, %c0_10], %25 {strides = array<i32>} : memref<32x82xbf16, #tpu.memory_space<vmem>>, vector<32x9xbf16>,
    %c0_11 = arith.constant 0 : index
    %c73 = arith.constant 73 : index
    %27 = vector.load %arg8[%c0_11, %c73] : memref<32x82xbf16, #tpu.memory_space<vmem>>, vector<32x9xbf16>
    tpu.vector_store %arg8[%c0_11, %c73], %25 {strides = array<i32>} : memref<32x82xbf16, #tpu.memory_space<vmem>>, vector<32x9xbf16>,
    %c0_12 = arith.constant 0 : index
    %c9 = arith.constant 9 : index
    %28 = vector.load %arg8[%c0_12, %c9] : memref<32x82xbf16, #tpu.memory_space<vmem>>, vector<16x64xbf16>
    tpu.vector_store %arg8[%c0_12, %c9], %22 {strides = array<i32>} : memref<32x82xbf16, #tpu.memory_space<vmem>>, vector<16x64xbf16>,
    %c16 = arith.constant 16 : index
    %c9_13 = arith.constant 9 : index
    %29 = vector.load %arg8[%c16, %c9_13] : memref<32x82xbf16, #tpu.memory_space<vmem>>, vector<16x64xbf16>
    tpu.vector_store %arg8[%c16, %c9_13], %24 {strides = array<i32>} : memref<32x82xbf16, #tpu.memory_space<vmem>>, vector<16x64xbf16>,
    %c0_14 = arith.constant 0 : index
    %c0_15 = arith.constant 0 : index
    %30 = vector.load %arg8[%c0_14, %c0_15] : memref<32x82xbf16, #tpu.memory_space<vmem>>, vector<32x64xbf16>
    %cst_16 = arith.constant 0.000000e+00 : bf16
    %31 = vector.broadcast %cst_16 : bf16 to vector<32x64xbf16>
    %32 = vector.shape_cast %18 : vector<1x64xi1> to vector<1x64xi1>
    %33 = vector.broadcast %32 : vector<1x64xi1> to vector<32x64xi1>
    %34 = arith.select %33, %30, %31 : vector<32x64xi1>, vector<32x64xbf16>
    %c0_17 = arith.constant 0 : index
    %c0_18 = arith.constant 0 : index
    %35 = vector.load %arg10[%c0_17, %c0_18] : memref<288x64xbf16, #tpu.memory_space<vmem>>, vector<32x64xbf16>
    tpu.vector_store %arg10[%c0_17, %c0_18], %34 {strides = array<i32>} : memref<288x64xbf16, #tpu.memory_space<vmem>>, vector<32x64xbf16>,
    %c0_19 = arith.constant 0 : index
    %c1 = arith.constant 1 : index
    %36 = vector.load %arg8[%c0_19, %c1] : memref<32x82xbf16, #tpu.memory_space<vmem>>, vector<32x64xbf16>
    %c32 = arith.constant 32 : index
    %c0_20 = arith.constant 0 : index
    %37 = vector.load %arg10[%c32, %c0_20] : memref<288x64xbf16, #tpu.memory_space<vmem>>, vector<32x64xbf16>
    tpu.vector_store %arg10[%c32, %c0_20], %36 {strides = array<i32>} : memref<288x64xbf16, #tpu.memory_space<vmem>>, vector<32x64xbf16>,
    %c0_21 = arith.constant 0 : index
    %c2 = arith.constant 2 : index
    %38 = vector.load %arg8[%c0_21, %c2] : memref<32x82xbf16, #tpu.memory_space<vmem>>, vector<32x64xbf16>
    %cst_22 = arith.constant 0.000000e+00 : bf16
    %39 = vector.broadcast %cst_22 : bf16 to vector<32x64xbf16>
    %40 = vector.shape_cast %20 : vector<1x64xi1> to vector<1x64xi1>
    %41 = vector.broadcast %40 : vector<1x64xi1> to vector<32x64xi1>
    %42 = arith.select %41, %38, %39 : vector<32x64xi1>, vector<32x64xbf16>
    %c64 = arith.constant 64 : index
    %c0_23 = arith.constant 0 : index
    %43 = vector.load %arg10[%c64, %c0_23] : memref<288x64xbf16, #tpu.memory_space<vmem>>, vector<32x64xbf16>
    tpu.vector_store %arg10[%c64, %c0_23], %42 {strides = array<i32>} : memref<288x64xbf16, #tpu.memory_space<vmem>>, vector<32x64xbf16>,
    %c0_24 = arith.constant 0 : index
    %c8 = arith.constant 8 : index
    %44 = vector.load %arg8[%c0_24, %c8] : memref<32x82xbf16, #tpu.memory_space<vmem>>, vector<32x64xbf16>
    %cst_25 = arith.constant 0.000000e+00 : bf16
    %45 = vector.broadcast %cst_25 : bf16 to vector<32x64xbf16>
    %46 = vector.shape_cast %18 : vector<1x64xi1> to vector<1x64xi1>
    %47 = vector.broadcast %46 : vector<1x64xi1> to vector<32x64xi1>
    %48 = arith.select %47, %44, %45 : vector<32x64xi1>, vector<32x64xbf16>
    %c96 = arith.constant 96 : index
    %c0_26 = arith.constant 0 : index
    %49 = vector.load %arg10[%c96, %c0_26] : memref<288x64xbf16, #tpu.memory_space<vmem>>, vector<32x64xbf16>
    tpu.vector_store %arg10[%c96, %c0_26], %48 {strides = array<i32>} : memref<288x64xbf16, #tpu.memory_space<vmem>>, vector<32x64xbf16>,
    %c0_27 = arith.constant 0 : index
    %c9_28 = arith.constant 9 : index
    %50 = vector.load %arg8[%c0_27, %c9_28] : memref<32x82xbf16, #tpu.memory_space<vmem>>, vector<32x64xbf16>
    %c128 = arith.constant 128 : index
    %c0_29 = arith.constant 0 : index
    %51 = vector.load %arg10[%c128, %c0_29] : memref<288x64xbf16, #tpu.memory_space<vmem>>, vector<32x64xbf16>
    tpu.vector_store %arg10[%c128, %c0_29], %50 {strides = array<i32>} : memref<288x64xbf16, #tpu.memory_space<vmem>>, vector<32x64xbf16>,
    %c0_30 = arith.constant 0 : index
    %c10 = arith.constant 10 : index
    %52 = vector.load %arg8[%c0_30, %c10] : memref<32x82xbf16, #tpu.memory_space<vmem>>, vector<32x64xbf16>
    %cst_31 = arith.constant 0.000000e+00 : bf16
    %53 = vector.broadcast %cst_31 : bf16 to vector<32x64xbf16>
    %54 = vector.shape_cast %20 : vector<1x64xi1> to vector<1x64xi1>
    %55 = vector.broadcast %54 : vector<1x64xi1> to vector<32x64xi1>
    %56 = arith.select %55, %52, %53 : vector<32x64xi1>, vector<32x64xbf16>
    %c160 = arith.constant 160 : index
    %c0_32 = arith.constant 0 : index
    %57 = vector.load %arg10[%c160, %c0_32] : memref<288x64xbf16, #tpu.memory_space<vmem>>, vector<32x64xbf16>
    tpu.vector_store %arg10[%c160, %c0_32], %56 {strides = array<i32>} : memref<288x64xbf16, #tpu.memory_space<vmem>>, vector<32x64xbf16>,
    %c0_33 = arith.constant 0 : index
    %c16_34 = arith.constant 16 : index
    %58 = vector.load %arg8[%c0_33, %c16_34] : memref<32x82xbf16, #tpu.memory_space<vmem>>, vector<32x64xbf16>
    %cst_35 = arith.constant 0.000000e+00 : bf16
    %59 = vector.broadcast %cst_35 : bf16 to vector<32x64xbf16>
    %60 = vector.shape_cast %18 : vector<1x64xi1> to vector<1x64xi1>
    %61 = vector.broadcast %60 : vector<1x64xi1> to vector<32x64xi1>
    %62 = arith.select %61, %58, %59 : vector<32x64xi1>, vector<32x64xbf16>
    %c192 = arith.constant 192 : index
    %c0_36 = arith.constant 0 : index
    %63 = vector.load %arg10[%c192, %c0_36] : memref<288x64xbf16, #tpu.memory_space<vmem>>, vector<32x64xbf16>
    tpu.vector_store %arg10[%c192, %c0_36], %62 {strides = array<i32>} : memref<288x64xbf16, #tpu.memory_space<vmem>>, vector<32x64xbf16>,
    %c0_37 = arith.constant 0 : index
    %c17 = arith.constant 17 : index
    %64 = vector.load %arg8[%c0_37, %c17] : memref<32x82xbf16, #tpu.memory_space<vmem>>, vector<32x64xbf16>
    %c224 = arith.constant 224 : index
    %c0_38 = arith.constant 0 : index
    %65 = vector.load %arg10[%c224, %c0_38] : memref<288x64xbf16, #tpu.memory_space<vmem>>, vector<32x64xbf16>
    tpu.vector_store %arg10[%c224, %c0_38], %64 {strides = array<i32>} : memref<288x64xbf16, #tpu.memory_space<vmem>>, vector<32x64xbf16>,
    %c0_39 = arith.constant 0 : index
    %c18 = arith.constant 18 : index
    %66 = vector.load %arg8[%c0_39, %c18] : memref<32x82xbf16, #tpu.memory_space<vmem>>, vector<32x64xbf16>
    %cst_40 = arith.constant 0.000000e+00 : bf16
    %67 = vector.broadcast %cst_40 : bf16 to vector<32x64xbf16>
    %68 = vector.shape_cast %20 : vector<1x64xi1> to vector<1x64xi1>
    %69 = vector.broadcast %68 : vector<1x64xi1> to vector<32x64xi1>
    %70 = arith.select %69, %66, %67 : vector<32x64xi1>, vector<32x64xbf16>
    %c256 = arith.constant 256 : index
    %c0_41 = arith.constant 0 : index
    %71 = vector.load %arg10[%c256, %c0_41] : memref<288x64xbf16, #tpu.memory_space<vmem>>, vector<32x64xbf16>
    tpu.vector_store %arg10[%c256, %c0_41], %70 {strides = array<i32>} : memref<288x64xbf16, #tpu.memory_space<vmem>>, vector<32x64xbf16>,
    %c0_42 = arith.constant 0 : index
    %c0_43 = arith.constant 0 : index
    %72 = vector.load %arg3[%c0_42, %c0_43] : memref<8x288xbf16, #tpu.memory_space<vmem>>, vector<8x288xbf16>
    %c0_44 = arith.constant 0 : index
    %c0_45 = arith.constant 0 : index
    %73 = vector.load %arg10[%c0_44, %c0_45] : memref<288x64xbf16, #tpu.memory_space<vmem>>, vector<288x64xbf16>
    %cst_46 = arith.constant dense<0.000000e+00> : vector<8x64xf32>
    %74 = tpu.matmul %72, %73, %cst_46 {dimension_numbers = #tpu.dot_dimension_numbers<[1], [0], [0], [1], [0, 0, 1, 1], [], []>} : vector<8x288xbf16>, vector<288x64xbf16>, vector<8x64xf32> -> vector<8x64xf32>
    %c0_47 = arith.constant 0 : index
    %c0_48 = arith.constant 0 : index
    %75 = vector.load %arg4[%c0_47, %c0_48] : memref<8x1xf32, #tpu.memory_space<vmem>>, vector<8x1xf32>
    %76 = vector.broadcast %75 : vector<8x1xf32> to vector<8x64xf32>
    %77 = arith.addf %74, %76 : vector<8x64xf32>
    %cst_49 = arith.constant 0.000000e+00 : f32
    %78 = vector.broadcast %cst_49 : f32 to vector<8x64xf32>
    %79 = arith.maximumf %77, %78 : vector<8x64xf32>
    %cst_50 = arith.constant 0.000000e+00 : bf16
    %80 = vector.broadcast %cst_50 : bf16 to vector<8x9xbf16>
    %c0_51 = arith.constant 0 : index
    %c0_52 = arith.constant 0 : index
    %81 = vector.load %arg9[%c0_51, %c0_52] : memref<8x82xbf16, #tpu.memory_space<vmem>>, vector<8x9xbf16>
    tpu.vector_store %arg9[%c0_51, %c0_52], %80 {strides = array<i32>} : memref<8x82xbf16, #tpu.memory_space<vmem>>, vector<8x9xbf16>,
    %c0_53 = arith.constant 0 : index
    %c73_54 = arith.constant 73 : index
    %82 = vector.load %arg9[%c0_53, %c73_54] : memref<8x82xbf16, #tpu.memory_space<vmem>>, vector<8x9xbf16>
    tpu.vector_store %arg9[%c0_53, %c73_54], %80 {strides = array<i32>} : memref<8x82xbf16, #tpu.memory_space<vmem>>, vector<8x9xbf16>,
    %83 = arith.truncf %79 : vector<8x64xf32> to vector<8x64xbf16>
    %c0_55 = arith.constant 0 : index
    %c9_56 = arith.constant 9 : index
    %84 = vector.load %arg9[%c0_55, %c9_56] : memref<8x82xbf16, #tpu.memory_space<vmem>>, vector<8x64xbf16>
    tpu.vector_store %arg9[%c0_55, %c9_56], %83 {strides = array<i32>} : memref<8x82xbf16, #tpu.memory_space<vmem>>, vector<8x64xbf16>,
    %c0_57 = arith.constant 0 : index
    %c0_58 = arith.constant 0 : index
    %85 = vector.load %arg9[%c0_57, %c0_58] : memref<8x82xbf16, #tpu.memory_space<vmem>>, vector<8x64xbf16>
    %cst_59 = arith.constant 0.000000e+00 : bf16
    %86 = vector.broadcast %cst_59 : bf16 to vector<8x64xbf16>
    %87 = vector.shape_cast %18 : vector<1x64xi1> to vector<1x64xi1>
    %88 = vector.broadcast %87 : vector<1x64xi1> to vector<8x64xi1>
    %89 = arith.select %88, %85, %86 : vector<8x64xi1>, vector<8x64xbf16>
    %c0_60 = arith.constant 0 : index
    %c0_61 = arith.constant 0 : index
    %90 = vector.load %arg10[%c0_60, %c0_61] : memref<288x64xbf16, #tpu.memory_space<vmem>>, vector<8x64xbf16>
    tpu.vector_store %arg10[%c0_60, %c0_61], %89 {strides = array<i32>} : memref<288x64xbf16, #tpu.memory_space<vmem>>, vector<8x64xbf16>,
    %c0_62 = arith.constant 0 : index
    %c1_63 = arith.constant 1 : index
    %91 = vector.load %arg9[%c0_62, %c1_63] : memref<8x82xbf16, #tpu.memory_space<vmem>>, vector<8x64xbf16>
    %c8_64 = arith.constant 8 : index
    %c0_65 = arith.constant 0 : index
    %92 = vector.load %arg10[%c8_64, %c0_65] : memref<288x64xbf16, #tpu.memory_space<vmem>>, vector<8x64xbf16>
    tpu.vector_store %arg10[%c8_64, %c0_65], %91 {strides = array<i32>} : memref<288x64xbf16, #tpu.memory_space<vmem>>, vector<8x64xbf16>,
    %c0_66 = arith.constant 0 : index
    %c2_67 = arith.constant 2 : index
    %93 = vector.load %arg9[%c0_66, %c2_67] : memref<8x82xbf16, #tpu.memory_space<vmem>>, vector<8x64xbf16>
    %cst_68 = arith.constant 0.000000e+00 : bf16
    %94 = vector.broadcast %cst_68 : bf16 to vector<8x64xbf16>
    %95 = vector.shape_cast %20 : vector<1x64xi1> to vector<1x64xi1>
    %96 = vector.broadcast %95 : vector<1x64xi1> to vector<8x64xi1>
    %97 = arith.select %96, %93, %94 : vector<8x64xi1>, vector<8x64xbf16>
    %c16_69 = arith.constant 16 : index
    %c0_70 = arith.constant 0 : index
    %98 = vector.load %arg10[%c16_69, %c0_70] : memref<288x64xbf16, #tpu.memory_space<vmem>>, vector<8x64xbf16>
    tpu.vector_store %arg10[%c16_69, %c0_70], %97 {strides = array<i32>} : memref<288x64xbf16, #tpu.memory_space<vmem>>, vector<8x64xbf16>,
    %c0_71 = arith.constant 0 : index
    %c8_72 = arith.constant 8 : index
    %99 = vector.load %arg9[%c0_71, %c8_72] : memref<8x82xbf16, #tpu.memory_space<vmem>>, vector<8x64xbf16>
    %cst_73 = arith.constant 0.000000e+00 : bf16
    %100 = vector.broadcast %cst_73 : bf16 to vector<8x64xbf16>
    %101 = vector.shape_cast %18 : vector<1x64xi1> to vector<1x64xi1>
    %102 = vector.broadcast %101 : vector<1x64xi1> to vector<8x64xi1>
    %103 = arith.select %102, %99, %100 : vector<8x64xi1>, vector<8x64xbf16>
    %c24 = arith.constant 24 : index
    %c0_74 = arith.constant 0 : index
    %104 = vector.load %arg10[%c24, %c0_74] : memref<288x64xbf16, #tpu.memory_space<vmem>>, vector<8x64xbf16>
    tpu.vector_store %arg10[%c24, %c0_74], %103 {strides = array<i32>} : memref<288x64xbf16, #tpu.memory_space<vmem>>, vector<8x64xbf16>,
    %c0_75 = arith.constant 0 : index
    %c9_76 = arith.constant 9 : index
    %105 = vector.load %arg9[%c0_75, %c9_76] : memref<8x82xbf16, #tpu.memory_space<vmem>>, vector<8x64xbf16>
    %c32_77 = arith.constant 32 : index
    %c0_78 = arith.constant 0 : index
    %106 = vector.load %arg10[%c32_77, %c0_78] : memref<288x64xbf16, #tpu.memory_space<vmem>>, vector<8x64xbf16>
    tpu.vector_store %arg10[%c32_77, %c0_78], %105 {strides = array<i32>} : memref<288x64xbf16, #tpu.memory_space<vmem>>, vector<8x64xbf16>,
    %c0_79 = arith.constant 0 : index
    %c10_80 = arith.constant 10 : index
    %107 = vector.load %arg9[%c0_79, %c10_80] : memref<8x82xbf16, #tpu.memory_space<vmem>>, vector<8x64xbf16>
    %cst_81 = arith.constant 0.000000e+00 : bf16
    %108 = vector.broadcast %cst_81 : bf16 to vector<8x64xbf16>
    %109 = vector.shape_cast %20 : vector<1x64xi1> to vector<1x64xi1>
    %110 = vector.broadcast %109 : vector<1x64xi1> to vector<8x64xi1>
    %111 = arith.select %110, %107, %108 : vector<8x64xi1>, vector<8x64xbf16>
    %c40 = arith.constant 40 : index
    %c0_82 = arith.constant 0 : index
    %112 = vector.load %arg10[%c40, %c0_82] : memref<288x64xbf16, #tpu.memory_space<vmem>>, vector<8x64xbf16>
    tpu.vector_store %arg10[%c40, %c0_82], %111 {strides = array<i32>} : memref<288x64xbf16, #tpu.memory_space<vmem>>, vector<8x64xbf16>,
    %c0_83 = arith.constant 0 : index
    %c16_84 = arith.constant 16 : index
    %113 = vector.load %arg9[%c0_83, %c16_84] : memref<8x82xbf16, #tpu.memory_space<vmem>>, vector<8x64xbf16>
    %cst_85 = arith.constant 0.000000e+00 : bf16
    %114 = vector.broadcast %cst_85 : bf16 to vector<8x64xbf16>
    %115 = vector.shape_cast %18 : vector<1x64xi1> to vector<1x64xi1>
    %116 = vector.broadcast %115 : vector<1x64xi1> to vector<8x64xi1>
    %117 = arith.select %116, %113, %114 : vector<8x64xi1>, vector<8x64xbf16>
    %c48 = arith.constant 48 : index
    %c0_86 = arith.constant 0 : index
    %118 = vector.load %arg10[%c48, %c0_86] : memref<288x64xbf16, #tpu.memory_space<vmem>>, vector<8x64xbf16>
    tpu.vector_store %arg10[%c48, %c0_86], %117 {strides = array<i32>} : memref<288x64xbf16, #tpu.memory_space<vmem>>, vector<8x64xbf16>,
    %c0_87 = arith.constant 0 : index
    %c17_88 = arith.constant 17 : index
    %119 = vector.load %arg9[%c0_87, %c17_88] : memref<8x82xbf16, #tpu.memory_space<vmem>>, vector<8x64xbf16>
    %c56 = arith.constant 56 : index
    %c0_89 = arith.constant 0 : index
    %120 = vector.load %arg10[%c56, %c0_89] : memref<288x64xbf16, #tpu.memory_space<vmem>>, vector<8x64xbf16>
    tpu.vector_store %arg10[%c56, %c0_89], %119 {strides = array<i32>} : memref<288x64xbf16, #tpu.memory_space<vmem>>, vector<8x64xbf16>,
    %c0_90 = arith.constant 0 : index
    %c18_91 = arith.constant 18 : index
    %121 = vector.load %arg9[%c0_90, %c18_91] : memref<8x82xbf16, #tpu.memory_space<vmem>>, vector<8x64xbf16>
    %cst_92 = arith.constant 0.000000e+00 : bf16
    %122 = vector.broadcast %cst_92 : bf16 to vector<8x64xbf16>
    %123 = vector.shape_cast %20 : vector<1x64xi1> to vector<1x64xi1>
    %124 = vector.broadcast %123 : vector<1x64xi1> to vector<8x64xi1>
    %125 = arith.select %124, %121, %122 : vector<8x64xi1>, vector<8x64xbf16>
    %c64_93 = arith.constant 64 : index
    %c0_94 = arith.constant 0 : index
    %126 = vector.load %arg10[%c64_93, %c0_94] : memref<288x64xbf16, #tpu.memory_space<vmem>>, vector<8x64xbf16>
    tpu.vector_store %arg10[%c64_93, %c0_94], %125 {strides = array<i32>} : memref<288x64xbf16, #tpu.memory_space<vmem>>, vector<8x64xbf16>,
    %c0_95 = arith.constant 0 : index
    %c0_96 = arith.constant 0 : index
    %127 = vector.load %arg5[%c0_95, %c0_96] : memref<8x72xbf16, #tpu.memory_space<vmem>>, vector<8x72xbf16>
    %c0_97 = arith.constant 0 : index
    %c0_98 = arith.constant 0 : index
    %128 = vector.load %arg10[%c0_97, %c0_98] : memref<288x64xbf16, #tpu.memory_space<vmem>>, vector<72x64xbf16>
    %cst_99 = arith.constant dense<0.000000e+00> : vector<8x64xf32>
    %129 = tpu.matmul %127, %128, %cst_99 {dimension_numbers = #tpu.dot_dimension_numbers<[1], [0], [0], [1], [0, 0, 1, 1], [], []>} : vector<8x72xbf16>, vector<72x64xbf16>, vector<8x64xf32> -> vector<8x64xf32>
    %c0_100 = arith.constant 0 : index
    %c0_101 = arith.constant 0 : index
    %130 = vector.load %arg6[%c0_100, %c0_101] : memref<8x1xf32, #tpu.memory_space<vmem>>, vector<8x1xf32>
    %131 = vector.broadcast %130 : vector<8x1xf32> to vector<8x64xf32>
    %132 = arith.addf %129, %131 : vector<8x64xf32>
    %cst_102 = arith.constant 0.000000e+00 : f32
    %133 = vector.broadcast %cst_102 : f32 to vector<8x64xf32>
    %134 = arith.maximumf %132, %133 : vector<8x64xf32>
    %135 = arith.truncf %134 : vector<8x64xf32> to vector<8x64xbf16>
    %c0_103 = arith.constant 0 : index
    %c0_104 = arith.constant 0 : index
    %c0_105 = arith.constant 0 : index
    %136 = vector.load %arg7[%c0_103, %c0_104, %c0_105] : memref<1x8x64xbf16, #tpu.memory_space<vmem>>, vector<1x8x64xbf16>
    %137 = vector.shape_cast %136 : vector<1x8x64xbf16> to vector<8x64xbf16>
    %138 = vector.shape_cast %135 : vector<8x64xbf16> to vector<1x8x64xbf16>
    tpu.vector_store %arg7[%c0_103, %c0_104, %c0_105], %138 {strides = array<i32>} : memref<1x8x64xbf16, #tpu.memory_space<vmem>>, vector<1x8x64xbf16>,
    return
  }
  func.func @transform_0(%arg0: i32) -> (i32, i32, i32) {
    %c0_i32 = arith.constant 0 : i32
    %c0_i32_0 = arith.constant 0 : i32
    %c0_i32_1 = arith.constant 0 : i32
    return %arg0, %c0_i32, %c0_i32_0 : i32, i32, i32
  }
  func.func @transform_1(%arg0: i32) -> (i32, i32, i32) {
    %c0_i32 = arith.constant 0 : i32
    %c0_i32_0 = arith.constant 0 : i32
    %c0_i32_1 = arith.constant 0 : i32
    return %arg0, %c0_i32, %c0_i32_0 : i32, i32, i32
  }
  func.func @transform_2(%arg0: i32) -> (i32, i32) {
    %c0_i32 = arith.constant 0 : i32
    %c0_i32_0 = arith.constant 0 : i32
    %c0_i32_1 = arith.constant 0 : i32
    return %c0_i32, %c0_i32_0 : i32, i32
  }
  func.func @transform_3(%arg0: i32) -> (i32, i32) {
    %c0_i32 = arith.constant 0 : i32
    %c0_i32_0 = arith.constant 0 : i32
    %c0_i32_1 = arith.constant 0 : i32
    return %c0_i32, %c0_i32_0 : i32, i32
  }
  func.func @transform_4(%arg0: i32) -> (i32, i32) {
    %c0_i32 = arith.constant 0 : i32
    %c0_i32_0 = arith.constant 0 : i32
    %c0_i32_1 = arith.constant 0 : i32
    return %c0_i32, %c0_i32_0 : i32, i32
  }
  func.func @transform_5(%arg0: i32) -> (i32, i32) {
    %c0_i32 = arith.constant 0 : i32
    %c0_i32_0 = arith.constant 0 : i32
    %c0_i32_1 = arith.constant 0 : i32
    return %c0_i32, %c0_i32_0 : i32, i32
  }
  func.func @transform_6(%arg0: i32) -> (i32, i32, i32) {
    %c0_i32 = arith.constant 0 : i32
    %c0_i32_0 = arith.constant 0 : i32
    %c0_i32_1 = arith.constant 0 : i32
    return %arg0, %c0_i32, %c0_i32_0 : i32, i32, i32
  }
}

module attributes {stable_mosaic.version = 11 : i64} {
  func.func @_stage_kernel(%arg0: i32, %arg1: memref<1x8x256xbf16, #tpu.memory_space<vmem>>, %arg2: memref<1x16x256xbf16, #tpu.memory_space<vmem>>, %arg3: memref<8x216xbf16, #tpu.memory_space<vmem>>, %arg4: memref<8x1xf32, #tpu.memory_space<vmem>>, %arg5: memref<8x72xbf16, #tpu.memory_space<vmem>>, %arg6: memref<8x1xf32, #tpu.memory_space<vmem>>, %arg7: memref<1x8x256xbf16, #tpu.memory_space<vmem>>, %arg8: memref<24x290xbf16, #tpu.memory_space<vmem>>, %arg9: memref<8x290xbf16, #tpu.memory_space<vmem>>, %arg10: memref<216x256xbf16, #tpu.memory_space<vmem>>) attributes {dimension_semantics = [#tpu.dimension_semantics<parallel>], iteration_bounds = array<i64: 2>, scalar_prefetch = 0 : i64, scratch_operands = 3 : i64, tpu.core_type = #tpu.core_type<tc>, window_params = [{transform_indices = @transform_0, window_bounds = array<i64: 1, 8, 256>}, {transform_indices = @transform_1, window_bounds = array<i64: 1, 16, 256>}, {pipeline_mode = #tpu.pipeline_mode<synchronous>, transform_indices = @transform_2, window_bounds = array<i64: 8, 216>}, {pipeline_mode = #tpu.pipeline_mode<synchronous>, transform_indices = @transform_3, window_bounds = array<i64: 8, 1>}, {pipeline_mode = #tpu.pipeline_mode<synchronous>, transform_indices = @transform_4, window_bounds = array<i64: 8, 72>}, {pipeline_mode = #tpu.pipeline_mode<synchronous>, transform_indices = @transform_5, window_bounds = array<i64: 8, 1>}, {transform_indices = @transform_6, window_bounds = array<i64: 1, 8, 256>}]} {
    %0 = tpu.iota {dimensions = array<i32: 1>} : vector<1x256xi32>
    %c16_i32 = arith.constant 16 : i32
    %c0_i32 = arith.constant 0 : i32
    %1 = arith.cmpi eq, %c16_i32, %c0_i32 : i32
    %c1_i32 = arith.constant 1 : i32
    %2 = arith.select %1, %c1_i32, %c16_i32 : i32
    %3 = vector.broadcast %2 : i32 to vector<1x256xi32>
    %4 = arith.remsi %0, %3 : vector<1x256xi32>
    %c0_i32_0 = arith.constant 0 : i32
    %5 = vector.broadcast %c0_i32_0 : i32 to vector<1x256xi32>
    %6 = arith.cmpi ne, %4, %5 : vector<1x256xi32>
    %c0_i32_1 = arith.constant 0 : i32
    %7 = vector.broadcast %c0_i32_1 : i32 to vector<1x256xi32>
    %8 = arith.cmpi slt, %4, %7 : vector<1x256xi32>
    %c0_i32_2 = arith.constant 0 : i32
    %9 = arith.cmpi slt, %2, %c0_i32_2 : i32
    %10 = vector.broadcast %9 : i1 to vector<1x256xi1>
    %11 = vector.broadcast %10 : vector<1x256xi1> to vector<1x256xi1>
    %12 = arith.xori %8, %11 : vector<1x256xi1>
    %13 = arith.andi %12, %6 : vector<1x256xi1>
    %14 = vector.broadcast %2 : i32 to vector<1x256xi32>
    %15 = arith.addi %4, %14 : vector<1x256xi32>
    %16 = arith.select %13, %15, %4 : vector<1x256xi1>, vector<1x256xi32>
    %c0_i32_3 = arith.constant 0 : i32
    %17 = vector.broadcast %c0_i32_3 : i32 to vector<1x256xi32>
    %18 = arith.cmpi ne, %16, %17 : vector<1x256xi32>
    %c15_i32 = arith.constant 15 : i32
    %19 = vector.broadcast %c15_i32 : i32 to vector<1x256xi32>
    %20 = arith.cmpi ne, %16, %19 : vector<1x256xi32>
    %c0 = arith.constant 0 : index
    %c0_4 = arith.constant 0 : index
    %c0_5 = arith.constant 0 : index
    %21 = vector.load %arg1[%c0, %c0_4, %c0_5] : memref<1x8x256xbf16, #tpu.memory_space<vmem>>, vector<1x8x256xbf16>
    %22 = vector.shape_cast %21 : vector<1x8x256xbf16> to vector<8x256xbf16>
    %c0_6 = arith.constant 0 : index
    %c0_7 = arith.constant 0 : index
    %c0_8 = arith.constant 0 : index
    %23 = vector.load %arg2[%c0_6, %c0_7, %c0_8] : memref<1x16x256xbf16, #tpu.memory_space<vmem>>, vector<1x16x256xbf16>
    %24 = vector.shape_cast %23 : vector<1x16x256xbf16> to vector<16x256xbf16>
    %cst = arith.constant 0.000000e+00 : bf16
    %25 = vector.broadcast %cst : bf16 to vector<24x17xbf16>
    %c0_9 = arith.constant 0 : index
    %c0_10 = arith.constant 0 : index
    %26 = vector.load %arg8[%c0_9, %c0_10] : memref<24x290xbf16, #tpu.memory_space<vmem>>, vector<24x17xbf16>
    tpu.vector_store %arg8[%c0_9, %c0_10], %25 {strides = array<i32>} : memref<24x290xbf16, #tpu.memory_space<vmem>>, vector<24x17xbf16>,
    %c0_11 = arith.constant 0 : index
    %c273 = arith.constant 273 : index
    %27 = vector.load %arg8[%c0_11, %c273] : memref<24x290xbf16, #tpu.memory_space<vmem>>, vector<24x17xbf16>
    tpu.vector_store %arg8[%c0_11, %c273], %25 {strides = array<i32>} : memref<24x290xbf16, #tpu.memory_space<vmem>>, vector<24x17xbf16>,
    %c0_12 = arith.constant 0 : index
    %c17 = arith.constant 17 : index
    %28 = vector.load %arg8[%c0_12, %c17] : memref<24x290xbf16, #tpu.memory_space<vmem>>, vector<8x256xbf16>
    tpu.vector_store %arg8[%c0_12, %c17], %22 {strides = array<i32>} : memref<24x290xbf16, #tpu.memory_space<vmem>>, vector<8x256xbf16>,
    %c8 = arith.constant 8 : index
    %c17_13 = arith.constant 17 : index
    %29 = vector.load %arg8[%c8, %c17_13] : memref<24x290xbf16, #tpu.memory_space<vmem>>, vector<16x256xbf16>
    tpu.vector_store %arg8[%c8, %c17_13], %24 {strides = array<i32>} : memref<24x290xbf16, #tpu.memory_space<vmem>>, vector<16x256xbf16>,
    %c0_14 = arith.constant 0 : index
    %c0_15 = arith.constant 0 : index
    %30 = vector.load %arg8[%c0_14, %c0_15] : memref<24x290xbf16, #tpu.memory_space<vmem>>, vector<24x256xbf16>
    %cst_16 = arith.constant 0.000000e+00 : bf16
    %31 = vector.broadcast %cst_16 : bf16 to vector<24x256xbf16>
    %32 = vector.shape_cast %18 : vector<1x256xi1> to vector<1x256xi1>
    %33 = vector.broadcast %32 : vector<1x256xi1> to vector<24x256xi1>
    %34 = arith.select %33, %30, %31 : vector<24x256xi1>, vector<24x256xbf16>
    %c0_17 = arith.constant 0 : index
    %c0_18 = arith.constant 0 : index
    %35 = vector.load %arg10[%c0_17, %c0_18] : memref<216x256xbf16, #tpu.memory_space<vmem>>, vector<24x256xbf16>
    tpu.vector_store %arg10[%c0_17, %c0_18], %34 {strides = array<i32>} : memref<216x256xbf16, #tpu.memory_space<vmem>>, vector<24x256xbf16>,
    %c0_19 = arith.constant 0 : index
    %c1 = arith.constant 1 : index
    %36 = vector.load %arg8[%c0_19, %c1] : memref<24x290xbf16, #tpu.memory_space<vmem>>, vector<24x256xbf16>
    %c24 = arith.constant 24 : index
    %c0_20 = arith.constant 0 : index
    %37 = vector.load %arg10[%c24, %c0_20] : memref<216x256xbf16, #tpu.memory_space<vmem>>, vector<24x256xbf16>
    tpu.vector_store %arg10[%c24, %c0_20], %36 {strides = array<i32>} : memref<216x256xbf16, #tpu.memory_space<vmem>>, vector<24x256xbf16>,
    %c0_21 = arith.constant 0 : index
    %c2 = arith.constant 2 : index
    %38 = vector.load %arg8[%c0_21, %c2] : memref<24x290xbf16, #tpu.memory_space<vmem>>, vector<24x256xbf16>
    %cst_22 = arith.constant 0.000000e+00 : bf16
    %39 = vector.broadcast %cst_22 : bf16 to vector<24x256xbf16>
    %40 = vector.shape_cast %20 : vector<1x256xi1> to vector<1x256xi1>
    %41 = vector.broadcast %40 : vector<1x256xi1> to vector<24x256xi1>
    %42 = arith.select %41, %38, %39 : vector<24x256xi1>, vector<24x256xbf16>
    %c48 = arith.constant 48 : index
    %c0_23 = arith.constant 0 : index
    %43 = vector.load %arg10[%c48, %c0_23] : memref<216x256xbf16, #tpu.memory_space<vmem>>, vector<24x256xbf16>
    tpu.vector_store %arg10[%c48, %c0_23], %42 {strides = array<i32>} : memref<216x256xbf16, #tpu.memory_space<vmem>>, vector<24x256xbf16>,
    %c0_24 = arith.constant 0 : index
    %c16 = arith.constant 16 : index
    %44 = vector.load %arg8[%c0_24, %c16] : memref<24x290xbf16, #tpu.memory_space<vmem>>, vector<24x256xbf16>
    %cst_25 = arith.constant 0.000000e+00 : bf16
    %45 = vector.broadcast %cst_25 : bf16 to vector<24x256xbf16>
    %46 = vector.shape_cast %18 : vector<1x256xi1> to vector<1x256xi1>
    %47 = vector.broadcast %46 : vector<1x256xi1> to vector<24x256xi1>
    %48 = arith.select %47, %44, %45 : vector<24x256xi1>, vector<24x256xbf16>
    %c72 = arith.constant 72 : index
    %c0_26 = arith.constant 0 : index
    %49 = vector.load %arg10[%c72, %c0_26] : memref<216x256xbf16, #tpu.memory_space<vmem>>, vector<24x256xbf16>
    tpu.vector_store %arg10[%c72, %c0_26], %48 {strides = array<i32>} : memref<216x256xbf16, #tpu.memory_space<vmem>>, vector<24x256xbf16>,
    %c0_27 = arith.constant 0 : index
    %c17_28 = arith.constant 17 : index
    %50 = vector.load %arg8[%c0_27, %c17_28] : memref<24x290xbf16, #tpu.memory_space<vmem>>, vector<24x256xbf16>
    %c96 = arith.constant 96 : index
    %c0_29 = arith.constant 0 : index
    %51 = vector.load %arg10[%c96, %c0_29] : memref<216x256xbf16, #tpu.memory_space<vmem>>, vector<24x256xbf16>
    tpu.vector_store %arg10[%c96, %c0_29], %50 {strides = array<i32>} : memref<216x256xbf16, #tpu.memory_space<vmem>>, vector<24x256xbf16>,
    %c0_30 = arith.constant 0 : index
    %c18 = arith.constant 18 : index
    %52 = vector.load %arg8[%c0_30, %c18] : memref<24x290xbf16, #tpu.memory_space<vmem>>, vector<24x256xbf16>
    %cst_31 = arith.constant 0.000000e+00 : bf16
    %53 = vector.broadcast %cst_31 : bf16 to vector<24x256xbf16>
    %54 = vector.shape_cast %20 : vector<1x256xi1> to vector<1x256xi1>
    %55 = vector.broadcast %54 : vector<1x256xi1> to vector<24x256xi1>
    %56 = arith.select %55, %52, %53 : vector<24x256xi1>, vector<24x256xbf16>
    %c120 = arith.constant 120 : index
    %c0_32 = arith.constant 0 : index
    %57 = vector.load %arg10[%c120, %c0_32] : memref<216x256xbf16, #tpu.memory_space<vmem>>, vector<24x256xbf16>
    tpu.vector_store %arg10[%c120, %c0_32], %56 {strides = array<i32>} : memref<216x256xbf16, #tpu.memory_space<vmem>>, vector<24x256xbf16>,
    %c0_33 = arith.constant 0 : index
    %c32 = arith.constant 32 : index
    %58 = vector.load %arg8[%c0_33, %c32] : memref<24x290xbf16, #tpu.memory_space<vmem>>, vector<24x256xbf16>
    %cst_34 = arith.constant 0.000000e+00 : bf16
    %59 = vector.broadcast %cst_34 : bf16 to vector<24x256xbf16>
    %60 = vector.shape_cast %18 : vector<1x256xi1> to vector<1x256xi1>
    %61 = vector.broadcast %60 : vector<1x256xi1> to vector<24x256xi1>
    %62 = arith.select %61, %58, %59 : vector<24x256xi1>, vector<24x256xbf16>
    %c144 = arith.constant 144 : index
    %c0_35 = arith.constant 0 : index
    %63 = vector.load %arg10[%c144, %c0_35] : memref<216x256xbf16, #tpu.memory_space<vmem>>, vector<24x256xbf16>
    tpu.vector_store %arg10[%c144, %c0_35], %62 {strides = array<i32>} : memref<216x256xbf16, #tpu.memory_space<vmem>>, vector<24x256xbf16>,
    %c0_36 = arith.constant 0 : index
    %c33 = arith.constant 33 : index
    %64 = vector.load %arg8[%c0_36, %c33] : memref<24x290xbf16, #tpu.memory_space<vmem>>, vector<24x256xbf16>
    %c168 = arith.constant 168 : index
    %c0_37 = arith.constant 0 : index
    %65 = vector.load %arg10[%c168, %c0_37] : memref<216x256xbf16, #tpu.memory_space<vmem>>, vector<24x256xbf16>
    tpu.vector_store %arg10[%c168, %c0_37], %64 {strides = array<i32>} : memref<216x256xbf16, #tpu.memory_space<vmem>>, vector<24x256xbf16>,
    %c0_38 = arith.constant 0 : index
    %c34 = arith.constant 34 : index
    %66 = vector.load %arg8[%c0_38, %c34] : memref<24x290xbf16, #tpu.memory_space<vmem>>, vector<24x256xbf16>
    %cst_39 = arith.constant 0.000000e+00 : bf16
    %67 = vector.broadcast %cst_39 : bf16 to vector<24x256xbf16>
    %68 = vector.shape_cast %20 : vector<1x256xi1> to vector<1x256xi1>
    %69 = vector.broadcast %68 : vector<1x256xi1> to vector<24x256xi1>
    %70 = arith.select %69, %66, %67 : vector<24x256xi1>, vector<24x256xbf16>
    %c192 = arith.constant 192 : index
    %c0_40 = arith.constant 0 : index
    %71 = vector.load %arg10[%c192, %c0_40] : memref<216x256xbf16, #tpu.memory_space<vmem>>, vector<24x256xbf16>
    tpu.vector_store %arg10[%c192, %c0_40], %70 {strides = array<i32>} : memref<216x256xbf16, #tpu.memory_space<vmem>>, vector<24x256xbf16>,
    %c0_41 = arith.constant 0 : index
    %c0_42 = arith.constant 0 : index
    %72 = vector.load %arg3[%c0_41, %c0_42] : memref<8x216xbf16, #tpu.memory_space<vmem>>, vector<8x216xbf16>
    %c0_43 = arith.constant 0 : index
    %c0_44 = arith.constant 0 : index
    %73 = vector.load %arg10[%c0_43, %c0_44] : memref<216x256xbf16, #tpu.memory_space<vmem>>, vector<216x256xbf16>
    %cst_45 = arith.constant dense<0.000000e+00> : vector<8x256xf32>
    %74 = tpu.matmul %72, %73, %cst_45 {dimension_numbers = #tpu.dot_dimension_numbers<[1], [0], [0], [1], [0, 0, 1, 1], [], []>} : vector<8x216xbf16>, vector<216x256xbf16>, vector<8x256xf32> -> vector<8x256xf32>
    %c0_46 = arith.constant 0 : index
    %c0_47 = arith.constant 0 : index
    %75 = vector.load %arg4[%c0_46, %c0_47] : memref<8x1xf32, #tpu.memory_space<vmem>>, vector<8x1xf32>
    %76 = vector.broadcast %75 : vector<8x1xf32> to vector<8x256xf32>
    %77 = arith.addf %74, %76 : vector<8x256xf32>
    %cst_48 = arith.constant 0.000000e+00 : f32
    %78 = vector.broadcast %cst_48 : f32 to vector<8x256xf32>
    %79 = arith.maximumf %77, %78 : vector<8x256xf32>
    %cst_49 = arith.constant 0.000000e+00 : bf16
    %80 = vector.broadcast %cst_49 : bf16 to vector<8x17xbf16>
    %c0_50 = arith.constant 0 : index
    %c0_51 = arith.constant 0 : index
    %81 = vector.load %arg9[%c0_50, %c0_51] : memref<8x290xbf16, #tpu.memory_space<vmem>>, vector<8x17xbf16>
    tpu.vector_store %arg9[%c0_50, %c0_51], %80 {strides = array<i32>} : memref<8x290xbf16, #tpu.memory_space<vmem>>, vector<8x17xbf16>,
    %c0_52 = arith.constant 0 : index
    %c273_53 = arith.constant 273 : index
    %82 = vector.load %arg9[%c0_52, %c273_53] : memref<8x290xbf16, #tpu.memory_space<vmem>>, vector<8x17xbf16>
    tpu.vector_store %arg9[%c0_52, %c273_53], %80 {strides = array<i32>} : memref<8x290xbf16, #tpu.memory_space<vmem>>, vector<8x17xbf16>,
    %83 = arith.truncf %79 : vector<8x256xf32> to vector<8x256xbf16>
    %c0_54 = arith.constant 0 : index
    %c17_55 = arith.constant 17 : index
    %84 = vector.load %arg9[%c0_54, %c17_55] : memref<8x290xbf16, #tpu.memory_space<vmem>>, vector<8x256xbf16>
    tpu.vector_store %arg9[%c0_54, %c17_55], %83 {strides = array<i32>} : memref<8x290xbf16, #tpu.memory_space<vmem>>, vector<8x256xbf16>,
    %c0_56 = arith.constant 0 : index
    %c0_57 = arith.constant 0 : index
    %85 = vector.load %arg9[%c0_56, %c0_57] : memref<8x290xbf16, #tpu.memory_space<vmem>>, vector<8x256xbf16>
    %cst_58 = arith.constant 0.000000e+00 : bf16
    %86 = vector.broadcast %cst_58 : bf16 to vector<8x256xbf16>
    %87 = vector.shape_cast %18 : vector<1x256xi1> to vector<1x256xi1>
    %88 = vector.broadcast %87 : vector<1x256xi1> to vector<8x256xi1>
    %89 = arith.select %88, %85, %86 : vector<8x256xi1>, vector<8x256xbf16>
    %c0_59 = arith.constant 0 : index
    %c0_60 = arith.constant 0 : index
    %90 = vector.load %arg10[%c0_59, %c0_60] : memref<216x256xbf16, #tpu.memory_space<vmem>>, vector<8x256xbf16>
    tpu.vector_store %arg10[%c0_59, %c0_60], %89 {strides = array<i32>} : memref<216x256xbf16, #tpu.memory_space<vmem>>, vector<8x256xbf16>,
    %c0_61 = arith.constant 0 : index
    %c1_62 = arith.constant 1 : index
    %91 = vector.load %arg9[%c0_61, %c1_62] : memref<8x290xbf16, #tpu.memory_space<vmem>>, vector<8x256xbf16>
    %c8_63 = arith.constant 8 : index
    %c0_64 = arith.constant 0 : index
    %92 = vector.load %arg10[%c8_63, %c0_64] : memref<216x256xbf16, #tpu.memory_space<vmem>>, vector<8x256xbf16>
    tpu.vector_store %arg10[%c8_63, %c0_64], %91 {strides = array<i32>} : memref<216x256xbf16, #tpu.memory_space<vmem>>, vector<8x256xbf16>,
    %c0_65 = arith.constant 0 : index
    %c2_66 = arith.constant 2 : index
    %93 = vector.load %arg9[%c0_65, %c2_66] : memref<8x290xbf16, #tpu.memory_space<vmem>>, vector<8x256xbf16>
    %cst_67 = arith.constant 0.000000e+00 : bf16
    %94 = vector.broadcast %cst_67 : bf16 to vector<8x256xbf16>
    %95 = vector.shape_cast %20 : vector<1x256xi1> to vector<1x256xi1>
    %96 = vector.broadcast %95 : vector<1x256xi1> to vector<8x256xi1>
    %97 = arith.select %96, %93, %94 : vector<8x256xi1>, vector<8x256xbf16>
    %c16_68 = arith.constant 16 : index
    %c0_69 = arith.constant 0 : index
    %98 = vector.load %arg10[%c16_68, %c0_69] : memref<216x256xbf16, #tpu.memory_space<vmem>>, vector<8x256xbf16>
    tpu.vector_store %arg10[%c16_68, %c0_69], %97 {strides = array<i32>} : memref<216x256xbf16, #tpu.memory_space<vmem>>, vector<8x256xbf16>,
    %c0_70 = arith.constant 0 : index
    %c16_71 = arith.constant 16 : index
    %99 = vector.load %arg9[%c0_70, %c16_71] : memref<8x290xbf16, #tpu.memory_space<vmem>>, vector<8x256xbf16>
    %cst_72 = arith.constant 0.000000e+00 : bf16
    %100 = vector.broadcast %cst_72 : bf16 to vector<8x256xbf16>
    %101 = vector.shape_cast %18 : vector<1x256xi1> to vector<1x256xi1>
    %102 = vector.broadcast %101 : vector<1x256xi1> to vector<8x256xi1>
    %103 = arith.select %102, %99, %100 : vector<8x256xi1>, vector<8x256xbf16>
    %c24_73 = arith.constant 24 : index
    %c0_74 = arith.constant 0 : index
    %104 = vector.load %arg10[%c24_73, %c0_74] : memref<216x256xbf16, #tpu.memory_space<vmem>>, vector<8x256xbf16>
    tpu.vector_store %arg10[%c24_73, %c0_74], %103 {strides = array<i32>} : memref<216x256xbf16, #tpu.memory_space<vmem>>, vector<8x256xbf16>,
    %c0_75 = arith.constant 0 : index
    %c17_76 = arith.constant 17 : index
    %105 = vector.load %arg9[%c0_75, %c17_76] : memref<8x290xbf16, #tpu.memory_space<vmem>>, vector<8x256xbf16>
    %c32_77 = arith.constant 32 : index
    %c0_78 = arith.constant 0 : index
    %106 = vector.load %arg10[%c32_77, %c0_78] : memref<216x256xbf16, #tpu.memory_space<vmem>>, vector<8x256xbf16>
    tpu.vector_store %arg10[%c32_77, %c0_78], %105 {strides = array<i32>} : memref<216x256xbf16, #tpu.memory_space<vmem>>, vector<8x256xbf16>,
    %c0_79 = arith.constant 0 : index
    %c18_80 = arith.constant 18 : index
    %107 = vector.load %arg9[%c0_79, %c18_80] : memref<8x290xbf16, #tpu.memory_space<vmem>>, vector<8x256xbf16>
    %cst_81 = arith.constant 0.000000e+00 : bf16
    %108 = vector.broadcast %cst_81 : bf16 to vector<8x256xbf16>
    %109 = vector.shape_cast %20 : vector<1x256xi1> to vector<1x256xi1>
    %110 = vector.broadcast %109 : vector<1x256xi1> to vector<8x256xi1>
    %111 = arith.select %110, %107, %108 : vector<8x256xi1>, vector<8x256xbf16>
    %c40 = arith.constant 40 : index
    %c0_82 = arith.constant 0 : index
    %112 = vector.load %arg10[%c40, %c0_82] : memref<216x256xbf16, #tpu.memory_space<vmem>>, vector<8x256xbf16>
    tpu.vector_store %arg10[%c40, %c0_82], %111 {strides = array<i32>} : memref<216x256xbf16, #tpu.memory_space<vmem>>, vector<8x256xbf16>,
    %c0_83 = arith.constant 0 : index
    %c32_84 = arith.constant 32 : index
    %113 = vector.load %arg9[%c0_83, %c32_84] : memref<8x290xbf16, #tpu.memory_space<vmem>>, vector<8x256xbf16>
    %cst_85 = arith.constant 0.000000e+00 : bf16
    %114 = vector.broadcast %cst_85 : bf16 to vector<8x256xbf16>
    %115 = vector.shape_cast %18 : vector<1x256xi1> to vector<1x256xi1>
    %116 = vector.broadcast %115 : vector<1x256xi1> to vector<8x256xi1>
    %117 = arith.select %116, %113, %114 : vector<8x256xi1>, vector<8x256xbf16>
    %c48_86 = arith.constant 48 : index
    %c0_87 = arith.constant 0 : index
    %118 = vector.load %arg10[%c48_86, %c0_87] : memref<216x256xbf16, #tpu.memory_space<vmem>>, vector<8x256xbf16>
    tpu.vector_store %arg10[%c48_86, %c0_87], %117 {strides = array<i32>} : memref<216x256xbf16, #tpu.memory_space<vmem>>, vector<8x256xbf16>,
    %c0_88 = arith.constant 0 : index
    %c33_89 = arith.constant 33 : index
    %119 = vector.load %arg9[%c0_88, %c33_89] : memref<8x290xbf16, #tpu.memory_space<vmem>>, vector<8x256xbf16>
    %c56 = arith.constant 56 : index
    %c0_90 = arith.constant 0 : index
    %120 = vector.load %arg10[%c56, %c0_90] : memref<216x256xbf16, #tpu.memory_space<vmem>>, vector<8x256xbf16>
    tpu.vector_store %arg10[%c56, %c0_90], %119 {strides = array<i32>} : memref<216x256xbf16, #tpu.memory_space<vmem>>, vector<8x256xbf16>,
    %c0_91 = arith.constant 0 : index
    %c34_92 = arith.constant 34 : index
    %121 = vector.load %arg9[%c0_91, %c34_92] : memref<8x290xbf16, #tpu.memory_space<vmem>>, vector<8x256xbf16>
    %cst_93 = arith.constant 0.000000e+00 : bf16
    %122 = vector.broadcast %cst_93 : bf16 to vector<8x256xbf16>
    %123 = vector.shape_cast %20 : vector<1x256xi1> to vector<1x256xi1>
    %124 = vector.broadcast %123 : vector<1x256xi1> to vector<8x256xi1>
    %125 = arith.select %124, %121, %122 : vector<8x256xi1>, vector<8x256xbf16>
    %c64 = arith.constant 64 : index
    %c0_94 = arith.constant 0 : index
    %126 = vector.load %arg10[%c64, %c0_94] : memref<216x256xbf16, #tpu.memory_space<vmem>>, vector<8x256xbf16>
    tpu.vector_store %arg10[%c64, %c0_94], %125 {strides = array<i32>} : memref<216x256xbf16, #tpu.memory_space<vmem>>, vector<8x256xbf16>,
    %c0_95 = arith.constant 0 : index
    %c0_96 = arith.constant 0 : index
    %127 = vector.load %arg5[%c0_95, %c0_96] : memref<8x72xbf16, #tpu.memory_space<vmem>>, vector<8x72xbf16>
    %c0_97 = arith.constant 0 : index
    %c0_98 = arith.constant 0 : index
    %128 = vector.load %arg10[%c0_97, %c0_98] : memref<216x256xbf16, #tpu.memory_space<vmem>>, vector<72x256xbf16>
    %cst_99 = arith.constant dense<0.000000e+00> : vector<8x256xf32>
    %129 = tpu.matmul %127, %128, %cst_99 {dimension_numbers = #tpu.dot_dimension_numbers<[1], [0], [0], [1], [0, 0, 1, 1], [], []>} : vector<8x72xbf16>, vector<72x256xbf16>, vector<8x256xf32> -> vector<8x256xf32>
    %c0_100 = arith.constant 0 : index
    %c0_101 = arith.constant 0 : index
    %130 = vector.load %arg6[%c0_100, %c0_101] : memref<8x1xf32, #tpu.memory_space<vmem>>, vector<8x1xf32>
    %131 = vector.broadcast %130 : vector<8x1xf32> to vector<8x256xf32>
    %132 = arith.addf %129, %131 : vector<8x256xf32>
    %cst_102 = arith.constant 0.000000e+00 : f32
    %133 = vector.broadcast %cst_102 : f32 to vector<8x256xf32>
    %134 = arith.maximumf %132, %133 : vector<8x256xf32>
    %135 = arith.truncf %134 : vector<8x256xf32> to vector<8x256xbf16>
    %c0_103 = arith.constant 0 : index
    %c0_104 = arith.constant 0 : index
    %c0_105 = arith.constant 0 : index
    %136 = vector.load %arg7[%c0_103, %c0_104, %c0_105] : memref<1x8x256xbf16, #tpu.memory_space<vmem>>, vector<1x8x256xbf16>
    %137 = vector.shape_cast %136 : vector<1x8x256xbf16> to vector<8x256xbf16>
    %138 = vector.shape_cast %135 : vector<8x256xbf16> to vector<1x8x256xbf16>
    tpu.vector_store %arg7[%c0_103, %c0_104, %c0_105], %138 {strides = array<i32>} : memref<1x8x256xbf16, #tpu.memory_space<vmem>>, vector<1x8x256xbf16>,
    return
  }
  func.func @transform_0(%arg0: i32) -> (i32, i32, i32) {
    %c0_i32 = arith.constant 0 : i32
    %c0_i32_0 = arith.constant 0 : i32
    %c0_i32_1 = arith.constant 0 : i32
    return %arg0, %c0_i32, %c0_i32_0 : i32, i32, i32
  }
  func.func @transform_1(%arg0: i32) -> (i32, i32, i32) {
    %c0_i32 = arith.constant 0 : i32
    %c0_i32_0 = arith.constant 0 : i32
    %c0_i32_1 = arith.constant 0 : i32
    return %arg0, %c0_i32, %c0_i32_0 : i32, i32, i32
  }
  func.func @transform_2(%arg0: i32) -> (i32, i32) {
    %c0_i32 = arith.constant 0 : i32
    %c0_i32_0 = arith.constant 0 : i32
    %c0_i32_1 = arith.constant 0 : i32
    return %c0_i32, %c0_i32_0 : i32, i32
  }
  func.func @transform_3(%arg0: i32) -> (i32, i32) {
    %c0_i32 = arith.constant 0 : i32
    %c0_i32_0 = arith.constant 0 : i32
    %c0_i32_1 = arith.constant 0 : i32
    return %c0_i32, %c0_i32_0 : i32, i32
  }
  func.func @transform_4(%arg0: i32) -> (i32, i32) {
    %c0_i32 = arith.constant 0 : i32
    %c0_i32_0 = arith.constant 0 : i32
    %c0_i32_1 = arith.constant 0 : i32
    return %c0_i32, %c0_i32_0 : i32, i32
  }
  func.func @transform_5(%arg0: i32) -> (i32, i32) {
    %c0_i32 = arith.constant 0 : i32
    %c0_i32_0 = arith.constant 0 : i32
    %c0_i32_1 = arith.constant 0 : i32
    return %c0_i32, %c0_i32_0 : i32, i32
  }
  func.func @transform_6(%arg0: i32) -> (i32, i32, i32) {
    %c0_i32 = arith.constant 0 : i32
    %c0_i32_0 = arith.constant 0 : i32
    %c0_i32_1 = arith.constant 0 : i32
    return %arg0, %c0_i32, %c0_i32_0 : i32, i32, i32
  }
}

module attributes {stable_mosaic.version = 11 : i64} {
  func.func @_stage_kernel(%arg0: i32, %arg1: memref<1x8x1024xbf16, #tpu.memory_space<vmem>>, %arg2: memref<1x8x1024xbf16, #tpu.memory_space<vmem>>, %arg3: memref<8x144xbf16, #tpu.memory_space<vmem>>, %arg4: memref<8x1xf32, #tpu.memory_space<vmem>>, %arg5: memref<8x72xbf16, #tpu.memory_space<vmem>>, %arg6: memref<8x1xf32, #tpu.memory_space<vmem>>, %arg7: memref<1x8x1024xbf16, #tpu.memory_space<vmem>>, %arg8: memref<16x1090xbf16, #tpu.memory_space<vmem>>, %arg9: memref<8x1090xbf16, #tpu.memory_space<vmem>>, %arg10: memref<144x1024xbf16, #tpu.memory_space<vmem>>) attributes {dimension_semantics = [#tpu.dimension_semantics<parallel>], iteration_bounds = array<i64: 2>, scalar_prefetch = 0 : i64, scratch_operands = 3 : i64, tpu.core_type = #tpu.core_type<tc>, window_params = [{transform_indices = @transform_0, window_bounds = array<i64: 1, 8, 1024>}, {transform_indices = @transform_1, window_bounds = array<i64: 1, 8, 1024>}, {pipeline_mode = #tpu.pipeline_mode<synchronous>, transform_indices = @transform_2, window_bounds = array<i64: 8, 144>}, {pipeline_mode = #tpu.pipeline_mode<synchronous>, transform_indices = @transform_3, window_bounds = array<i64: 8, 1>}, {pipeline_mode = #tpu.pipeline_mode<synchronous>, transform_indices = @transform_4, window_bounds = array<i64: 8, 72>}, {pipeline_mode = #tpu.pipeline_mode<synchronous>, transform_indices = @transform_5, window_bounds = array<i64: 8, 1>}, {transform_indices = @transform_6, window_bounds = array<i64: 1, 8, 1024>}]} {
    %0 = tpu.iota {dimensions = array<i32: 1>} : vector<1x1024xi32>
    %c32_i32 = arith.constant 32 : i32
    %c0_i32 = arith.constant 0 : i32
    %1 = arith.cmpi eq, %c32_i32, %c0_i32 : i32
    %c1_i32 = arith.constant 1 : i32
    %2 = arith.select %1, %c1_i32, %c32_i32 : i32
    %3 = vector.broadcast %2 : i32 to vector<1x1024xi32>
    %4 = arith.remsi %0, %3 : vector<1x1024xi32>
    %c0_i32_0 = arith.constant 0 : i32
    %5 = vector.broadcast %c0_i32_0 : i32 to vector<1x1024xi32>
    %6 = arith.cmpi ne, %4, %5 : vector<1x1024xi32>
    %c0_i32_1 = arith.constant 0 : i32
    %7 = vector.broadcast %c0_i32_1 : i32 to vector<1x1024xi32>
    %8 = arith.cmpi slt, %4, %7 : vector<1x1024xi32>
    %c0_i32_2 = arith.constant 0 : i32
    %9 = arith.cmpi slt, %2, %c0_i32_2 : i32
    %10 = vector.broadcast %9 : i1 to vector<1x1024xi1>
    %11 = vector.broadcast %10 : vector<1x1024xi1> to vector<1x1024xi1>
    %12 = arith.xori %8, %11 : vector<1x1024xi1>
    %13 = arith.andi %12, %6 : vector<1x1024xi1>
    %14 = vector.broadcast %2 : i32 to vector<1x1024xi32>
    %15 = arith.addi %4, %14 : vector<1x1024xi32>
    %16 = arith.select %13, %15, %4 : vector<1x1024xi1>, vector<1x1024xi32>
    %c0_i32_3 = arith.constant 0 : i32
    %17 = vector.broadcast %c0_i32_3 : i32 to vector<1x1024xi32>
    %18 = arith.cmpi ne, %16, %17 : vector<1x1024xi32>
    %c31_i32 = arith.constant 31 : i32
    %19 = vector.broadcast %c31_i32 : i32 to vector<1x1024xi32>
    %20 = arith.cmpi ne, %16, %19 : vector<1x1024xi32>
    %c0 = arith.constant 0 : index
    %c0_4 = arith.constant 0 : index
    %c0_5 = arith.constant 0 : index
    %21 = vector.load %arg1[%c0, %c0_4, %c0_5] : memref<1x8x1024xbf16, #tpu.memory_space<vmem>>, vector<1x8x1024xbf16>
    %22 = vector.shape_cast %21 : vector<1x8x1024xbf16> to vector<8x1024xbf16>
    %c0_6 = arith.constant 0 : index
    %c0_7 = arith.constant 0 : index
    %c0_8 = arith.constant 0 : index
    %23 = vector.load %arg2[%c0_6, %c0_7, %c0_8] : memref<1x8x1024xbf16, #tpu.memory_space<vmem>>, vector<1x8x1024xbf16>
    %24 = vector.shape_cast %23 : vector<1x8x1024xbf16> to vector<8x1024xbf16>
    %cst = arith.constant 0.000000e+00 : bf16
    %25 = vector.broadcast %cst : bf16 to vector<16x33xbf16>
    %c0_9 = arith.constant 0 : index
    %c0_10 = arith.constant 0 : index
    %26 = vector.load %arg8[%c0_9, %c0_10] : memref<16x1090xbf16, #tpu.memory_space<vmem>>, vector<16x33xbf16>
    tpu.vector_store %arg8[%c0_9, %c0_10], %25 {strides = array<i32>} : memref<16x1090xbf16, #tpu.memory_space<vmem>>, vector<16x33xbf16>,
    %c0_11 = arith.constant 0 : index
    %c1057 = arith.constant 1057 : index
    %27 = vector.load %arg8[%c0_11, %c1057] : memref<16x1090xbf16, #tpu.memory_space<vmem>>, vector<16x33xbf16>
    tpu.vector_store %arg8[%c0_11, %c1057], %25 {strides = array<i32>} : memref<16x1090xbf16, #tpu.memory_space<vmem>>, vector<16x33xbf16>,
    %c0_12 = arith.constant 0 : index
    %c33 = arith.constant 33 : index
    %28 = vector.load %arg8[%c0_12, %c33] : memref<16x1090xbf16, #tpu.memory_space<vmem>>, vector<8x1024xbf16>
    tpu.vector_store %arg8[%c0_12, %c33], %22 {strides = array<i32>} : memref<16x1090xbf16, #tpu.memory_space<vmem>>, vector<8x1024xbf16>,
    %c8 = arith.constant 8 : index
    %c33_13 = arith.constant 33 : index
    %29 = vector.load %arg8[%c8, %c33_13] : memref<16x1090xbf16, #tpu.memory_space<vmem>>, vector<8x1024xbf16>
    tpu.vector_store %arg8[%c8, %c33_13], %24 {strides = array<i32>} : memref<16x1090xbf16, #tpu.memory_space<vmem>>, vector<8x1024xbf16>,
    %c0_14 = arith.constant 0 : index
    %c0_15 = arith.constant 0 : index
    %30 = vector.load %arg8[%c0_14, %c0_15] : memref<16x1090xbf16, #tpu.memory_space<vmem>>, vector<16x1024xbf16>
    %cst_16 = arith.constant 0.000000e+00 : bf16
    %31 = vector.broadcast %cst_16 : bf16 to vector<16x1024xbf16>
    %32 = vector.shape_cast %18 : vector<1x1024xi1> to vector<1x1024xi1>
    %33 = vector.broadcast %32 : vector<1x1024xi1> to vector<16x1024xi1>
    %34 = arith.select %33, %30, %31 : vector<16x1024xi1>, vector<16x1024xbf16>
    %c0_17 = arith.constant 0 : index
    %c0_18 = arith.constant 0 : index
    %35 = vector.load %arg10[%c0_17, %c0_18] : memref<144x1024xbf16, #tpu.memory_space<vmem>>, vector<16x1024xbf16>
    tpu.vector_store %arg10[%c0_17, %c0_18], %34 {strides = array<i32>} : memref<144x1024xbf16, #tpu.memory_space<vmem>>, vector<16x1024xbf16>,
    %c0_19 = arith.constant 0 : index
    %c1 = arith.constant 1 : index
    %36 = vector.load %arg8[%c0_19, %c1] : memref<16x1090xbf16, #tpu.memory_space<vmem>>, vector<16x1024xbf16>
    %c16 = arith.constant 16 : index
    %c0_20 = arith.constant 0 : index
    %37 = vector.load %arg10[%c16, %c0_20] : memref<144x1024xbf16, #tpu.memory_space<vmem>>, vector<16x1024xbf16>
    tpu.vector_store %arg10[%c16, %c0_20], %36 {strides = array<i32>} : memref<144x1024xbf16, #tpu.memory_space<vmem>>, vector<16x1024xbf16>,
    %c0_21 = arith.constant 0 : index
    %c2 = arith.constant 2 : index
    %38 = vector.load %arg8[%c0_21, %c2] : memref<16x1090xbf16, #tpu.memory_space<vmem>>, vector<16x1024xbf16>
    %cst_22 = arith.constant 0.000000e+00 : bf16
    %39 = vector.broadcast %cst_22 : bf16 to vector<16x1024xbf16>
    %40 = vector.shape_cast %20 : vector<1x1024xi1> to vector<1x1024xi1>
    %41 = vector.broadcast %40 : vector<1x1024xi1> to vector<16x1024xi1>
    %42 = arith.select %41, %38, %39 : vector<16x1024xi1>, vector<16x1024xbf16>
    %c32 = arith.constant 32 : index
    %c0_23 = arith.constant 0 : index
    %43 = vector.load %arg10[%c32, %c0_23] : memref<144x1024xbf16, #tpu.memory_space<vmem>>, vector<16x1024xbf16>
    tpu.vector_store %arg10[%c32, %c0_23], %42 {strides = array<i32>} : memref<144x1024xbf16, #tpu.memory_space<vmem>>, vector<16x1024xbf16>,
    %c0_24 = arith.constant 0 : index
    %c32_25 = arith.constant 32 : index
    %44 = vector.load %arg8[%c0_24, %c32_25] : memref<16x1090xbf16, #tpu.memory_space<vmem>>, vector<16x1024xbf16>
    %cst_26 = arith.constant 0.000000e+00 : bf16
    %45 = vector.broadcast %cst_26 : bf16 to vector<16x1024xbf16>
    %46 = vector.shape_cast %18 : vector<1x1024xi1> to vector<1x1024xi1>
    %47 = vector.broadcast %46 : vector<1x1024xi1> to vector<16x1024xi1>
    %48 = arith.select %47, %44, %45 : vector<16x1024xi1>, vector<16x1024xbf16>
    %c48 = arith.constant 48 : index
    %c0_27 = arith.constant 0 : index
    %49 = vector.load %arg10[%c48, %c0_27] : memref<144x1024xbf16, #tpu.memory_space<vmem>>, vector<16x1024xbf16>
    tpu.vector_store %arg10[%c48, %c0_27], %48 {strides = array<i32>} : memref<144x1024xbf16, #tpu.memory_space<vmem>>, vector<16x1024xbf16>,
    %c0_28 = arith.constant 0 : index
    %c33_29 = arith.constant 33 : index
    %50 = vector.load %arg8[%c0_28, %c33_29] : memref<16x1090xbf16, #tpu.memory_space<vmem>>, vector<16x1024xbf16>
    %c64 = arith.constant 64 : index
    %c0_30 = arith.constant 0 : index
    %51 = vector.load %arg10[%c64, %c0_30] : memref<144x1024xbf16, #tpu.memory_space<vmem>>, vector<16x1024xbf16>
    tpu.vector_store %arg10[%c64, %c0_30], %50 {strides = array<i32>} : memref<144x1024xbf16, #tpu.memory_space<vmem>>, vector<16x1024xbf16>,
    %c0_31 = arith.constant 0 : index
    %c34 = arith.constant 34 : index
    %52 = vector.load %arg8[%c0_31, %c34] : memref<16x1090xbf16, #tpu.memory_space<vmem>>, vector<16x1024xbf16>
    %cst_32 = arith.constant 0.000000e+00 : bf16
    %53 = vector.broadcast %cst_32 : bf16 to vector<16x1024xbf16>
    %54 = vector.shape_cast %20 : vector<1x1024xi1> to vector<1x1024xi1>
    %55 = vector.broadcast %54 : vector<1x1024xi1> to vector<16x1024xi1>
    %56 = arith.select %55, %52, %53 : vector<16x1024xi1>, vector<16x1024xbf16>
    %c80 = arith.constant 80 : index
    %c0_33 = arith.constant 0 : index
    %57 = vector.load %arg10[%c80, %c0_33] : memref<144x1024xbf16, #tpu.memory_space<vmem>>, vector<16x1024xbf16>
    tpu.vector_store %arg10[%c80, %c0_33], %56 {strides = array<i32>} : memref<144x1024xbf16, #tpu.memory_space<vmem>>, vector<16x1024xbf16>,
    %c0_34 = arith.constant 0 : index
    %c64_35 = arith.constant 64 : index
    %58 = vector.load %arg8[%c0_34, %c64_35] : memref<16x1090xbf16, #tpu.memory_space<vmem>>, vector<16x1024xbf16>
    %cst_36 = arith.constant 0.000000e+00 : bf16
    %59 = vector.broadcast %cst_36 : bf16 to vector<16x1024xbf16>
    %60 = vector.shape_cast %18 : vector<1x1024xi1> to vector<1x1024xi1>
    %61 = vector.broadcast %60 : vector<1x1024xi1> to vector<16x1024xi1>
    %62 = arith.select %61, %58, %59 : vector<16x1024xi1>, vector<16x1024xbf16>
    %c96 = arith.constant 96 : index
    %c0_37 = arith.constant 0 : index
    %63 = vector.load %arg10[%c96, %c0_37] : memref<144x1024xbf16, #tpu.memory_space<vmem>>, vector<16x1024xbf16>
    tpu.vector_store %arg10[%c96, %c0_37], %62 {strides = array<i32>} : memref<144x1024xbf16, #tpu.memory_space<vmem>>, vector<16x1024xbf16>,
    %c0_38 = arith.constant 0 : index
    %c65 = arith.constant 65 : index
    %64 = vector.load %arg8[%c0_38, %c65] : memref<16x1090xbf16, #tpu.memory_space<vmem>>, vector<16x1024xbf16>
    %c112 = arith.constant 112 : index
    %c0_39 = arith.constant 0 : index
    %65 = vector.load %arg10[%c112, %c0_39] : memref<144x1024xbf16, #tpu.memory_space<vmem>>, vector<16x1024xbf16>
    tpu.vector_store %arg10[%c112, %c0_39], %64 {strides = array<i32>} : memref<144x1024xbf16, #tpu.memory_space<vmem>>, vector<16x1024xbf16>,
    %c0_40 = arith.constant 0 : index
    %c66 = arith.constant 66 : index
    %66 = vector.load %arg8[%c0_40, %c66] : memref<16x1090xbf16, #tpu.memory_space<vmem>>, vector<16x1024xbf16>
    %cst_41 = arith.constant 0.000000e+00 : bf16
    %67 = vector.broadcast %cst_41 : bf16 to vector<16x1024xbf16>
    %68 = vector.shape_cast %20 : vector<1x1024xi1> to vector<1x1024xi1>
    %69 = vector.broadcast %68 : vector<1x1024xi1> to vector<16x1024xi1>
    %70 = arith.select %69, %66, %67 : vector<16x1024xi1>, vector<16x1024xbf16>
    %c128 = arith.constant 128 : index
    %c0_42 = arith.constant 0 : index
    %71 = vector.load %arg10[%c128, %c0_42] : memref<144x1024xbf16, #tpu.memory_space<vmem>>, vector<16x1024xbf16>
    tpu.vector_store %arg10[%c128, %c0_42], %70 {strides = array<i32>} : memref<144x1024xbf16, #tpu.memory_space<vmem>>, vector<16x1024xbf16>,
    %c0_43 = arith.constant 0 : index
    %c0_44 = arith.constant 0 : index
    %72 = vector.load %arg3[%c0_43, %c0_44] : memref<8x144xbf16, #tpu.memory_space<vmem>>, vector<8x144xbf16>
    %c0_45 = arith.constant 0 : index
    %c0_46 = arith.constant 0 : index
    %73 = vector.load %arg10[%c0_45, %c0_46] : memref<144x1024xbf16, #tpu.memory_space<vmem>>, vector<144x1024xbf16>
    %cst_47 = arith.constant dense<0.000000e+00> : vector<8x1024xf32>
    %74 = tpu.matmul %72, %73, %cst_47 {dimension_numbers = #tpu.dot_dimension_numbers<[1], [0], [0], [1], [0, 0, 1, 1], [], []>} : vector<8x144xbf16>, vector<144x1024xbf16>, vector<8x1024xf32> -> vector<8x1024xf32>
    %c0_48 = arith.constant 0 : index
    %c0_49 = arith.constant 0 : index
    %75 = vector.load %arg4[%c0_48, %c0_49] : memref<8x1xf32, #tpu.memory_space<vmem>>, vector<8x1xf32>
    %76 = vector.broadcast %75 : vector<8x1xf32> to vector<8x1024xf32>
    %77 = arith.addf %74, %76 : vector<8x1024xf32>
    %cst_50 = arith.constant 0.000000e+00 : f32
    %78 = vector.broadcast %cst_50 : f32 to vector<8x1024xf32>
    %79 = arith.maximumf %77, %78 : vector<8x1024xf32>
    %cst_51 = arith.constant 0.000000e+00 : bf16
    %80 = vector.broadcast %cst_51 : bf16 to vector<8x33xbf16>
    %c0_52 = arith.constant 0 : index
    %c0_53 = arith.constant 0 : index
    %81 = vector.load %arg9[%c0_52, %c0_53] : memref<8x1090xbf16, #tpu.memory_space<vmem>>, vector<8x33xbf16>
    tpu.vector_store %arg9[%c0_52, %c0_53], %80 {strides = array<i32>} : memref<8x1090xbf16, #tpu.memory_space<vmem>>, vector<8x33xbf16>,
    %c0_54 = arith.constant 0 : index
    %c1057_55 = arith.constant 1057 : index
    %82 = vector.load %arg9[%c0_54, %c1057_55] : memref<8x1090xbf16, #tpu.memory_space<vmem>>, vector<8x33xbf16>
    tpu.vector_store %arg9[%c0_54, %c1057_55], %80 {strides = array<i32>} : memref<8x1090xbf16, #tpu.memory_space<vmem>>, vector<8x33xbf16>,
    %83 = arith.truncf %79 : vector<8x1024xf32> to vector<8x1024xbf16>
    %c0_56 = arith.constant 0 : index
    %c33_57 = arith.constant 33 : index
    %84 = vector.load %arg9[%c0_56, %c33_57] : memref<8x1090xbf16, #tpu.memory_space<vmem>>, vector<8x1024xbf16>
    tpu.vector_store %arg9[%c0_56, %c33_57], %83 {strides = array<i32>} : memref<8x1090xbf16, #tpu.memory_space<vmem>>, vector<8x1024xbf16>,
    %c0_58 = arith.constant 0 : index
    %c0_59 = arith.constant 0 : index
    %85 = vector.load %arg9[%c0_58, %c0_59] : memref<8x1090xbf16, #tpu.memory_space<vmem>>, vector<8x1024xbf16>
    %cst_60 = arith.constant 0.000000e+00 : bf16
    %86 = vector.broadcast %cst_60 : bf16 to vector<8x1024xbf16>
    %87 = vector.shape_cast %18 : vector<1x1024xi1> to vector<1x1024xi1>
    %88 = vector.broadcast %87 : vector<1x1024xi1> to vector<8x1024xi1>
    %89 = arith.select %88, %85, %86 : vector<8x1024xi1>, vector<8x1024xbf16>
    %c0_61 = arith.constant 0 : index
    %c0_62 = arith.constant 0 : index
    %90 = vector.load %arg10[%c0_61, %c0_62] : memref<144x1024xbf16, #tpu.memory_space<vmem>>, vector<8x1024xbf16>
    tpu.vector_store %arg10[%c0_61, %c0_62], %89 {strides = array<i32>} : memref<144x1024xbf16, #tpu.memory_space<vmem>>, vector<8x1024xbf16>,
    %c0_63 = arith.constant 0 : index
    %c1_64 = arith.constant 1 : index
    %91 = vector.load %arg9[%c0_63, %c1_64] : memref<8x1090xbf16, #tpu.memory_space<vmem>>, vector<8x1024xbf16>
    %c8_65 = arith.constant 8 : index
    %c0_66 = arith.constant 0 : index
    %92 = vector.load %arg10[%c8_65, %c0_66] : memref<144x1024xbf16, #tpu.memory_space<vmem>>, vector<8x1024xbf16>
    tpu.vector_store %arg10[%c8_65, %c0_66], %91 {strides = array<i32>} : memref<144x1024xbf16, #tpu.memory_space<vmem>>, vector<8x1024xbf16>,
    %c0_67 = arith.constant 0 : index
    %c2_68 = arith.constant 2 : index
    %93 = vector.load %arg9[%c0_67, %c2_68] : memref<8x1090xbf16, #tpu.memory_space<vmem>>, vector<8x1024xbf16>
    %cst_69 = arith.constant 0.000000e+00 : bf16
    %94 = vector.broadcast %cst_69 : bf16 to vector<8x1024xbf16>
    %95 = vector.shape_cast %20 : vector<1x1024xi1> to vector<1x1024xi1>
    %96 = vector.broadcast %95 : vector<1x1024xi1> to vector<8x1024xi1>
    %97 = arith.select %96, %93, %94 : vector<8x1024xi1>, vector<8x1024xbf16>
    %c16_70 = arith.constant 16 : index
    %c0_71 = arith.constant 0 : index
    %98 = vector.load %arg10[%c16_70, %c0_71] : memref<144x1024xbf16, #tpu.memory_space<vmem>>, vector<8x1024xbf16>
    tpu.vector_store %arg10[%c16_70, %c0_71], %97 {strides = array<i32>} : memref<144x1024xbf16, #tpu.memory_space<vmem>>, vector<8x1024xbf16>,
    %c0_72 = arith.constant 0 : index
    %c32_73 = arith.constant 32 : index
    %99 = vector.load %arg9[%c0_72, %c32_73] : memref<8x1090xbf16, #tpu.memory_space<vmem>>, vector<8x1024xbf16>
    %cst_74 = arith.constant 0.000000e+00 : bf16
    %100 = vector.broadcast %cst_74 : bf16 to vector<8x1024xbf16>
    %101 = vector.shape_cast %18 : vector<1x1024xi1> to vector<1x1024xi1>
    %102 = vector.broadcast %101 : vector<1x1024xi1> to vector<8x1024xi1>
    %103 = arith.select %102, %99, %100 : vector<8x1024xi1>, vector<8x1024xbf16>
    %c24 = arith.constant 24 : index
    %c0_75 = arith.constant 0 : index
    %104 = vector.load %arg10[%c24, %c0_75] : memref<144x1024xbf16, #tpu.memory_space<vmem>>, vector<8x1024xbf16>
    tpu.vector_store %arg10[%c24, %c0_75], %103 {strides = array<i32>} : memref<144x1024xbf16, #tpu.memory_space<vmem>>, vector<8x1024xbf16>,
    %c0_76 = arith.constant 0 : index
    %c33_77 = arith.constant 33 : index
    %105 = vector.load %arg9[%c0_76, %c33_77] : memref<8x1090xbf16, #tpu.memory_space<vmem>>, vector<8x1024xbf16>
    %c32_78 = arith.constant 32 : index
    %c0_79 = arith.constant 0 : index
    %106 = vector.load %arg10[%c32_78, %c0_79] : memref<144x1024xbf16, #tpu.memory_space<vmem>>, vector<8x1024xbf16>
    tpu.vector_store %arg10[%c32_78, %c0_79], %105 {strides = array<i32>} : memref<144x1024xbf16, #tpu.memory_space<vmem>>, vector<8x1024xbf16>,
    %c0_80 = arith.constant 0 : index
    %c34_81 = arith.constant 34 : index
    %107 = vector.load %arg9[%c0_80, %c34_81] : memref<8x1090xbf16, #tpu.memory_space<vmem>>, vector<8x1024xbf16>
    %cst_82 = arith.constant 0.000000e+00 : bf16
    %108 = vector.broadcast %cst_82 : bf16 to vector<8x1024xbf16>
    %109 = vector.shape_cast %20 : vector<1x1024xi1> to vector<1x1024xi1>
    %110 = vector.broadcast %109 : vector<1x1024xi1> to vector<8x1024xi1>
    %111 = arith.select %110, %107, %108 : vector<8x1024xi1>, vector<8x1024xbf16>
    %c40 = arith.constant 40 : index
    %c0_83 = arith.constant 0 : index
    %112 = vector.load %arg10[%c40, %c0_83] : memref<144x1024xbf16, #tpu.memory_space<vmem>>, vector<8x1024xbf16>
    tpu.vector_store %arg10[%c40, %c0_83], %111 {strides = array<i32>} : memref<144x1024xbf16, #tpu.memory_space<vmem>>, vector<8x1024xbf16>,
    %c0_84 = arith.constant 0 : index
    %c64_85 = arith.constant 64 : index
    %113 = vector.load %arg9[%c0_84, %c64_85] : memref<8x1090xbf16, #tpu.memory_space<vmem>>, vector<8x1024xbf16>
    %cst_86 = arith.constant 0.000000e+00 : bf16
    %114 = vector.broadcast %cst_86 : bf16 to vector<8x1024xbf16>
    %115 = vector.shape_cast %18 : vector<1x1024xi1> to vector<1x1024xi1>
    %116 = vector.broadcast %115 : vector<1x1024xi1> to vector<8x1024xi1>
    %117 = arith.select %116, %113, %114 : vector<8x1024xi1>, vector<8x1024xbf16>
    %c48_87 = arith.constant 48 : index
    %c0_88 = arith.constant 0 : index
    %118 = vector.load %arg10[%c48_87, %c0_88] : memref<144x1024xbf16, #tpu.memory_space<vmem>>, vector<8x1024xbf16>
    tpu.vector_store %arg10[%c48_87, %c0_88], %117 {strides = array<i32>} : memref<144x1024xbf16, #tpu.memory_space<vmem>>, vector<8x1024xbf16>,
    %c0_89 = arith.constant 0 : index
    %c65_90 = arith.constant 65 : index
    %119 = vector.load %arg9[%c0_89, %c65_90] : memref<8x1090xbf16, #tpu.memory_space<vmem>>, vector<8x1024xbf16>
    %c56 = arith.constant 56 : index
    %c0_91 = arith.constant 0 : index
    %120 = vector.load %arg10[%c56, %c0_91] : memref<144x1024xbf16, #tpu.memory_space<vmem>>, vector<8x1024xbf16>
    tpu.vector_store %arg10[%c56, %c0_91], %119 {strides = array<i32>} : memref<144x1024xbf16, #tpu.memory_space<vmem>>, vector<8x1024xbf16>,
    %c0_92 = arith.constant 0 : index
    %c66_93 = arith.constant 66 : index
    %121 = vector.load %arg9[%c0_92, %c66_93] : memref<8x1090xbf16, #tpu.memory_space<vmem>>, vector<8x1024xbf16>
    %cst_94 = arith.constant 0.000000e+00 : bf16
    %122 = vector.broadcast %cst_94 : bf16 to vector<8x1024xbf16>
    %123 = vector.shape_cast %20 : vector<1x1024xi1> to vector<1x1024xi1>
    %124 = vector.broadcast %123 : vector<1x1024xi1> to vector<8x1024xi1>
    %125 = arith.select %124, %121, %122 : vector<8x1024xi1>, vector<8x1024xbf16>
    %c64_95 = arith.constant 64 : index
    %c0_96 = arith.constant 0 : index
    %126 = vector.load %arg10[%c64_95, %c0_96] : memref<144x1024xbf16, #tpu.memory_space<vmem>>, vector<8x1024xbf16>
    tpu.vector_store %arg10[%c64_95, %c0_96], %125 {strides = array<i32>} : memref<144x1024xbf16, #tpu.memory_space<vmem>>, vector<8x1024xbf16>,
    %c0_97 = arith.constant 0 : index
    %c0_98 = arith.constant 0 : index
    %127 = vector.load %arg5[%c0_97, %c0_98] : memref<8x72xbf16, #tpu.memory_space<vmem>>, vector<8x72xbf16>
    %c0_99 = arith.constant 0 : index
    %c0_100 = arith.constant 0 : index
    %128 = vector.load %arg10[%c0_99, %c0_100] : memref<144x1024xbf16, #tpu.memory_space<vmem>>, vector<72x1024xbf16>
    %cst_101 = arith.constant dense<0.000000e+00> : vector<8x1024xf32>
    %129 = tpu.matmul %127, %128, %cst_101 {dimension_numbers = #tpu.dot_dimension_numbers<[1], [0], [0], [1], [0, 0, 1, 1], [], []>} : vector<8x72xbf16>, vector<72x1024xbf16>, vector<8x1024xf32> -> vector<8x1024xf32>
    %c0_102 = arith.constant 0 : index
    %c0_103 = arith.constant 0 : index
    %130 = vector.load %arg6[%c0_102, %c0_103] : memref<8x1xf32, #tpu.memory_space<vmem>>, vector<8x1xf32>
    %131 = vector.broadcast %130 : vector<8x1xf32> to vector<8x1024xf32>
    %132 = arith.addf %129, %131 : vector<8x1024xf32>
    %cst_104 = arith.constant 0.000000e+00 : f32
    %133 = vector.broadcast %cst_104 : f32 to vector<8x1024xf32>
    %134 = arith.maximumf %132, %133 : vector<8x1024xf32>
    %135 = arith.truncf %134 : vector<8x1024xf32> to vector<8x1024xbf16>
    %c0_105 = arith.constant 0 : index
    %c0_106 = arith.constant 0 : index
    %c0_107 = arith.constant 0 : index
    %136 = vector.load %arg7[%c0_105, %c0_106, %c0_107] : memref<1x8x1024xbf16, #tpu.memory_space<vmem>>, vector<1x8x1024xbf16>
    %137 = vector.shape_cast %136 : vector<1x8x1024xbf16> to vector<8x1024xbf16>
    %138 = vector.shape_cast %135 : vector<8x1024xbf16> to vector<1x8x1024xbf16>
    tpu.vector_store %arg7[%c0_105, %c0_106, %c0_107], %138 {strides = array<i32>} : memref<1x8x1024xbf16, #tpu.memory_space<vmem>>, vector<1x8x1024xbf16>,
    return
  }
  func.func @transform_0(%arg0: i32) -> (i32, i32, i32) {
    %c0_i32 = arith.constant 0 : i32
    %c0_i32_0 = arith.constant 0 : i32
    %c0_i32_1 = arith.constant 0 : i32
    return %arg0, %c0_i32, %c0_i32_0 : i32, i32, i32
  }
  func.func @transform_1(%arg0: i32) -> (i32, i32, i32) {
    %c0_i32 = arith.constant 0 : i32
    %c0_i32_0 = arith.constant 0 : i32
    %c0_i32_1 = arith.constant 0 : i32
    return %arg0, %c0_i32, %c0_i32_0 : i32, i32, i32
  }
  func.func @transform_2(%arg0: i32) -> (i32, i32) {
    %c0_i32 = arith.constant 0 : i32
    %c0_i32_0 = arith.constant 0 : i32
    %c0_i32_1 = arith.constant 0 : i32
    return %c0_i32, %c0_i32_0 : i32, i32
  }
  func.func @transform_3(%arg0: i32) -> (i32, i32) {
    %c0_i32 = arith.constant 0 : i32
    %c0_i32_0 = arith.constant 0 : i32
    %c0_i32_1 = arith.constant 0 : i32
    return %c0_i32, %c0_i32_0 : i32, i32
  }
  func.func @transform_4(%arg0: i32) -> (i32, i32) {
    %c0_i32 = arith.constant 0 : i32
    %c0_i32_0 = arith.constant 0 : i32
    %c0_i32_1 = arith.constant 0 : i32
    return %c0_i32, %c0_i32_0 : i32, i32
  }
  func.func @transform_5(%arg0: i32) -> (i32, i32) {
    %c0_i32 = arith.constant 0 : i32
    %c0_i32_0 = arith.constant 0 : i32
    %c0_i32_1 = arith.constant 0 : i32
    return %c0_i32, %c0_i32_0 : i32, i32
  }
  func.func @transform_6(%arg0: i32) -> (i32, i32, i32) {
    %c0_i32 = arith.constant 0 : i32
    %c0_i32_0 = arith.constant 0 : i32
    %c0_i32_1 = arith.constant 0 : i32
    return %arg0, %c0_i32, %c0_i32_0 : i32, i32, i32
  }
}

</mosaic_0001>

<bundles_post_ra>
// kernel: decoder_forward.4
= control target key start
LH: loop header
LB: loop body
LE: loop exit
PB: predicated region body
PF: predicated region fallthrough
CT: control target
= control target key end

     0   :  { %s1398_s21 = smov 0   ;;  %s1690_s0 = inlined_call_operand.vmem [shape: bf16[2,16,16], index: 0, kind: input, shape index: {}]   ;;  %s1691_s1 = inlined_call_operand.vmem [shape: bf16[2,16,16], index: 1, kind: input, shape index: {}]   ;;  %s1692_s2 = inlined_call_operand.vmem [shape: bf16[16,288], index: 2, kind: input, shape index: {}]   ;;  %s1693_s3 = inlined_call_operand.vmem [shape: f32[16,1], index: 3, kind: input, shape index: {}]   ;;  %s1694_s4 = inlined_call_operand.vmem [shape: bf16[16,144], index: 4, kind: input, shape index: {}]   ;;  %s1695_s5 = inlined_call_operand.vmem [shape: f32[16,1], index: 5, kind: input, shape index: {}]   ;;  %s1696_s6 = inlined_call_operand.vmem [shape: bf16[2,16,16], index: 6, kind: output, shape index: {}]  }
   0x1 LB: > { %s1186_s22 = sadd.s32 4294967295, %s1344_s21   ;;  %p1190_p0 = scmp.ge.s32.totalorder %s1344_s21, 1  ;;  %s1344_s21 = sphi %s1398_s21, %s16_s21  }
   0x2   : > { %p222_p1 = scmp.lt.s32.totalorder %s1344_s21, 3 }
   0x4   : > { %p223_p2 = pnand %p1190_p0, %p222_p1 }
   0x5   : > { %p257_p3 = scmp.lt.s32.totalorder (!%p223_p2), %s1186_s22, 1  ;;  %s1347_s30 = smov (!%p223_p2), 5  }
   0x6   : > { %226 = sbr.rel (%p223_p2) target bundleno = 1019 (0x3fb), region = 44  ;;  %s1348_s7 = smov (!%p223_p2), 4  }
   0x7   : > { %s1349_s8 = smov (!%p223_p2), 8   ;;  %s1350_s9 = smov (!%p223_p2), 2  }
   0x8   : > { %s1351_s10 = smov (!%p223_p2), 6   ;;  %s1352_s11 = smov (!%p223_p2), 10  }
   0x9   : > { %s1353_s12 = smov (!%p223_p2), 119   ;;  %s1354_s13 = smov (!%p223_p2), 127  }
   0xa   : > { %s1355_s14 = smov (!%p223_p2), 124   ;;  %s1356_s15 = smov (!%p223_p2), 120  }
   0xb   : > { %v275_v0 = vlaneseq  ;;  %vm295_vm0 = vcmask 35840   ;;  %vm300_vm1 = vcmask 208040   ;;  %v1346_v1 = vmov 0   ;;  %s1700_s22 = smov (!%p257_p3, %s1186_s22), 1  ;;  %s1357_s16 = smov 126  }
   0xc   : > { %298 = vst.msk [vmem:[#allocation2 + $0x8] sm:$0xf] %vm295_vm0, %v1346_v1  ;;  %296 = vst.msk [vmem:[#allocation2] sm:$0xf] %vm295_vm0, %v1346_v1  ;;  %1302 = vset.pattern.permute.xlu1 %v1346_v1  ;;  %1303 = vset.pattern.permute.xlu0 %v1346_v1  ;;  %s1427_s23 = sshll.u32 %s1700_s22, 3  ;;  %vm313_vm6 = vcmask 166952  }
   0xd   : > { %297 = vst.msk [vmem:[#allocation2 + $0x4] sm:$0xf] %vm295_vm0, %v1346_v1  ;;  %299 = vst.msk [vmem:[#allocation2 + $0xc] sm:$0xf] %vm295_vm0, %v1346_v1  ;;  %v276_v2 = vand.u32 127, %v275_v0  ;;  %1066 = vmatprep.subr.bf16.mxu1 %v1346_v1  ;;  %s266_s26 = scalar_lea.vmem %s1691_s1, %s1427_s23  ;;  %s261_s29 = scalar_lea.vmem %s1690_s0, %s1427_s23  ;;  %vm337_vm7 = vcmask 125952  }
   0xe   : > { %837 = vst.msk [vmem:[#allocation3] sm:$0xf] %vm295_vm0, %v1346_v1  ;;  %838 = vst.msk [vmem:[#allocation3 + $0x4] sm:$0xf] %vm295_vm0, %v1346_v1  ;;  %v293_v4 = vld [vmem:[%s266_s26] sm:$0xf] }
   0xf   : > { %303 = vst.msk [vmem:[#allocation2 + $0x8] sm:$0xf] %vm300_vm1, %v1346_v1  ;;  %301 = vst.msk [vmem:[#allocation2] sm:$0xf] %vm300_vm1, %v1346_v1  ;;  %v281_v3 = vand.u32 3, %v276_v2  ;;  %318 = vrot.lane.b32.xlu0 %v293_v4, %s1347_s30  ;;  %s1358_s17 = smov 122  }
  0x10   : > { %302 = vst.msk [vmem:[#allocation2 + $0x4] sm:$0xf] %vm300_vm1, %v1346_v1  ;;  %304 = vst.msk [vmem:[#allocation2 + $0xc] sm:$0xf] %vm300_vm1, %v1346_v1  ;;  %v291_v5 = vld [vmem:[%s261_s29] sm:$0xf] }
  0x11   : > { %839 = vst.msk [vmem:[#allocation3] sm:$0xf] %vm300_vm1, %v1346_v1  ;;  %840 = vst.msk [vmem:[#allocation3 + $0x4] sm:$0xf] %vm300_vm1, %v1346_v1  ;;  %vm289_vm2 = vcmp.ne.s32.totalorder %v281_v3, 0  ;;  %307 = vrot.lane.b32.xlu1 %v291_v5, %s1347_s30  ;;  %vm290_vm4 = vcmp.ne.s32.totalorder %v281_v3, 3 }
  0x12   : > { %v294_v6 = vld [vmem:[%s266_s26 + $0x4] sm:$0xf]  ;;  %vm1439_vm3 = vmpackc.low %vm289_vm2, %vm289_vm2  ;;  %s1359_s18 = smov 123   ;;  %s1360_s22 = smov 118   ;;  %vm1362_vm13 = vmmov 0   ;;  %vm749_vm14 = vcmask 261120  }
  0x13   : > { %v292_v7 = vld [vmem:[%s261_s29 + $0x4] sm:$0xf]  ;;  %320 = vrot.lane.b32.xlu0 %v294_v6, %s1347_s30  ;;  %v405_v9 = vsel %vm1439_vm3, 65537, %v1346_v1  ;;  %vm372_vm5 = vmpackc.low %vm290_vm4, %vm290_vm4  ;;  %vm1062_vm15 = vcmask 130048  }
  0x14   : > { %v373_v10 = vsel %vm372_vm5, 65537, %v1346_v1 }
  0x15   : > { %309 = vrot.lane.b32.xlu1 %v292_v7, %s1347_s30 }
  0x17   : > { %406 = vrot.lane.b32.xlu0 %v405_v9, %s1348_s7 }
  0x19   : > { %492 = vrot.lane.b32.xlu1 %v405_v9, %s1349_s8  ;;  %v1322_v9 = vld [vmem:[%s1692_s2 + $0x4] ss:$12 sps:$4 sm:$0xff]  }
  0x1a   : > { %785 = vmatprep.mubr.bf16.mxu0 %v1322_v9 }
  0x1b   : > { %374 = vrot.lane.b32.xlu0 %v373_v10, %s1350_s9 }
  0x1d   : > { %461 = vrot.lane.b32.xlu1 %v373_v10, %s1351_s10 }
  0x1f   : > { %547 = vrot.lane.b32.xlu0 %v373_v10, %s1352_s11 }
  0x81   : > { %v319_v11 = vpop.permute.xlu0 %318 }
  0x82   : > { %324 = vst.msk [vmem:[#allocation2 + $0x8] sm:$0xf] %vm313_vm6, %v319_v11 }
  0x83   : > { %v308_v12 = vpop.permute.xlu1 %307 }
  0x84   : > { %314 = vst.msk [vmem:[#allocation2] sm:$0xf] %vm313_vm6, %v308_v12 }
  0x85   : > { %v321_v13 = vpop.permute.xlu0 %320 }
  0x86   : > { %325 = vst.msk [vmem:[#allocation2 + $0xc] sm:$0xf] %vm313_vm6, %v321_v13 }
  0x87   : > { %v310_v14 = vpop.permute.xlu1 %309 }
  0x88   : > { %315 = vst.msk [vmem:[#allocation2 + $0x4] sm:$0xf] %vm313_vm6, %v310_v14 }
  0x89   : > { %v328_v15 = vld [vmem:[#allocation2 + $0x8] sm:$0xf]  ;;  %v1470_v28 = vpop.permute.xlu0 %406 }
  0x8a   : > { %v521_v16 = vld [vmem:[#allocation2 + $0x8] sm:$0xf]  ;;  %v335_v17 = vsel %vm1439_vm3, %v328_v15, 0  ;;  %vm408_vm8 = vcmp.ne.s16.totalorder %v1470_v28, 0 }
  0x8b   : > { %v326_v18 = vld [vmem:[#allocation2] sm:$0xf]  ;;  %531 = vrot.lane.b32.xlu1 %v521_v16, %s1353_s12  ;;  %340 = vst.msk [vmem:[#allocation4 + $0x8] sm:$0xf] %vm337_vm7, %v335_v17  ;;  %v344_v27 = vld [vmem:[#allocation2 + $0x8] sm:$0xf]  ;;  %v1479_v36 = vpop.permute.xlu1 %492 }
  0x8c   : > { %v333_v19 = vsel %vm1439_vm3, %v326_v18, 0  ;;  %v519_v20 = vld [vmem:[#allocation2] sm:$0xf]  ;;  %v403_v31 = vld [vmem:[#allocation2 + $0x8] sm:$0xf]  ;;  %vm494_vm9 = vcmp.ne.s16.totalorder %v1479_v36, 0 }
  0x8d   : > { %338 = vst.msk [vmem:[#allocation4] sm:$0xf] %vm337_vm7, %v333_v19  ;;  %v329_v21 = vld [vmem:[#allocation2 + $0xc] sm:$0xf]  ;;  %v342_v29 = vld [vmem:[#allocation2] sm:$0xf]  ;;  %v1488_v41 = vpop.permute.xlu0 %374 }
  0x8e   : > { %v522_v22 = vld [vmem:[#allocation2 + $0xc] sm:$0xf]  ;;  %v336_v23 = vsel %vm1439_vm3, %v329_v21, 0  ;;  %v411_v32 = vsel %vm408_vm8, %v403_v31, 0  ;;  %v401_v34 = vld [vmem:[#allocation2] sm:$0xf] }
  0x8f   : > { %v327_v24 = vld [vmem:[#allocation2 + $0x4] sm:$0xf]  ;;  %533 = vrot.lane.b32.xlu0 %v522_v22, %s1353_s12  ;;  %527 = vrot.lane.b32.xlu1 %v519_v20, %s1353_s12  ;;  %341 = vst.msk [vmem:[#allocation4 + $0xc] sm:$0xf] %vm337_vm7, %v336_v23  ;;  %v345_v30 = vld [vmem:[#allocation2 + $0xc] sm:$0xf]  ;;  %v1509_v54 = vpop.permute.xlu1 %461 }
  0x90   : > { %v334_v25 = vsel %vm1439_vm3, %v327_v24, 0  ;;  %v520_v26 = vld [vmem:[#allocation2 + $0x4] sm:$0xf]  ;;  %v404_v35 = vld [vmem:[#allocation2 + $0xc] sm:$0xf]  ;;  %v409_v37 = vsel %vm408_vm8, %v401_v34, 0 }
  0x91   : > { %339 = vst.msk [vmem:[#allocation4 + $0x4] sm:$0xf] %vm337_vm7, %v334_v25  ;;  %v343_v33 = vld [vmem:[#allocation2 + $0x4] sm:$0xf]  ;;  %v412_v38 = vsel %vm408_vm8, %v404_v35, 0  ;;  %vm376_vm10 = vcmp.ne.s16.totalorder %v1488_v41, 0  ;;  %v1534_v5 = vpop.permute.xlu0 %547 }
  0x92   : > { %v402_v39 = vld [vmem:[#allocation2 + $0x4] sm:$0xf]  ;;  %v490_v40 = vld [vmem:[#allocation2 + $0x8] sm:$0xf]  ;;  %v491_v44 = vld [vmem:[#allocation2 + $0xc] sm:$0xf] }
  0x93   : > { %354 = vrot.lane.b32.xlu1 %v344_v27, %s1354_s13  ;;  %529 = vrot.lane.b32.xlu0 %v520_v26, %s1353_s12  ;;  %v410_v42 = vsel %vm408_vm8, %v402_v39, 0  ;;  %v497_v43 = vsel %vm494_vm9, %v490_v40, 0  ;;  %v368_v45 = vld [vmem:[#allocation2 + $0x8] sm:$0xf]  ;;  %v498_v46 = vsel %vm494_vm9, %v491_v44, 0  ;;  %vm463_vm11 = vcmp.ne.s16.totalorder %v1509_v54, 0 }
  0x94   : > { %v379_v47 = vsel %vm376_vm10, %v368_v45, 0  ;;  %v369_v48 = vld [vmem:[#allocation2 + $0xc] sm:$0xf]  ;;  %v488_v49 = vld [vmem:[#allocation2] sm:$0xf]  ;;  %vm549_vm12 = vcmp.ne.s16.totalorder %v1534_v5, 0 }
  0x95   : > { %v380_v50 = vsel %vm376_vm10, %v369_v48, 0  ;;  %v495_v51 = vsel %vm494_vm9, %v488_v49, 0  ;;  %v489_v52 = vld [vmem:[#allocation2 + $0x4] sm:$0xf]  ;;  %v366_v53 = vld [vmem:[#allocation2] sm:$0xf] }
  0x96   : > { %v496_v55 = vsel %vm494_vm9, %v489_v52, 0  ;;  %v377_v56 = vsel %vm376_vm10, %v366_v53, 0  ;;  %v367_v57 = vld [vmem:[#allocation2 + $0x4] sm:$0xf]  ;;  %v459_v58 = vld [vmem:[#allocation2 + $0x8] sm:$0xf] }
  0x97   : > { %350 = vrot.lane.b32.xlu1 %v342_v29, %s1354_s13  ;;  %356 = vrot.lane.b32.xlu0 %v345_v30, %s1354_s13  ;;  %v378_v59 = vsel %vm376_vm10, %v367_v57, 0  ;;  %v466_v60 = vsel %vm463_vm11, %v459_v58, 0  ;;  %v460_v61 = vld [vmem:[#allocation2 + $0xc] sm:$0xf]  ;;  %v457_v62 = vld [vmem:[#allocation2] sm:$0xf] }
  0x98   : > { %v467_v63 = vsel %vm463_vm11, %v460_v61, 0  ;;  %v464_v0 = vsel %vm463_vm11, %v457_v62, 0  ;;  %v458_v2 = vld [vmem:[#allocation2 + $0x4] sm:$0xf]  ;;  %v435_v4 = vld [vmem:[#allocation2 + $0x8] sm:$0xf] }
  0x99   : > { %v465_v3 = vsel %vm463_vm11, %v458_v2, 0  ;;  %v436_v6 = vld [vmem:[#allocation2 + $0xc] sm:$0xf]  ;;  %v433_v7 = vld [vmem:[#allocation2] sm:$0xf] }
  0x9a   : > { %v545_v10 = vld [vmem:[#allocation2 + $0x8] sm:$0xf]  ;;  %v434_v11 = vld [vmem:[#allocation2 + $0x4] sm:$0xf]  ;;  %v546_v13 = vld [vmem:[#allocation2 + $0xc] sm:$0xf] }
  0x9b   : > { %421 = vrot.lane.b32.xlu1 %v411_v32, %s1355_s14  ;;  %352 = vrot.lane.b32.xlu0 %v343_v33, %s1354_s13  ;;  %v552_v12 = vsel %vm549_vm12, %v545_v10, 0  ;;  %v543_v14 = vld [vmem:[#allocation2] sm:$0xf]  ;;  %v553_v15 = vsel %vm549_vm12, %v546_v13, 0  ;;  %v544_v17 = vld [vmem:[#allocation2 + $0x4] sm:$0xf] }
  0x9c   : > { %v550_v16 = vsel %vm549_vm12, %v543_v14, 0  ;;  %v551_v18 = vsel %vm549_vm12, %v544_v17, 0  ;;  %v614_v19 = vld [vmem:[%s1693_s3] sm:$0xff]  ;;  %v615_v20 = vld [vmem:[%s1693_s3 + $0x8] sm:$0xff]  ;;  %v1361_v13 = vmov 0.0  }
  0x9f   : > { %417 = vrot.lane.b32.xlu1 %v409_v37, %s1355_s14  ;;  %423 = vrot.lane.b32.xlu0 %v412_v38, %s1355_s14 }
  0xa3   : > { %419 = vrot.lane.b32.xlu0 %v410_v42, %s1355_s14  ;;  %507 = vrot.lane.b32.xlu1 %v497_v43, %s1356_s15 }
  0xa7   : > { %509 = vrot.lane.b32.xlu0 %v498_v46, %s1356_s15  ;;  %389 = vrot.lane.b32.xlu1 %v379_v47, %s1357_s16 }
  0xab   : > { %391 = vrot.lane.b32.xlu0 %v380_v50, %s1357_s16  ;;  %503 = vrot.lane.b32.xlu1 %v495_v51, %s1356_s15 }
  0xaf   : > { %505 = vrot.lane.b32.xlu0 %v496_v55, %s1356_s15  ;;  %385 = vrot.lane.b32.xlu1 %v377_v56, %s1357_s16 }
  0xb3   : > { %387 = vrot.lane.b32.xlu0 %v378_v59, %s1357_s16  ;;  %476 = vrot.lane.b32.xlu1 %v466_v60, %s1358_s17 }
  0xb7   : > { %478 = vrot.lane.b32.xlu0 %v467_v63, %s1358_s17  ;;  %472 = vrot.lane.b32.xlu1 %v464_v0, %s1358_s17 }
  0xbb   : > { %474 = vrot.lane.b32.xlu0 %v465_v3, %s1358_s17  ;;  %445 = vrot.lane.b32.xlu1 %v435_v4, %s1359_s18 }
  0xbf   : > { %447 = vrot.lane.b32.xlu0 %v436_v6, %s1359_s18  ;;  %441 = vrot.lane.b32.xlu1 %v433_v7, %s1359_s18  ;;  %v1317_v7 = vld [vmem:[#allocation4 + $0x8] sm:$0xff]  }
  0xc3   : > { %443 = vrot.lane.b32.xlu0 %v434_v11, %s1359_s18  ;;  %562 = vrot.lane.b32.xlu1 %v552_v12, %s1360_s22  ;;  %v1319_v11 = vld [vmem:[#allocation4] sm:$0xff]   ;;  %v1320_v12 = vld [vmem:[%s1692_s2] ss:$12 sps:$4 sm:$0xff]  }
  0xc7   : > { %564 = vrot.lane.b32.xlu0 %v553_v15, %s1360_s22  ;;  %558 = vrot.lane.b32.xlu1 %v550_v16, %s1360_s22  ;;  %v1325_v16 = vld [vmem:[%s1692_s2 + $0x8] ss:$12 sps:$4 sm:$0xff]  }
  0xcb   : > { %560 = vrot.lane.b32.xlu0 %v551_v18, %s1360_s22  ;;  %618 = vperm.xlu1 %1302, %v614_v19  }
  0xcf   : > { %623 = vperm.xlu0 %1303, %v615_v20  }
  0xfd   : > { %v532_v21 = vpop.permute.xlu1 %531 }
  0xfe   : > { %541 = vst.msk [vmem:[#allocation4 + $0x78] sm:$0xf] %vm337_vm7, %v532_v21 }
 0x101   : > { %v534_v22 = vpop.permute.xlu0 %533  ;;  %v528_v23 = vpop.permute.xlu1 %527 }
 0x102   : > { %542 = vst.msk [vmem:[#allocation4 + $0x7c] sm:$0xf] %vm337_vm7, %v534_v22  ;;  %539 = vst.msk [vmem:[#allocation4 + $0x70] sm:$0xf] %vm337_vm7, %v528_v23 }
 0x105   : > { %v530_v24 = vpop.permute.xlu0 %529  ;;  %v355_v25 = vpop.permute.xlu1 %354 }
 0x106   : > { %540 = vst.msk [vmem:[#allocation4 + $0x74] sm:$0xf] %vm337_vm7, %v530_v24  ;;  %364 = vst.msk [vmem:[#allocation4 + $0x18] sm:$0xf] %vm337_vm7, %v355_v25 }
 0x109   : > { %v357_v26 = vpop.permute.xlu0 %356  ;;  %v351_v27 = vpop.permute.xlu1 %350  ;;  %v1304_v29 = vld [vmem:[#allocation4 + $0x78] sm:$0xff]  }
 0x10a   : > { %365 = vst.msk [vmem:[#allocation4 + $0x1c] sm:$0xf] %vm337_vm7, %v357_v26  ;;  %362 = vst.msk [vmem:[#allocation4 + $0x10] sm:$0xf] %vm337_vm7, %v351_v27  ;;  %1244 = vmatprep.subr.bf16.mxu0 %v1304_v29 }
 0x10d   : > { %v353_v30 = vpop.permute.xlu0 %352  ;;  %v422_v31 = vpop.permute.xlu1 %421  ;;  %v1306_v40 = vld [vmem:[#allocation4 + $0x70] sm:$0xff]  }
 0x10e   : > { %363 = vst.msk [vmem:[#allocation4 + $0x14] sm:$0xf] %vm337_vm7, %v353_v30  ;;  %431 = vst.msk [vmem:[#allocation4 + $0x38] sm:$0xf] %vm337_vm7, %v422_v31 }
 0x111   : > { %v424_v32 = vpop.permute.xlu0 %423  ;;  %v418_v33 = vpop.permute.xlu1 %417  ;;  %v1313_v61 = vld [vmem:[#allocation4 + $0x18] sm:$0xff]  }
 0x112   : > { %432 = vst.msk [vmem:[#allocation4 + $0x3c] sm:$0xf] %vm337_vm7, %v424_v32  ;;  %429 = vst.msk [vmem:[#allocation4 + $0x30] sm:$0xf] %vm337_vm7, %v418_v33 }
 0x115   : > { %v420_v34 = vpop.permute.xlu0 %419  ;;  %v508_v35 = vpop.permute.xlu1 %507  ;;  %v1315_v2 = vld [vmem:[#allocation4 + $0x10] sm:$0xff]  }
 0x116   : > { %430 = vst.msk [vmem:[#allocation4 + $0x34] sm:$0xf] %vm337_vm7, %v420_v34  ;;  %517 = vst.msk [vmem:[#allocation4 + $0x68] sm:$0xf] %vm337_vm7, %v508_v35 }
 0x119   : > { %v510_v37 = vpop.permute.xlu0 %509  ;;  %v390_v38 = vpop.permute.xlu1 %389  ;;  %v1305_v39 = vld [vmem:[#allocation4 + $0x38] sm:$0xff]  }
 0x11a   : > { %518 = vst.msk [vmem:[#allocation4 + $0x6c] sm:$0xf] %vm337_vm7, %v510_v37  ;;  %399 = vst.msk [vmem:[#allocation4 + $0x28] sm:$0xf] %vm337_vm7, %v390_v38  ;;  %1245 = vmatpush3.bf16.msra.mxu0 %v1305_v39 }
 0x11b   : > { %1246 = vmatprep.subr.bf16.mxu0 %v1306_v40 }
 0x11d   : > { %v392_v42 = vpop.permute.xlu0 %391  ;;  %v504_v43 = vpop.permute.xlu1 %503  ;;  %v1307_v44 = vld [vmem:[#allocation4 + $0x30] sm:$0xff]  }
 0x11e   : > { %400 = vst.msk [vmem:[#allocation4 + $0x2c] sm:$0xf] %vm337_vm7, %v392_v42  ;;  %515 = vst.msk [vmem:[#allocation4 + $0x60] sm:$0xf] %vm337_vm7, %v504_v43  ;;  %1247 = vmatpush3.bf16.msra.mxu0 %v1307_v44 }
 0x121   : > { %v506_v45 = vpop.permute.xlu0 %505  ;;  %v386_v46 = vpop.permute.xlu1 %385  ;;  %v1308_v47 = vld [vmem:[#allocation4 + $0x68] sm:$0xff]  }
 0x122   : > { %516 = vst.msk [vmem:[#allocation4 + $0x64] sm:$0xf] %vm337_vm7, %v506_v45  ;;  %397 = vst.msk [vmem:[#allocation4 + $0x20] sm:$0xf] %vm337_vm7, %v386_v46  ;;  %1248 = vmatprep.subr.bf16.mxu0 %v1308_v47 }
 0x125   : > { %v388_v48 = vpop.permute.xlu0 %387  ;;  %v477_v49 = vpop.permute.xlu1 %476  ;;  %v1309_v50 = vld [vmem:[#allocation4 + $0x28] sm:$0xff]  }
 0x126   : > { %398 = vst.msk [vmem:[#allocation4 + $0x24] sm:$0xf] %vm337_vm7, %v388_v48  ;;  %486 = vst.msk [vmem:[#allocation4 + $0x58] sm:$0xf] %vm337_vm7, %v477_v49  ;;  %1249 = vmatpush3.bf16.msra.mxu0 %v1309_v50 }
 0x129   : > { %v479_v51 = vpop.permute.xlu0 %478  ;;  %v473_v52 = vpop.permute.xlu1 %472  ;;  %v1310_v53 = vld [vmem:[#allocation4 + $0x60] sm:$0xff]  }
 0x12a   : > { %487 = vst.msk [vmem:[#allocation4 + $0x5c] sm:$0xf] %vm337_vm7, %v479_v51  ;;  %484 = vst.msk [vmem:[#allocation4 + $0x50] sm:$0xf] %vm337_vm7, %v473_v52  ;;  %1250 = vmatprep.subr.bf16.mxu0 %v1310_v53 }
 0x12d   : > { %v475_v55 = vpop.permute.xlu0 %474  ;;  %v446_v56 = vpop.permute.xlu1 %445  ;;  %v1311_v57 = vld [vmem:[#allocation4 + $0x20] sm:$0xff]  }
 0x12e   : > { %485 = vst.msk [vmem:[#allocation4 + $0x54] sm:$0xf] %vm337_vm7, %v475_v55  ;;  %455 = vst.msk [vmem:[#allocation4 + $0x48] sm:$0xf] %vm337_vm7, %v446_v56  ;;  %1251 = vmatpush3.bf16.msra.mxu0 %v1311_v57 }
 0x131   : > { %v448_v58 = vpop.permute.xlu0 %447  ;;  %v442_v59 = vpop.permute.xlu1 %441  ;;  %v1312_v60 = vld [vmem:[#allocation4 + $0x58] sm:$0xff]  }
 0x132   : > { %456 = vst.msk [vmem:[#allocation4 + $0x4c] sm:$0xf] %vm337_vm7, %v448_v58  ;;  %453 = vst.msk [vmem:[#allocation4 + $0x40] sm:$0xf] %vm337_vm7, %v442_v59  ;;  %1252 = vmatprep.subr.bf16.mxu0 %v1312_v60 }
 0x133   : > { %1253 = vmatpush3.bf16.msra.mxu0 %v1313_v61 }
 0x135   : > { %v444_v62 = vpop.permute.xlu0 %443  ;;  %v563_v63 = vpop.permute.xlu1 %562  ;;  %v1314_v0 = vld [vmem:[#allocation4 + $0x50] sm:$0xff]  }
 0x136   : > { %454 = vst.msk [vmem:[#allocation4 + $0x44] sm:$0xf] %vm337_vm7, %v444_v62  ;;  %572 = vst.msk [vmem:[#allocation4 + $0x88] sm:$0xf] %vm337_vm7, %v563_v63  ;;  %1254 = vmatprep.subr.bf16.mxu0 %v1314_v0 }
 0x137   : > { %1255 = vmatpush3.bf16.msra.mxu0 %v1315_v2 }
 0x139   : > { %v565_v3 = vpop.permute.xlu0 %564  ;;  %v559_v4 = vpop.permute.xlu1 %558  ;;  %v1316_v6 = vld [vmem:[#allocation4 + $0x48] sm:$0xff]  }
 0x13a   : > { %573 = vst.msk [vmem:[#allocation4 + $0x8c] sm:$0xf] %vm337_vm7, %v565_v3  ;;  %570 = vst.msk [vmem:[#allocation4 + $0x80] sm:$0xf] %vm337_vm7, %v559_v4  ;;  %1256 = vmatprep.subr.bf16.mxu0 %v1316_v6  ;;  %v987_v6 = vld [vmem:[%s1695_s5] sm:$0xff] }
 0x13b   : > { %1257 = vmatpush3.bf16.msra.mxu0 %v1317_v7  ;;  %v1337_v7 = vld [vmem:[%s1694_s4 + $0x4] ss:$8 sps:$4 sm:$0xff]  }
 0x13c   : > { %1232 = vmatprep.mubr.msk.bf16.mxu1 %vm1062_vm15, %v1337_v7 }
 0x13d   : > { %v561_v9 = vpop.permute.xlu0 %560  ;;  %v1318_v10 = vld [vmem:[#allocation4 + $0x40] sm:$0xff]  }
 0x13e   : > { %571 = vst.msk [vmem:[#allocation4 + $0x84] sm:$0xf] %vm337_vm7, %v561_v9  ;;  %1258 = vmatprep.subr.bf16.mxu0 %v1318_v10  ;;  %v988_v9 = vld [vmem:[%s1695_s5 + $0x8] sm:$0xff] }
 0x13f   : > { %1259 = vmatpush3.bf16.msra.mxu0 %v1319_v11 }
 0x140   : > { %1269 = vmatprep.subr.bf16.mxu0 %v1361_v13 }
 0x141   : > { %v1323_v14 = vld [vmem:[#allocation4 + $0x88] sm:$0xff]  }
 0x142   : > { %786 = vmatmul.mubr.bf16.vlgmr.msra.gmra.mxu0 %v1320_v12 }
 0x143   : > { %1270 = vmatpush3.bf16.msra.mxu0 %v1323_v14  ;;  %1273 = vmatprep.mubr.msk.bf16.mxu0 %vm1362_vm13, %v1361_v13 }
 0x144   : > { %1271 = vmatprep.subr.bf16.mxu0 %v1361_v13 }
 0x145   : > { %v1324_v15 = vld [vmem:[#allocation4 + $0x80] sm:$0xff]  }
 0x146   : > { %v619_v21 = vpop.permute.xlu1 %618 }
 0x147   : > { %1272 = vmatpush3.bf16.msra.mxu0 %v1324_v15 }
 0x14a   : > { %1274 = vmatmul.mubr.msk.bf16.vlgmr.msra.gmra.mxu0 %vm749_vm14, %v1325_v16  ;;  %v624_v25 = vpop.permute.xlu0 %623 }
 0x202   : > { %v1260_v17 = vpop.f32.mrf.mxu0 }
 0x204   : > { %v1261_v18 = vpop.f32.mrf.mxu0 }
 0x205   : > { %v1262_v19 = vadd.f32 %v1261_v18, %v1260_v17 }
 0x206   : > { %v1263_v20 = vpop.f32.mrf.mxu0 }
 0x207   : > { %v788_v23 = vadd.f32 %v1262_v19, %v619_v21 }
 0x208   : > { %v1264_v22 = vpop.f32.mrf.mxu0 }
 0x209   : > { %v1265_v24 = vadd.f32 %v1264_v22, %v1263_v20 }
 0x20a   : > { %v828_v26 = vpop.f32.mrf.mxu0 }
 0x20b   : > { %v829_v27 = vadd.f32 %v828_v26, %v788_v23  ;;  %v791_v30 = vadd.f32 %v1265_v24, %v624_v25 }
 0x20c   : > { %v1275_v29 = vpop.f32.mrf.mxu0 }
 0x20d   : > { %v835_v31 = vmax.f32 %v829_v27, 0.0 }
 0x20e   : > { %v831_v32 = vpop.f32.mrf.mxu0 }
 0x20f   : > { %v1240_v33 = vpack.c.bf16 %v835_v31, %v835_v31  ;;  %v832_v34 = vadd.f32 %v831_v32, %v791_v30 }
 0x210   : > { %v1276_v35 = vpop.f32.mrf.mxu0 }
 0x211   : > { %v836_v37 = vmax.f32 %v832_v34, 0.0  ;;  %847 = vrot.lane.b32.xlu1 %v1240_v33, %s1347_s30  ;;  %v1335_v35 = vld [vmem:[%s1694_s4] ss:$8 sps:$4 sm:$0xff]  }
 0x213   : > { %v1241_v38 = vpack.c.bf16 %v836_v37, %v836_v37 }
 0x215   : > { %849 = vrot.lane.b32.xlu1 %v1241_v38, %s1347_s30 }
 0x283   : > { %v848_v39 = vpop.permute.xlu1 %847 }
 0x284   : > { %853 = vst.msk [vmem:[#allocation3] sm:$0xf] %vm313_vm6, %v848_v39 }
 0x287   : > { %v850_v40 = vpop.permute.xlu1 %849 }
 0x288   : > { %854 = vst.msk [vmem:[#allocation3 + $0x4] sm:$0xf] %vm313_vm6, %v850_v40 }
 0x28b   : > { %v855_v42 = vld [vmem:[#allocation3] sm:$0xf] }
 0x28c   : > { %v941_v43 = vld [vmem:[#allocation3] sm:$0xf]  ;;  %v857_v44 = vsel %vm1439_vm3, %v855_v42, 0 }
 0x28d   : > { %945 = vrot.lane.b32.xlu0 %v941_v43, %s1353_s12  ;;  %v927_v45 = vld [vmem:[#allocation3] sm:$0xf]  ;;  %859 = vst.msk [vmem:[#allocation4] sm:$0xf] %vm337_vm7, %v857_v44 }
 0x28e   : > { %v929_v47 = vsel %vm494_vm9, %v927_v45, 0  ;;  %v913_v50 = vld [vmem:[#allocation3] sm:$0xf] }
 0x28f   : > { %v856_v46 = vld [vmem:[#allocation3 + $0x4] sm:$0xf]  ;;  %v915_v52 = vsel %vm463_vm11, %v913_v50, 0  ;;  %v901_v55 = vld [vmem:[#allocation3] sm:$0xf] }
 0x290   : > { %v942_v48 = vld [vmem:[#allocation3 + $0x4] sm:$0xf]  ;;  %v858_v49 = vsel %vm1439_vm3, %v856_v46, 0  ;;  %v887_v57 = vld [vmem:[#allocation3] sm:$0xf] }
 0x291   : > { %933 = vrot.lane.b32.xlu0 %v929_v47, %s1356_s15  ;;  %947 = vrot.lane.b32.xlu1 %v942_v48, %s1353_s12  ;;  %v928_v51 = vld [vmem:[#allocation3 + $0x4] sm:$0xf]  ;;  %860 = vst.msk [vmem:[#allocation4 + $0x4] sm:$0xf] %vm337_vm7, %v858_v49  ;;  %v889_v58 = vsel %vm408_vm8, %v887_v57, 0 }
 0x292   : > { %v930_v53 = vsel %vm494_vm9, %v928_v51, 0  ;;  %v914_v8 = vld [vmem:[#allocation3 + $0x4] sm:$0xf]  ;;  %v873_v36 = vld [vmem:[#allocation3] sm:$0xf] }
 0x293   : > { %v916_v56 = vsel %vm463_vm11, %v914_v8, 0  ;;  %v902_v59 = vld [vmem:[#allocation3 + $0x4] sm:$0xf]  ;;  %v875_v61 = vsel %vm376_vm10, %v873_v36, 0  ;;  %v861_v63 = vld [vmem:[#allocation3] sm:$0xf] }
 0x294   : > { %v888_v60 = vld [vmem:[#allocation3 + $0x4] sm:$0xf]  ;;  %v953_v2 = vld [vmem:[#allocation3] sm:$0xf] }
 0x295   : > { %919 = vrot.lane.b32.xlu0 %v915_v52, %s1358_s17  ;;  %935 = vrot.lane.b32.xlu1 %v930_v53, %s1356_s15  ;;  %v890_v54 = vsel %vm408_vm8, %v888_v60, 0  ;;  %v874_v62 = vld [vmem:[#allocation3 + $0x4] sm:$0xf]  ;;  %v955_v3 = vsel %vm549_vm12, %v953_v2, 0 }
 0x296   : > { %v876_v0 = vsel %vm376_vm10, %v874_v62, 0  ;;  %v862_v4 = vld [vmem:[#allocation3 + $0x4] sm:$0xf] }
 0x297   : > { %v954_v28 = vld [vmem:[#allocation3 + $0x4] sm:$0xf] }
 0x298   : > { %v956_v41 = vsel %vm549_vm12, %v954_v28, 0  ;;  %v1333_v33 = vld [vmem:[#allocation4] sm:$0xff]  }
 0x299   : > { %905 = vrot.lane.b32.xlu0 %v901_v55, %s1359_s18  ;;  %921 = vrot.lane.b32.xlu1 %v916_v56, %s1358_s17 }
 0x29d   : > { %893 = vrot.lane.b32.xlu0 %v889_v58, %s1355_s14  ;;  %907 = vrot.lane.b32.xlu1 %v902_v59, %s1359_s18  ;;  %s271_s18 = scalar_lea.vmem %s1696_s6, %s1427_s23 }
 0x2a1   : > { %879 = vrot.lane.b32.xlu0 %v875_v61, %s1357_s16  ;;  %895 = vrot.lane.b32.xlu1 %v890_v54, %s1355_s14 }
 0x2a5   : > { %865 = vrot.lane.b32.xlu0 %v861_v63, %s1354_s13  ;;  %881 = vrot.lane.b32.xlu1 %v876_v0, %s1357_s16 }
 0x2a9   : > { %959 = vrot.lane.b32.xlu0 %v955_v3, %s1360_s22  ;;  %867 = vrot.lane.b32.xlu1 %v862_v4, %s1354_s13 }
 0x2ad   : > { %991 = vperm.xlu0 %1303, %v987_v6   ;;  %961 = vrot.lane.b32.xlu1 %v956_v41, %s1360_s22 }
 0x2b1   : > { %996 = vperm.xlu1 %1302, %v988_v9  }
 0x2ff   : > { %v946_v10 = vpop.permute.xlu0 %945 }
 0x300   : > { %951 = vst.msk [vmem:[#allocation4 + $0x38] sm:$0xf] %vm337_vm7, %v946_v10 }
 0x303   : > { %v934_v11 = vpop.permute.xlu0 %933  ;;  %v948_v5 = vpop.permute.xlu1 %947 }
 0x304   : > { %939 = vst.msk [vmem:[#allocation4 + $0x30] sm:$0xf] %vm337_vm7, %v934_v11  ;;  %952 = vst.msk [vmem:[#allocation4 + $0x3c] sm:$0xf] %vm337_vm7, %v948_v5 }
 0x307   : > { %v920_v12 = vpop.permute.xlu0 %919  ;;  %v936_v13 = vpop.permute.xlu1 %935 }
 0x308   : > { %925 = vst.msk [vmem:[#allocation4 + $0x28] sm:$0xf] %vm337_vm7, %v920_v12  ;;  %940 = vst.msk [vmem:[#allocation4 + $0x34] sm:$0xf] %vm337_vm7, %v936_v13 }
 0x30b   : > { %v906_v14 = vpop.permute.xlu0 %905  ;;  %v922_v15 = vpop.permute.xlu1 %921  ;;  %v1326_v16 = vld [vmem:[#allocation4 + $0x38] sm:$0xff]  }
 0x30c   : > { %911 = vst.msk [vmem:[#allocation4 + $0x20] sm:$0xf] %vm337_vm7, %v906_v14  ;;  %926 = vst.msk [vmem:[#allocation4 + $0x2c] sm:$0xf] %vm337_vm7, %v922_v15  ;;  %1067 = vmatpush1.bf16.msra.mxu1 %v1326_v16 }
 0x30d   : > { %1068 = vmatprep.subr.bf16.mxu1 %v1346_v1 }
 0x30f   : > { %v894_v17 = vpop.permute.xlu0 %893  ;;  %v908_v18 = vpop.permute.xlu1 %907  ;;  %v1327_v19 = vld [vmem:[#allocation4 + $0x30] sm:$0xff]  }
 0x310   : > { %899 = vst.msk [vmem:[#allocation4 + $0x18] sm:$0xf] %vm337_vm7, %v894_v17  ;;  %912 = vst.msk [vmem:[#allocation4 + $0x24] sm:$0xf] %vm337_vm7, %v908_v18  ;;  %1069 = vmatpush1.bf16.msra.mxu1 %v1327_v19 }
 0x311   : > { %1070 = vmatprep.subr.bf16.mxu1 %v1346_v1 }
 0x313   : > { %v880_v20 = vpop.permute.xlu0 %879  ;;  %v896_v21 = vpop.permute.xlu1 %895  ;;  %v1328_v22 = vld [vmem:[#allocation4 + $0x28] sm:$0xff]  }
 0x314   : > { %885 = vst.msk [vmem:[#allocation4 + $0x10] sm:$0xf] %vm337_vm7, %v880_v20  ;;  %900 = vst.msk [vmem:[#allocation4 + $0x1c] sm:$0xf] %vm337_vm7, %v896_v21  ;;  %1071 = vmatpush1.bf16.msra.mxu1 %v1328_v22 }
 0x315   : > { %1072 = vmatprep.subr.bf16.mxu1 %v1346_v1 }
 0x317   : > { %v866_v23 = vpop.permute.xlu0 %865  ;;  %v882_v24 = vpop.permute.xlu1 %881  ;;  %v1329_v25 = vld [vmem:[#allocation4 + $0x20] sm:$0xff]  }
 0x318   : > { %871 = vst.msk [vmem:[#allocation4 + $0x8] sm:$0xf] %vm337_vm7, %v866_v23  ;;  %886 = vst.msk [vmem:[#allocation4 + $0x14] sm:$0xf] %vm337_vm7, %v882_v24  ;;  %1073 = vmatpush1.bf16.msra.mxu1 %v1329_v25 }
 0x319   : > { %1074 = vmatprep.subr.bf16.mxu1 %v1346_v1 }
 0x31b   : > { %v960_v26 = vpop.permute.xlu0 %959  ;;  %v868_v27 = vpop.permute.xlu1 %867  ;;  %v1330_v29 = vld [vmem:[#allocation4 + $0x18] sm:$0xff]  }
 0x31c   : > { %965 = vst.msk [vmem:[#allocation4 + $0x40] sm:$0xf] %vm337_vm7, %v960_v26  ;;  %872 = vst.msk [vmem:[#allocation4 + $0xc] sm:$0xf] %vm337_vm7, %v868_v27  ;;  %1075 = vmatpush1.bf16.msra.mxu1 %v1330_v29 }
 0x31d   : > { %1076 = vmatprep.subr.bf16.mxu1 %v1346_v1 }
 0x31f   : > { %v962_v30 = vpop.permute.xlu1 %961  ;;  %v1331_v31 = vld [vmem:[#allocation4 + $0x10] sm:$0xff]  }
 0x320   : > { %966 = vst.msk [vmem:[#allocation4 + $0x44] sm:$0xf] %vm337_vm7, %v962_v30  ;;  %1077 = vmatpush1.bf16.msra.mxu1 %v1331_v31 }
 0x321   : > { %1078 = vmatprep.subr.bf16.mxu1 %v1346_v1 }
 0x323   : > { %v1332_v32 = vld [vmem:[#allocation4 + $0x8] sm:$0xff]  }
 0x324   : > { %1079 = vmatpush1.bf16.msra.mxu1 %v1332_v32 }
 0x325   : > { %1080 = vmatprep.subr.bf16.mxu1 %v1346_v1 }
 0x327   : > { %v1334_v34 = vld [vmem:[#allocation4 + $0x40] sm:$0xff]  }
 0x328   : > { %1081 = vmatpush1.bf16.msra.mxu1 %v1333_v33  ;;  %v992_v37 = vpop.permute.xlu0 %991 }
 0x329   : > { %1096 = vmatprep.subr.bf16.mxu1 %v1346_v1 }
 0x32c   : > { %1097 = vmatpush2.bf16.msra.mxu1 %v1334_v34  ;;  %v997_v43 = vpop.permute.xlu1 %996 }
 0x32f   : > { %1099 = vmatmul.mubr.bf16.vlgmr.msra.gmra.mxu1 %v1335_v35 }
 0x3ef   : > { %v1100_v38 = vpop.f32.mrf.mxu1 }
 0x3f0   : > { %v1101_v39 = vadd.f32 %v1100_v38, %v992_v37 }
 0x3f1   : > { %v1102_v40 = vpop.f32.mrf.mxu1 }
 0x3f2   : > { %v1107_v42 = vmax.f32 %v1101_v39, 0.0 }
 0x3f3   : > { %v1103_v44 = vpop.f32.mrf.mxu1 }
 0x3f4   : > { %v1242_v45 = vpack.c.bf16 %v1107_v42, %v1107_v42  ;;  %v1104_v1 = vadd.f32 %v1103_v44, %v997_v43 }
 0x3f5   : > { %v1105_v46 = vpop.f32.mrf.mxu1 }
 0x3f6   : > { %1117 = vst.msk [vmem:[%s271_s18] sm:$0xf] %vm337_vm7, %v1242_v45  ;;  %v1108_v47 = vmax.f32 %v1104_v1, 0.0 }
 0x3f8   : > { %v1243_v48 = vpack.c.bf16 %v1108_v47, %v1108_v47 }
 0x3fa   : > { %1118 = vst.msk [vmem:[%s271_s18 + $0x4] sm:$0xf] %vm337_vm7, %v1243_v48 }
 0x3fb PF: > { %s16_s21 = sadd.s32 1, %s1344_s21  }
 0x3fc   : > { %p13_p4 = scmp.ge.s32.totalorder %s16_s21, 4  }
 0x3fe   :  { %15 = sbr.rel (!%p13_p4) target bundleno = 1 (0x1), region = 77 }

// kernel: decoder_forward.5
= control target key start
LH: loop header
LB: loop body
LE: loop exit
PB: predicated region body
PF: predicated region fallthrough
CT: control target
= control target key end

     0   :  { %s1254_s21 = smov 0   ;;  %s1487_s0 = inlined_call_operand.vmem [shape: bf16[2,16,64], index: 0, kind: input, shape index: {}]   ;;  %s1488_s1 = inlined_call_operand.vmem [shape: bf16[2,16,64], index: 1, kind: input, shape index: {}]   ;;  %s1489_s2 = inlined_call_operand.vmem [shape: bf16[8,288], index: 2, kind: input, shape index: {}]   ;;  %s1490_s3 = inlined_call_operand.vmem [shape: f32[8,1], index: 3, kind: input, shape index: {}]   ;;  %s1491_s4 = inlined_call_operand.vmem [shape: bf16[8,72], index: 4, kind: input, shape index: {}]   ;;  %s1492_s5 = inlined_call_operand.vmem [shape: f32[8,1], index: 5, kind: input, shape index: {}]   ;;  %s1493_s6 = inlined_call_operand.vmem [shape: bf16[2,8,64], index: 6, kind: output, shape index: {}]  }
   0x1 LB: > { %s1044_s22 = sadd.s32 4294967295, %s1200_s21   ;;  %p1048_p0 = scmp.ge.s32.totalorder %s1200_s21, 1  ;;  %s1200_s21 = sphi %s1254_s21, %s16_s21  }
   0x2   : > { %p222_p1 = scmp.lt.s32.totalorder %s1200_s21, 3 }
   0x4   : > { %p223_p2 = pnand %p1048_p0, %p222_p1 }
   0x5   : > { %p256_p3 = scmp.lt.s32.totalorder (!%p223_p2), %s1044_s22, 1  ;;  %s1203_s30 = smov (!%p223_p2), 9  }
   0x6   : > { %226 = sbr.rel (%p223_p2) target bundleno = 996 (0x3e4), region = 44  ;;  %s1204_s7 = smov (!%p223_p2), 8  }
   0x7   : > { %s1205_s8 = smov (!%p223_p2), 16   ;;  %s1206_s9 = smov (!%p223_p2), 2  }
   0x8   : > { %s1207_s10 = smov (!%p223_p2), 10   ;;  %s1208_s11 = smov (!%p223_p2), 18  }
   0x9   : > { %s1209_s12 = smov (!%p223_p2), 111   ;;  %s1210_s13 = smov (!%p223_p2), 127  }
   0xa   : > { %s1211_s14 = smov (!%p223_p2), 120   ;;  %s1212_s15 = smov (!%p223_p2), 112  }
   0xb   : > { %v273_v0 = vlaneseq  ;;  %vm293_vm0 = vcmask 68608   ;;  %vm298_vm1 = vcmask 667208   ;;  %v1202_v1 = vmov 0   ;;  %s1497_s22 = smov (!%p256_p3, %s1044_s22), 1  ;;  %s1213_s16 = smov 126  }
   0xc   : > { %296 = vst.msk [vmem:[#allocation2 + $0x8] sm:$0xf] %vm293_vm0, %v1202_v1  ;;  %294 = vst.msk [vmem:[#allocation2] sm:$0xf] %vm293_vm0, %v1202_v1  ;;  %1166 = vset.pattern.permute.xlu1 %v1202_v1  ;;  %1167 = vset.pattern.permute.xlu0 %v1202_v1  ;;  %s1085_s23 = sshll.u32 %s1497_s22, 3  ;;  %vm311_vm6 = vcmask 592968  }
   0xd   : > { %295 = vst.msk [vmem:[#allocation2 + $0x4] sm:$0xf] %vm293_vm0, %v1202_v1  ;;  %297 = vst.msk [vmem:[#allocation2 + $0xc] sm:$0xf] %vm293_vm0, %v1202_v1  ;;  %v274_v2 = vand.u32 127, %v273_v0  ;;  %s265_s26 = scalar_lea.vmem %s1488_s1, %s1085_s23  ;;  %s260_s29 = scalar_lea.vmem %s1487_s0, %s1085_s23  ;;  %vm335_vm7 = vcmask 519168  }
   0xe   : > { %819 = vst.msk [vmem:[#allocation3] sm:$0xf] %vm293_vm0, %v1202_v1  ;;  %v291_v4 = vld [vmem:[%s265_s26] sm:$0xf]  ;;  %v292_v6 = vld [vmem:[%s265_s26 + $0x4] sm:$0xf] }
   0xf   : > { %301 = vst.msk [vmem:[#allocation2 + $0x8] sm:$0xf] %vm298_vm1, %v1202_v1  ;;  %299 = vst.msk [vmem:[#allocation2] sm:$0xf] %vm298_vm1, %v1202_v1  ;;  %v279_v3 = vand.u32 7, %v274_v2  ;;  %316 = vrot.lane.b32.xlu0 %v291_v4, %s1203_s30  ;;  %s1214_s17 = smov 118  }
  0x10   : > { %300 = vst.msk [vmem:[#allocation2 + $0x4] sm:$0xf] %vm298_vm1, %v1202_v1  ;;  %302 = vst.msk [vmem:[#allocation2 + $0xc] sm:$0xf] %vm298_vm1, %v1202_v1  ;;  %v289_v5 = vld [vmem:[%s260_s29] sm:$0xf] }
  0x11   : > { %820 = vst.msk [vmem:[#allocation3] sm:$0xf] %vm298_vm1, %v1202_v1  ;;  %vm287_vm2 = vcmp.ne.s32.totalorder %v279_v3, 0  ;;  %305 = vrot.lane.b32.xlu1 %v289_v5, %s1203_s30  ;;  %v290_v7 = vld [vmem:[%s260_s29 + $0x4] sm:$0xf]  ;;  %vm288_vm4 = vcmp.ne.s32.totalorder %v279_v3, 7 }
  0x12   : > { %vm1273_vm3 = vmpackc.low %vm287_vm2, %vm287_vm2  ;;  %s1215_s18 = smov 119   ;;  %s1217_s23 = smov 110   ;;  %vm1218_vm13 = vmmov 0   ;;  %vm734_vm14 = vcmask 261120   ;;  %vm932_vm15 = vcmask 1043456   ;;  %vm928_vm0 = vcmask 588800  }
  0x13   : > { %318 = vrot.lane.b32.xlu0 %v292_v6, %s1203_s30  ;;  %v403_v9 = vsel %vm1273_vm3, 65537, %v1202_v1  ;;  %vm370_vm5 = vmpackc.low %vm288_vm4, %vm288_vm4 }
  0x14   : > { %v371_v10 = vsel %vm370_vm5, 65537, %v1202_v1 }
  0x15   : > { %307 = vrot.lane.b32.xlu1 %v290_v7, %s1203_s30  ;;  %v1374_v7 = vld [vmem:[%s1489_s2] sm:$0xff] }
  0x17   : > { %404 = vrot.lane.b32.xlu0 %v403_v9, %s1204_s7 }
  0x19   : > { %490 = vrot.lane.b32.xlu1 %v403_v9, %s1205_s8  ;;  %s1053_s8 = sshll.u32 %s1497_s22, 2 }
  0x1b   : > { %372 = vrot.lane.b32.xlu0 %v371_v10, %s1206_s9 }
  0x1d   : > { %459 = vrot.lane.b32.xlu1 %v371_v10, %s1207_s10 }
  0x1f   : > { %545 = vrot.lane.b32.xlu0 %v371_v10, %s1208_s11  ;;  %v1055_v10 = vcombine.high %v1374_v7, %v1374_v7  ;;  %s269_s11 = scalar_lea.vmem %s1493_s6, %s1053_s8 }
  0x21   : > { %770 = vmatprep.mubr.bf16.mxu0 %v1055_v10 }
  0x81   : > { %v317_v11 = vpop.permute.xlu0 %316 }
  0x82   : > { %322 = vst.msk [vmem:[#allocation2 + $0x8] sm:$0xf] %vm311_vm6, %v317_v11  ;;  %v1216_v11 = vmov 0.0  }
  0x83   : > { %v306_v12 = vpop.permute.xlu1 %305  ;;  %1119 = vmatprep.subr.bf16.mxu1 %v1216_v11  ;;  %1123 = vmatprep.mubr.msk.bf16.mxu1 %vm1218_vm13, %v1216_v11 }
  0x84   : > { %312 = vst.msk [vmem:[#allocation2] sm:$0xf] %vm311_vm6, %v306_v12 }
  0x85   : > { %v319_v13 = vpop.permute.xlu0 %318 }
  0x86   : > { %323 = vst.msk [vmem:[#allocation2 + $0xc] sm:$0xf] %vm311_vm6, %v319_v13 }
  0x87   : > { %v308_v14 = vpop.permute.xlu1 %307 }
  0x88   : > { %313 = vst.msk [vmem:[#allocation2 + $0x4] sm:$0xf] %vm311_vm6, %v308_v14 }
  0x89   : > { %v326_v15 = vld [vmem:[#allocation2 + $0x8] sm:$0xf]  ;;  %v1302_v28 = vpop.permute.xlu0 %404 }
  0x8a   : > { %v519_v16 = vld [vmem:[#allocation2 + $0x8] sm:$0xf]  ;;  %v333_v17 = vsel %vm1273_vm3, %v326_v15, 0  ;;  %vm406_vm8 = vcmp.ne.s16.totalorder %v1302_v28, 0 }
  0x8b   : > { %v324_v18 = vld [vmem:[#allocation2] sm:$0xf]  ;;  %529 = vrot.lane.b32.xlu1 %v519_v16, %s1209_s12  ;;  %338 = vst.msk [vmem:[#allocation4 + $0x8] sm:$0xf] %vm335_vm7, %v333_v17  ;;  %v342_v27 = vld [vmem:[#allocation2 + $0x8] sm:$0xf]  ;;  %v1311_v36 = vpop.permute.xlu1 %490 }
  0x8c   : > { %v331_v19 = vsel %vm1273_vm3, %v324_v18, 0  ;;  %v517_v20 = vld [vmem:[#allocation2] sm:$0xf]  ;;  %v401_v31 = vld [vmem:[#allocation2 + $0x8] sm:$0xf]  ;;  %vm492_vm9 = vcmp.ne.s16.totalorder %v1311_v36, 0 }
  0x8d   : > { %336 = vst.msk [vmem:[#allocation4] sm:$0xf] %vm335_vm7, %v331_v19  ;;  %v327_v21 = vld [vmem:[#allocation2 + $0xc] sm:$0xf]  ;;  %v340_v29 = vld [vmem:[#allocation2] sm:$0xf]  ;;  %v1320_v41 = vpop.permute.xlu0 %372 }
  0x8e   : > { %v520_v22 = vld [vmem:[#allocation2 + $0xc] sm:$0xf]  ;;  %v334_v23 = vsel %vm1273_vm3, %v327_v21, 0  ;;  %v409_v32 = vsel %vm406_vm8, %v401_v31, 0  ;;  %v399_v34 = vld [vmem:[#allocation2] sm:$0xf] }
  0x8f   : > { %v325_v24 = vld [vmem:[#allocation2 + $0x4] sm:$0xf]  ;;  %531 = vrot.lane.b32.xlu0 %v520_v22, %s1209_s12  ;;  %525 = vrot.lane.b32.xlu1 %v517_v20, %s1209_s12  ;;  %339 = vst.msk [vmem:[#allocation4 + $0xc] sm:$0xf] %vm335_vm7, %v334_v23  ;;  %v343_v30 = vld [vmem:[#allocation2 + $0xc] sm:$0xf]  ;;  %v1341_v54 = vpop.permute.xlu1 %459 }
  0x90   : > { %v332_v25 = vsel %vm1273_vm3, %v325_v24, 0  ;;  %v518_v26 = vld [vmem:[#allocation2 + $0x4] sm:$0xf]  ;;  %v402_v35 = vld [vmem:[#allocation2 + $0xc] sm:$0xf]  ;;  %v407_v37 = vsel %vm406_vm8, %v399_v34, 0 }
  0x91   : > { %337 = vst.msk [vmem:[#allocation4 + $0x4] sm:$0xf] %vm335_vm7, %v332_v25  ;;  %v341_v33 = vld [vmem:[#allocation2 + $0x4] sm:$0xf]  ;;  %v410_v38 = vsel %vm406_vm8, %v402_v35, 0  ;;  %vm374_vm10 = vcmp.ne.s16.totalorder %v1320_v41, 0  ;;  %v1366_v4 = vpop.permute.xlu0 %545 }
  0x92   : > { %v400_v39 = vld [vmem:[#allocation2 + $0x4] sm:$0xf]  ;;  %v488_v40 = vld [vmem:[#allocation2 + $0x8] sm:$0xf]  ;;  %v489_v44 = vld [vmem:[#allocation2 + $0xc] sm:$0xf] }
  0x93   : > { %352 = vrot.lane.b32.xlu1 %v342_v27, %s1210_s13  ;;  %527 = vrot.lane.b32.xlu0 %v518_v26, %s1209_s12  ;;  %v408_v42 = vsel %vm406_vm8, %v400_v39, 0  ;;  %v495_v43 = vsel %vm492_vm9, %v488_v40, 0  ;;  %v366_v45 = vld [vmem:[#allocation2 + $0x8] sm:$0xf]  ;;  %v496_v46 = vsel %vm492_vm9, %v489_v44, 0  ;;  %vm461_vm11 = vcmp.ne.s16.totalorder %v1341_v54, 0 }
  0x94   : > { %v377_v47 = vsel %vm374_vm10, %v366_v45, 0  ;;  %v367_v48 = vld [vmem:[#allocation2 + $0xc] sm:$0xf]  ;;  %v486_v49 = vld [vmem:[#allocation2] sm:$0xf]  ;;  %vm547_vm12 = vcmp.ne.s16.totalorder %v1366_v4, 0 }
  0x95   : > { %v378_v50 = vsel %vm374_vm10, %v367_v48, 0  ;;  %v493_v51 = vsel %vm492_vm9, %v486_v49, 0  ;;  %v487_v52 = vld [vmem:[#allocation2 + $0x4] sm:$0xf]  ;;  %v364_v53 = vld [vmem:[#allocation2] sm:$0xf] }
  0x96   : > { %v494_v55 = vsel %vm492_vm9, %v487_v52, 0  ;;  %v375_v56 = vsel %vm374_vm10, %v364_v53, 0  ;;  %v365_v57 = vld [vmem:[#allocation2 + $0x4] sm:$0xf]  ;;  %v457_v58 = vld [vmem:[#allocation2 + $0x8] sm:$0xf] }
  0x97   : > { %348 = vrot.lane.b32.xlu1 %v340_v29, %s1210_s13  ;;  %354 = vrot.lane.b32.xlu0 %v343_v30, %s1210_s13  ;;  %v376_v59 = vsel %vm374_vm10, %v365_v57, 0  ;;  %v464_v60 = vsel %vm461_vm11, %v457_v58, 0  ;;  %v458_v61 = vld [vmem:[#allocation2 + $0xc] sm:$0xf]  ;;  %v455_v62 = vld [vmem:[#allocation2] sm:$0xf] }
  0x98   : > { %v465_v63 = vsel %vm461_vm11, %v458_v61, 0  ;;  %v462_v0 = vsel %vm461_vm11, %v455_v62, 0  ;;  %v456_v1 = vld [vmem:[#allocation2 + $0x4] sm:$0xf]  ;;  %v433_v3 = vld [vmem:[#allocation2 + $0x8] sm:$0xf] }
  0x99   : > { %v463_v2 = vsel %vm461_vm11, %v456_v1, 0  ;;  %v434_v5 = vld [vmem:[#allocation2 + $0xc] sm:$0xf]  ;;  %v431_v6 = vld [vmem:[#allocation2] sm:$0xf] }
  0x9a   : > { %v543_v9 = vld [vmem:[#allocation2 + $0x8] sm:$0xf]  ;;  %v432_v12 = vld [vmem:[#allocation2 + $0x4] sm:$0xf]  ;;  %v544_v14 = vld [vmem:[#allocation2 + $0xc] sm:$0xf] }
  0x9b   : > { %419 = vrot.lane.b32.xlu1 %v409_v32, %s1211_s14  ;;  %350 = vrot.lane.b32.xlu0 %v341_v33, %s1210_s13  ;;  %v550_v13 = vsel %vm547_vm12, %v543_v9, 0  ;;  %v541_v15 = vld [vmem:[#allocation2] sm:$0xf]  ;;  %v551_v16 = vsel %vm547_vm12, %v544_v14, 0  ;;  %v542_v18 = vld [vmem:[#allocation2 + $0x4] sm:$0xf] }
  0x9c   : > { %v548_v17 = vsel %vm547_vm12, %v541_v15, 0  ;;  %v549_v19 = vsel %vm547_vm12, %v542_v18, 0  ;;  %v610_v20 = vld [vmem:[%s1490_s3] sm:$0xff] }
  0x9d   : > { %v895_v54 = vld [vmem:[%s1492_s5] sm:$0xff] }
  0x9f   : > { %415 = vrot.lane.b32.xlu1 %v407_v37, %s1211_s14  ;;  %421 = vrot.lane.b32.xlu0 %v410_v38, %s1211_s14 }
  0xa3   : > { %417 = vrot.lane.b32.xlu0 %v408_v42, %s1211_s14  ;;  %505 = vrot.lane.b32.xlu1 %v495_v43, %s1212_s15 }
  0xa7   : > { %507 = vrot.lane.b32.xlu0 %v496_v46, %s1212_s15  ;;  %387 = vrot.lane.b32.xlu1 %v377_v47, %s1213_s16 }
  0xab   : > { %389 = vrot.lane.b32.xlu0 %v378_v50, %s1213_s16  ;;  %501 = vrot.lane.b32.xlu1 %v493_v51, %s1212_s15 }
  0xaf   : > { %503 = vrot.lane.b32.xlu0 %v494_v55, %s1212_s15  ;;  %383 = vrot.lane.b32.xlu1 %v375_v56, %s1213_s16 }
  0xb3   : > { %385 = vrot.lane.b32.xlu0 %v376_v59, %s1213_s16  ;;  %474 = vrot.lane.b32.xlu1 %v464_v60, %s1214_s17 }
  0xb7   : > { %476 = vrot.lane.b32.xlu0 %v465_v63, %s1214_s17  ;;  %470 = vrot.lane.b32.xlu1 %v462_v0, %s1214_s17 }
  0xbb   : > { %472 = vrot.lane.b32.xlu0 %v463_v2, %s1214_s17  ;;  %443 = vrot.lane.b32.xlu1 %v433_v3, %s1215_s18 }
  0xbf   : > { %445 = vrot.lane.b32.xlu0 %v434_v5, %s1215_s18  ;;  %439 = vrot.lane.b32.xlu1 %v431_v6, %s1215_s18  ;;  %v1181_v6 = vld [vmem:[#allocation4 + $0x8] sm:$0xff]  }
  0xc3   : > { %441 = vrot.lane.b32.xlu0 %v432_v12, %s1215_s18  ;;  %560 = vrot.lane.b32.xlu1 %v550_v13, %s1217_s23  ;;  %v1183_v12 = vld [vmem:[#allocation4] sm:$0xff]   ;;  %v1054_v13 = vcombine.low %v1374_v7, %v1374_v7 }
  0xc7   : > { %562 = vrot.lane.b32.xlu0 %v551_v16, %s1217_s23  ;;  %556 = vrot.lane.b32.xlu1 %v548_v17, %s1217_s23  ;;  %v1188_v16 = vld [vmem:[%s1489_s2 + $0x8] ss:$0 sps:$4 sm:$0xff]  }
  0xcb   : > { %558 = vrot.lane.b32.xlu0 %v549_v19, %s1217_s23  ;;  %613 = vperm.xlu1 %1166, %v610_v20  }
  0xfd   : > { %v530_v21 = vpop.permute.xlu1 %529 }
  0xfe   : > { %539 = vst.msk [vmem:[#allocation4 + $0x78] sm:$0xf] %vm335_vm7, %v530_v21 }
 0x101   : > { %v532_v22 = vpop.permute.xlu0 %531  ;;  %v526_v23 = vpop.permute.xlu1 %525 }
 0x102   : > { %540 = vst.msk [vmem:[#allocation4 + $0x7c] sm:$0xf] %vm335_vm7, %v532_v22  ;;  %537 = vst.msk [vmem:[#allocation4 + $0x70] sm:$0xf] %vm335_vm7, %v526_v23 }
 0x105   : > { %v528_v24 = vpop.permute.xlu0 %527  ;;  %v353_v25 = vpop.permute.xlu1 %352 }
 0x106   : > { %538 = vst.msk [vmem:[#allocation4 + $0x74] sm:$0xf] %vm335_vm7, %v528_v24  ;;  %362 = vst.msk [vmem:[#allocation4 + $0x18] sm:$0xf] %vm335_vm7, %v353_v25 }
 0x109   : > { %v355_v26 = vpop.permute.xlu0 %354  ;;  %v349_v27 = vpop.permute.xlu1 %348  ;;  %v1168_v29 = vld [vmem:[#allocation4 + $0x78] sm:$0xff]  }
 0x10a   : > { %363 = vst.msk [vmem:[#allocation4 + $0x1c] sm:$0xf] %vm335_vm7, %v355_v26  ;;  %360 = vst.msk [vmem:[#allocation4 + $0x10] sm:$0xf] %vm335_vm7, %v349_v27  ;;  %1088 = vmatprep.subr.bf16.mxu0 %v1168_v29 }
 0x10d   : > { %v351_v30 = vpop.permute.xlu0 %350  ;;  %v420_v31 = vpop.permute.xlu1 %419  ;;  %v1170_v40 = vld [vmem:[#allocation4 + $0x70] sm:$0xff]  }
 0x10e   : > { %361 = vst.msk [vmem:[#allocation4 + $0x14] sm:$0xf] %vm335_vm7, %v351_v30  ;;  %429 = vst.msk [vmem:[#allocation4 + $0x38] sm:$0xf] %vm335_vm7, %v420_v31 }
 0x111   : > { %v422_v32 = vpop.permute.xlu0 %421  ;;  %v416_v33 = vpop.permute.xlu1 %415  ;;  %v1177_v61 = vld [vmem:[#allocation4 + $0x18] sm:$0xff]  }
 0x112   : > { %430 = vst.msk [vmem:[#allocation4 + $0x3c] sm:$0xf] %vm335_vm7, %v422_v32  ;;  %427 = vst.msk [vmem:[#allocation4 + $0x30] sm:$0xf] %vm335_vm7, %v416_v33 }
 0x115   : > { %v418_v34 = vpop.permute.xlu0 %417  ;;  %v506_v35 = vpop.permute.xlu1 %505  ;;  %v1179_v1 = vld [vmem:[#allocation4 + $0x10] sm:$0xff]  }
 0x116   : > { %428 = vst.msk [vmem:[#allocation4 + $0x34] sm:$0xf] %vm335_vm7, %v418_v34  ;;  %515 = vst.msk [vmem:[#allocation4 + $0x68] sm:$0xf] %vm335_vm7, %v506_v35 }
 0x119   : > { %v508_v37 = vpop.permute.xlu0 %507  ;;  %v388_v38 = vpop.permute.xlu1 %387  ;;  %v1169_v39 = vld [vmem:[#allocation4 + $0x38] sm:$0xff]  }
 0x11a   : > { %516 = vst.msk [vmem:[#allocation4 + $0x6c] sm:$0xf] %vm335_vm7, %v508_v37  ;;  %397 = vst.msk [vmem:[#allocation4 + $0x28] sm:$0xf] %vm335_vm7, %v388_v38  ;;  %1089 = vmatpush3.bf16.msra.mxu0 %v1169_v39 }
 0x11b   : > { %1090 = vmatprep.subr.bf16.mxu0 %v1170_v40 }
 0x11d   : > { %v390_v42 = vpop.permute.xlu0 %389  ;;  %v502_v43 = vpop.permute.xlu1 %501  ;;  %v1171_v44 = vld [vmem:[#allocation4 + $0x30] sm:$0xff]  }
 0x11e   : > { %398 = vst.msk [vmem:[#allocation4 + $0x2c] sm:$0xf] %vm335_vm7, %v390_v42  ;;  %513 = vst.msk [vmem:[#allocation4 + $0x60] sm:$0xf] %vm335_vm7, %v502_v43  ;;  %1091 = vmatpush3.bf16.msra.mxu0 %v1171_v44 }
 0x121   : > { %v504_v45 = vpop.permute.xlu0 %503  ;;  %v384_v46 = vpop.permute.xlu1 %383  ;;  %v1172_v47 = vld [vmem:[#allocation4 + $0x68] sm:$0xff]  }
 0x122   : > { %514 = vst.msk [vmem:[#allocation4 + $0x64] sm:$0xf] %vm335_vm7, %v504_v45  ;;  %395 = vst.msk [vmem:[#allocation4 + $0x20] sm:$0xf] %vm335_vm7, %v384_v46  ;;  %1092 = vmatprep.subr.bf16.mxu0 %v1172_v47 }
 0x125   : > { %v386_v48 = vpop.permute.xlu0 %385  ;;  %v475_v49 = vpop.permute.xlu1 %474  ;;  %v1173_v50 = vld [vmem:[#allocation4 + $0x28] sm:$0xff]  }
 0x126   : > { %396 = vst.msk [vmem:[#allocation4 + $0x24] sm:$0xf] %vm335_vm7, %v386_v48  ;;  %484 = vst.msk [vmem:[#allocation4 + $0x58] sm:$0xf] %vm335_vm7, %v475_v49  ;;  %1093 = vmatpush3.bf16.msra.mxu0 %v1173_v50 }
 0x129   : > { %v477_v51 = vpop.permute.xlu0 %476  ;;  %v471_v52 = vpop.permute.xlu1 %470  ;;  %v1174_v53 = vld [vmem:[#allocation4 + $0x60] sm:$0xff]  }
 0x12a   : > { %485 = vst.msk [vmem:[#allocation4 + $0x5c] sm:$0xf] %vm335_vm7, %v477_v51  ;;  %482 = vst.msk [vmem:[#allocation4 + $0x50] sm:$0xf] %vm335_vm7, %v471_v52  ;;  %1094 = vmatprep.subr.bf16.mxu0 %v1174_v53 }
 0x12d   : > { %v473_v55 = vpop.permute.xlu0 %472  ;;  %v444_v56 = vpop.permute.xlu1 %443  ;;  %v1175_v57 = vld [vmem:[#allocation4 + $0x20] sm:$0xff]  }
 0x12e   : > { %483 = vst.msk [vmem:[#allocation4 + $0x54] sm:$0xf] %vm335_vm7, %v473_v55  ;;  %453 = vst.msk [vmem:[#allocation4 + $0x48] sm:$0xf] %vm335_vm7, %v444_v56  ;;  %1095 = vmatpush3.bf16.msra.mxu0 %v1175_v57 }
 0x131   : > { %v446_v58 = vpop.permute.xlu0 %445  ;;  %v440_v59 = vpop.permute.xlu1 %439  ;;  %v1176_v60 = vld [vmem:[#allocation4 + $0x58] sm:$0xff]  }
 0x132   : > { %454 = vst.msk [vmem:[#allocation4 + $0x4c] sm:$0xf] %vm335_vm7, %v446_v58  ;;  %451 = vst.msk [vmem:[#allocation4 + $0x40] sm:$0xf] %vm335_vm7, %v440_v59  ;;  %1096 = vmatprep.subr.bf16.mxu0 %v1176_v60  ;;  %v885_v59 = vld [vmem:[%s1491_s4] sm:$0xf] }
 0x133   : > { %1097 = vmatpush3.bf16.msra.mxu0 %v1177_v61 }
 0x135   : > { %v442_v62 = vpop.permute.xlu0 %441  ;;  %v561_v63 = vpop.permute.xlu1 %560  ;;  %v1178_v0 = vld [vmem:[#allocation4 + $0x50] sm:$0xff]  }
 0x136   : > { %452 = vst.msk [vmem:[#allocation4 + $0x44] sm:$0xf] %vm335_vm7, %v442_v62  ;;  %570 = vst.msk [vmem:[#allocation4 + $0x88] sm:$0xf] %vm335_vm7, %v561_v63  ;;  %1098 = vmatprep.subr.bf16.mxu0 %v1178_v0 }
 0x137   : > { %1099 = vmatpush3.bf16.msra.mxu0 %v1179_v1 }
 0x139   : > { %v563_v2 = vpop.permute.xlu0 %562  ;;  %v557_v3 = vpop.permute.xlu1 %556  ;;  %v1180_v5 = vld [vmem:[#allocation4 + $0x48] sm:$0xff]  }
 0x13a   : > { %571 = vst.msk [vmem:[#allocation4 + $0x8c] sm:$0xf] %vm335_vm7, %v563_v2  ;;  %568 = vst.msk [vmem:[#allocation4 + $0x80] sm:$0xf] %vm335_vm7, %v557_v3  ;;  %1100 = vmatprep.subr.bf16.mxu0 %v1180_v5 }
 0x13b   : > { %1101 = vmatpush3.bf16.msra.mxu0 %v1181_v6 }
 0x13d   : > { %v559_v9 = vpop.permute.xlu0 %558  ;;  %v1182_v10 = vld [vmem:[#allocation4 + $0x40] sm:$0xff]  }
 0x13e   : > { %569 = vst.msk [vmem:[#allocation4 + $0x84] sm:$0xf] %vm335_vm7, %v559_v9  ;;  %1102 = vmatprep.subr.bf16.mxu0 %v1182_v10 }
 0x13f   : > { %1103 = vmatpush3.bf16.msra.mxu0 %v1183_v12 }
 0x141   : > { %v1186_v14 = vld [vmem:[#allocation4 + $0x88] sm:$0xff]  }
 0x142   : > { %771 = vmatmul.mubr.bf16.vlgmr.msra.gmra.mxu0 %v1054_v13  ;;  %1120 = vmatpush3.bf16.msra.mxu1 %v1186_v14 }
 0x143   : > { %1121 = vmatprep.subr.bf16.mxu1 %v1216_v11 }
 0x145   : > { %v1187_v15 = vld [vmem:[#allocation4 + $0x80] sm:$0xff]  }
 0x146   : > { %1122 = vmatpush3.bf16.msra.mxu1 %v1187_v15  ;;  %v614_v18 = vpop.permute.xlu1 %613 }
 0x147   : > { %1127 = vmatprep.subr.bf16.mxu1 %v1216_v11 }
 0x149   : > { %1124 = vmatmul.mubr.msk.bf16.vlgmr.msra.gmra.mxu1 %vm734_vm14, %v1188_v16 }
 0x14a   : > { %1137 = vmatprep.mubr.msk.bf16.mxu1 %vm1218_vm13, %v1216_v11 }
 0x202   : > { %v1104_v7 = vpop.f32.mrf.mxu0 }
 0x204   : > { %v1105_v17 = vpop.f32.mrf.mxu0 }
 0x205   : > { %v1106_v19 = vadd.f32 %v1105_v17, %v1104_v7 }
 0x206   : > { %v1107_v20 = vpop.f32.mrf.mxu0 }
 0x207   : > { %v773_v21 = vadd.f32 %v1106_v19, %v614_v18 }
 0x208   : > { %v1108_v22 = vpop.f32.mrf.mxu0 }
 0x209   : > { %v812_v23 = vpop.f32.mrf.mxu1 }
 0x20a   : > { %v813_v24 = vadd.f32 %v812_v23, %v773_v21 }
 0x20b   : > { %v1125_v25 = vpop.f32.mrf.mxu1 }
 0x20c   : > { %v818_v26 = vmax.f32 %v813_v24, 0.0 }
 0x20d   : > { %v815_v27 = vpop.f32.mrf.mxu1 }
 0x20e   : > { %v1087_v29 = vpack.c.bf16 %v818_v26, %v818_v26 }
 0x20f   : > { %v1126_v30 = vpop.f32.mrf.mxu1 }
 0x210   : > { %825 = vrot.lane.b32.xlu0 %v1087_v29, %s1203_s30 }
 0x282   : > { %v826_v31 = vpop.permute.xlu0 %825 }
 0x283   : > { %828 = vst.msk [vmem:[#allocation3] sm:$0xf] %vm311_vm6, %v826_v31 }
 0x28a   : > { %v829_v32 = vld [vmem:[#allocation3] sm:$0xf] }
 0x28b   : > { %v878_v33 = vld [vmem:[#allocation3] sm:$0xf]  ;;  %v830_v35 = vsel %vm1273_vm3, %v829_v32, 0 }
 0x28c   : > { %v865_v34 = vld [vmem:[#allocation3] sm:$0xf]  ;;  %v879_v37 = vsel %vm547_vm12, %v878_v33, 0  ;;  %831 = vst.msk [vmem:[#allocation4] sm:$0xf] %vm335_vm7, %v830_v35 }
 0x28d   : > { %v866_v38 = vsel %vm492_vm9, %v865_v34, 0  ;;  %881 = vrot.lane.b32.xlu1 %v879_v37, %s1217_s23  ;;  %v872_v39 = vld [vmem:[#allocation3] sm:$0xf] }
 0x28e   : > { %868 = vrot.lane.b32.xlu0 %v866_v38, %s1212_s15  ;;  %v852_v40 = vld [vmem:[#allocation3] sm:$0xf] }
 0x28f   : > { %v858_v8 = vld [vmem:[#allocation3] sm:$0xf] }
 0x290   : > { %v838_v42 = vld [vmem:[#allocation3] sm:$0xf]  ;;  %v859_v4 = vsel %vm461_vm11, %v858_v8, 0 }
 0x291   : > { %874 = vrot.lane.b32.xlu1 %v872_v39, %s1209_s12  ;;  %v839_v36 = vsel %vm374_vm10, %v838_v42, 0  ;;  %v845_v43 = vld [vmem:[#allocation3] sm:$0xf] }
 0x292   : > { %854 = vrot.lane.b32.xlu0 %v852_v40, %s1215_s18  ;;  %v846_v44 = vsel %vm406_vm8, %v845_v43, 0  ;;  %v832_v45 = vld [vmem:[#allocation3] sm:$0xf] }
 0x295   : > { %861 = vrot.lane.b32.xlu1 %v859_v4, %s1214_s17 }
 0x296   : > { %841 = vrot.lane.b32.xlu0 %v839_v36, %s1213_s16 }
 0x299   : > { %848 = vrot.lane.b32.xlu1 %v846_v44, %s1211_s14 }
 0x29a   : > { %834 = vrot.lane.b32.xlu0 %v832_v45, %s1210_s13 }
 0x29d   : > { %898 = vperm.xlu1 %1166, %v895_v54  }
 0x2ff   : > { %v882_v41 = vpop.permute.xlu1 %881 }
 0x300   : > { %v869_v46 = vpop.permute.xlu0 %868  ;;  %884 = vst.msk [vmem:[#allocation4 + $0x20] sm:$0xf] %vm335_vm7, %v882_v41 }
 0x301   : > { %871 = vst.msk [vmem:[#allocation4 + $0x18] sm:$0xf] %vm335_vm7, %v869_v46 }
 0x303   : > { %v875_v47 = vpop.permute.xlu1 %874 }
 0x304   : > { %v855_v48 = vpop.permute.xlu0 %854  ;;  %877 = vst.msk [vmem:[#allocation4 + $0x1c] sm:$0xf] %vm335_vm7, %v875_v47 }
 0x305   : > { %857 = vst.msk [vmem:[#allocation4 + $0x10] sm:$0xf] %vm335_vm7, %v855_v48 }
 0x307   : > { %v862_v28 = vpop.permute.xlu1 %861  ;;  %v1189_v50 = vld [vmem:[#allocation4 + $0x20] ss:$0 sps:$4 sm:$0xff]  }
 0x308   : > { %v842_v49 = vpop.permute.xlu0 %841  ;;  %864 = vst.msk [vmem:[#allocation4 + $0x14] sm:$0xf] %vm335_vm7, %v862_v28  ;;  %v934_v51 = vsel %vm932_vm15, %v1189_v50, 0 }
 0x309   : > { %844 = vst.msk [vmem:[#allocation4 + $0x8] sm:$0xf] %vm335_vm7, %v842_v49  ;;  %1128 = vmatpush3.bf16.msra.mxu1 %v934_v51 }
 0x30a   : > { %1129 = vmatprep.subr.bf16.mxu1 %v1216_v11 }
 0x30b   : > { %v849_v52 = vpop.permute.xlu1 %848  ;;  %v1190_v55 = vld [vmem:[#allocation4 + $0x18] sm:$0xff]  }
 0x30c   : > { %v835_v53 = vpop.permute.xlu0 %834  ;;  %851 = vst.msk [vmem:[#allocation4 + $0xc] sm:$0xf] %vm335_vm7, %v849_v52 }
 0x30d   : > { %837 = vst.msk [vmem:[#allocation4 + $0x4] sm:$0xf] %vm335_vm7, %v835_v53  ;;  %1130 = vmatpush3.bf16.msra.mxu1 %v1190_v55 }
 0x30e   : > { %1131 = vmatprep.subr.bf16.mxu1 %v1216_v11 }
 0x30f   : > { %v1191_v56 = vld [vmem:[#allocation4 + $0x10] sm:$0xff]  }
 0x311   : > { %1132 = vmatpush3.bf16.msra.mxu1 %v1191_v56 }
 0x312   : > { %1133 = vmatprep.subr.bf16.mxu1 %v1216_v11 }
 0x313   : > { %v1192_v57 = vld [vmem:[#allocation4 + $0x8] sm:$0xff]  }
 0x314   : > { %v1193_v58 = vld [vmem:[#allocation4] sm:$0xff]  }
 0x315   : > { %1134 = vmatpush3.bf16.msra.mxu1 %v1192_v57 }
 0x316   : > { %1135 = vmatprep.subr.bf16.mxu1 %v1216_v11 }
 0x318   : > { %v899_v60 = vpop.permute.xlu1 %898 }
 0x319   : > { %1136 = vmatpush3.bf16.msra.mxu1 %v1193_v58 }
 0x31c   : > { %1138 = vmatmul.mubr.msk.bf16.vlgmr.msra.gmra.mxu1 %vm928_vm0, %v885_v59 }
 0x3dc   : > { %v970_v61 = vpop.f32.mrf.mxu1 }
 0x3dd   : > { %v971_v62 = vadd.f32 %v970_v61, %v899_v60 }
 0x3de   : > { %v1139_v63 = vpop.f32.mrf.mxu1 }
 0x3df   : > { %v976_v0 = vmax.f32 %v971_v62, 0.0 }
 0x3e0   : > { %v973_v1 = vpop.f32.mrf.mxu1 }
 0x3e1   : > { %v977_v11 = vpack.c.bf16 %v976_v0, %v976_v0 }
 0x3e2   : > { %v1140_v2 = vpop.f32.mrf.mxu1 }
 0x3e3   : > { %978 = vst.msk [vmem:[%s269_s11] sm:$0xf] %vm335_vm7, %v977_v11 }
 0x3e4 PF: > { %s16_s21 = sadd.s32 1, %s1200_s21  }
 0x3e5   : > { %p13_p4 = scmp.ge.s32.totalorder %s16_s21, 4  }
 0x3e7   :  { %15 = sbr.rel (!%p13_p4) target bundleno = 1 (0x1), region = 77 }

// kernel: decoder_forward.6
= control target key start
LH: loop header
LB: loop body
LE: loop exit
PB: predicated region body
PF: predicated region fallthrough
CT: control target
= control target key end

     0   :  { %s1489_s21 = smov 0   ;;  %s1927_s0 = inlined_call_operand.vmem [shape: bf16[2,8,256], index: 0, kind: input, shape index: {}]   ;;  %s1928_s1 = inlined_call_operand.vmem [shape: bf16[2,16,256], index: 1, kind: input, shape index: {}]   ;;  %s1929_s2 = inlined_call_operand.vmem [shape: bf16[8,216], index: 2, kind: input, shape index: {}]   ;;  %s1930_s3 = inlined_call_operand.vmem [shape: f32[8,1], index: 3, kind: input, shape index: {}]   ;;  %s1931_s4 = inlined_call_operand.vmem [shape: bf16[8,72], index: 4, kind: input, shape index: {}]   ;;  %s1932_s5 = inlined_call_operand.vmem [shape: f32[8,1], index: 5, kind: input, shape index: {}]   ;;  %s1933_s6 = inlined_call_operand.vmem [shape: bf16[2,8,256], index: 6, kind: output, shape index: {}]  }
   0x1 LB: > { %s1340_s22 = sadd.s32 4294967295, %s1437_s21   ;;  %p1344_p0 = scmp.ge.s32.totalorder %s1437_s21, 1  ;;  %s1437_s21 = sphi %s1489_s21, %s16_s21  }
   0x2   : > { %p222_p1 = scmp.lt.s32.totalorder %s1437_s21, 3 }
   0x4   : > { %p223_p2 = pnand %p1344_p0, %p222_p1 }
   0x5   : > { %p1497_p3 = scmp.lt.s32.totalorder (!%p223_p2), %s1340_s22, 1  ;;  %s1440_s8 = smov (!%p223_p2), 17  }
   0x6   : > { %226 = sbr.rel (%p223_p2) target bundleno = 1046 (0x416), region = 44  ;;  %s1441_s9 = smov (!%p223_p2), 18  }
   0x7   : > { %s1442_s10 = smov (!%p223_p2), 2   ;;  %s1443_s11 = smov (!%p223_p2), 16  }
   0x8   : > { %s1444_s12 = smov (!%p223_p2), 32   ;;  %s1445_s13 = smov (!%p223_p2), 34  }
   0x9   : > { %s1446_s14 = smov (!%p223_p2), 111   ;;  %s1447_s15 = smov (!%p223_p2), 127  }
   0xa   : > { %s1448_s16 = smov (!%p223_p2), 95   ;;  %s1449_s17 = smov (!%p223_p2), 110  }
   0xb   : > { %v275_v0 = vlaneseq  ;;  %vm309_vm0 = vcmask 134144   ;;  %vm313_vm1 = vcmask 273544   ;;  %v1439_v1 = vmov 0   ;;  %s1964_s22 = smov (!%p1497_p3, %s1340_s22), 1  ;;  %s1450_s18 = smov 112  }
   0xc   : > { %311 = vst.msk [vmem:[#allocation2 + $0xc] sm:$0xf] %vm309_vm0, %v1439_v1  ;;  %310 = vst.msk [vmem:[#allocation2] sm:$0xf] %vm309_vm0, %v1439_v1  ;;  %1427 = vset.pattern.permute.xlu0 %v1439_v1  ;;  %1253 = vmatprep.mubr.bf16.mxu1 %v1439_v1  ;;  %s1400_s24 = sshll.u32 %s1964_s22, 4  ;;  %s1399_s25 = sshll.u32 %s1964_s22, 3 }
   0xd   : > { %315 = vst.msk [vmem:[#allocation2 + $0x14] sm:$0xf] %vm313_vm1, %v1439_v1  ;;  %314 = vst.msk [vmem:[#allocation2 + $0x8] sm:$0xf] %vm313_vm1, %v1439_v1  ;;  %v276_v2 = vand.u32 127, %v275_v0  ;;  %1428 = vset.pattern.permute.xlu1 %v1439_v1  ;;  %s266_s28 = scalar_lea.vmem %s1928_s1, %s1400_s24  ;;  %s261_s7 = scalar_lea.vmem %s1927_s0, %s1399_s25  ;;  %vm325_vm8 = vcmask 1043592  }
   0xe   : > { %312 = vst.msk [vmem:[#allocation2 + $0x18] sm:$0xf] %vm309_vm0, %v1439_v1  ;;  %1008 = vst.msk [vmem:[#allocation3] sm:$0xf] %vm309_vm0, %v1439_v1  ;;  %v307_v5 = vld [vmem:[%s266_s28] sm:$0xff]  ;;  %v308_v8 = vld [vmem:[%s266_s28 + $0x8] sm:$0xff] }
   0xf   : > { %316 = vst.msk [vmem:[#allocation2 + $0x20] sm:$0xf] %vm313_vm1, %v1439_v1  ;;  %1009 = vst.msk [vmem:[#allocation3 + $0x8] sm:$0xf] %vm313_vm1, %v1439_v1  ;;  %v277_v3 = vadd.s32 128, %v276_v2  ;;  %v282_v4 = vand.u32 15, %v276_v2  ;;  %332 = vrot.lane.b32.xlu1 %v307_v5, %s1440_s8 }
  0x10   : > { %v306_v6 = vld [vmem:[%s261_s7] sm:$0xff]  ;;  %vm326_vm9 = vcmask 1047556   ;;  %vm321_vm10 = vcmask 138240   ;;  %vm577_vm12 = vcmask 146432   ;;  %vm478_vm15 = vcmask 130048   ;;  %s1451_s19 = smov 126  }
  0x11   : > { %v289_v7 = vand.u32 15, %v277_v3  ;;  %vm304_vm2 = vcmp.ne.s32.totalorder %v282_v4, 15  ;;  %318 = vrot.lane.b32.xlu0 %v306_v6, %s1440_s8  ;;  %vm302_vm3 = vcmp.ne.s32.totalorder %v282_v4, 0  ;;  %vm1528_vm11 = vmor %vm326_vm9, %vm325_vm8  ;;  %s1452_s20 = smov 94   ;;  %s1453_s23 = smov 96  }
  0x13   : > { %vm303_vm4 = vcmp.ne.s32.totalorder %v289_v7, 0  ;;  %vm305_vm5 = vcmp.ne.s32.totalorder %v289_v7, 15 }
  0x14   : > { %vm416_vm6 = vmpackc.low %vm305_vm5, %vm304_vm2 }
  0x15   : > { %v417_v9 = vsel %vm416_vm6, 65537, %v1439_v1  ;;  %vm1521_vm7 = vmpackc.low %vm303_vm4, %vm302_vm3  ;;  %334 = vrot.lane.b32.xlu0 %v308_v8, %s1440_s8  ;;  %vm421_vm3 = vcmask 15360   ;;  %vm732_vm6 = vcmask 277504  }
  0x16   : > { %574 = vrot.lane.b32.xlu1 %v417_v9, %s1441_s9  ;;  %v474_v11 = vsel %vm1521_vm7, 65537, %v1439_v1 }
  0x19   : > { %475 = vrot.lane.b32.xlu0 %v474_v11, %s1443_s11  ;;  %s271_s11 = scalar_lea.vmem %s1933_s6, %s1399_s25 }
  0x1a   : > { %418 = vrot.lane.b32.xlu1 %v417_v9, %s1442_s10 }
  0x1d   : > { %729 = vrot.lane.b32.xlu0 %v417_v9, %s1445_s13 }
  0x1e   : > { %630 = vrot.lane.b32.xlu1 %v474_v11, %s1444_s12 }
  0x81   : > { %v333_v12 = vpop.permute.xlu1 %332 }
  0x82   : > { %v336_v15 = vrot.slane %v333_v12, 4 }
  0x83   : > { %v319_v13 = vpop.permute.xlu0 %318 }
  0x84   : > { %v320_v16 = vrot.slane %v319_v13, 4  ;;  %v338_v17 = vsel %vm321_vm10, %v336_v15, %v333_v12  ;;  %345 = vst.msk [vmem:[#allocation2 + $0x14] sm:$0xf] %vm309_vm0, %v336_v15 }
  0x85   : > { %344 = vst.msk [vmem:[#allocation2 + $0xc] sm:$0xff] %vm1528_vm11, %v338_v17 }
  0x86   : > { %v322_v18 = vsel %vm321_vm10, %v320_v16, %v319_v13  ;;  %329 = vst.msk [vmem:[#allocation2 + $0x8] sm:$0xf] %vm309_vm0, %v320_v16 }
  0x87   : > { %328 = vst.msk [vmem:[#allocation2] sm:$0xff] %vm1528_vm11, %v322_v18  ;;  %v335_v19 = vpop.permute.xlu0 %334 }
  0x88   : > { %v337_v20 = vrot.slane %v335_v19, 4  ;;  %v575_v35 = vpop.permute.xlu1 %574 }
  0x89   : > { %v576_v36 = vrot.slane %v575_v35, 4 }
  0x8a   : > { %v339_v21 = vsel %vm321_vm10, %v337_v20, %v335_v19  ;;  %347 = vst.msk [vmem:[#allocation2 + $0x20] sm:$0xf] %vm309_vm0, %v337_v20 }
  0x8b   : > { %346 = vst.msk [vmem:[#allocation2 + $0x18] sm:$0xff] %vm1528_vm11, %v339_v21  ;;  %v528_v26 = vld [vmem:[#allocation2 + $0x14] sm:$0xf]  ;;  %v476_v38 = vpop.permute.xlu0 %475  ;;  %v1585_v39 = vsel %vm577_vm12, %v576_v36, %v575_v35  ;;  %vm1587_vm13 = vcmp.ne.s16.totalorder %v576_v36, 0  ;;  %vm633_vm12 = vcmask 261120  }
  0x8c   : > { %v1555_v27 = vld [vmem:[#allocation2 + $0xc] sm:$0xff]  ;;  %v365_v28 = vld [vmem:[#allocation2 + $0x14] sm:$0xf]  ;;  %v477_v42 = vrot.slane %v476_v38, 4  ;;  %vm1940_vm14 = vcmp.ne.s16.totalorder %v1585_v39, 0  ;;  %v419_v48 = vpop.permute.xlu1 %418 }
  0x8d   : > { %v526_v24 = vld [vmem:[#allocation2 + $0x8] sm:$0xf]  ;;  %v1567_v30 = vsel %vm1521_vm7, %v1555_v27, 0  ;;  %v683_v37 = vld [vmem:[#allocation2 + $0x14] sm:$0xf]  ;;  %v420_v51 = vrot.slane %v419_v48, 4 }
  0x8e   : > { %v1550_v25 = vld [vmem:[#allocation2] sm:$0xff]  ;;  %v363_v34 = vld [vmem:[#allocation2 + $0x8] sm:$0xf]  ;;  %v1597_v45 = vsel %vm478_vm15, %v477_v42, %v476_v38  ;;  %v471_v47 = vld [vmem:[#allocation2 + $0x14] sm:$0xf]  ;;  %vm1604_vm1 = vcmp.ne.s16.totalorder %v477_v42, 0 }
  0x8f   : > { %v1562_v29 = vsel %vm1521_vm7, %v1550_v25, 0  ;;  %v569_v43 = vld [vmem:[#allocation2 + $0x8] sm:$0xf]  ;;  %v581_v46 = vsel %vm1940_vm14, %v1550_v25, 0  ;;  %vm1934_vm2 = vcmp.ne.s16.totalorder %v1597_v45, 0  ;;  %v485_v50 = vsel %vm1604_vm1, %v471_v47, 0  ;;  %v730_v1 = vpop.permute.xlu0 %729 }
  0x90   : > { %v1354_v31 = vcombine.high %v1562_v29, %v1567_v30  ;;  %v1353_v32 = vcombine.low %v1562_v29, %v1567_v30  ;;  %v582_v44 = vsel %vm1587_vm13, %v569_v43, 0  ;;  %v484_v52 = vsel %vm1934_vm2, %v1555_v27, 0  ;;  %v469_v61 = vld [vmem:[#allocation2 + $0x8] sm:$0xf]  ;;  %v409_v5 = vld [vmem:[#allocation2 + $0x14] sm:$0xf]  ;;  %v631_v13 = vpop.permute.xlu1 %630 }
  0x91   : > { %v530_v22 = vld [vmem:[#allocation2 + $0x20] sm:$0xf]  ;;  %v1618_v55 = vsel %vm421_vm3, %v420_v51, %v419_v48  ;;  %vm1625_vm4 = vcmp.ne.s16.totalorder %v420_v51, 0  ;;  %v483_v62 = vsel %vm1604_vm1, %v469_v61, 0  ;;  %v482_v63 = vsel %vm1934_vm2, %v1550_v25, 0 }
  0x92   : > { %547 = vrot.lane.b32.xlu1 %v530_v22, %s1446_s14  ;;  %v1545_v23 = vld [vmem:[#allocation2 + $0x18] sm:$0xff]  ;;  %v367_v33 = vld [vmem:[#allocation2 + $0x20] sm:$0xf]  ;;  %vm1935_vm5 = vcmp.ne.s16.totalorder %v1618_v55, 0  ;;  %v407_v0 = vld [vmem:[#allocation2 + $0x8] sm:$0xf] }
  0x93   : > { %545 = vrot.lane.b32.xlu0 %v1545_v23, %s1446_s14  ;;  %v685_v40 = vld [vmem:[#allocation2 + $0x20] sm:$0xf]  ;;  %v486_v56 = vsel %vm1934_vm2, %v1545_v23, 0  ;;  %v429_v60 = vsel %vm1935_vm5, %v1545_v23, 0  ;;  %v426_v2 = vsel %vm1625_vm4, %v407_v0, 0  ;;  %v731_v3 = vrot.slane %v730_v1, 4 }
  0x94   : > { %v473_v53 = vld [vmem:[#allocation2 + $0x20] sm:$0xf]  ;;  %v425_v4 = vsel %vm1935_vm5, %v1550_v25, 0  ;;  %v428_v6 = vsel %vm1625_vm4, %v409_v5, 0  ;;  %v427_v8 = vsel %vm1935_vm5, %v1555_v27, 0  ;;  %v632_v17 = vrot.slane %v631_v13, 4 }
  0x95   : > { %v487_v54 = vsel %vm1604_vm1, %v473_v53, 0  ;;  %v411_v57 = vld [vmem:[#allocation2 + $0x20] sm:$0xf]  ;;  %vm1653_vm8 = vcmp.ne.s16.totalorder %v731_v3, 0  ;;  %v1662_v11 = vsel %vm732_vm6, %v731_v3, %v730_v1  ;;  %v724_v15 = vld [vmem:[#allocation2 + $0x8] sm:$0xf] }
  0x96   : > { %539 = vrot.lane.b32.xlu1 %v526_v24, %s1446_s14  ;;  %v430_v59 = vsel %vm1625_vm4, %v411_v57, 0  ;;  %v728_v9 = vld [vmem:[#allocation2 + $0x20] sm:$0xf]  ;;  %vm734_vm9 = vcmp.ne.s16.totalorder %v1662_v11, 0  ;;  %v737_v16 = vsel %vm1653_vm8, %v724_v15, 0  ;;  %vm1679_vm15 = vcmp.ne.s16.totalorder %v632_v17, 0 }
  0x97   : > { %537 = vrot.lane.b32.xlu0 %v1550_v25, %s1446_s14  ;;  %v741_v12 = vsel %vm1653_vm8, %v728_v9, 0  ;;  %v740_v18 = vsel %vm734_vm9, %v1545_v23, 0  ;;  %v726_v19 = vld [vmem:[#allocation2 + $0x14] sm:$0xf]  ;;  %v736_v22 = vsel %vm734_vm9, %v1550_v25, 0  ;;  %vm954_vm6 = vcmask 719872  }
  0x98   : > { %v739_v20 = vsel %vm1653_vm8, %v726_v19, 0  ;;  %v629_v24 = vld [vmem:[#allocation2 + $0x20] sm:$0xf]  ;;  %v625_v36 = vld [vmem:[#allocation2 + $0x8] sm:$0xf]  ;;  %v583_v47 = vsel %vm1940_vm14, %v1555_v27, 0 }
  0x99   : > { %v573_v48 = vld [vmem:[#allocation2 + $0x20] sm:$0xf]  ;;  %vm612_vm2 = vcmask 900096   ;;  %vm1937_vm5 = vcmask 916480  }
  0x9a   : > { %543 = vrot.lane.b32.xlu1 %v528_v26, %s1446_s14  ;;  %v1688_v26 = vsel %vm633_vm12, %v632_v17, %v631_v13  ;;  %v586_v51 = vsel %vm1587_vm13, %v573_v48, 0  ;;  %vm392_vm12 = vcmask 1043456  }
  0x9b   : > { %541 = vrot.lane.b32.xlu0 %v1555_v27, %s1446_s14  ;;  %vm635_vm3 = vcmp.ne.s16.totalorder %v1688_v26, 0 }
  0x9c   : > { %v641_v35 = vsel %vm635_vm3, %v1545_v23, 0  ;;  %v637_v38 = vsel %vm635_vm3, %v1550_v25, 0  ;;  %v639_v43 = vsel %vm635_vm3, %v1555_v27, 0 }
  0x9e   : > { %380 = vrot.lane.b32.xlu1 %v365_v28, %s1447_s15  ;;  %v642_v28 = vsel %vm1679_vm15, %v629_v24, 0 }
  0x9f   : > { %378 = vrot.lane.b32.xlu0 %v1555_v27, %s1447_s15 }
  0xa2   : > { %384 = vrot.lane.b32.xlu1 %v367_v33, %s1447_s15  ;;  %v738_v33 = vsel %vm734_vm9, %v1555_v27, 0 }
  0xa3   : > { %382 = vrot.lane.b32.xlu0 %v1545_v23, %s1447_s15 }
  0xa6   : > { %376 = vrot.lane.b32.xlu1 %v363_v34, %s1447_s15  ;;  %v681_v34 = vld [vmem:[#allocation2 + $0x8] sm:$0xf] }
  0xa7   : > { %374 = vrot.lane.b32.xlu0 %v1550_v25, %s1447_s15 }
  0xaa   : > { %698 = vrot.lane.b32.xlu1 %v683_v37, %s1448_s16  ;;  %v638_v37 = vsel %vm1679_vm15, %v625_v36, 0 }
  0xab   : > { %696 = vrot.lane.b32.xlu0 %v1555_v27, %s1448_s16  ;;  %v807_v27 = vld [vmem:[%s1930_s3] sm:$0xff] }
  0xae   : > { %702 = vrot.lane.b32.xlu1 %v685_v40, %s1448_s16  ;;  %v627_v40 = vld [vmem:[#allocation2 + $0x14] sm:$0xf] }
  0xaf   : > { %700 = vrot.lane.b32.xlu0 %v1545_v23, %s1448_s16  ;;  %v640_v42 = vsel %vm1679_vm15, %v627_v40, 0 }
  0xb2   : > { %595 = vrot.lane.b32.xlu1 %v582_v44, %s1449_s17  ;;  %v571_v44 = vld [vmem:[#allocation2 + $0x14] sm:$0xf] }
  0xb3   : > { %593 = vrot.lane.b32.xlu0 %v581_v46, %s1449_s17  ;;  %v584_v46 = vsel %vm1587_vm13, %v571_v44, 0 }
  0xb6   : > { %500 = vrot.lane.b32.xlu1 %v485_v50, %s1450_s18 }
  0xb7   : > { %498 = vrot.lane.b32.xlu0 %v484_v52, %s1450_s18  ;;  %v585_v52 = vsel %vm1940_vm14, %v1545_v23, 0  ;;  %vm668_vm14 = vcmask 785408  }
  0xba   : > { %504 = vrot.lane.b32.xlu1 %v487_v54, %s1450_s18 }
  0xbb   : > { %502 = vrot.lane.b32.xlu0 %v486_v56, %s1450_s18 }
  0xbe   : > { %447 = vrot.lane.b32.xlu1 %v430_v59, %s1451_s19 }
  0xbf   : > { %445 = vrot.lane.b32.xlu0 %v429_v60, %s1451_s19 }
  0xc2   : > { %496 = vrot.lane.b32.xlu1 %v483_v62, %s1450_s18 }
  0xc3   : > { %494 = vrot.lane.b32.xlu0 %v482_v63, %s1450_s18 }
  0xc6   : > { %439 = vrot.lane.b32.xlu1 %v426_v2, %s1451_s19 }
  0xc7   : > { %437 = vrot.lane.b32.xlu0 %v425_v4, %s1451_s19 }
  0xca   : > { %443 = vrot.lane.b32.xlu1 %v428_v6, %s1451_s19 }
  0xcb   : > { %441 = vrot.lane.b32.xlu0 %v427_v8, %s1451_s19 }
  0xce   : > { %758 = vrot.lane.b32.xlu1 %v741_v12, %s1452_s20 }
  0xcf   : > { %692 = vrot.lane.b32.xlu0 %v1550_v25, %s1448_s16  ;;  %v1722_v25 = vld [vmem:[%s1929_s2] sm:$0xff] }
  0xd0   : > { %v1352_v50 = vcombine.high %v1722_v25, %v1722_v25 }
  0xd2   : > { %750 = vrot.lane.b32.xlu1 %v737_v16, %s1452_s20  ;;  %1382 = vmatprep.mubr.msk.bf16.mxu0 %vm954_vm6, %v1352_v50  ;;  %vm1936_vm6 = vcmask 908288  }
  0xd3   : > { %756 = vrot.lane.b32.xlu0 %v740_v18, %s1452_s20 }
  0xd6   : > { %754 = vrot.lane.b32.xlu1 %v739_v20, %s1452_s20 }
  0xd7   : > { %748 = vrot.lane.b32.xlu0 %v736_v22, %s1452_s20 }
  0xda   : > { %659 = vrot.lane.b32.xlu1 %v642_v28, %s1453_s23 }
  0xdb   : > { %752 = vrot.lane.b32.xlu0 %v738_v33, %s1452_s20 }
  0xde   : > { %694 = vrot.lane.b32.xlu1 %v681_v34, %s1448_s16 }
  0xdf   : > { %657 = vrot.lane.b32.xlu0 %v641_v35, %s1453_s23 }
  0xe2   : > { %651 = vrot.lane.b32.xlu1 %v638_v37, %s1453_s23 }
  0xe3   : > { %649 = vrot.lane.b32.xlu0 %v637_v38, %s1453_s23 }
  0xe6   : > { %655 = vrot.lane.b32.xlu1 %v640_v42, %s1453_s23 }
  0xe7   : > { %653 = vrot.lane.b32.xlu0 %v639_v43, %s1453_s23 }
  0xea   : > { %599 = vrot.lane.b32.xlu1 %v584_v46, %s1449_s17 }
  0xeb   : > { %597 = vrot.lane.b32.xlu0 %v583_v47, %s1449_s17 }
  0xee   : > { %603 = vrot.lane.b32.xlu1 %v586_v51, %s1449_s17 }
  0xef   : > { %601 = vrot.lane.b32.xlu0 %v585_v52, %s1449_s17 }
  0xf3   : > { %810 = vperm.xlu0 %1427, %v807_v27  }
 0x104   : > { %v548_v53 = vpop.permute.xlu1 %547 }
 0x105   : > { %v546_v54 = vpop.permute.xlu0 %545  ;;  %v554_v8 = vrot.slane %v548_v53, 4 }
 0x106   : > { %v553_v9 = vrot.slane %v546_v54, 4 }
 0x108   : > { %v540_v56 = vpop.permute.xlu1 %539  ;;  %v560_v24 = vsel %vm392_vm12, %v553_v9, %v554_v8 }
 0x109   : > { %v538_v57 = vpop.permute.xlu0 %537  ;;  %v550_v15 = vrot.slane %v540_v56, 4  ;;  %v561_v37 = vsel %vm1936_vm6, %v546_v54, %v560_v24 }
 0x10a   : > { %v549_v16 = vrot.slane %v538_v57, 4 }
 0x10c   : > { %v544_v59 = vpop.permute.xlu1 %543  ;;  %v555_v28 = vsel %vm392_vm12, %v549_v16, %v550_v15 }
 0x10d   : > { %v542_v60 = vpop.permute.xlu0 %541  ;;  %v552_v12 = vrot.slane %v544_v59, 4  ;;  %v557_v46 = vsel %vm1936_vm6, %v538_v57, %v555_v28 }
 0x10e   : > { %v551_v13 = vrot.slane %v542_v60, 4 }
 0x110   : > { %v1741_v61 = vpop.permute.xlu1 %380  ;;  %v558_v20 = vsel %vm392_vm12, %v551_v13, %v552_v12 }
 0x111   : > { %v1743_v62 = vpop.permute.xlu0 %378  ;;  %v559_v35 = vsel %vm1936_vm6, %v542_v60, %v558_v20  ;;  %vm1938_vm6 = vcmask 1031168  }
 0x112   : > { %v1366_v47 = vcombine.high %v557_v46, %v559_v35  ;;  %v1365_v53 = vcombine.low %v557_v46, %v559_v35 }
 0x114   : > { %v1745_v63 = vpop.permute.xlu1 %384 }
 0x115   : > { %v1747_v0 = vpop.permute.xlu0 %382  ;;  %v391_v24 = vrot.slane %v1745_v63, 4 }
 0x116   : > { %v390_v28 = vrot.slane %v1747_v0, 4 }
 0x118   : > { %v1749_v1 = vpop.permute.xlu1 %376  ;;  %v398_v46 = vsel %vm392_vm12, %v390_v28, %v391_v24 }
 0x119   : > { %v1751_v2 = vpop.permute.xlu0 %374 }
 0x11c   : > { %v1753_v3 = vpop.permute.xlu1 %698 }
 0x11d   : > { %v1755_v4 = vpop.permute.xlu0 %696 }
 0x120   : > { %v1757_v5 = vpop.permute.xlu1 %702 }
 0x121   : > { %v1759_v6 = vpop.permute.xlu0 %700 }
 0x124   : > { %v596_v17 = vpop.permute.xlu1 %595 }
 0x125   : > { %v606_v18 = vrot.slane %v596_v17, 4  ;;  %v594_v19 = vpop.permute.xlu0 %593 }
 0x126   : > { %v605_v22 = vrot.slane %v594_v19, 4 }
 0x128   : > { %v501_v33 = vpop.permute.xlu1 %500  ;;  %v611_v34 = vsel %vm392_vm12, %v605_v22, %v606_v18 }
 0x129   : > { %v499_v36 = vpop.permute.xlu0 %498  ;;  %v613_v38 = vsel %vm612_vm2, %v594_v19, %v611_v34  ;;  %v509_v40 = vrot.slane %v501_v33, 4 }
 0x12a   : > { %v508_v42 = vrot.slane %v499_v36, 4  ;;  %v1368_v43 = vcombine.high %v561_v37, %v613_v38  ;;  %v1367_v44 = vcombine.low %v561_v37, %v613_v38 }
 0x12c   : > { %v505_v48 = vpop.permute.xlu1 %504  ;;  %965 = vmatprep.subr.bf16.mxu0 %v1368_v43  ;;  %v515_v52 = vsel %vm392_vm12, %v508_v42, %v509_v40  ;;  %v389_v42 = vrot.slane %v1741_v61, 4  ;;  %v388_v43 = vrot.slane %v1743_v62, 4 }
 0x12d   : > { %v511_v50 = vrot.slane %v505_v48, 4  ;;  %966 = vmatpush1.bf16.msra.mxu0 %v1367_v44  ;;  %v503_v51 = vpop.permute.xlu0 %502  ;;  %v516_v59 = vsel %vm1937_vm5, %v499_v36, %v515_v52  ;;  %v387_v48 = vrot.slane %v1749_v1, 4 }
 0x12e   : > { %v510_v27 = vrot.slane %v503_v51, 4  ;;  %967 = vmatprep.subr.bf16.mxu0 %v1366_v47 }
 0x130   : > { %v517_v54 = vsel %vm392_vm12, %v510_v27, %v511_v50  ;;  %v448_v56 = vpop.permute.xlu1 %447  ;;  %v386_v50 = vrot.slane %v1751_v2, 4  ;;  %v396_v27 = vsel %vm392_vm12, %v388_v43, %v389_v42  ;;  %v707_v42 = vrot.slane %v1753_v3, 4 }
 0x131   : > { %v518_v60 = vsel %vm1937_vm5, %v503_v51, %v517_v54  ;;  %968 = vmatpush1.bf16.msra.mxu0 %v1365_v53  ;;  %v446_v57 = vpop.permute.xlu0 %445  ;;  %v454_v12 = vrot.slane %v448_v56, 4  ;;  %v706_v43 = vrot.slane %v1755_v4, 4 }
 0x132   : > { %v1363_v8 = vcombine.low %v516_v59, %v518_v60  ;;  %v1364_v9 = vcombine.high %v516_v59, %v518_v60  ;;  %v453_v13 = vrot.slane %v446_v57, 4  ;;  %v393_v1 = vsel %vm392_vm12, %v386_v50, %v387_v48 }
 0x134   : > { %v497_v15 = vpop.permute.xlu1 %496  ;;  %969 = vmatprep.subr.bf16.mxu0 %v1364_v9  ;;  %v460_v18 = vsel %vm392_vm12, %v453_v13, %v454_v12 }
 0x135   : > { %v507_v16 = vrot.slane %v497_v15, 4  ;;  %970 = vmatpush1.bf16.msra.mxu0 %v1363_v8  ;;  %v495_v17 = vpop.permute.xlu0 %494  ;;  %v461_v33 = vsel %vm1938_vm6, %v446_v57, %v460_v18  ;;  %v358_v18 = vsel %vm1521_vm7, %v1545_v23, 0  ;;  %v708_v23 = vrot.slane %v1759_v6, 4 }
 0x136   : > { %v506_v19 = vrot.slane %v495_v17, 4 }
 0x138   : > { %v512_v20 = vsel %vm392_vm12, %v506_v19, %v507_v16  ;;  %v440_v22 = vpop.permute.xlu1 %439 }
 0x139   : > { %v514_v34 = vsel %vm1937_vm5, %v495_v17, %v512_v20  ;;  %v438_v35 = vpop.permute.xlu0 %437  ;;  %v450_v38 = vrot.slane %v440_v22, 4  ;;  %vm1939_vm5 = vcmask 1039360  }
 0x13a   : > { %v1361_v36 = vcombine.low %v461_v33, %v514_v34  ;;  %v1362_v37 = vcombine.high %v461_v33, %v514_v34  ;;  %v449_v40 = vrot.slane %v438_v35, 4  ;;  %v399_v54 = vsel %vm1939_vm5, %v1747_v0, %v398_v46 }
 0x13b   : > { %v397_v9 = vsel %vm1939_vm5, %v1743_v62, %v396_v27  ;;  %v395_v15 = vsel %vm1939_vm5, %v1751_v2, %v393_v1  ;;  %v709_v34 = vrot.slane %v1757_v5, 4  ;;  %vm711_vm5 = vcmask 777216  }
 0x13c   : > { %v444_v44 = vpop.permute.xlu1 %443  ;;  %971 = vmatprep.subr.bf16.mxu0 %v1362_v37  ;;  %v455_v51 = vsel %vm392_vm12, %v449_v40, %v450_v38  ;;  %v1358_v12 = vcombine.high %v397_v9, %v399_v54  ;;  %v1357_v17 = vcombine.low %v397_v9, %v399_v54  ;;  %v1356_v19 = vcombine.high %v358_v18, %v395_v15 }
 0x13d   : > { %v452_v63 = vrot.slane %v444_v44, 4  ;;  %972 = vmatpush1.bf16.msra.mxu0 %v1361_v36  ;;  %v442_v47 = vpop.permute.xlu0 %441  ;;  %v457_v56 = vsel %vm1938_vm6, %v438_v35, %v455_v51  ;;  %v1355_v28 = vcombine.low %v358_v18, %v395_v15 }
 0x13e   : > { %v451_v52 = vrot.slane %v442_v47, 4 }
 0x140   : > { %v458_v61 = vsel %vm392_vm12, %v451_v52, %v452_v63  ;;  %v759_v53 = vpop.permute.xlu1 %758  ;;  %v713_v52 = vsel %vm392_vm12, %v706_v43, %v707_v42 }
 0x141   : > { %v459_v59 = vsel %vm1938_vm6, %v442_v47, %v458_v61  ;;  %v1791_v60 = vpop.permute.xlu0 %692  ;;  %v765_v20 = vrot.slane %v759_v53, 4  ;;  %vm767_vm6 = vcmask 769024  }
 0x142   : > { %v1359_v57 = vcombine.low %v457_v56, %v459_v59  ;;  %v1360_v8 = vcombine.high %v457_v56, %v459_v59  ;;  %v704_v61 = vrot.slane %v1791_v60, 4 }
 0x144   : > { %v751_v13 = vpop.permute.xlu1 %750  ;;  %973 = vmatprep.subr.bf16.mxu0 %v1360_v8 }
 0x145   : > { %974 = vmatpush1.bf16.msra.mxu0 %v1359_v57  ;;  %v757_v0 = vpop.permute.xlu0 %756  ;;  %v761_v37 = vrot.slane %v751_v13, 4  ;;  %v714_v57 = vsel %vm711_vm5, %v1755_v4, %v713_v52 }
 0x146   : > { %v764_v16 = vrot.slane %v757_v0, 4  ;;  %975 = vmatprep.subr.bf16.mxu0 %v1358_v12 }
 0x148   : > { %v755_v22 = vpop.permute.xlu1 %754  ;;  %v771_v24 = vsel %vm392_vm12, %v764_v16, %v765_v20 }
 0x149   : > { %976 = vmatpush1.bf16.msra.mxu0 %v1357_v17  ;;  %v749_v62 = vpop.permute.xlu0 %748  ;;  %v772_v35 = vsel %vm767_vm6, %v757_v0, %v771_v24  ;;  %v763_v38 = vrot.slane %v755_v22, 4 }
 0x14a   : > { %977 = vmatprep.subr.bf16.mxu0 %v1356_v19  ;;  %v760_v2 = vrot.slane %v749_v62, 4  ;;  %v1379_v44 = vcombine.low %v772_v35, %v772_v35  ;;  %v1380_v46 = vcombine.high %v772_v35, %v772_v35 }
 0x14c   : > { %v660_v33 = vpop.permute.xlu1 %659  ;;  %v766_v5 = vsel %vm392_vm12, %v760_v2, %v761_v37  ;;  %v960_v29 = vsel %vm392_vm12, %v1379_v44, 0 }
 0x14d   : > { %978 = vmatpush1.bf16.msra.mxu0 %v1355_v28  ;;  %v753_v36 = vpop.permute.xlu0 %752  ;;  %v768_v27 = vsel %vm767_vm6, %v749_v62, %v766_v5  ;;  %v666_v53 = vrot.slane %v660_v33, 4 }
 0x14e   : > { %v762_v40 = vrot.slane %v753_v36, 4  ;;  %979 = vmatprep.subr.bf16.mxu0 %v1354_v31  ;;  %v715_v31 = vsel %vm392_vm12, %v708_v23, %v709_v34 }
 0x14f   : > { %v716_v30 = vsel %vm711_vm5, %v1759_v6, %v715_v31 }
 0x150   : > { %v769_v63 = vsel %vm392_vm12, %v762_v40, %v763_v38  ;;  %v695_v47 = vpop.permute.xlu1 %694  ;;  %v1376_v9 = vcombine.high %v714_v57, %v716_v30  ;;  %v1375_v19 = vcombine.low %v714_v57, %v716_v30 }
 0x151   : > { %v770_v48 = vsel %vm767_vm6, %v753_v36, %v769_v63  ;;  %980 = vmatpush1.bf16.msra.mxu0 %v1353_v32  ;;  %v658_v50 = vpop.permute.xlu0 %657  ;;  %v705_v51 = vrot.slane %v695_v47, 4  ;;  %v1351_v47 = vcombine.low %v1722_v25, %v1722_v25 }
 0x152   : > { %v665_v3 = vrot.slane %v658_v50, 4  ;;  %1381 = vmatprep.subr.msk.bf16.mxu0 %vm392_vm12, %v1380_v46  ;;  %v1378_v54 = vcombine.high %v768_v27, %v770_v48  ;;  %v1377_v8 = vcombine.low %v768_v27, %v770_v48 }
 0x153   : > { %v710_v59 = vsel %vm392_vm12, %v704_v61, %v705_v51 }
 0x154   : > { %v652_v56 = vpop.permute.xlu1 %651  ;;  %v672_v1 = vsel %vm392_vm12, %v665_v3, %v666_v53  ;;  %v712_v0 = vsel %vm711_vm5, %v1791_v60, %v710_v59 }
 0x155   : > { %986 = vmatpush2.bf16.msra.mxu0 %v960_v29  ;;  %v650_v32 = vpop.permute.xlu0 %649  ;;  %v662_v12 = vrot.slane %v652_v56, 4  ;;  %v673_v6 = vsel %vm668_vm14, %v658_v50, %v672_v1 }
 0x156   : > { %987 = vmatprep.subr.bf16.mxu0 %v1378_v54  ;;  %v661_v13 = vrot.slane %v650_v32, 4  ;;  %v1374_v20 = vcombine.high %v673_v6, %v712_v0  ;;  %v1373_v33 = vcombine.low %v673_v6, %v712_v0 }
 0x158   : > { %v656_v15 = vpop.permute.xlu1 %655  ;;  %v667_v22 = vsel %vm392_vm12, %v661_v13, %v662_v12 }
 0x159   : > { %v664_v16 = vrot.slane %v656_v15, 4  ;;  %988 = vmatpush2.bf16.msra.mxu0 %v1377_v8  ;;  %v654_v17 = vpop.permute.xlu0 %653  ;;  %v669_v34 = vsel %vm668_vm14, %v650_v32, %v667_v22 }
 0x15a   : > { %v663_v18 = vrot.slane %v654_v17, 4  ;;  %989 = vmatprep.subr.bf16.mxu0 %v1376_v9 }
 0x15c   : > { %v670_v4 = vsel %vm392_vm12, %v663_v18, %v664_v16  ;;  %v600_v62 = vpop.permute.xlu1 %599 }
 0x15d   : > { %v671_v24 = vsel %vm668_vm14, %v654_v17, %v670_v4  ;;  %990 = vmatpush2.bf16.msra.mxu0 %v1375_v19  ;;  %v598_v28 = vpop.permute.xlu0 %597  ;;  %v608_v2 = vrot.slane %v600_v62, 4 }
 0x15e   : > { %v607_v60 = vrot.slane %v598_v28, 4  ;;  %991 = vmatprep.subr.bf16.mxu0 %v1374_v20  ;;  %v1372_v35 = vcombine.high %v669_v34, %v671_v24  ;;  %v1371_v42 = vcombine.low %v669_v34, %v671_v24 }
 0x160   : > { %v604_v36 = vpop.permute.xlu1 %603  ;;  %v614_v38 = vsel %vm392_vm12, %v607_v60, %v608_v2 }
 0x161   : > { %v610_v23 = vrot.slane %v604_v36, 4  ;;  %992 = vmatpush2.bf16.msra.mxu0 %v1373_v33  ;;  %v602_v37 = vpop.permute.xlu0 %601  ;;  %v615_v44 = vsel %vm612_vm2, %v598_v28, %v614_v38 }
 0x162   : > { %v609_v40 = vrot.slane %v602_v37, 4  ;;  %993 = vmatprep.subr.bf16.mxu0 %v1372_v35 }
 0x164   : > { %v616_v43 = vsel %vm392_vm12, %v609_v40, %v610_v23 }
 0x165   : > { %v617_v46 = vsel %vm612_vm2, %v602_v37, %v616_v43  ;;  %994 = vmatpush2.bf16.msra.mxu0 %v1371_v42 }
 0x166   : > { %v1369_v5 = vcombine.low %v615_v44, %v617_v46  ;;  %v1370_v63 = vcombine.high %v615_v44, %v617_v46 }
 0x168   : > { %995 = vmatprep.subr.bf16.mxu0 %v1370_v63 }
 0x169   : > { %996 = vmatpush2.bf16.msra.mxu0 %v1369_v5 }
 0x16c   : > { %998 = vmatmul.mubr.bf16.vlgmr.msra.gmra.mxu0 %v1351_v47 }
 0x16e   : > { %v811_v48 = vpop.permute.xlu0 %810 }
 0x22c   : > { %v999_v50 = vpop.f32.mrf.mxu0 }
 0x22d   : > { %v1000_v31 = vadd.f32 %v999_v50, %v811_v48 }
 0x22e   : > { %v1001_v51 = vpop.f32.mrf.mxu0 }
 0x22f   : > { %v1002_v3 = vadd.f32 %v1001_v51, %v811_v48  ;;  %v1006_v27 = vmax.f32 %v1000_v31, 0.0 }
 0x230   : > { %v1003_v52 = vpop.f32.mrf.mxu0 }
 0x231   : > { %v1007_v61 = vmax.f32 %v1002_v3, 0.0 }
 0x232   : > { %v1004_v53 = vpop.f32.mrf.mxu0 }
 0x233   : > { %v1402_v54 = vpack.c.bf16 %v1007_v61, %v1006_v27 }
 0x235   : > { %1017 = vrot.lane.b32.xlu1 %v1402_v54, %s1440_s8 }
 0x2a7   : > { %v1018_v56 = vpop.permute.xlu1 %1017 }
 0x2a8   : > { %v1019_v29 = vrot.slane %v1018_v56, 4 }
 0x2aa   : > { %v1020_v30 = vsel %vm321_vm10, %v1019_v29, %v1018_v56  ;;  %1024 = vst.msk [vmem:[#allocation3 + $0x8] sm:$0xf] %vm309_vm0, %v1019_v29  ;;  %vm1956_vm0 = vcmp.ne.s16.totalorder %v1585_v39, 0  ;;  %vm1957_vm10 = vcmp.ne.s16.totalorder %v1618_v55, 0  ;;  %v1160_v55 = vld [vmem:[%s1932_s5] sm:$0xff] }
 0x2ab   : > { %1023 = vst.msk [vmem:[#allocation3] sm:$0xff] %vm1528_vm11, %v1020_v30  ;;  %vm1958_vm11 = vcmp.ne.s16.totalorder %v1597_v45, 0 }
 0x2b1   : > { %v1121_v25 = vld [vmem:[#allocation3 + $0x8] sm:$0xf] }
 0x2b2   : > { %1126 = vrot.lane.b32.xlu0 %v1121_v25, %s1448_s16  ;;  %v1847_v32 = vld [vmem:[#allocation3] sm:$0xff]  ;;  %v1075_v59 = vld [vmem:[#allocation3 + $0x8] sm:$0xf] }
 0x2b3   : > { %1124 = vrot.lane.b32.xlu1 %v1847_v32, %s1448_s16  ;;  %v1135_v1 = vld [vmem:[#allocation3 + $0x8] sm:$0xf]  ;;  %v1136_v14 = vsel %vm734_vm9, %v1847_v32, 0  ;;  %v1106_v12 = vsel %vm635_vm3, %v1847_v32, 0  ;;  %v1090_v11 = vsel %vm1956_vm0, %v1847_v32, 0  ;;  %v1044_v26 = vsel %vm1957_vm10, %v1847_v32, 0 }
 0x2b4   : > { %v1137_v57 = vsel %vm1653_vm8, %v1135_v1, 0  ;;  %v1105_v8 = vld [vmem:[#allocation3 + $0x8] sm:$0xf]  ;;  %v1060_v39 = vsel %vm1958_vm11, %v1847_v32, 0 }
 0x2b5   : > { %v1107_v9 = vsel %vm1679_vm15, %v1105_v8, 0  ;;  %v1089_v7 = vld [vmem:[#allocation3 + $0x8] sm:$0xf] }
 0x2b6   : > { %1080 = vrot.lane.b32.xlu0 %v1075_v59, %s1446_s14  ;;  %v1091_v13 = vsel %vm1587_vm13, %v1089_v7, 0  ;;  %v1043_v21 = vld [vmem:[#allocation3 + $0x8] sm:$0xf]  ;;  %vm1959_vm13 = vcmask 908288  }
 0x2b7   : > { %1078 = vrot.lane.b32.xlu1 %v1847_v32, %s1446_s14  ;;  %v1045_v15 = vsel %vm1625_vm4, %v1043_v21, 0  ;;  %v1059_v41 = vld [vmem:[#allocation3 + $0x8] sm:$0xf]  ;;  %vm1211_vm4 = vcmask 588800  }
 0x2b8   : > { %v1061_v0 = vsel %vm1604_vm1, %v1059_v41, 0  ;;  %v1029_v58 = vld [vmem:[#allocation3 + $0x8] sm:$0xf]  ;;  %vm1961_vm1 = vcmask 916480  }
 0x2ba   : > { %1142 = vrot.lane.b32.xlu0 %v1137_v57, %s1452_s20 }
 0x2bb   : > { %1140 = vrot.lane.b32.xlu1 %v1136_v14, %s1452_s20 }
 0x2be   : > { %1112 = vrot.lane.b32.xlu0 %v1107_v9, %s1453_s23 }
 0x2bf   : > { %1110 = vrot.lane.b32.xlu1 %v1106_v12, %s1453_s23 }
 0x2c2   : > { %1096 = vrot.lane.b32.xlu0 %v1091_v13, %s1449_s17 }
 0x2c3   : > { %1094 = vrot.lane.b32.xlu1 %v1090_v11, %s1449_s17 }
 0x2c6   : > { %1050 = vrot.lane.b32.xlu0 %v1045_v15, %s1451_s19 }
 0x2c7   : > { %1048 = vrot.lane.b32.xlu1 %v1044_v26, %s1451_s19  ;;  %v1026_v26 = vsel %vm1521_vm7, %v1847_v32, 0 }
 0x2ca   : > { %1066 = vrot.lane.b32.xlu0 %v1061_v0, %s1450_s18 }
 0x2cb   : > { %1064 = vrot.lane.b32.xlu1 %v1060_v39, %s1450_s18 }
 0x2ce   : > { %1034 = vrot.lane.b32.xlu0 %v1029_v58, %s1447_s15  ;;  %v1150_v58 = vld [vmem:[%s1931_s4] sm:$0xf] }
 0x2cf   : > { %1032 = vrot.lane.b32.xlu1 %v1847_v32, %s1447_s15 }
 0x2d3   : > { %1163 = vperm.xlu1 %1428, %v1160_v55  }
 0x324   : > { %v1127_v49 = vpop.permute.xlu0 %1126 }
 0x325   : > { %v1125_v6 = vpop.permute.xlu1 %1124  ;;  %v1129_v45 = vrot.slane %v1127_v49, 4 }
 0x326   : > { %v1128_v19 = vrot.slane %v1125_v6, 4 }
 0x328   : > { %v1081_v16 = vpop.permute.xlu0 %1080  ;;  %v1130_v28 = vsel %vm392_vm12, %v1128_v19, %v1129_v45 }
 0x329   : > { %v1079_v17 = vpop.permute.xlu1 %1078  ;;  %v1083_v2 = vrot.slane %v1081_v16, 4  ;;  %v1131_v43 = vsel %vm711_vm5, %v1125_v6, %v1130_v28 }
 0x32a   : > { %v1082_v35 = vrot.slane %v1079_v17, 4 }
 0x32c   : > { %v1143_v18 = vpop.permute.xlu0 %1142  ;;  %v1084_v63 = vsel %vm392_vm12, %v1082_v35, %v1083_v2 }
 0x32d   : > { %v1145_v20 = vrot.slane %v1143_v18, 4  ;;  %v1141_v22 = vpop.permute.xlu1 %1140  ;;  %v1085_v3 = vsel %vm1959_vm13, %v1079_v17, %v1084_v63 }
 0x32e   : > { %v1144_v4 = vrot.slane %v1141_v22, 4 }
 0x330   : > { %v1146_v62 = vsel %vm392_vm12, %v1144_v4, %v1145_v20  ;;  %v1113_v24 = vpop.permute.xlu0 %1112 }
 0x331   : > { %v1147_v60 = vsel %vm767_vm6, %v1141_v22, %v1146_v62  ;;  %v1115_v33 = vrot.slane %v1113_v24, 4  ;;  %v1111_v34 = vpop.permute.xlu1 %1110 }
 0x332   : > { %v1114_v36 = vrot.slane %v1111_v34, 4  ;;  %v1393_v23 = vcombine.high %v1147_v60, %v1147_v60  ;;  %v1392_v37 = vcombine.low %v1147_v60, %v1147_v60 }
 0x334   : > { %v1116_v38 = vsel %vm392_vm12, %v1114_v36, %v1115_v33  ;;  %v1097_v40 = vpop.permute.xlu0 %1096  ;;  %1394 = vmatprep.subr.msk.bf16.mxu1 %vm392_vm12, %v1393_v23  ;;  %v1216_v42 = vsel %vm392_vm12, %v1392_v37, 0 }
 0x335   : > { %v1117_v44 = vsel %vm668_vm14, %v1111_v34, %v1116_v38  ;;  %v1099_v46 = vrot.slane %v1097_v40, 4  ;;  %1228 = vmatpush1.bf16.msra.mxu1 %v1216_v42  ;;  %v1095_v5 = vpop.permute.xlu1 %1094  ;;  %vm1960_vm14 = vcmask 1031168  }
 0x336   : > { %v1390_v47 = vcombine.low %v1117_v44, %v1131_v43  ;;  %v1391_v48 = vcombine.high %v1117_v44, %v1131_v43  ;;  %v1098_v50 = vrot.slane %v1095_v5, 4 }
 0x338   : > { %v1100_v31 = vsel %vm392_vm12, %v1098_v50, %v1099_v46  ;;  %v1051_v51 = vpop.permute.xlu0 %1050  ;;  %1229 = vmatprep.subr.bf16.mxu1 %v1391_v48 }
 0x339   : > { %v1101_v52 = vsel %vm612_vm2, %v1095_v5, %v1100_v31  ;;  %1230 = vmatpush1.bf16.msra.mxu1 %v1390_v47  ;;  %v1049_v27 = vpop.permute.xlu1 %1048  ;;  %v1053_v54 = vrot.slane %v1051_v51, 4  ;;  %vm1962_vm2 = vcmask 1039360  }
 0x33a   : > { %v1388_v61 = vcombine.low %v1085_v3, %v1101_v52  ;;  %v1389_v53 = vcombine.high %v1085_v3, %v1101_v52  ;;  %v1052_v56 = vrot.slane %v1049_v27, 4 }
 0x33c   : > { %v1067_v29 = vpop.permute.xlu0 %1066  ;;  %1231 = vmatprep.subr.bf16.mxu1 %v1389_v53  ;;  %v1054_v59 = vsel %vm392_vm12, %v1052_v56, %v1053_v54 }
 0x33d   : > { %v1069_v30 = vrot.slane %v1067_v29, 4  ;;  %1232 = vmatpush1.bf16.msra.mxu1 %v1388_v61  ;;  %v1065_v25 = vpop.permute.xlu1 %1064  ;;  %v1055_v8 = vsel %vm1960_vm14, %v1049_v27, %v1054_v59 }
 0x33e   : > { %v1068_v1 = vrot.slane %v1065_v25, 4 }
 0x340   : > { %v1070_v57 = vsel %vm392_vm12, %v1068_v1, %v1069_v30  ;;  %v1035_v14 = vpop.permute.xlu0 %1034 }
 0x341   : > { %v1071_v9 = vsel %vm1961_vm1, %v1065_v25, %v1070_v57  ;;  %v1037_v12 = vrot.slane %v1035_v14, 4  ;;  %v1033_v7 = vpop.permute.xlu1 %1032 }
 0x342   : > { %v1386_v13 = vcombine.low %v1055_v8, %v1071_v9  ;;  %v1387_v11 = vcombine.high %v1055_v8, %v1071_v9  ;;  %v1036_v21 = vrot.slane %v1033_v7, 4 }
 0x344   : > { %v1038_v15 = vsel %vm392_vm12, %v1036_v21, %v1037_v12  ;;  %1233 = vmatprep.subr.bf16.mxu1 %v1387_v11 }
 0x345   : > { %v1039_v41 = vsel %vm1962_vm2, %v1033_v7, %v1038_v15  ;;  %1234 = vmatpush1.bf16.msra.mxu1 %v1386_v13 }
 0x346   : > { %v1384_v0 = vcombine.low %v1026_v26, %v1039_v41  ;;  %v1385_v39 = vcombine.high %v1026_v26, %v1039_v41 }
 0x348   : > { %1235 = vmatprep.subr.bf16.mxu1 %v1385_v39 }
 0x349   : > { %1236 = vmatpush1.bf16.msra.mxu1 %v1384_v0 }
 0x34c   : > { %1395 = vmatmul.mubr.msk.bf16.vlgmr.msra.gmra.mxu1 %vm1211_vm4, %v1150_v58 }
 0x34e   : > { %v1164_v55 = vpop.permute.xlu1 %1163 }
 0x40c   : > { %v1255_v49 = vpop.f32.mrf.mxu1 }
 0x40d   : > { %v1256_v6 = vadd.f32 %v1255_v49, %v1164_v55 }
 0x40e   : > { %v1257_v16 = vpop.f32.mrf.mxu1 }
 0x40f   : > { %v1258_v10 = vadd.f32 %v1257_v16, %v1164_v55  ;;  %v1262_v17 = vmax.f32 %v1256_v6, 0.0 }
 0x410   : > { %v1259_v32 = vpop.f32.mrf.mxu1 }
 0x411   : > { %v1263_v18 = vmax.f32 %v1258_v10, 0.0 }
 0x412   : > { %v1260_v45 = vpop.f32.mrf.mxu1 }
 0x413   : > { %v1403_v19 = vpack.c.bf16 %v1263_v18, %v1262_v17 }
 0x415   : > { %1272 = vst [vmem:[%s271_s11] sm:$0xff] %v1403_v19 }
 0x416 PF: > { %s16_s21 = sadd.s32 1, %s1437_s21  }
 0x417   : > { %p13_p4 = scmp.ge.s32.totalorder %s16_s21, 4  }
 0x419   :  { %15 = sbr.rel (!%p13_p4) target bundleno = 1 (0x1), region = 77 }

// kernel: decoder_forward.7
= control target key start
LH: loop header
LB: loop body
LE: loop exit
PB: predicated region body
PF: predicated region fallthrough
CT: control target
= control target key end

     0   :  { %s3203_s21 = smov 0   ;;  %s4822_s0 = inlined_call_operand.vmem [shape: bf16[2,8,1024], index: 0, kind: input, shape index: {}]   ;;  %s4823_s1 = inlined_call_operand.vmem [shape: bf16[2,8,1024], index: 1, kind: input, shape index: {}]   ;;  %s4824_s2 = inlined_call_operand.vmem [shape: bf16[8,144], index: 2, kind: input, shape index: {}]   ;;  %s4825_s3 = inlined_call_operand.vmem [shape: f32[8,1], index: 3, kind: input, shape index: {}]   ;;  %s4826_s4 = inlined_call_operand.vmem [shape: bf16[8,72], index: 4, kind: input, shape index: {}]   ;;  %s4827_s5 = inlined_call_operand.vmem [shape: f32[8,1], index: 5, kind: input, shape index: {}]   ;;  %s4828_s6 = inlined_call_operand.vmem [shape: bf16[2,8,1024], index: 6, kind: output, shape index: {}]  }
   0x1 LB: > { %s2963_s22 = sadd.s32 4294967295, %s3152_s21   ;;  %p2967_p0 = scmp.ge.s32.totalorder %s3152_s21, 1  ;;  %s3152_s21 = sphi %s3203_s21, %s16_s21  }
   0x2   : > { %p222_p1 = scmp.lt.s32.totalorder %s3152_s21, 3 }
   0x4   : > { %p223_p2 = pnand %p2967_p0, %p222_p1 }
   0x6   : > { %226 = sbr.rel (%p223_p2) target bundleno = 1127 (0x467), region = 44 }
   0xb   : > { %p257_p3 = scmp.lt.s32.totalorder %s2963_s22, 1  ;;  %v275_v0 = vlaneseq  ;;  %vm4829_vm0 = vcmask 265216   ;;  %v4849_v1 = vmov 0   ;;  %s3155_s30 = smov 33  }
   0xc   : > { %406 = vst.msk [vmem:[#allocation2 + $0x24] sm:$0xf] %vm4829_vm0, %v4849_v1  ;;  %405 = vst.msk [vmem:[#allocation2] sm:$0xf] %vm4829_vm0, %v4849_v1  ;;  %3143 = vset.pattern.permute.xlu0 %v4849_v1  ;;  %s3156_s7 = smov 64   ;;  %s3157_s8 = smov 34  }
   0xd   : > { %2012 = vst.msk [vmem:[#allocation3] sm:$0xf] %vm4829_vm0, %v4849_v1  ;;  %s5061_s22 = smov (!%p257_p3, %s2963_s22), 1  ;;  %v3218_v2 = vand.u32 127, %v275_v0  ;;  %s3158_s9 = smov 32  }
   0xe   : > { %s3220_s23 = sshll.u32 %s5061_s22, 5  ;;  %s3159_s10 = smov 2  }
   0xf   : > { %v278_v3 = vadd.s32 256, %v3218_v2  ;;  %v279_v4 = vadd.s32 384, %v3218_v2  ;;  %v277_v5 = vadd.s32 128, %v3218_v2  ;;  %v288_v6 = vand.u32 31, %v3218_v2  ;;  %s3230_s26 = scalar_lea.vmem %s4823_s1, %s3220_s23  ;;  %s3236_s29 = scalar_lea.vmem %s4822_s0, %s3220_s23 }
  0x10   : > { %v400_v7 = vld [vmem:[%s3230_s26] sm:$0xff]  ;;  %v401_v12 = vld [vmem:[%s3230_s26 + $0x8] sm:$0xff]  ;;  %v280_v20 = vadd.s32 512, %v3218_v2  ;;  %v281_v21 = vadd.s32 640, %v3218_v2  ;;  %v402_v22 = vld [vmem:[%s3230_s26 + $0x10] sm:$0xff]  ;;  %v282_v31 = vadd.s32 768, %v3218_v2 }
  0x11   : > { %v396_v8 = vld [vmem:[%s3236_s29] sm:$0xff]  ;;  %v302_v9 = vand.u32 31, %v278_v3  ;;  %v309_v10 = vand.u32 31, %v279_v4  ;;  %v295_v11 = vand.u32 31, %v277_v5  ;;  %452 = vrot.lane.b32.xlu1 %v400_v7, %s3155_s30  ;;  %vm380_vm1 = vcmp.ne.s32.totalorder %v288_v6, 0  ;;  %v397_v13 = vld [vmem:[%s3236_s29 + $0x8] sm:$0xff] }
  0x12   : > { %414 = vrot.lane.b32.xlu0 %v396_v8, %s3155_s30  ;;  %vm388_vm9 = vcmp.ne.s32.totalorder %v288_v6, 31  ;;  %v398_v23 = vld [vmem:[%s3236_s29 + $0x10] sm:$0xff]  ;;  %v316_v24 = vand.u32 31, %v280_v20  ;;  %v323_v25 = vand.u32 31, %v281_v21  ;;  %v283_v32 = vadd.s32 896, %v3218_v2  ;;  %v403_v33 = vld [vmem:[%s3230_s26 + $0x18] sm:$0xff] }
  0x13   : > { %vm382_vm2 = vcmp.ne.s32.totalorder %v302_v9, 0  ;;  %vm383_vm3 = vcmp.ne.s32.totalorder %v309_v10, 0  ;;  %vm381_vm4 = vcmp.ne.s32.totalorder %v295_v11, 0  ;;  %vm390_vm6 = vcmp.ne.s32.totalorder %v302_v9, 31  ;;  %v399_v34 = vld [vmem:[%s3236_s29 + $0x18] sm:$0xff]  ;;  %s3160_s11 = smov 66  }
  0x14   : > { %vm3244_vm5 = vmpackc.low %vm383_vm3, %vm382_vm2  ;;  %vm391_vm7 = vcmp.ne.s32.totalorder %v309_v10, 31  ;;  %vm389_vm10 = vcmp.ne.s32.totalorder %v295_v11, 31  ;;  %vm3272_vm13 = vcmp.ne.s32.totalorder %v316_v24, 31  ;;  %vm3276_vm14 = vcmp.ne.s32.totalorder %v323_v25, 31  ;;  %s3161_s12 = smov 63   ;;  %s3162_s13 = smov 95  }
  0x15   : > { %vm3248_vm8 = vmpackc.low %vm381_vm4, %vm380_vm1  ;;  %454 = vrot.lane.b32.xlu1 %v401_v12, %s3155_s30  ;;  %v761_v16 = vsel %vm3244_vm5, 65537, %v4849_v1  ;;  %vm384_vm15 = vcmp.ne.s32.totalorder %v316_v24, 0  ;;  %vm385_vm1 = vcmp.ne.s32.totalorder %v323_v25, 0  ;;  %vm407_vm2 = vcmask 535816   ;;  %s3163_s14 = smov 127   ;;  %s3164_s15 = smov 94  }
  0x16   : > { %416 = vrot.lane.b32.xlu0 %v397_v13, %s3155_s30  ;;  %v760_v17 = vsel %vm3248_vm8, 65537, %v4849_v1  ;;  %vm635_vm11 = vmpackc.low %vm391_vm7, %vm390_vm6  ;;  %409 = vst.msk [vmem:[#allocation2 + $0x44] sm:$0xf] %vm407_vm2, %v4849_v1  ;;  %v330_v35 = vand.u32 31, %v282_v31  ;;  %v337_v36 = vand.u32 31, %v283_v32  ;;  %s3165_s16 = smov 96  }
  0x17   : > { %vm634_vm12 = vmpackc.low %vm389_vm10, %vm388_vm9  ;;  %v639_v18 = vsel %vm635_vm11, 65537, %v4849_v1  ;;  %408 = vst.msk [vmem:[#allocation2 + $0x20] sm:$0xf] %vm407_vm2, %v4849_v1  ;;  %s3166_s17 = smov 126   ;;  %s3167_s18 = smov 62  }
  0x18   : > { %v638_v19 = vsel %vm634_vm12, 65537, %v4849_v1  ;;  %2013 = vst.msk [vmem:[#allocation3 + $0x20] sm:$0xf] %vm407_vm2, %v4849_v1  ;;  %vm636_vm3 = vmpackc.low %vm3276_vm14, %vm3272_vm13  ;;  %vm394_vm6 = vcmp.ne.s32.totalorder %v330_v35, 31  ;;  %vm395_vm7 = vcmp.ne.s32.totalorder %v337_v36, 31  ;;  %vm386_vm9 = vcmp.ne.s32.totalorder %v330_v35, 0 }
  0x19   : > { %1085 = vrot.lane.b32.xlu1 %v761_v16, %s3156_s7  ;;  %vm3289_vm4 = vmpackc.low %vm385_vm1, %vm384_vm15  ;;  %v640_v29 = vsel %vm636_vm3, 65537, %v4849_v1  ;;  %vm387_vm10 = vcmp.ne.s32.totalorder %v337_v36, 0  ;;  %vm440_vm13 = vcmask 1043720   ;;  %vm441_vm14 = vcmask 1047556  }
  0x1a   : > { %1083 = vrot.lane.b32.xlu0 %v760_v17, %s3156_s7  ;;  %v762_v30 = vsel %vm3289_vm4, 65537, %v4849_v1  ;;  %vm637_vm11 = vmpackc.low %vm395_vm7, %vm394_vm6  ;;  %vm4864_vm15 = vcmask 269312   ;;  %vm428_vm2 = vcmask 1043456   ;;  %vm4891_vm3 = vcmask 523264  }
  0x1b   : > { %vm3307_vm12 = vmpackc.low %vm387_vm10, %vm386_vm9  ;;  %v641_v38 = vsel %vm637_vm11, 65537, %v4849_v1  ;;  %vm977_vm7 = vcmask 277504   ;;  %vm776_vm10 = vcmask 261120  }
  0x1c   : > { %v763_v39 = vsel %vm3307_vm12, 65537, %v4849_v1  ;;  %vm3321_vm1 = vmor %vm441_vm14, %vm440_vm13  ;;  %vm654_vm13 = vcmask 15360  }
  0x1d   : > { %967 = vrot.lane.b32.xlu1 %v639_v18, %s3157_s8 }
  0x1e   : > { %965 = vrot.lane.b32.xlu0 %v638_v19, %s3157_s8 }
  0x21   : > { %456 = vrot.lane.b32.xlu1 %v402_v22, %s3155_s30 }
  0x22   : > { %418 = vrot.lane.b32.xlu0 %v398_v23, %s3155_s30 }
  0x25   : > { %766 = vrot.lane.b32.xlu1 %v761_v16, %s3158_s9 }
  0x26   : > { %764 = vrot.lane.b32.xlu0 %v760_v17, %s3158_s9 }
  0x29   : > { %644 = vrot.lane.b32.xlu1 %v639_v18, %s3159_s10 }
  0x2a   : > { %642 = vrot.lane.b32.xlu0 %v638_v19, %s3159_s10 }
  0x2d   : > { %969 = vrot.lane.b32.xlu1 %v640_v29, %s3157_s8 }
  0x2e   : > { %1087 = vrot.lane.b32.xlu0 %v762_v30, %s3156_s7 }
  0x31   : > { %458 = vrot.lane.b32.xlu1 %v403_v33, %s3155_s30 }
  0x32   : > { %420 = vrot.lane.b32.xlu0 %v399_v34, %s3155_s30 }
  0x35   : > { %1285 = vrot.lane.b32.xlu1 %v639_v18, %s3160_s11 }
  0x36   : > { %1283 = vrot.lane.b32.xlu0 %v638_v19, %s3160_s11 }
  0x39   : > { %646 = vrot.lane.b32.xlu1 %v640_v29, %s3159_s10 }
  0x3a   : > { %768 = vrot.lane.b32.xlu0 %v762_v30, %s3158_s9 }
  0x3d   : > { %971 = vrot.lane.b32.xlu1 %v641_v38, %s3157_s8 }
  0x3e   : > { %1089 = vrot.lane.b32.xlu0 %v763_v39, %s3156_s7 }
  0x41   : > { %1287 = vrot.lane.b32.xlu1 %v640_v29, %s3160_s11 }
  0x42   : > { %770 = vrot.lane.b32.xlu0 %v763_v39, %s3158_s9 }
  0x45   : > { %1289 = vrot.lane.b32.xlu1 %v641_v38, %s3160_s11 }
  0x46   : > { %648 = vrot.lane.b32.xlu0 %v641_v38, %s3159_s10 }
  0x83   : > { %v453_v40 = vpop.permute.xlu1 %452 }
  0x84   : > { %v415_v41 = vpop.permute.xlu0 %414  ;;  %v460_v43 = vrot.slane %v453_v40, 4 }
  0x85   : > { %v422_v44 = vrot.slane %v415_v41, 4 }
  0x86   : > { %v464_v45 = vsel %vm4864_vm15, %v460_v43, %v453_v40 }
  0x87   : > { %v427_v46 = vsel %vm4864_vm15, %v422_v44, %v415_v41  ;;  %476 = vst.msk [vmem:[#allocation2 + $0x24] sm:$0xff] %vm3321_vm1, %v464_v45  ;;  %v455_v47 = vpop.permute.xlu1 %454 }
  0x88   : > { %443 = vst.msk [vmem:[#allocation2] sm:$0xff] %vm3321_vm1, %v427_v46  ;;  %v417_v48 = vpop.permute.xlu0 %416  ;;  %v461_v49 = vrot.slane %v455_v47, 4 }
  0x89   : > { %v423_v50 = vrot.slane %v417_v48, 4 }
  0x8a   : > { %v465_v51 = vsel %vm428_vm2, %v460_v43, %v461_v49 }
  0x8b   : > { %v429_v52 = vsel %vm428_vm2, %v422_v44, %v423_v50  ;;  %v3334_v53 = vsel %vm4864_vm15, %v465_v51, %v455_v47  ;;  %v3339_v55 = vpop.permute.xlu1 %1085 }
  0x8c   : > { %v3337_v54 = vsel %vm4864_vm15, %v429_v52, %v417_v48  ;;  %v3341_v56 = vpop.permute.xlu0 %1083  ;;  %477 = vst [vmem:[#allocation2 + $0x2c] sm:$0xff] %v3334_v53 }
  0x8d   : > { %444 = vst [vmem:[#allocation2 + $0x8] sm:$0xff] %v3337_v54  ;;  %v1091_v57 = vrot.slane %v3341_v56, 4 }
  0x8e   : > { %v3362_v62 = vld [vmem:[#allocation2 + $0x24] sm:$0xff] }
  0x8f   : > { %v3346_v58 = vld [vmem:[#allocation2] sm:$0xff]  ;;  %v3348_v59 = vpop.permute.xlu1 %967  ;;  %v3360_v61 = vsel %vm4891_vm3, %v1091_v57, %v3341_v56 }
  0x90   : > { %1210 = vrot.lane.b32.xlu1 %v3346_v58, %s3161_s12  ;;  %892 = vrot.lane.b32.xlu0 %v3346_v58, %s3162_s13  ;;  %v3354_v60 = vpop.permute.xlu0 %965  ;;  %vm4835_vm6 = vcmp.ne.s16.totalorder %v3360_v61, 0  ;;  %v974_v32 = vrot.slane %v3348_v59, 4 }
  0x91   : > { %v1108_v6 = vsel %vm4835_vm6, %v3346_v58, 0  ;;  %v1113_v11 = vsel %vm4835_vm6, %v3362_v62, 0  ;;  %v973_v16 = vrot.slane %v3354_v60, 4 }
  0x93   : > { %v457_v63 = vpop.permute.xlu1 %456  ;;  %v3408_v19 = vsel %vm977_vm7, %v973_v16, %v3354_v60  ;;  %v979_v35 = vsel %vm428_vm2, %v973_v16, %v974_v32 }
  0x94   : > { %1220 = vrot.lane.b32.xlu1 %v3362_v62, %s3161_s12  ;;  %902 = vrot.lane.b32.xlu0 %v3362_v62, %s3162_s13  ;;  %v419_v0 = vpop.permute.xlu0 %418  ;;  %v462_v2 = vrot.slane %v457_v63, 4  ;;  %4906 = vst [vmem:[#allocation5_spill] sm:$0xff] %v3408_v19  ;;  %vm4831_vm9 = vcmp.ne.s16.totalorder %v3408_v19, 0  ;;  %v3458_v39 = vsel %vm977_vm7, %v979_v35, %v3348_v59 }
  0x95   : > { %v424_v3 = vrot.slane %v419_v0, 4  ;;  %v990_v27 = vsel %vm4831_vm9, %v3346_v58, 0  ;;  %v995_v33 = vsel %vm4831_vm9, %v3362_v62, 0  ;;  %4909 = vst [vmem:[#allocation8_spill] sm:$0xff] %v3458_v39  ;;  %vm1295_vm9 = vcmask 539648  }
  0x96   : > { %v467_v4 = vsel %vm428_vm2, %v461_v49, %v462_v2 }
  0x97   : > { %v431_v5 = vsel %vm428_vm2, %v423_v50, %v424_v3  ;;  %v3375_v7 = vsel %vm4864_vm15, %v467_v4, %v457_v63  ;;  %v3380_v9 = vpop.permute.xlu1 %766 }
  0x98   : > { %v3378_v8 = vsel %vm4864_vm15, %v431_v5, %v419_v0  ;;  %545 = vrot.lane.b32.xlu0 %v3346_v58, %s3163_s14  ;;  %1128 = vrot.lane.b32.xlu1 %v1108_v6, %s3156_s7  ;;  %v765_v10 = vpop.permute.xlu0 %764  ;;  %478 = vst [vmem:[#allocation2 + $0x34] sm:$0xff] %v3375_v7  ;;  %v773_v40 = vrot.slane %v3380_v9, 4  ;;  %v1092_v0 = vrot.slane %v3339_v55, 4 }
  0x99   : > { %445 = vst [vmem:[#allocation2 + $0x10] sm:$0xff] %v3378_v8  ;;  %v772_v22 = vrot.slane %v765_v10, 4 }
  0x9a   : > { %v1097_v6 = vsel %vm428_vm2, %v1091_v57, %v1092_v0 }
  0x9b   : > { %v3390_v12 = vpop.permute.xlu1 %644  ;;  %v3432_v31 = vsel %vm776_vm10, %v772_v22, %v765_v10  ;;  %v778_v43 = vsel %vm428_vm2, %v772_v22, %v773_v40  ;;  %v3541_v57 = vsel %vm4891_vm3, %v1097_v6, %v3339_v55 }
  0x9c   : > { %555 = vrot.lane.b32.xlu0 %v3362_v62, %s3163_s14  ;;  %1138 = vrot.lane.b32.xlu1 %v1113_v11, %s3156_s7  ;;  %v3395_v13 = vpop.permute.xlu0 %642  ;;  %4907 = vst [vmem:[#allocation6_spill] sm:$0xff] %v3432_v31  ;;  %vm4830_vm11 = vcmp.ne.s16.totalorder %v3432_v31, 0  ;;  %v3482_v46 = vsel %vm776_vm10, %v778_v43, %v3380_v9  ;;  %v651_v47 = vrot.slane %v3390_v12, 4  ;;  %4913 = vst [vmem:[#allocation12_spill] sm:$0xff] %v3541_v57  ;;  %vm4848_vm6 = vcmp.ne.s16.totalorder %v3541_v57, 0 }
  0x9d   : > { %v650_v34 = vrot.slane %v3395_v13, 4  ;;  %v789_v36 = vsel %vm4830_vm11, %v3346_v58, 0  ;;  %v794_v41 = vsel %vm4830_vm11, %v3362_v62, 0  ;;  %4910 = vst [vmem:[#allocation9_spill] sm:$0xff] %v3482_v46  ;;  %vm4834_vm11 = vcmp.ne.s16.totalorder %v3482_v46, 0 }
  0x9e   : > { %v790_v59 = vsel %vm4834_vm11, %v3337_v54, 0 }
  0x9f   : > { %v3398_v17 = vpop.permute.xlu1 %969  ;;  %v3454_v38 = vsel %vm654_vm13, %v650_v34, %v3395_v13  ;;  %v656_v52 = vsel %vm428_vm2, %v650_v34, %v651_v47 }
  0xa0   : > { %1212 = vrot.lane.b32.xlu0 %v3337_v54, %s3161_s12  ;;  %894 = vrot.lane.b32.xlu1 %v3337_v54, %s3162_s13  ;;  %v3404_v18 = vpop.permute.xlu0 %1087  ;;  %4908 = vst [vmem:[#allocation7_spill] sm:$0xff] %v3454_v38  ;;  %vm4833_vm14 = vcmp.ne.s16.totalorder %v3454_v38, 0  ;;  %v3508_v63 = vsel %vm654_vm13, %v656_v52, %v3390_v12  ;;  %v975_v4 = vrot.slane %v3398_v17, 4 }
  0xa1   : > { %v667_v45 = vsel %vm4833_vm14, %v3346_v58, 0  ;;  %v672_v50 = vsel %vm4833_vm14, %v3362_v62, 0  ;;  %4911 = vst [vmem:[#allocation10_spill] sm:$0xff] %v3508_v63  ;;  %vm4836_vm14 = vcmp.ne.s16.totalorder %v3508_v63, 0 }
  0xa2   : > { %v668_v11 = vsel %vm4836_vm14, %v3337_v54, 0  ;;  %v981_v16 = vsel %vm428_vm2, %v974_v32, %v975_v4 }
  0xa3   : > { %v459_v20 = vpop.permute.xlu1 %458  ;;  %v3559_v55 = vsel %vm977_vm7, %v981_v16, %v3398_v17  ;;  %v3676_v17 = vld [vmem:[%s4824_s2] sm:$0xff] }
  0xa4   : > { %1222 = vrot.lane.b32.xlu0 %v3334_v53, %s3161_s12  ;;  %904 = vrot.lane.b32.xlu1 %v3334_v53, %s3162_s13  ;;  %v421_v21 = vpop.permute.xlu0 %420  ;;  %v463_v23 = vrot.slane %v459_v20, 4  ;;  %4914 = vst [vmem:[#allocation13_spill] sm:$0xff] %v3559_v55 }
  0xa5   : > { %v425_v24 = vrot.slane %v421_v21, 4 }
  0xa6   : > { %v469_v25 = vsel %vm428_vm2, %v462_v2, %v463_v23  ;;  %480 = vst.msk [vmem:[#allocation2 + $0x44] sm:$0xf] %vm4829_vm0, %v463_v23  ;;  %v1093_v2 = vrot.slane %v3404_v18, 4  ;;  %v1109_v23 = vsel %vm4848_vm6, %v3337_v54, 0 }
  0xa7   : > { %v433_v26 = vsel %vm428_vm2, %v424_v3, %v425_v24  ;;  %447 = vst.msk [vmem:[#allocation2 + $0x20] sm:$0xf] %vm4829_vm0, %v425_v24  ;;  %v3423_v29 = vsel %vm4864_vm15, %v469_v25, %v459_v20  ;;  %vm4832_vm0 = vcmp.ne.s16.totalorder %v3458_v39, 0  ;;  %v795_v3 = vsel %vm4834_vm11, %v3334_v53, 0  ;;  %v3525_v10 = vpop.permute.xlu1 %1285 }
  0xa8   : > { %v3426_v30 = vsel %vm4864_vm15, %v433_v26, %v421_v21  ;;  %1224 = vrot.lane.b32.xlu1 %v3375_v7, %s3161_s12  ;;  %1010 = vrot.lane.b32.xlu0 %v990_v27, %s3164_s15  ;;  %479 = vst [vmem:[#allocation2 + $0x3c] sm:$0xff] %v3423_v29  ;;  %v991_v44 = vsel %vm4832_vm0, %v3337_v54, 0  ;;  %v1284_v48 = vpop.permute.xlu0 %1283  ;;  %v996_v49 = vsel %vm4832_vm0, %v3334_v53, 0  ;;  %v1099_v5 = vsel %vm428_vm2, %v1092_v0, %v1093_v2 }
  0xa9   : > { %446 = vst [vmem:[#allocation2 + $0x18] sm:$0xff] %v3426_v30  ;;  %v1291_v51 = vrot.slane %v1284_v48, 4  ;;  %v3537_v56 = vsel %vm4891_vm3, %v1099_v5, %v3404_v18  ;;  %v1292_v20 = vrot.slane %v3525_v10, 4  ;;  %v1114_v27 = vsel %vm4848_vm6, %v3334_v53, 0 }
  0xaa   : > { %4912 = vst [vmem:[#allocation11_spill] sm:$0xff] %v3537_v56  ;;  %vm4838_vm11 = vcmp.ne.s16.totalorder %v3537_v56, 0  ;;  %v3684_v5 = vcombine.high %v3676_v17, %v3676_v17  ;;  %vm4890_vm15 = vcmask 769024  }
  0xab   : > { %v3504_v60 = vsel %vm1295_vm9, %v1291_v51, %v1284_v48  ;;  %v1297_v18 = vsel %vm428_vm2, %v1291_v51, %v1292_v20  ;;  %v1110_v35 = vsel %vm4838_vm11, %v3378_v8, 0 }
  0xac   : > { %547 = vrot.lane.b32.xlu1 %v3337_v54, %s3163_s14  ;;  %1020 = vrot.lane.b32.xlu0 %v995_v33, %s3164_s15  ;;  %vm4837_vm0 = vcmp.ne.s16.totalorder %v3504_v60, 0  ;;  %v3564_v22 = vpop.permute.xlu0 %768  ;;  %v3577_v24 = vsel %vm1295_vm9, %v1297_v18, %v3525_v10  ;;  %v3592_v33 = vpop.permute.xlu1 %646 }
  0xad   : > { %v1308_v13 = vsel %vm4837_vm0, %v3346_v58, 0  ;;  %v673_v58 = vsel %vm4836_vm14, %v3334_v53, 0  ;;  %v1313_v21 = vsel %vm4837_vm0, %v3362_v62, 0  ;;  %v1115_v62 = vsel %vm4838_vm11, %v3375_v7, 0  ;;  %4915 = vst [vmem:[#allocation14_spill] sm:$0xff] %v3577_v24 }
  0xae   : > { %vm4839_vm14 = vcmp.ne.s16.totalorder %v3559_v55, 0  ;;  %v774_v25 = vrot.slane %v3564_v22, 4  ;;  %vm4860_vm0 = vcmp.ne.s16.totalorder %v3577_v24, 0  ;;  %v652_v9 = vrot.slane %v3592_v33, 4 }
  0xaf   : > { %v997_v26 = vsel %vm4839_vm14, %v3375_v7, 0  ;;  %v1309_v34 = vsel %vm4860_vm0, %v3337_v54, 0  ;;  %v1314_v54 = vsel %vm4860_vm0, %v3334_v53, 0  ;;  %vm4883_vm0 = vcmask 777216  }
  0xb0   : > { %557 = vrot.lane.b32.xlu1 %v3334_v53, %s3163_s14  ;;  %809 = vrot.lane.b32.xlu0 %v789_v36, %s3165_s16  ;;  %v780_v32 = vsel %vm428_vm2, %v773_v40, %v774_v25  ;;  %v3607_v40 = vpop.permute.xlu0 %1089  ;;  %v658_v43 = vsel %vm428_vm2, %v651_v47, %v652_v9  ;;  %v3637_v47 = vpop.permute.xlu1 %971 }
  0xb1   : > { %v3604_v36 = vsel %vm776_vm10, %v780_v32, %v3564_v22  ;;  %v3632_v48 = vsel %vm654_vm13, %v658_v43, %v3592_v33  ;;  %v1199_v43 = vld [vmem:[#allocation2 + $0x44] sm:$0xf] }
  0xb2   : > { %4916 = vst [vmem:[#allocation15_spill] sm:$0xff] %v3604_v36  ;;  %vm4840_vm11 = vcmp.ne.s16.totalorder %v3604_v36, 0  ;;  %4917 = vst [vmem:[#allocation16_spill] sm:$0xff] %v3632_v48 }
  0xb3   : > { %v796_v53 = vsel %vm4840_vm11, %v3375_v7, 0 }
  0xb4   : > { %906 = vrot.lane.b32.xlu1 %v3375_v7, %s3162_s13  ;;  %819 = vrot.lane.b32.xlu0 %v794_v41, %s3165_s16  ;;  %v992_v41 = vsel %vm4839_vm14, %v3378_v8, 0  ;;  %vm4841_vm14 = vcmp.ne.s16.totalorder %v3632_v48, 0  ;;  %v3663_v0 = vpop.permute.xlu0 %770 }
  0xb5   : > { %v674_v51 = vsel %vm4841_vm14, %v3375_v7, 0  ;;  %v669_v52 = vsel %vm4841_vm14, %v3378_v8, 0  ;;  %vm4869_vm14 = vcmask 130048   ;;  %v775_v6 = vrot.slane %v3663_v0, 4 }
  0xb6   : > { %3048 = vmatprep.mubr.msk.bf16.mxu0 %vm4869_vm14, %v3684_v5  ;;  %3049 = vmatprep.mubr.msk.bf16.mxu1 %vm4869_vm14, %v3684_v5  ;;  %vm4884_vm14 = vcmask 785408  }
  0xb7   : > { %v782_v16 = vsel %vm428_vm2, %v774_v25, %v775_v6 }
  0xb8   : > { %1012 = vrot.lane.b32.xlu1 %v991_v44, %s3164_s15  ;;  %687 = vrot.lane.b32.xlu0 %v667_v45, %s3166_s17  ;;  %v1094_v44 = vrot.slane %v3607_v40, 4  ;;  %v791_v45 = vsel %vm4840_vm11, %v3378_v8, 0  ;;  %v3714_v22 = vsel %vm776_vm10, %v782_v16, %v3663_v0 }
  0xb9   : > { %4920 = vst [vmem:[#allocation19_spill] sm:$0xff] %v3714_v22 }
  0xba   : > { %v1101_v12 = vsel %vm428_vm2, %v1093_v2, %v1094_v44 }
  0xbc   : > { %1022 = vrot.lane.b32.xlu1 %v996_v49, %s3164_s15  ;;  %697 = vrot.lane.b32.xlu0 %v672_v50, %s3166_s17  ;;  %v3646_v49 = vsel %vm4891_vm3, %v1101_v12, %v3607_v40  ;;  %v976_v50 = vrot.slane %v3637_v47, 4  ;;  %v964_v40 = vld [vmem:[#allocation2 + $0x44] sm:$0xf] }
  0xbd   : > { %4918 = vst [vmem:[#allocation17_spill] sm:$0xff] %v3646_v49  ;;  %vm4842_vm11 = vcmp.ne.s16.totalorder %v3646_v49, 0 }
  0xbe   : > { %v1116_v2 = vsel %vm4842_vm11, %v3423_v29, 0 }
  0xc0   : > { %811 = vrot.lane.b32.xlu1 %v790_v59, %s3165_s16  ;;  %1214 = vrot.lane.b32.xlu0 %v3378_v8, %s3161_s12  ;;  %v983_v59 = vsel %vm428_vm2, %v975_v4, %v976_v50 }
  0xc1   : > { %v3680_v4 = vsel %vm977_vm7, %v983_v59, %v3637_v47  ;;  %vm4843_vm7 = vcmp.ne.s16.totalorder %v3714_v22, 0  ;;  %v1077_v59 = vld [vmem:[#allocation2 + $0x20] sm:$0xf] }
  0xc2   : > { %4919 = vst [vmem:[#allocation18_spill] sm:$0xff] %v3680_v4 }
  0xc4   : > { %821 = vrot.lane.b32.xlu1 %v795_v3, %s3165_s16  ;;  %896 = vrot.lane.b32.xlu0 %v3378_v8, %s3162_s13  ;;  %v1111_v3 = vsel %vm4842_vm11, %v3426_v30, 0  ;;  %vm4845_vm11 = vcmp.ne.s16.totalorder %v3680_v4, 0 }
  0xc5   : > { %v993_v18 = vsel %vm4845_vm11, %v3426_v30, 0 }
  0xc8   : > { %689 = vrot.lane.b32.xlu1 %v668_v11, %s3166_s17  ;;  %1328 = vrot.lane.b32.xlu0 %v1308_v13, %s3167_s18  ;;  %v3687_v11 = vpop.permute.xlu1 %1287 }
  0xc9   : > { %v1293_v13 = vrot.slane %v3687_v11, 4 }
  0xcc   : > { %699 = vrot.lane.b32.xlu1 %v673_v58, %s3166_s17  ;;  %1338 = vrot.lane.b32.xlu0 %v1313_v21, %s3167_s18  ;;  %v3702_v58 = vpop.permute.xlu0 %648  ;;  %v998_v21 = vsel %vm4845_vm11, %v3423_v29, 0  ;;  %v3745_v32 = vpop.permute.xlu1 %1289  ;;  %vm4880_vm11 = vcmask 515072  }
  0xd0   : > { %1142 = vrot.lane.b32.xlu1 %v1115_v62, %s3156_s7  ;;  %1130 = vrot.lane.b32.xlu0 %v1109_v23, %s3156_s7  ;;  %v1299_v62 = vsel %vm428_vm2, %v1292_v20, %v1293_v13  ;;  %v653_v23 = vrot.slane %v3702_v58, 4  ;;  %v797_v20 = vsel %vm4843_vm7, %v3423_v29, 0 }
  0xd1   : > { %v3727_v25 = vsel %vm1295_vm9, %v1299_v62, %v3687_v11 }
  0xd2   : > { %4921 = vst [vmem:[#allocation20_spill] sm:$0xff] %v3727_v25  ;;  %v660_v10 = vsel %vm428_vm2, %v652_v9, %v653_v23  ;;  %vm4846_vm10 = vcmp.ne.s16.totalorder %v3727_v25, 0 }
  0xd3   : > { %v1315_v33 = vsel %vm4846_vm10, %v3375_v7, 0 }
  0xd4   : > { %1024 = vrot.lane.b32.xlu1 %v997_v26, %s3164_s15  ;;  %1140 = vrot.lane.b32.xlu0 %v1114_v27, %s3156_s7  ;;  %v792_v26 = vsel %vm4843_vm7, %v3426_v30, 0  ;;  %v3743_v27 = vsel %vm654_vm13, %v660_v10, %v3702_v58  ;;  %vm3780_vm13 = vcmp.ne.s16.totalorder %v1094_v44, 0  ;;  %v4926_v44 = vmov 0 }
  0xd5   : > { %4922 = vst [vmem:[#allocation21_spill] sm:$0xff] %v3743_v27  ;;  %vm4844_vm7 = vcmp.ne.s16.totalorder %v3743_v27, 0 }
  0xd8   : > { %1330 = vrot.lane.b32.xlu1 %v1309_v34, %s3167_s18  ;;  %1132 = vrot.lane.b32.xlu0 %v1110_v35, %s3156_s7  ;;  %v1310_v34 = vsel %vm4846_vm10, %v3378_v8, 0 }
  0xdc   : > { %1340 = vrot.lane.b32.xlu1 %v1314_v54, %s3167_s18  ;;  %1014 = vrot.lane.b32.xlu0 %v992_v41, %s3164_s15  ;;  %v675_v54 = vsel %vm4844_vm7, %v3423_v29, 0 }
  0xe0   : > { %823 = vrot.lane.b32.xlu1 %v796_v53, %s3165_s16  ;;  %813 = vrot.lane.b32.xlu0 %v791_v45, %s3165_s16  ;;  %v1194_v53 = vld [vmem:[#allocation2 + $0x20] sm:$0xf] }
  0xe4   : > { %1226 = vrot.lane.b32.xlu1 %v3423_v29, %s3161_s12  ;;  %1216 = vrot.lane.b32.xlu0 %v3426_v30, %s3161_s12 }
  0xe8   : > { %701 = vrot.lane.b32.xlu1 %v674_v51, %s3166_s17  ;;  %691 = vrot.lane.b32.xlu0 %v669_v52, %s3166_s17  ;;  %v1082_v51 = vld [vmem:[#allocation2 + $0x44] sm:$0xf]  ;;  %v4923_v52 = vmov 0 }
  0xe9   : > { %v4924_v52 = vsel %vm3780_vm13, 4294967295, %v4923_v52  ;;  %v1117_v16 = vsel %vm3780_vm13, %v1082_v51, 0  ;;  %v876_v51 = vld [vmem:[#allocation2 + $0x20] sm:$0xf] }
  0xea   : > { %4925 = vst [vmem:[#allocation22_spill] sm:$0xff] %v4924_v52 }
  0xec   : > { %1144 = vrot.lane.b32.xlu1 %v1116_v2, %s3156_s7  ;;  %1134 = vrot.lane.b32.xlu0 %v1111_v3, %s3156_s7  ;;  %v1294_v2 = vrot.slane %v3745_v32, 4 }
  0xee   : > { %v1301_v62 = vsel %vm428_vm2, %v1293_v13, %v1294_v2  ;;  %vm3883_vm6 = vcmp.ne.s16.totalorder %v1294_v2, 0  ;;  %v1464_v2 = vld [vmem:[%s4825_s3] sm:$0xff] }
  0xf0   : > { %559 = vrot.lane.b32.xlu1 %v3375_v7, %s3163_s14  ;;  %549 = vrot.lane.b32.xlu0 %v3378_v8, %s3163_s14  ;;  %v670_v7 = vsel %vm4844_vm7, %v3426_v30, 0  ;;  %vm3797_vm7 = vcmp.ne.s16.totalorder %v976_v50, 0  ;;  %v3817_v50 = vsel %vm1295_vm9, %v1301_v62, %v3745_v32  ;;  %vm3845_vm9 = vcmp.ne.s16.totalorder %v775_v6, 0 }
  0xf1   : > { %v4927_v44 = vsel %vm3797_vm7, 4294967295, %v4926_v44  ;;  %4929 = vst [vmem:[#allocation24_spill] sm:$0xff] %v3817_v50  ;;  %vm4847_vm10 = vcmp.ne.s16.totalorder %v3817_v50, 0  ;;  %v4933_v6 = vmov 0 }
  0xf2   : > { %4928 = vst [vmem:[#allocation23_spill] sm:$0xff] %v4927_v44 }
  0xf4   : > { %1026 = vrot.lane.b32.xlu1 %v998_v21, %s3164_s15  ;;  %1016 = vrot.lane.b32.xlu0 %v993_v18, %s3164_s15  ;;  %v1112_v21 = vsel %vm3780_vm13, %v1077_v59, 0  ;;  %v959_v18 = vld [vmem:[#allocation2 + $0x20] sm:$0xf] }
  0xf5   : > { %v994_v47 = vsel %vm3797_vm7, %v959_v18, 0 }
  0xf8   : > { %908 = vrot.lane.b32.xlu1 %v3423_v29, %s3162_s13  ;;  %898 = vrot.lane.b32.xlu0 %v3426_v30, %s3162_s13 }
  0xfc   : > { %825 = vrot.lane.b32.xlu1 %v797_v20, %s3165_s16  ;;  %815 = vrot.lane.b32.xlu0 %v792_v26, %s3165_s16 }
 0x100   : > { %1342 = vrot.lane.b32.xlu1 %v1315_v33, %s3167_s18  ;;  %1332 = vrot.lane.b32.xlu0 %v1310_v34, %s3167_s18  ;;  %v999_v33 = vsel %vm3797_vm7, %v964_v40, 0 }
 0x102   : > { %v1211_v35 = vpop.permute.xlu1 %1210  ;;  %v3756_v9 = vpop.permute.xlu0 %892 }
 0x103   : > { %v1230_v13 = vrot.slane %v1211_v35, 4 }
 0x104   : > { %703 = vrot.lane.b32.xlu1 %v675_v54, %s3166_s17  ;;  %693 = vrot.lane.b32.xlu0 %v670_v7, %s3166_s17 }
 0x106   : > { %v1221_v8 = vpop.permute.xlu1 %1220  ;;  %v3766_v41 = vpop.permute.xlu0 %902 }
 0x107   : > { %v1235_v7 = vrot.slane %v1221_v8, 4  ;;  %v917_v48 = vrot.slane %v3766_v41, 4 }
 0x108   : > { %1228 = vrot.lane.b32.xlu1 %v1199_v43, %s3161_s12  ;;  %1218 = vrot.lane.b32.xlu0 %v1194_v53, %s3161_s12  ;;  %v881_v53 = vld [vmem:[#allocation2 + $0x44] sm:$0xf] }
 0x10a   : > { %v3770_v45 = vpop.permute.xlu1 %1128  ;;  %v3772_v12 = vpop.permute.xlu0 %545 }
 0x10b   : > { %v1148_v56 = vrot.slane %v3770_v45, 4 }
 0x10c   : > { %561 = vrot.lane.b32.xlu1 %v3423_v29, %s3163_s14  ;;  %551 = vrot.lane.b32.xlu0 %v3426_v30, %s3163_s14 }
 0x10e   : > { %v3785_v3 = vpop.permute.xlu1 %1138  ;;  %v3787_v11 = vpop.permute.xlu0 %555 }
 0x110   : > { %1146 = vrot.lane.b32.xlu1 %v1117_v16, %s3156_s7  ;;  %1136 = vrot.lane.b32.xlu0 %v1112_v21, %s3156_s7 }
 0x112   : > { %v3804_v10 = vpop.permute.xlu1 %894  ;;  %v3806_v20 = vpop.permute.xlu0 %1212 }
 0x113   : > { %v1231_v26 = vrot.slane %v3806_v20, 4 }
 0x114   : > { %1028 = vrot.lane.b32.xlu1 %v999_v33, %s3164_s15  ;;  %1018 = vrot.lane.b32.xlu0 %v994_v47, %s3164_s15  ;;  %v1316_v33 = vsel %vm4847_vm10, %v3423_v29, 0  ;;  %v1311_v47 = vsel %vm4847_vm10, %v3426_v30, 0  ;;  %vm3861_vm10 = vcmp.ne.s16.totalorder %v653_v23, 0 }
 0x115   : > { %v1240_v59 = vsel %vm428_vm2, %v1230_v13, %v1231_v26  ;;  %v4934_v6 = vsel %vm3861_vm10, 4294967295, %v4933_v6 }
 0x116   : > { %v3819_v34 = vpop.permute.xlu1 %904  ;;  %v3821_v54 = vpop.permute.xlu0 %1222  ;;  %v1242_v18 = vsel %vm4880_vm11, %v1211_v35, %v1240_v59  ;;  %v759_v35 = vld [vmem:[#allocation2 + $0x44] sm:$0xf]  ;;  %4935 = vst [vmem:[#allocation26_spill] sm:$0xff] %v4934_v6 }
 0x117   : > { %v1236_v43 = vrot.slane %v3821_v54, 4  ;;  %v798_v30 = vsel %vm3845_vm9, %v759_v35, 0  ;;  %v617_v59 = vld [vmem:[#allocation2 + $0x44] sm:$0xf]  ;;  %v4936_v35 = vmov 0 }
 0x118   : > { %910 = vrot.lane.b32.xlu1 %v881_v53, %s3162_s13  ;;  %900 = vrot.lane.b32.xlu0 %v876_v51, %s3162_s13  ;;  %v4937_v35 = vsel %vm3883_vm6, 4294967295, %v4936_v35 }
 0x119   : > { %v1249_v16 = vsel %vm428_vm2, %v1235_v7, %v1236_v43  ;;  %v4930_v7 = vmov 0  ;;  %4938 = vst [vmem:[#allocation27_spill] sm:$0xff] %v4937_v35 }
 0x11a   : > { %v3831_v21 = vpop.permute.xlu1 %1224  ;;  %v3833_v40 = vpop.permute.xlu0 %1010  ;;  %v1250_v62 = vsel %vm4880_vm11, %v1221_v8, %v1249_v16  ;;  %v4931_v7 = vsel %vm3845_vm9, 4294967295, %v4930_v7  ;;  %v754_v8 = vld [vmem:[#allocation2 + $0x20] sm:$0xf] }
 0x11b   : > { %v3033_v13 = vcombine.high %v1242_v18, %v1250_v62  ;;  %v3032_v53 = vcombine.low %v1242_v18, %v1250_v62  ;;  %4932 = vst [vmem:[#allocation25_spill] sm:$0xff] %v4931_v7  ;;  %v793_v0 = vsel %vm3845_vm9, %v754_v8, 0  ;;  %v612_v16 = vld [vmem:[#allocation2 + $0x20] sm:$0xf]  ;;  %v1282_v8 = vld [vmem:[#allocation2 + $0x44] sm:$0xf] }
 0x11c   : > { %1344 = vrot.lane.b32.xlu1 %v1316_v33, %s3167_s18  ;;  %1334 = vrot.lane.b32.xlu0 %v1311_v47, %s3167_s18  ;;  %v676_v33 = vsel %vm3861_vm10, %v617_v59, 0  ;;  %v671_v58 = vsel %vm3861_vm10, %v612_v16, 0  ;;  %v1317_v16 = vsel %vm3883_vm6, %v1282_v8, 0  ;;  %v1030_v50 = vrot.slane %v3833_v40, 4 }
 0x11d   : > { %1840 = vmatprep.subr.bf16.mxu0 %v3033_v13  ;;  %v534_v13 = vld [vmem:[#allocation2 + $0x44] sm:$0xf] }
 0x11e   : > { %v3851_v29 = vpop.permute.xlu1 %547  ;;  %1841 = vmatpush1.bf16.msra.mxu0 %v3032_v53  ;;  %v3853_v51 = vpop.permute.xlu0 %1020  ;;  %v529_v53 = vld [vmem:[#allocation2 + $0x20] sm:$0xf] }
 0x120   : > { %827 = vrot.lane.b32.xlu1 %v798_v30, %s3165_s16  ;;  %817 = vrot.lane.b32.xlu0 %v793_v0, %s3165_s16  ;;  %v1277_v30 = vld [vmem:[#allocation2 + $0x20] sm:$0xf] }
 0x121   : > { %v1312_v32 = vsel %vm3883_vm6, %v1277_v30, 0 }
 0x122   : > { %v3867_v18 = vpop.permute.xlu1 %557  ;;  %v3869_v62 = vpop.permute.xlu0 %809 }
 0x123   : > { %v829_v25 = vrot.slane %v3869_v62, 4  ;;  %v571_v24 = vrot.slane %v3867_v18, 4 }
 0x124   : > { %705 = vrot.lane.b32.xlu1 %v676_v33, %s3166_s17  ;;  %695 = vrot.lane.b32.xlu0 %v671_v58, %s3166_s17 }
 0x126   : > { %v3877_v23 = vpop.permute.xlu1 %906  ;;  %v3879_v47 = vpop.permute.xlu0 %819 }
 0x127   : > { %v834_v63 = vrot.slane %v3879_v47, 4 }
 0x128   : > { %563 = vrot.lane.b32.xlu1 %v534_v13, %s3163_s14  ;;  %553 = vrot.lane.b32.xlu0 %v529_v53, %s3163_s14  ;;  %v4855_v13 = vrot.slane %v3831_v21, 4 }
 0x12a   : > { %v3889_v0 = vpop.permute.xlu1 %1012  ;;  %v3891_v59 = vpop.permute.xlu0 %687 }
 0x12b   : > { %v1031_v52 = vrot.slane %v3889_v0, 4 }
 0x12c   : > { %1346 = vrot.lane.b32.xlu1 %v1317_v16, %s3167_s18  ;;  %1336 = vrot.lane.b32.xlu0 %v1312_v32, %s3167_s18  ;;  %v1251_v16 = vsel %vm428_vm2, %v1236_v43, %v4855_v13 }
 0x12d   : > { %v1252_v6 = vsel %vm4880_vm11, %v3821_v54, %v1251_v16  ;;  %v912_v54 = vrot.slane %v3756_v9, 4  ;;  %v1040_v46 = vsel %vm428_vm2, %v1030_v50, %v1031_v52 }
 0x12e   : > { %v3902_v33 = vpop.permute.xlu1 %1022  ;;  %v3904_v58 = vpop.permute.xlu0 %697  ;;  %v1042_v19 = vsel %vm4890_vm15, %v3833_v40, %v1040_v46 }
 0x130   : > { %1467 = vperm.xlu0 %3143, %v1464_v2  }
 0x132   : > { %v3907_v53 = vpop.permute.xlu1 %811  ;;  %v3909_v8 = vpop.permute.xlu0 %1214 }
 0x133   : > { %v4856_v30 = vrot.slane %v3909_v8, 4 }
 0x135   : > { %v1243_v32 = vsel %vm428_vm2, %v1231_v26, %v4856_v30  ;;  %v4865_v26 = vrot.slane %v3819_v34, 4 }
 0x136   : > { %v3920_v1 = vpop.permute.xlu1 %821  ;;  %v3922_v7 = vpop.permute.xlu0 %896  ;;  %v1244_v2 = vsel %vm4880_vm11, %v3806_v20, %v1243_v32  ;;  %v913_v20 = vrot.slane %v3804_v10, 4  ;;  %v1035_v32 = vrot.slane %v3853_v51, 4  ;;  %vm4885_vm11 = vcmask 1031168  }
 0x137   : > { %v3035_v44 = vcombine.high %v1244_v2, %v1252_v6  ;;  %v3034_v22 = vcombine.low %v1244_v2, %v1252_v6  ;;  %v1036_v6 = vrot.slane %v3902_v33, 4 }
 0x138   : > { %v922_v4 = vsel %vm428_vm2, %v912_v54, %v913_v20 }
 0x139   : > { %1881 = vmatprep.subr.bf16.mxu1 %v3035_v44  ;;  %v3961_v54 = vsel %vm4883_vm0, %v3756_v9, %v922_v4  ;;  %v919_v4 = vrot.slane %v3877_v23, 4 }
 0x13a   : > { %v3928_v43 = vpop.permute.xlu1 %689  ;;  %1882 = vmatpush1.bf16.msra.mxu1 %v3034_v22  ;;  %v3930_v13 = vpop.permute.xlu0 %1328  ;;  %v931_v22 = vsel %vm428_vm2, %v917_v48, %v4865_v26  ;;  %v1049_v48 = vsel %vm428_vm2, %v1035_v32, %v1036_v6  ;;  %v1153_v26 = vrot.slane %v3785_v3, 4 }
 0x13b   : > { %v3951_v49 = vsel %vm4883_vm0, %v3766_v41, %v931_v22  ;;  %v1050_v57 = vsel %vm4890_vm15, %v3853_v51, %v1049_v48 }
 0x13c   : > { %v3009_v32 = vcombine.high %v3961_v54, %v3951_v49 }
 0x13e   : > { %v3933_v30 = vpop.permute.xlu1 %699  ;;  %v3935_v27 = vpop.permute.xlu0 %1338 }
 0x13f   : > { %v713_v46 = vrot.slane %v3933_v30, 4 }
 0x142   : > { %v3944_v44 = vpop.permute.xlu1 %1142  ;;  %v1131_v16 = vpop.permute.xlu0 %1130 }
 0x143   : > { %v1149_v2 = vrot.slane %v1131_v16, 4  ;;  %v4882_v41 = vrot.slane %v3944_v44, 4 }
 0x145   : > { %v1158_v22 = vsel %vm428_vm2, %v1148_v56, %v1149_v2 }
 0x146   : > { %v3957_v36 = vpop.permute.xlu1 %1024  ;;  %v1141_v35 = vpop.permute.xlu0 %1140  ;;  %v1159_v50 = vsel %vm4891_vm3, %v3770_v45, %v1158_v22  ;;  %v3008_v45 = vcombine.low %v3961_v54, %v3951_v49  ;;  %v4939_v22 = vrot.slane %v3907_v53, 4 }
 0x147   : > { %v1154_v55 = vrot.slane %v1141_v35, 4 }
 0x149   : > { %v1166_v56 = vsel %vm428_vm2, %v1153_v26, %v1154_v55  ;;  %v1168_v48 = vsel %vm428_vm2, %v1154_v55, %v4882_v41  ;;  %v3017_v55 = vcombine.high %v1042_v19, %v1050_v57 }
 0x14a   : > { %v3978_v31 = vpop.permute.xlu1 %1330  ;;  %v3980_v38 = vpop.permute.xlu0 %1132  ;;  %v1167_v51 = vsel %vm4891_vm3, %v3785_v3, %v1166_v56  ;;  %v839_v56 = vsel %vm428_vm2, %v829_v25, %v4939_v22  ;;  %v1169_v40 = vsel %vm4891_vm3, %v1141_v35, %v1168_v48  ;;  %v4942_v22 = vrot.slane %v3957_v36, 4 }
 0x14b   : > { %v4881_v26 = vrot.slane %v3980_v38, 4  ;;  %v3025_v9 = vcombine.high %v1159_v50, %v1167_v51  ;;  %v3024_v39 = vcombine.low %v1159_v50, %v1167_v51  ;;  %v4940_v50 = vrot.slane %v3920_v1, 4 }
 0x14c   : > { %v712_v48 = vrot.slane %v3904_v58, 4  ;;  %v841_v41 = vsel %vm4884_vm14, %v3869_v62, %v839_v56 }
 0x14d   : > { %v1160_v3 = vsel %vm428_vm2, %v1149_v2, %v4881_v26  ;;  %1842 = vmatprep.subr.bf16.mxu0 %v3025_v9  ;;  %v848_v51 = vsel %vm428_vm2, %v834_v63, %v4940_v50  ;;  %v4941_v9 = vrot.slane %v3922_v7, 4  ;;  %v1051_v63 = vsel %vm428_vm2, %v1036_v6, %v4942_v22 }
 0x14e   : > { %v4007_v49 = vpop.permute.xlu1 %1340  ;;  %1843 = vmatpush1.bf16.msra.mxu0 %v3024_v39  ;;  %v4009_v54 = vpop.permute.xlu0 %1014  ;;  %v1161_v2 = vsel %vm4891_vm3, %v1131_v16, %v1160_v3  ;;  %v3016_v39 = vcombine.low %v1042_v19, %v1050_v57  ;;  %v4943_v16 = vrot.slane %v3819_v34, 4  ;;  %v708_v3 = vrot.slane %v3928_v43, 4 }
 0x14f   : > { %v925_v25 = vsel %vm428_vm2, %v913_v20, %v4941_v9  ;;  %v1032_v50 = vrot.slane %v4009_v54, 4  ;;  %1844 = vmatprep.subr.bf16.mxu0 %v3017_v55  ;;  %v3027_v26 = vcombine.high %v1161_v2, %v1169_v40  ;;  %v3026_v35 = vcombine.low %v1161_v2, %v1169_v40 }
 0x150   : > { %v933_v20 = vsel %vm428_vm2, %v4943_v16, %v919_v4  ;;  %v849_v55 = vsel %vm4884_vm14, %v3879_v47, %v848_v51  ;;  %v926_v19 = vsel %vm4883_vm0, %v3804_v10, %v925_v25  ;;  %v707_v57 = vrot.slane %v3891_v59, 4 }
 0x151   : > { %v1043_v6 = vsel %vm428_vm2, %v1031_v52, %v1032_v50  ;;  %1883 = vmatprep.subr.bf16.mxu1 %v3027_v26  ;;  %v726_v62 = vsel %vm428_vm2, %v712_v48, %v713_v46  ;;  %v1052_v47 = vsel %vm4890_vm15, %v3902_v33, %v1051_v63  ;;  %v566_v9 = vrot.slane %v3851_v29, 4 }
 0x152   : > { %v4039_v56 = vpop.permute.xlu1 %823  ;;  %1845 = vmatpush1.bf16.msra.mxu0 %v3016_v39  ;;  %1884 = vmatpush1.bf16.msra.mxu1 %v3026_v35  ;;  %v4041_v40 = vpop.permute.xlu0 %813  ;;  %v1044_v52 = vsel %vm4890_vm15, %v3889_v0, %v1043_v6  ;;  %v3001_v25 = vcombine.high %v841_v41, %v849_v55  ;;  %v934_v22 = vsel %vm4883_vm0, %v3819_v34, %v933_v20  ;;  %v4944_v0 = vrot.slane %v3787_v11, 4 }
 0x153   : > { %v836_v10 = vrot.slane %v4039_v56, 4  ;;  %v831_v26 = vrot.slane %v4041_v40, 4  ;;  %1846 = vmatprep.subr.bf16.mxu0 %v3009_v32  ;;  %v3019_v51 = vcombine.high %v1044_v52, %v1052_v47  ;;  %v3018_v2 = vcombine.low %v1044_v52, %v1052_v47 }
 0x154   : > { %v584_v35 = vsel %vm428_vm2, %v4944_v0, %v571_v24  ;;  %v717_v33 = vsel %vm428_vm2, %v707_v57, %v708_v3  ;;  %v4945_v32 = vrot.slane %v3920_v1, 4  ;;  %v4946_v34 = vrot.slane %v3907_v53, 4  ;;  %v485_v0 = vld [vmem:[#allocation2 + $0x24] sm:$0xff] }
 0x155   : > { %1885 = vmatprep.subr.bf16.mxu1 %v3019_v51  ;;  %v3011_v39 = vcombine.high %v926_v19, %v934_v22  ;;  %v565_v16 = vrot.slane %v3772_v12, 4  ;;  %v727_v57 = vsel %vm4885_vm11, %v3904_v58, %v726_v62  ;;  %vm576_vm0 = vcmask 1039360   ;;  %v481_v51 = vld [vmem:[#allocation2] sm:$0xff] }
 0x156   : > { %v850_v63 = vsel %vm428_vm2, %v4945_v32, %v836_v10  ;;  %v842_v48 = vsel %vm428_vm2, %v4946_v34, %v831_v26  ;;  %v4071_v20 = vpop.permute.xlu1 %1226  ;;  %1847 = vmatpush1.bf16.msra.mxu0 %v3008_v45  ;;  %1886 = vmatpush1.bf16.msra.mxu1 %v3018_v2  ;;  %v4073_v6 = vpop.permute.xlu0 %1216  ;;  %v3000_v32 = vcombine.low %v841_v41, %v849_v55  ;;  %v1354_v62 = vrot.slane %v4007_v49, 4 }
 0x157   : > { %v843_v52 = vsel %vm4884_vm14, %v3907_v53, %v842_v48  ;;  %v851_v47 = vsel %vm4884_vm14, %v3920_v1, %v850_v63  ;;  %1848 = vmatprep.subr.bf16.mxu0 %v3001_v25  ;;  %1887 = vmatprep.subr.bf16.mxu1 %v3011_v39  ;;  %v3010_v34 = vcombine.low %v926_v19, %v934_v22  ;;  %v513_v55 = vsel %vm3248_vm8, %v485_v0, 0 }
 0x158   : > { %v719_v45 = vsel %vm4885_vm11, %v3891_v59, %v717_v33  ;;  %v575_v58 = vsel %vm428_vm2, %v565_v16, %v566_v9  ;;  %v3003_v2 = vcombine.high %v843_v52, %v851_v47  ;;  %v585_v1 = vsel %vm576_vm0, %v3787_v11, %v584_v35 }
 0x159   : > { %v2993_v53 = vcombine.high %v719_v45, %v727_v57  ;;  %v509_v59 = vsel %vm3248_vm8, %v481_v51, 0  ;;  %v1353_v19 = vrot.slane %v3935_v27, 4  ;;  %v577_v11 = vsel %vm576_vm0, %v3772_v12, %v575_v58 }
 0x15a   : > { %v4089_v25 = vpop.permute.xlu1 %701  ;;  %1849 = vmatpush1.bf16.msra.mxu0 %v3000_v32  ;;  %1888 = vmatpush1.bf16.msra.mxu1 %v3010_v34  ;;  %v4091_v41 = vpop.permute.xlu0 %691  ;;  %v1349_v35 = vrot.slane %v3978_v31, 4  ;;  %v2992_v63 = vcombine.low %v719_v45, %v727_v57  ;;  %v3002_v48 = vcombine.low %v843_v52, %v851_v47  ;;  %v2985_v39 = vcombine.high %v577_v11, %v585_v1 }
 0x15b   : > { %v714_v22 = vrot.slane %v4089_v25, 4  ;;  %v709_v33 = vrot.slane %v4091_v41, 4  ;;  %1850 = vmatprep.subr.bf16.mxu0 %v2993_v53  ;;  %1889 = vmatprep.subr.bf16.mxu1 %v3003_v2  ;;  %v1348_v16 = vrot.slane %v3930_v13, 4  ;;  %v1367_v51 = vsel %vm428_vm2, %v1353_v19, %v1354_v62 }
 0x15c   : > { %v1238_v57 = vrot.slane %v4071_v20, 4  ;;  %v1233_v52 = vrot.slane %v4073_v6, 4  ;;  %v2984_v53 = vcombine.low %v577_v11, %v585_v1  ;;  %vm4886_vm14 = vcmask 506880  }
 0x15d   : > { %v728_v0 = vsel %vm428_vm2, %v713_v46, %v714_v22  ;;  %v720_v12 = vsel %vm428_vm2, %v708_v3, %v709_v33  ;;  %v1358_v3 = vsel %vm428_vm2, %v1348_v16, %v1349_v35  ;;  %v2977_v2 = vcombine.high %v509_v59, %v513_v55 }
 0x15e   : > { %v4119_v47 = vpop.permute.xlu1 %1144  ;;  %1851 = vmatpush1.bf16.msra.mxu0 %v2992_v63  ;;  %1890 = vmatpush1.bf16.msra.mxu1 %v3002_v48  ;;  %v4121_v32 = vpop.permute.xlu0 %1134  ;;  %v721_v34 = vsel %vm4885_vm11, %v3928_v43, %v720_v12  ;;  %v729_v46 = vsel %vm4885_vm11, %v3933_v30, %v728_v0  ;;  %v1368_v19 = vsel %vm4886_vm14, %v3935_v27, %v1367_v51  ;;  %v482_v63 = vld [vmem:[#allocation2 + $0x8] sm:$0xff]  ;;  %v4947_v30 = vrot.slane %v3831_v21, 4 }
 0x15f   : > { %1852 = vmatprep.subr.bf16.mxu0 %v2985_v39  ;;  %v2995_v45 = vcombine.high %v721_v34, %v729_v46  ;;  %v2994_v58 = vcombine.low %v721_v34, %v729_v46  ;;  %v486_v48 = vld [vmem:[#allocation2 + $0x2c] sm:$0xff]  ;;  %v4948_v39 = vrot.slane %v3909_v8, 4  ;;  %v4887_v11 = vrot.slane %v4119_v47, 4 }
 0x160   : > { %v1253_v43 = vsel %vm428_vm2, %v4947_v30, %v1238_v57  ;;  %v4888_v16 = vrot.slane %v4121_v32, 4  ;;  %v1360_v34 = vsel %vm4886_vm14, %v3930_v13, %v1358_v3  ;;  %v2976_v46 = vcombine.low %v509_v59, %v513_v55 }
 0x161   : > { %1891 = vmatprep.subr.bf16.mxu1 %v2995_v45  ;;  %v1245_v1 = vsel %vm428_vm2, %v4948_v39, %v1233_v52  ;;  %v3041_v45 = vcombine.high %v1360_v34, %v1368_v19  ;;  %v510_v30 = vsel %vm3244_vm5, %v482_v63, 0  ;;  %v514_v39 = vsel %vm3244_vm5, %v486_v48, 0 }
 0x162   : > { %v4144_v0 = vpop.permute.xlu1 %559  ;;  %1853 = vmatpush1.bf16.msra.mxu0 %v2984_v53  ;;  %1892 = vmatpush1.bf16.msra.mxu1 %v2994_v58  ;;  %v4146_v27 = vpop.permute.xlu0 %549  ;;  %vm4949_vm11 = vcmask 515072   ;;  %v4951_v3 = vrot.slane %v3944_v44, 4 }
 0x163   : > { %v572_v51 = vrot.slane %v4144_v0, 4  ;;  %v4889_v12 = vrot.slane %v4146_v27, 4  ;;  %1854 = vmatprep.subr.bf16.mxu0 %v2977_v2  ;;  %v1246_v59 = vsel %vm4949_vm11, %v3909_v8, %v1245_v1  ;;  %vm4950_vm14 = vmmov %vm4949_vm11  ;;  %vm4955_vm11 = vcmask 130048  }
 0x164   : > { %v1254_v55 = vsel %vm4950_vm14, %v3831_v21, %v1253_v43  ;;  %v1170_v53 = vsel %vm428_vm2, %v4951_v3, %v4887_v11  ;;  %v3040_v11 = vcombine.low %v1360_v34, %v1368_v19  ;;  %v4953_v19 = vrot.slane %v3957_v36, 4 }
 0x165   : > { %v586_v58 = vsel %vm428_vm2, %v571_v24, %v572_v51  ;;  %v578_v13 = vsel %vm428_vm2, %v566_v9, %v4889_v12  ;;  %v4952_v24 = vrot.slane %v3980_v38, 4  ;;  %vm4956_vm14 = vcmask 777216  }
 0x166   : > { %v4180_v63 = vpop.permute.xlu1 %1026  ;;  %1855 = vmatpush1.bf16.msra.mxu0 %v2976_v46  ;;  %v4182_v9 = vpop.permute.xlu0 %1016  ;;  %v579_v21 = vsel %vm576_vm0, %v3851_v29, %v578_v13  ;;  %v587_v8 = vsel %vm576_vm0, %v3867_v18, %v586_v58  ;;  %v4192_v46 = vcombine.low %v3676_v17, %v3676_v17 }
 0x167   : > { %v1162_v2 = vsel %vm428_vm2, %v4952_v24, %v4888_v16  ;;  %v1038_v48 = vrot.slane %v4180_v63, 4  ;;  %v1033_v43 = vrot.slane %v4182_v9, 4  ;;  %1870 = vmatprep.subr.bf16.mxu0 %v3041_v45  ;;  %v2987_v1 = vcombine.high %v579_v21, %v587_v8 }
 0x168   : > { %v2986_v3 = vcombine.low %v579_v21, %v587_v8  ;;  %v2979_v24 = vcombine.high %v510_v30, %v514_v39  ;;  %v3037_v16 = vcombine.high %v1246_v59, %v1254_v55  ;;  %v1163_v18 = vsel %vm4891_vm3, %v3980_v38, %v1162_v2 }
 0x169   : > { %1893 = vmatprep.subr.bf16.mxu1 %v2987_v1  ;;  %v1171_v45 = vsel %vm4891_vm3, %v3944_v44, %v1170_v53  ;;  %v1053_v34 = vsel %vm428_vm2, %v4953_v19, %v1038_v48  ;;  %v1045_v17 = vsel %vm428_vm2, %v1032_v50, %v1033_v43  ;;  %v3036_v38 = vcombine.low %v1246_v59, %v1254_v55 }
 0x16a   : > { %v4194_v12 = vpop.permute.xlu1 %908  ;;  %1871 = vmatpush2.bf16.msra.mxu0 %v3040_v11  ;;  %1894 = vmatpush1.bf16.msra.mxu1 %v2986_v3  ;;  %v4196_v29 = vpop.permute.xlu0 %898  ;;  %v2978_v44 = vcombine.low %v510_v30, %v514_v39  ;;  %v3029_v13 = vcombine.high %v1163_v18, %v1171_v45  ;;  %v1046_v50 = vsel %vm4890_vm15, %v4009_v54, %v1045_v17  ;;  %v4954_v30 = vrot.slane %v3922_v7, 4 }
 0x16b   : > { %v920_v11 = vrot.slane %v4194_v12, 4  ;;  %v915_v58 = vrot.slane %v4196_v29, 4  ;;  %1895 = vmatprep.subr.bf16.mxu1 %v2979_v24  ;;  %1922 = vmatprep.subr.bf16.mxu0 %v3037_v16  ;;  %v1054_v21 = vsel %vm4890_vm15, %v3957_v36, %v1053_v34  ;;  %v3028_v36 = vcombine.low %v1163_v18, %v1171_v45  ;;  %vm4957_vm15 = vmmov %vm4956_vm14 }
 0x16c   : > { %v3021_v54 = vcombine.high %v1046_v50, %v1054_v21 }
 0x16d   : > { %1873 = vmatmul.mubr.bf16.vlgmr.msra.gmra.mxu0 %v4192_v46  ;;  %v935_v16 = vsel %vm428_vm2, %v919_v4, %v920_v11  ;;  %v927_v39 = vsel %vm428_vm2, %v4954_v30, %v915_v58 }
 0x16e   : > { %v4215_v53 = vpop.permute.xlu1 %825  ;;  %1896 = vmatpush1.bf16.msra.mxu1 %v2978_v44  ;;  %1923 = vmatpush1.bf16.msra.mxu0 %v3036_v38  ;;  %v4217_v2 = vpop.permute.xlu0 %815  ;;  %v928_v1 = vsel %vm4956_vm14, %v3922_v7, %v927_v39  ;;  %v936_v3 = vsel %vm4957_vm15, %v3877_v23, %v935_v16  ;;  %v3020_v7 = vcombine.low %v1046_v50, %v1054_v21  ;;  %vm4958_vm15 = vcmask 506880  }
 0x16f   : > { %v837_v59 = vrot.slane %v4215_v53, 4  ;;  %v832_v55 = vrot.slane %v4217_v2, 4  ;;  %1924 = vmatprep.subr.bf16.mxu0 %v3029_v13  ;;  %3050 = vmatprep.mubr.msk.bf16.mxu0 %vm4955_vm11, %v3684_v5  ;;  %v3013_v34 = vcombine.high %v928_v1, %v936_v3  ;;  %vm4959_vm11 = vmmov %vm4958_vm15  ;;  %vm4960_vm14 = vcmask 785408  }
 0x170   : > { %vm4961_vm3 = vmmov %vm4960_vm14  ;;  %v3012_v30 = vcombine.low %v928_v1, %v936_v3 }
 0x171   : > { %v852_v24 = vsel %vm428_vm2, %v836_v10, %v837_v59  ;;  %v844_v18 = vsel %vm428_vm2, %v831_v26, %v832_v55 }
 0x172   : > { %v4237_v8 = vpop.permute.xlu1 %1342  ;;  %1925 = vmatpush1.bf16.msra.mxu0 %v3028_v36  ;;  %v4239_v4 = vpop.permute.xlu0 %1332  ;;  %v853_v13 = vsel %vm4961_vm3, %v4039_v56, %v852_v24  ;;  %vm4962_vm3 = vcmask 1031168  }
 0x173   : > { %v1355_v45 = vrot.slane %v4237_v8, 4  ;;  %v1350_v19 = vrot.slane %v4239_v4, 4  ;;  %1926 = vmatprep.subr.bf16.mxu0 %v3021_v54 }
 0x175   : > { %v1369_v23 = vsel %vm428_vm2, %v1354_v62, %v1355_v45  ;;  %v1361_v10 = vsel %vm428_vm2, %v1349_v35, %v1350_v19  ;;  %v845_v62 = vsel %vm4960_vm14, %v4041_v40, %v844_v18 }
 0x176   : > { %v4267_v26 = vpop.permute.xlu1 %703  ;;  %1927 = vmatpush1.bf16.msra.mxu0 %v3020_v7  ;;  %v4269_v17 = vpop.permute.xlu0 %693  ;;  %v1362_v38 = vsel %vm4958_vm15, %v3978_v31, %v1361_v10  ;;  %v1370_v44 = vsel %vm4959_vm11, %v4007_v49, %v1369_v23  ;;  %v3005_v56 = vcombine.high %v845_v62, %v853_v13  ;;  %vm4963_vm15 = vmmov %vm4962_vm3  ;;  %v3004_v3 = vcombine.low %v845_v62, %v853_v13 }
 0x177   : > { %v715_v35 = vrot.slane %v4267_v26, 4  ;;  %v710_v50 = vrot.slane %v4269_v17, 4  ;;  %1928 = vmatprep.subr.bf16.mxu0 %v3013_v34  ;;  %v3043_v21 = vcombine.high %v1362_v38, %v1370_v44  ;;  %v3042_v16 = vcombine.low %v1362_v38, %v1370_v44  ;;  %v483_v38 = vld [vmem:[#allocation2 + $0x10] sm:$0xff] }
 0x178   : > { %vm4964_vm11 = vcmask 515072   ;;  %v487_v44 = vld [vmem:[#allocation2 + $0x34] sm:$0xff] }
 0x179   : > { %v730_v31 = vsel %vm428_vm2, %v714_v22, %v715_v35  ;;  %v722_v49 = vsel %vm428_vm2, %v709_v33, %v710_v50  ;;  %1911 = vmatprep.subr.bf16.mxu1 %v3043_v21  ;;  %vm4965_vm14 = vmmov %vm4964_vm11 }
 0x17a   : > { %v1229_v40 = vpop.permute.xlu1 %1228  ;;  %1912 = vmatpush2.bf16.msra.mxu1 %v3042_v16  ;;  %1929 = vmatpush1.bf16.msra.mxu0 %v3012_v30  ;;  %v1219_v39 = vpop.permute.xlu0 %1218  ;;  %v723_v36 = vsel %vm4962_vm3, %v4091_v41, %v722_v49  ;;  %v731_v54 = vsel %vm4963_vm15, %v4089_v25, %v730_v31  ;;  %vm4966_vm3 = vcmask 130048   ;;  %v515_v31 = vsel %vm3289_vm4, %v487_v44, 0 }
 0x17b   : > { %v1239_v1 = vrot.slane %v1229_v40, 4  ;;  %v1234_v22 = vrot.slane %v1219_v39, 4  ;;  %1930 = vmatprep.subr.bf16.mxu0 %v3005_v56  ;;  %v2997_v18 = vcombine.high %v723_v36, %v731_v54  ;;  %v2996_v62 = vcombine.low %v723_v36, %v731_v54 }
 0x17c   : > { %v4968_v36 = vrot.slane %v4119_v47, 4  ;;  %vm4970_vm15 = vcmask 523264  }
 0x17d   : > { %v1255_v33 = vsel %vm428_vm2, %v1238_v57, %v1239_v1  ;;  %v1247_v24 = vsel %vm428_vm2, %v1233_v52, %v1234_v22  ;;  %1914 = vmatmul.mubr.bf16.vlgmr.msra.gmra.mxu1 %v4192_v46  ;;  %v4969_v1 = vrot.slane %v4121_v32, 4 }
 0x17e   : > { %v4302_v7 = vpop.permute.xlu1 %561  ;;  %1931 = vmatpush1.bf16.msra.mxu0 %v3004_v3  ;;  %v4304_v41 = vpop.permute.xlu0 %551  ;;  %v1248_v25 = vsel %vm4964_vm11, %v4073_v6, %v1247_v24  ;;  %v1256_v23 = vsel %vm4965_vm14, %v4071_v20, %v1255_v33  ;;  %3051 = vmatprep.mubr.msk.bf16.mxu1 %vm4966_vm3, %v3684_v5  ;;  %v4967_v5 = vrot.slane %v4146_v27, 4  ;;  %vm4971_vm11 = vmmov %vm4970_vm15  ;;  %vm4972_vm14 = vcmask 769024  }
 0x17f   : > { %v573_v57 = vrot.slane %v4302_v7, 4  ;;  %v568_v52 = vrot.slane %v4304_v41, 4  ;;  %1932 = vmatprep.subr.bf16.mxu0 %v2997_v18  ;;  %v3038_v10 = vcombine.low %v1248_v25, %v1256_v23  ;;  %v3039_v34 = vcombine.high %v1248_v25, %v1256_v23  ;;  %vm4973_vm3 = vmmov %vm4972_vm14 }
 0x181   : > { %v588_v6 = vsel %vm428_vm2, %v572_v51, %v573_v57  ;;  %v580_v20 = vsel %vm428_vm2, %v4967_v5, %v568_v52  ;;  %1963 = vmatprep.subr.bf16.mxu1 %v3039_v34  ;;  %v511_v51 = vsel %vm3289_vm4, %v483_v38, 0 }
 0x182   : > { %v1147_v13 = vpop.permute.xlu1 %1146  ;;  %1933 = vmatpush1.bf16.msra.mxu0 %v2996_v62  ;;  %1964 = vmatpush1.bf16.msra.mxu1 %v3038_v10  ;;  %v1137_v21 = vpop.permute.xlu0 %1136  ;;  %v581_v16 = vsel %vm576_vm0, %v4146_v27, %v580_v20  ;;  %v589_v30 = vsel %vm576_vm0, %v4144_v0, %v588_v6  ;;  %v2981_v0 = vcombine.high %v511_v51, %v515_v31 }
 0x183   : > { %v1157_v49 = vrot.slane %v1147_v13, 4  ;;  %v1152_v56 = vrot.slane %v1137_v21, 4  ;;  %v2988_v40 = vcombine.low %v581_v16, %v589_v30  ;;  %v2989_v39 = vcombine.high %v581_v16, %v589_v30 }
 0x184   : > { %v2980_v34 = vcombine.low %v511_v51, %v515_v31 }
 0x185   : > { %v1172_v54 = vsel %vm428_vm2, %v4968_v36, %v1157_v49  ;;  %v1164_v27 = vsel %vm428_vm2, %v4969_v1, %v1152_v56  ;;  %1934 = vmatprep.subr.bf16.mxu0 %v2989_v39 }
 0x186   : > { %v1029_v22 = vpop.permute.xlu1 %1028  ;;  %1935 = vmatpush1.bf16.msra.mxu0 %v2988_v40  ;;  %v1019_v3 = vpop.permute.xlu0 %1018  ;;  %v1165_v33 = vsel %vm4970_vm15, %v4121_v32, %v1164_v27  ;;  %v1173_v24 = vsel %vm4971_vm11, %v4119_v47, %v1172_v54  ;;  %vm4974_vm15 = vcmask 777216  }
 0x187   : > { %v1039_v18 = vrot.slane %v1029_v22, 4  ;;  %v1034_v25 = vrot.slane %v1019_v3, 4  ;;  %1936 = vmatprep.subr.bf16.mxu0 %v2981_v0  ;;  %v3030_v23 = vcombine.low %v1165_v33, %v1173_v24  ;;  %v3031_v10 = vcombine.high %v1165_v33, %v1173_v24  ;;  %vm4975_vm11 = vmmov %vm4974_vm15 }
 0x189   : > { %v1055_v38 = vsel %vm428_vm2, %v1038_v48, %v1039_v18  ;;  %v1047_v44 = vsel %vm428_vm2, %v1033_v43, %v1034_v25  ;;  %1965 = vmatprep.subr.bf16.mxu1 %v3031_v10  ;;  %v4982_v10 = vmov 0  }
 0x18a   : > { %v911_v62 = vpop.permute.xlu1 %910  ;;  %1937 = vmatpush1.bf16.msra.mxu0 %v2980_v34  ;;  %1966 = vmatpush1.bf16.msra.mxu1 %v3030_v23  ;;  %v901_v32 = vpop.permute.xlu0 %900  ;;  %v1048_v47 = vsel %vm4972_vm14, %v4182_v9, %v1047_v44  ;;  %v1056_v6 = vsel %vm4973_vm3, %v4180_v63, %v1055_v38  ;;  %vm4976_vm14 = vcmask 506880  }
 0x18b   : > { %v921_v5 = vrot.slane %v911_v62, 4  ;;  %v916_v20 = vrot.slane %v901_v32, 4  ;;  %v3022_v13 = vcombine.low %v1048_v47, %v1056_v6  ;;  %v3023_v21 = vcombine.high %v1048_v47, %v1056_v6  ;;  %vm4977_vm3 = vmmov %vm4976_vm14  ;;  %v484_v62 = vld [vmem:[#allocation2 + $0x18] sm:$0xff] }
 0x18d   : > { %v937_v48 = vsel %vm428_vm2, %v920_v11, %v921_v5  ;;  %v929_v43 = vsel %vm428_vm2, %v915_v58, %v916_v20  ;;  %1967 = vmatprep.subr.bf16.mxu1 %v3023_v21  ;;  %v512_v20 = vsel %vm3307_vm12, %v484_v62, 0 }
 0x18e   : > { %v4358_v16 = vpop.permute.xlu1 %1344  ;;  %1968 = vmatpush1.bf16.msra.mxu1 %v3022_v13  ;;  %v4360_v9 = vpop.permute.xlu0 %1334  ;;  %v930_v63 = vsel %vm4974_vm15, %v4196_v29, %v929_v43  ;;  %v938_v30 = vsel %vm4975_vm11, %v4194_v12, %v937_v48  ;;  %vm4978_vm15 = vcmask 785408  }
 0x18f   : > { %v1356_v51 = vrot.slane %v4358_v16, 4  ;;  %v1351_v11 = vrot.slane %v4360_v9, 4  ;;  %v3014_v31 = vcombine.low %v930_v63, %v938_v30  ;;  %v3015_v49 = vcombine.high %v930_v63, %v938_v30  ;;  %vm4979_vm11 = vmmov %vm4978_vm15 }
 0x191   : > { %v1371_v58 = vsel %vm428_vm2, %v1355_v45, %v1356_v51  ;;  %v1363_v56 = vsel %vm428_vm2, %v1350_v19, %v1351_v11  ;;  %1969 = vmatprep.subr.bf16.mxu1 %v3015_v49 }
 0x192   : > { %v828_v40 = vpop.permute.xlu1 %827  ;;  %1970 = vmatpush1.bf16.msra.mxu1 %v3014_v31  ;;  %v818_v29 = vpop.permute.xlu0 %817  ;;  %v1364_v12 = vsel %vm4976_vm14, %v4239_v4, %v1363_v56  ;;  %v1372_v39 = vsel %vm4977_vm3, %v4237_v8, %v1371_v58  ;;  %vm4980_vm14 = vcmask 1031168  }
 0x193   : > { %v838_v36 = vrot.slane %v828_v40, 4  ;;  %v833_v54 = vrot.slane %v818_v29, 4  ;;  %v3044_v1 = vcombine.low %v1364_v12, %v1372_v39  ;;  %v3045_v27 = vcombine.high %v1364_v12, %v1372_v39  ;;  %vm4981_vm3 = vmmov %vm4980_vm14 }
 0x195   : > { %v854_v45 = vsel %vm428_vm2, %v837_v59, %v838_v36  ;;  %v846_v19 = vsel %vm428_vm2, %v832_v55, %v833_v54  ;;  %1952 = vmatprep.subr.bf16.mxu0 %v3045_v27 }
 0x196   : > { %v706_v0 = vpop.permute.xlu1 %705  ;;  %1953 = vmatpush2.bf16.msra.mxu0 %v3044_v1  ;;  %v696_v22 = vpop.permute.xlu0 %695  ;;  %v847_v4 = vsel %vm4978_vm15, %v4217_v2, %v846_v19  ;;  %v855_v8 = vsel %vm4979_vm11, %v4215_v53, %v854_v45  ;;  %vm4983_vm15 = vcmask 506880  }
 0x197   : > { %v716_v3 = vrot.slane %v706_v0, 4  ;;  %v711_v33 = vrot.slane %v696_v22, 4  ;;  %v3006_v24 = vcombine.low %v847_v4, %v855_v8  ;;  %v3007_v18 = vcombine.high %v847_v4, %v855_v8  ;;  %vm4984_vm11 = vmmov %vm4983_vm15 }
 0x199   : > { %v732_v59 = vsel %vm428_vm2, %v715_v35, %v716_v3  ;;  %v724_v55 = vsel %vm428_vm2, %v710_v50, %v711_v33  ;;  %1955 = vmatmul.mubr.bf16.vlgmr.msra.gmra.mxu0 %v4192_v46  ;;  %1971 = vmatprep.subr.bf16.mxu1 %v3007_v18  ;;  %v488_v50 = vld [vmem:[#allocation2 + $0x3c] sm:$0xff] }
 0x19a   : > { %v564_v25 = vpop.permute.xlu1 %563  ;;  %1972 = vmatpush1.bf16.msra.mxu1 %v3006_v24  ;;  %v554_v2 = vpop.permute.xlu0 %553  ;;  %v725_v53 = vsel %vm4980_vm14, %v4269_v17, %v724_v55  ;;  %v733_v23 = vsel %vm4981_vm3, %v4267_v26, %v732_v59  ;;  %2720 = vmatprep.mubr.bf16.mxu0 %v4982_v10  ;;  %vm4985_vm14 = vcmask 269312   ;;  %vm4986_vm3 = vcmp.ne.s16.totalorder %v3504_v60, 0  ;;  %v4989_v60 = vld [vmem:[#allocation5_spill] sm:$0xff] }
 0x19b   : > { %v574_v34 = vrot.slane %v564_v25, 4  ;;  %v569_v35 = vrot.slane %v554_v2, 4  ;;  %v2998_v38 = vcombine.low %v725_v53, %v733_v23  ;;  %v2999_v44 = vcombine.high %v725_v53, %v733_v23 }
 0x19d   : > { %v590_v32 = vsel %vm428_vm2, %v573_v57, %v574_v34  ;;  %v582_v47 = vsel %vm428_vm2, %v568_v52, %v569_v35  ;;  %1973 = vmatprep.subr.bf16.mxu1 %v2999_v44  ;;  %v516_v57 = vsel %vm3307_vm12, %v488_v50, 0 }
 0x19e   : > { %v1347_v17 = vpop.permute.xlu1 %1346  ;;  %1974 = vmatpush1.bf16.msra.mxu1 %v2998_v38  ;;  %v1337_v26 = vpop.permute.xlu0 %1336  ;;  %v583_v6 = vsel %vm576_vm0, %v4304_v41, %v582_v47  ;;  %v591_v5 = vsel %vm576_vm0, %v4302_v7, %v590_v32  ;;  %v2983_v30 = vcombine.high %v512_v20, %v516_v57  ;;  %v2982_v31 = vcombine.low %v512_v20, %v516_v57 }
 0x19f   : > { %v1357_v13 = vrot.slane %v1347_v17, 4  ;;  %v1352_v21 = vrot.slane %v1337_v26, 4  ;;  %v2990_v48 = vcombine.low %v583_v6, %v591_v5  ;;  %v2991_v52 = vcombine.high %v583_v6, %v591_v5 }
 0x1a1   : > { %v1373_v43 = vsel %vm428_vm2, %v1356_v51, %v1357_v13  ;;  %v1365_v63 = vsel %vm428_vm2, %v1351_v11, %v1352_v21  ;;  %1975 = vmatprep.subr.bf16.mxu1 %v2991_v52 }
 0x1a2   : > { %1976 = vmatpush1.bf16.msra.mxu1 %v2990_v48  ;;  %v1366_v7 = vsel %vm4983_vm15, %v4360_v9, %v1365_v63  ;;  %v1374_v41 = vsel %vm4984_vm11, %v4358_v16, %v1373_v43  ;;  %vm4988_vm15 = vmmov %vm4985_vm14  ;;  %vm4990_vm11 = vcmp.ne.s16.totalorder %v4989_v60, 0  ;;  %v4993_v43 = vld [vmem:[#allocation6_spill] sm:$0xff] }
 0x1a3   : > { %1977 = vmatprep.subr.bf16.mxu1 %v2983_v30  ;;  %v3047_v49 = vcombine.high %v1366_v7, %v1374_v41  ;;  %v3046_v58 = vcombine.low %v1366_v7, %v1374_v41  ;;  %v4995_v30 = vld [vmem:[#allocation14_spill] sm:$0xff]  ;;  %v4997_v41 = vld [vmem:[#allocation8_spill] sm:$0xff] }
 0x1a6   : > { %1978 = vmatpush1.bf16.msra.mxu1 %v2982_v31 }
 0x1a7   : > { %1993 = vmatprep.subr.bf16.mxu1 %v3047_v49  ;;  %v4999_v49 = vld [vmem:[#allocation12_spill] sm:$0xff] }
 0x1aa   : > { %1994 = vmatpush2.bf16.msra.mxu1 %v3046_v58 }
 0x1ab   : > { %v1468_v51 = vpop.permute.xlu0 %1467 }
 0x1ad   : > { %1996 = vmatmul.mubr.bf16.vlgmr.msra.gmra.mxu1 %v4192_v46 }
 0x1ae   : > { %2761 = vmatprep.mubr.bf16.mxu1 %v4982_v10 }
 0x22d   : > { %v1874_v11 = vpop.f32.mrf.mxu0 }
 0x22e   : > { %v1875_v56 = vadd.f32 %v1874_v11, %v1468_v51 }
 0x22f   : > { %v1876_v40 = vpop.f32.mrf.mxu0 }
 0x230   : > { %v1877_v29 = vadd.f32 %v1876_v40, %v1468_v51  ;;  %v2004_v9 = vmax.f32 %v1875_v56, 0.0  ;;  %v5003_v56 = vld [vmem:[#allocation10_spill] sm:$0xff] }
 0x231   : > { %v1878_v12 = vpop.f32.mrf.mxu0 }
 0x232   : > { %v2005_v39 = vmax.f32 %v1877_v29, 0.0 }
 0x233   : > { %v1879_v16 = vpop.f32.mrf.mxu0 }
 0x234   : > { %v3113_v36 = vpack.c.bf16 %v2005_v39, %v2004_v9  ;;  %v5006_v16 = vld [vmem:[#allocation20_spill] sm:$0xff] }
 0x236   : > { %2042 = vrot.lane.b32.xlu1 %v3113_v36, %s3155_s30 }
 0x23d   : > { %v1915_v54 = vpop.f32.mrf.mxu1 }
 0x23e   : > { %v1916_v1 = vadd.f32 %v1915_v54, %v1468_v51 }
 0x23f   : > { %v1917_v27 = vpop.f32.mrf.mxu1 }
 0x240   : > { %v2006_v45 = vmax.f32 %v1916_v1, 0.0  ;;  %v1918_v19 = vadd.f32 %v1917_v27, %v1468_v51 }
 0x241   : > { %v1919_v46 = vpop.f32.mrf.mxu1 }
 0x242   : > { %v2007_v0 = vmax.f32 %v1918_v19, 0.0  ;;  %v5010_v19 = vld [vmem:[#allocation13_spill] sm:$0xff] }
 0x243   : > { %v1920_v22 = vpop.f32.mrf.mxu1 }
 0x244   : > { %v3114_v4 = vpack.c.bf16 %v2007_v0, %v2006_v45 }
 0x246   : > { %2044 = vrot.lane.b32.xlu1 %v3114_v4, %s3155_s30 }
 0x259   : > { %v1956_v8 = vpop.f32.mrf.mxu0 }
 0x25a   : > { %v1957_v3 = vadd.f32 %v1956_v8, %v1468_v51  ;;  %v5013_v8 = vld [vmem:[#allocation15_spill] sm:$0xff] }
 0x25b   : > { %v1958_v33 = vpop.f32.mrf.mxu0 }
 0x25c   : > { %v1959_v24 = vadd.f32 %v1958_v33, %v1468_v51  ;;  %v2008_v59 = vmax.f32 %v1957_v3, 0.0  ;;  %v5015_v33 = vld [vmem:[#allocation24_spill] sm:$0xff] }
 0x25d   : > { %v1960_v18 = vpop.f32.mrf.mxu0 }
 0x25e   : > { %v2009_v55 = vmax.f32 %v1959_v24, 0.0  ;;  %v5017_v18 = vld [vmem:[#allocation11_spill] sm:$0xff] }
 0x25f   : > { %v1961_v25 = vpop.f32.mrf.mxu0 }
 0x260   : > { %v3115_v2 = vpack.c.bf16 %v2009_v55, %v2008_v59  ;;  %v5019_v25 = vld [vmem:[#allocation17_spill] sm:$0xff] }
 0x262   : > { %2046 = vrot.lane.b32.xlu0 %v3115_v2, %s3155_s30 }
 0x26d   : > { %v1997_v53 = vpop.f32.mrf.mxu1 }
 0x26e   : > { %v1998_v23 = vadd.f32 %v1997_v53, %v1468_v51 }
 0x26f   : > { %v1999_v34 = vpop.f32.mrf.mxu1 }
 0x270   : > { %v2000_v35 = vadd.f32 %v1999_v34, %v1468_v51  ;;  %v2010_v44 = vmax.f32 %v1998_v23, 0.0  ;;  %v5001_v51 = vld [vmem:[#allocation9_spill] sm:$0xff]  ;;  %v5022_v34 = vld [vmem:[#allocation18_spill] sm:$0xff] }
 0x271   : > { %v2001_v38 = vpop.f32.mrf.mxu1 }
 0x272   : > { %v2011_v62 = vmax.f32 %v2000_v35, 0.0  ;;  %v5024_v38 = vld [vmem:[#allocation16_spill] sm:$0xff] }
 0x273   : > { %v2002_v50 = vpop.f32.mrf.mxu1 }
 0x274   : > { %v3116_v32 = vpack.c.bf16 %v2011_v62, %v2010_v44  ;;  %v5026_v62 = vld [vmem:[#allocation21_spill] sm:$0xff] }
 0x276   : > { %2048 = vrot.lane.b32.xlu1 %v3116_v32, %s3155_s30 }
 0x2a8   : > { %v2043_v47 = vpop.permute.xlu1 %2042 }
 0x2a9   : > { %v2050_v17 = vrot.slane %v2043_v47, 4 }
 0x2ab   : > { %v2054_v26 = vsel %vm4985_vm14, %v2050_v17, %v2043_v47  ;;  %v5028_v47 = vld [vmem:[#allocation19_spill] sm:$0xff] }
 0x2ac   : > { %2066 = vst.msk [vmem:[#allocation3] sm:$0xff] %vm3321_vm1, %v2054_v26  ;;  %vm4987_vm1 = vcmp.ne.s16.totalorder %v3360_v61, 0  ;;  %v4991_v61 = vld [vmem:[#allocation7_spill] sm:$0xff] }
 0x2ad   : > { %vm4992_vm14 = vcmp.ne.s16.totalorder %v4991_v61, 0 }
 0x2b3   : > { %v4429_v6 = vld [vmem:[#allocation3] sm:$0xff] }
 0x2b4   : > { %2359 = vrot.lane.b32.xlu0 %v4429_v6, %s3161_s12  ;;  %2226 = vrot.lane.b32.xlu1 %v4429_v6, %s3162_s13  ;;  %v2395_v5 = vsel %vm4986_vm3, %v4429_v6, 0  ;;  %v2308_v13 = vsel %vm4987_vm1, %v4429_v6, 0  ;;  %v2262_v48 = vsel %vm4990_vm11, %v4429_v6, 0  ;;  %v2129_v52 = vsel %vm4992_vm14, %v4429_v6, 0 }
 0x2b5   : > { %vm4994_vm3 = vcmp.ne.s16.totalorder %v4993_v43, 0  ;;  %vm4996_vm1 = vcmp.ne.s16.totalorder %v4995_v30, 0  ;;  %vm5000_vm11 = vcmp.ne.s16.totalorder %v4999_v49, 0  ;;  %vm5002_vm14 = vcmp.ne.s16.totalorder %v5001_v51, 0 }
 0x2b6   : > { %v2175_v63 = vsel %vm4994_vm3, %v4429_v6, 0  ;;  %vm5004_vm3 = vcmp.ne.s16.totalorder %v5003_v56, 0 }
 0x2b8   : > { %2405 = vrot.lane.b32.xlu0 %v2395_v5, %s3167_s18  ;;  %2093 = vrot.lane.b32.xlu1 %v4429_v6, %s3163_s14  ;;  %v2045_v20 = vpop.permute.xlu1 %2044 }
 0x2b9   : > { %v2051_v42 = vrot.slane %v2045_v20, 4 }
 0x2bb   : > { %v2055_v57 = vsel %vm428_vm2, %v2050_v17, %v2051_v42 }
 0x2bc   : > { %v4446_v21 = vsel %vm4988_vm15, %v2055_v57, %v2045_v20  ;;  %2318 = vrot.lane.b32.xlu1 %v2308_v13, %s3156_s7  ;;  %vm4998_vm15 = vcmp.ne.s16.totalorder %v4997_v41, 0  ;;  %v2473_v20 = vld [vmem:[%s4827_s5] sm:$0xff] }
 0x2bd   : > { %2228 = vrot.lane.b32.xlu0 %v4446_v21, %s3162_s13  ;;  %v2396_v7 = vsel %vm4996_vm1, %v4446_v21, 0  ;;  %v2263_v31 = vsel %vm4998_vm15, %v4446_v21, 0  ;;  %v2309_v58 = vsel %vm5000_vm11, %v4446_v21, 0  ;;  %v2176_v11 = vsel %vm5002_vm14, %v4446_v21, 0 }
 0x2be   : > { %v2130_v40 = vsel %vm5004_vm3, %v4446_v21, 0  ;;  %vm5005_vm1 = vcmask 269312   ;;  %vm5007_vm15 = vcmp.ne.s16.totalorder %v5006_v16, 0  ;;  %vm5008_vm11 = vcmask 265216  }
 0x2bf   : > { %vm5009_vm14 = vmmov %vm5005_vm1  ;;  %vm5011_vm3 = vcmp.ne.s16.totalorder %v5010_v19, 0 }
 0x2c0   : > { %2361 = vrot.lane.b32.xlu1 %v4446_v21, %s3161_s12 }
 0x2c1   : > { %2272 = vrot.lane.b32.xlu0 %v2262_v48, %s3164_s15 }
 0x2c4   : > { %2139 = vrot.lane.b32.xlu1 %v2129_v52, %s3166_s17 }
 0x2c5   : > { %2185 = vrot.lane.b32.xlu0 %v2175_v63, %s3165_s16 }
 0x2c8   : > { %2407 = vrot.lane.b32.xlu1 %v2396_v7, %s3167_s18 }
 0x2c9   : > { %2095 = vrot.lane.b32.xlu0 %v4446_v21, %s3163_s14 }
 0x2cc   : > { %2274 = vrot.lane.b32.xlu1 %v2263_v31, %s3164_s15 }
 0x2cd   : > { %2320 = vrot.lane.b32.xlu0 %v2309_v58, %s3156_s7 }
 0x2d0   : > { %2187 = vrot.lane.b32.xlu1 %v2176_v11, %s3165_s16 }
 0x2d1   : > { %2141 = vrot.lane.b32.xlu0 %v2130_v40, %s3166_s17 }
 0x2d4   : > { %v2047_v29 = vpop.permute.xlu0 %2046 }
 0x2d5   : > { %v2052_v9 = vrot.slane %v2047_v29, 4 }
 0x2d7   : > { %v2057_v12 = vsel %vm428_vm2, %v2051_v42, %v2052_v9 }
 0x2d8   : > { %v4489_v39 = vsel %vm5005_vm1, %v2057_v12, %v2047_v29  ;;  %vm5014_vm1 = vcmp.ne.s16.totalorder %v5013_v8, 0 }
 0x2d9   : > { %2363 = vrot.lane.b32.xlu0 %v4489_v39, %s3161_s12  ;;  %v2397_v36 = vsel %vm5007_vm15, %v4489_v39, 0  ;;  %v2264_v46 = vsel %vm5011_vm3, %v4489_v39, 0  ;;  %v2177_v3 = vsel %vm5014_vm1, %v4489_v39, 0  ;;  %vm5018_vm15 = vcmp.ne.s16.totalorder %v5017_v18, 0 }
 0x2da   : > { %v2310_v59 = vsel %vm5018_vm15, %v4489_v39, 0  ;;  %vm5025_vm3 = vcmp.ne.s16.totalorder %v5024_v38, 0  ;;  %vm5027_vm1 = vcmp.ne.s16.totalorder %v5026_v62, 0  ;;  %vm5037_vm15 = vcmask 777216  }
 0x2db   : > { %v2131_v44 = vsel %vm5025_vm3, %v4489_v39, 0  ;;  %vm2659_vm3 = vcmask 588800  }
 0x2dd   : > { %2409 = vrot.lane.b32.xlu0 %v2397_v36, %s3167_s18 }
 0x2e8   : > { %v2049_v54 = vpop.permute.xlu1 %2048 }
 0x2e9   : > { %v2053_v1 = vrot.slane %v2049_v54, 4 }
 0x2eb   : > { %v2059_v27 = vsel %vm428_vm2, %v2052_v9, %v2053_v1  ;;  %2070 = vst.msk [vmem:[#allocation3 + $0x20] sm:$0xf] %vm5008_vm11, %v2053_v1  ;;  %vm5020_vm11 = vcmp.ne.s16.totalorder %v5019_v25, 0 }
 0x2ec   : > { %v4500_v45 = vsel %vm5009_vm14, %v2059_v27, %v2049_v54  ;;  %vm5023_vm14 = vcmp.ne.s16.totalorder %v5022_v34, 0 }
 0x2ed   : > { %2365 = vrot.lane.b32.xlu0 %v4500_v45, %s3161_s12  ;;  %v2311_v2 = vsel %vm5020_vm11, %v4500_v45, 0  ;;  %v2265_v35 = vsel %vm5023_vm14, %v4500_v45, 0  ;;  %v2132_v50 = vsel %vm5027_vm1, %v4500_v45, 0  ;;  %vm5038_vm11 = vcmask 1031168  }
 0x2ee   : > { %vm5039_vm14 = vcmask 785408  }
 0x2f1   : > { %2276 = vrot.lane.b32.xlu0 %v2264_v46, %s3164_s15 }
 0x2f2   : > { %v2394_v0 = vld [vmem:[#allocation3 + $0x20] sm:$0xf] }
 0x2f3   : > { %v2399_v4 = vsel %vm3883_vm6, %v2394_v0, 0  ;;  %vm5016_vm6 = vcmp.ne.s16.totalorder %v5015_v33, 0  ;;  %v2307_v55 = vld [vmem:[#allocation3 + $0x20] sm:$0xf] }
 0x2f4   : > { %2413 = vrot.lane.b32.xlu1 %v2399_v4, %s3167_s18  ;;  %v2398_v24 = vsel %vm5016_vm6, %v4500_v45, 0  ;;  %v2312_v23 = vsel %vm3780_vm13, %v2307_v55, 0  ;;  %v2353_v32 = vld [vmem:[#allocation3 + $0x20] sm:$0xf]  ;;  %vm5029_vm13 = vcmp.ne.s16.totalorder %v5028_v47, 0  ;;  %vm5036_vm6 = vcmask 769024  }
 0x2f5   : > { %2232 = vrot.lane.b32.xlu0 %v4500_v45, %s3162_s13  ;;  %v2178_v17 = vsel %vm5029_vm13, %v4500_v45, 0  ;;  %v2220_v26 = vld [vmem:[#allocation3 + $0x20] sm:$0xf] }
 0x2f6   : > { %v2261_v5 = vld [vmem:[#allocation3 + $0x20] sm:$0xf] }
 0x2f7   : > { %v2266_v57 = vsel %vm3797_vm7, %v2261_v5, 0  ;;  %v2128_v13 = vld [vmem:[#allocation3 + $0x20] sm:$0xf]  ;;  %vm5033_vm7 = vcmask 506880  }
 0x2f8   : > { %2230 = vrot.lane.b32.xlu1 %v4489_v39, %s3162_s13  ;;  %v2133_v48 = vsel %vm3861_vm10, %v2128_v13, 0  ;;  %v2174_v61 = vld [vmem:[#allocation3 + $0x20] sm:$0xf]  ;;  %vm5034_vm10 = vcmask 515072   ;;  %vm5040_vm1 = vmmov %vm5033_vm7 }
 0x2f9   : > { %2189 = vrot.lane.b32.xlu0 %v2177_v3, %s3165_s16  ;;  %v2179_v43 = vsel %vm3845_vm9, %v2174_v61, 0  ;;  %v2087_v63 = vld [vmem:[#allocation3 + $0x20] sm:$0xf]  ;;  %vm5035_vm9 = vcmask 523264   ;;  %vm5042_vm13 = vmmov %vm5034_vm10 }
 0x2fc   : > { %2097 = vrot.lane.b32.xlu1 %v4489_v39, %s3163_s14 }
 0x2fd   : > { %2411 = vrot.lane.b32.xlu0 %v2398_v24, %s3167_s18 }
 0x300   : > { %2322 = vrot.lane.b32.xlu1 %v2310_v59, %s3156_s7 }
 0x301   : > { %2324 = vrot.lane.b32.xlu0 %v2311_v2, %s3156_s7 }
 0x304   : > { %2326 = vrot.lane.b32.xlu1 %v2312_v23, %s3156_s7  ;;  %s4813_s7 = scalar_lea.vmem %s4828_s6, %s3220_s23 }
 0x305   : > { %2278 = vrot.lane.b32.xlu0 %v2265_v35, %s3164_s15 }
 0x308   : > { %2143 = vrot.lane.b32.xlu1 %v2131_v44, %s3166_s17 }
 0x309   : > { %2145 = vrot.lane.b32.xlu0 %v2132_v50, %s3166_s17 }
 0x30c   : > { %2367 = vrot.lane.b32.xlu1 %v2353_v32, %s3161_s12 }
 0x30d   : > { %2191 = vrot.lane.b32.xlu0 %v2178_v17, %s3165_s16 }
 0x310   : > { %2234 = vrot.lane.b32.xlu1 %v2220_v26, %s3162_s13 }
 0x311   : > { %2099 = vrot.lane.b32.xlu0 %v4500_v45, %s3163_s14 }
 0x314   : > { %2280 = vrot.lane.b32.xlu1 %v2266_v57, %s3164_s15 }
 0x315   : > { %2476 = vperm.xlu0 %3143, %v2473_v20  }
 0x318   : > { %2147 = vrot.lane.b32.xlu1 %v2133_v48, %s3166_s17 }
 0x31c   : > { %2193 = vrot.lane.b32.xlu1 %v2179_v43, %s3165_s16 }
 0x320   : > { %2101 = vrot.lane.b32.xlu1 %v2087_v63, %s3163_s14 }
 0x326   : > { %v2360_v30 = vpop.permute.xlu0 %2359  ;;  %v2227_v7 = vpop.permute.xlu1 %2226 }
 0x327   : > { %v2369_v9 = vrot.slane %v2360_v30, 4  ;;  %v2236_v27 = vrot.slane %v2227_v7, 4 }
 0x32a   : > { %v2406_v41 = vpop.permute.xlu0 %2405  ;;  %v2094_v31 = vpop.permute.xlu1 %2093 }
 0x32b   : > { %v2415_v12 = vrot.slane %v2406_v41, 4  ;;  %v2103_v55 = vrot.slane %v2094_v31, 4 }
 0x32e   : > { %v2319_v49 = vpop.permute.xlu1 %2318 }
 0x32f   : > { %v4569_v58 = vpop.permute.xlu0 %2228  ;;  %v2328_v18 = vrot.slane %v2319_v49, 4 }
 0x330   : > { %v2237_v19 = vrot.slane %v4569_v58, 4 }
 0x332   : > { %v4571_v51 = vpop.permute.xlu1 %2361  ;;  %v2241_v53 = vsel %vm428_vm2, %v2236_v27, %v2237_v19 }
 0x333   : > { %v2273_v11 = vpop.permute.xlu0 %2272  ;;  %v2370_v16 = vrot.slane %v4571_v51, 4  ;;  %v2242_v57 = vsel %vm5037_vm15, %v2227_v7, %v2241_v53 }
 0x334   : > { %v2282_v46 = vrot.slane %v2273_v11, 4 }
 0x335   : > { %v2374_v4 = vsel %vm428_vm2, %v2369_v9, %v2370_v16 }
 0x336   : > { %v2140_v56 = vpop.permute.xlu1 %2139  ;;  %v2375_v38 = vsel %vm5034_vm10, %v2360_v30, %v2374_v4 }
 0x337   : > { %v2186_v40 = vpop.permute.xlu0 %2185  ;;  %v2149_v23 = vrot.slane %v2140_v56, 4 }
 0x338   : > { %v2195_v44 = vrot.slane %v2186_v40, 4 }
 0x33a   : > { %v4573_v29 = vpop.permute.xlu1 %2407 }
 0x33b   : > { %v2416_v36 = vrot.slane %v4573_v29, 4  ;;  %v4577_v54 = vpop.permute.xlu0 %2095 }
 0x33c   : > { %v2104_v17 = vrot.slane %v4577_v54, 4 }
 0x33d   : > { %v2420_v1 = vsel %vm428_vm2, %v2415_v12, %v2416_v36 }
 0x33e   : > { %v4581_v0 = vpop.permute.xlu1 %2274  ;;  %v2421_v22 = vsel %vm5033_vm7, %v2406_v41, %v2420_v1  ;;  %v2108_v52 = vsel %vm428_vm2, %v2103_v55, %v2104_v17  ;;  %v4630_v1 = vld [vmem:[%s4826_s4] sm:$0xf]  ;;  %vm5044_vm7 = vmmov %vm5035_vm9 }
 0x33f   : > { %v2283_v8 = vrot.slane %v4581_v0, 4  ;;  %v3089_v3 = vcombine.high %v2421_v22, %v2421_v22  ;;  %v4588_v33 = vpop.permute.xlu0 %2320  ;;  %v3088_v24 = vcombine.low %v2421_v22, %v2421_v22  ;;  %v2109_v7 = vsel %vm576_vm0, %v2094_v31, %v2108_v52 }
 0x340   : > { %v2329_v59 = vrot.slane %v4588_v33, 4 }
 0x341   : > { %v2287_v25 = vsel %vm428_vm2, %v2282_v46, %v2283_v8  ;;  %3096 = vmatprep.subr.msk.bf16.mxu0 %vm428_vm2, %v3089_v3  ;;  %v2665_v2 = vsel %vm428_vm2, %v3088_v24, 0 }
 0x342   : > { %v2333_v34 = vsel %vm428_vm2, %v2328_v18, %v2329_v59  ;;  %2695 = vmatpush1.bf16.msra.mxu0 %v2665_v2  ;;  %v4602_v35 = vpop.permute.xlu1 %2187  ;;  %v2288_v47 = vsel %vm5036_vm6, %v2273_v11, %v2287_v25 }
 0x343   : > { %v2196_v62 = vrot.slane %v4602_v35, 4  ;;  %v4606_v50 = vpop.permute.xlu0 %2141  ;;  %v2334_v32 = vsel %vm5035_vm9, %v2319_v49, %v2333_v34  ;;  %v3073_v60 = vcombine.high %v2242_v57, %v2288_v47  ;;  %v3072_v43 = vcombine.low %v2242_v57, %v2288_v47  ;;  %vm5046_vm9 = vmmov %vm5036_vm6 }
 0x344   : > { %v2150_v26 = vrot.slane %v4606_v50, 4  ;;  %v3080_v5 = vcombine.low %v2334_v32, %v2375_v38  ;;  %v3081_v20 = vcombine.high %v2334_v32, %v2375_v38  ;;  %v2075_v49 = vsel %vm3248_vm8, %v4429_v6, 0  ;;  %vm5041_vm8 = vmmov %vm5040_vm1 }
 0x345   : > { %v2200_v42 = vsel %vm428_vm2, %v2195_v44, %v2196_v62  ;;  %v3057_v11 = vcombine.high %v2075_v49, %v2109_v7  ;;  %vm5047_vm6 = vmmov %vm5044_vm7 }
 0x346   : > { %v2154_v13 = vsel %vm428_vm2, %v2149_v23, %v2150_v26  ;;  %2696 = vmatprep.subr.bf16.mxu0 %v3081_v20  ;;  %v2201_v61 = vsel %vm5039_vm14, %v2186_v40, %v2200_v42  ;;  %v3056_v40 = vcombine.low %v2075_v49, %v2109_v7  ;;  %v4672_v20 = vsel %vm3244_vm5, %v4446_v21, 0  ;;  %vm5043_vm5 = vmmov %vm5034_vm10 }
 0x347   : > { %2697 = vmatpush1.bf16.msra.mxu0 %v3080_v5  ;;  %v2155_v48 = vsel %vm5038_vm11, %v2140_v56, %v2154_v13  ;;  %vm5045_vm10 = vmmov %vm5037_vm15  ;;  %vm5050_vm14 = vcmask 1031168  }
 0x348   : > { %2698 = vmatprep.subr.bf16.mxu0 %v3073_v60  ;;  %v3065_v63 = vcombine.high %v2155_v48, %v2201_v61  ;;  %v3064_v41 = vcombine.low %v2155_v48, %v2201_v61  ;;  %vm5048_vm15 = vmmov %vm5045_vm10 }
 0x349   : > { %vm5049_vm11 = vmmov %vm5046_vm9 }
 0x34b   : > { %v2364_v30 = vpop.permute.xlu0 %2363  ;;  %2699 = vmatpush1.bf16.msra.mxu0 %v3072_v43 }
 0x34c   : > { %2700 = vmatprep.subr.bf16.mxu0 %v3065_v63  ;;  %v2371_v24 = vrot.slane %v2364_v30, 4 }
 0x34e   : > { %v2376_v34 = vsel %vm428_vm2, %v2370_v16, %v2371_v24 }
 0x34f   : > { %v2410_v9 = vpop.permute.xlu0 %2409  ;;  %2701 = vmatpush1.bf16.msra.mxu0 %v3064_v41  ;;  %v2377_v14 = vsel %vm5042_vm13, %v4571_v51, %v2376_v34  ;;  %vm5052_vm13 = vmmov %vm5050_vm14 }
 0x350   : > { %v2417_v56 = vrot.slane %v2410_v9, 4  ;;  %2702 = vmatprep.subr.bf16.mxu0 %v3057_v11 }
 0x352   : > { %v2422_v12 = vsel %vm428_vm2, %v2416_v36, %v2417_v56 }
 0x353   : > { %2703 = vmatpush1.bf16.msra.mxu0 %v3056_v40  ;;  %v2423_v31 = vsel %vm5040_vm1, %v4573_v29, %v2422_v12  ;;  %vm5051_vm1 = vcmask 785408  }
 0x354   : > { %v3091_v15 = vcombine.high %v2423_v31, %v2423_v31  ;;  %v3090_v6 = vcombine.low %v2423_v31, %v2423_v31 }
 0x356   : > { %3097 = vmatmul.mubr.msk.bf16.vlgmr.msra.gmra.mxu0 %vm2659_vm3, %v4630_v1  ;;  %3098 = vmatprep.subr.msk.bf16.mxu1 %vm428_vm2, %v3091_v15  ;;  %v2671_v27 = vsel %vm428_vm2, %v3090_v6, 0 }
 0x357   : > { %2736 = vmatpush1.bf16.msra.mxu1 %v2671_v27  ;;  %2802 = vmatprep.mubr.bf16.mxu0 %v4982_v10 }
 0x35f   : > { %v4639_v36 = vpop.permute.xlu0 %2365 }
 0x360   : > { %v2372_v18 = vrot.slane %v4639_v36, 4 }
 0x362   : > { %v2378_v38 = vsel %vm428_vm2, %v2371_v24, %v2372_v18 }
 0x363   : > { %v4641_v46 = vpop.permute.xlu0 %2276 }
 0x364   : > { %v2284_v44 = vrot.slane %v4641_v46, 4 }
 0x366   : > { %v4643_v22 = vpop.permute.xlu1 %2413 }
 0x367   : > { %v4645_v4 = vpop.permute.xlu0 %2232 }
 0x368   : > { %v2239_v63 = vrot.slane %v4645_v4, 4 }
 0x36a   : > { %v2231_v29 = vpop.permute.xlu1 %2230 }
 0x36b   : > { %v4647_v3 = vpop.permute.xlu0 %2189  ;;  %v2238_v25 = vrot.slane %v2231_v29, 4 }
 0x36d   : > { %v2243_v42 = vsel %vm428_vm2, %v2237_v19, %v2238_v25  ;;  %v2289_v19 = vsel %vm428_vm2, %v2283_v8, %v2284_v44 }
 0x36e   : > { %v4650_v55 = vpop.permute.xlu1 %2097  ;;  %v2244_v8 = vsel %vm5045_vm10, %v4569_v58, %v2243_v42  ;;  %v2419_v42 = vrot.slane %v4643_v22, 4  ;;  %vm5055_vm10 = vmmov %vm5047_vm6 }
 0x36f   : > { %v2105_v2 = vrot.slane %v4650_v55, 4  ;;  %v4653_v53 = vpop.permute.xlu0 %2411 }
 0x370   : > { %v2418_v23 = vrot.slane %v4653_v53, 4 }
 0x371   : > { %v2110_v32 = vsel %vm428_vm2, %v2104_v17, %v2105_v2 }
 0x372   : > { %v2323_v47 = vpop.permute.xlu1 %2322  ;;  %v2424_v5 = vsel %vm428_vm2, %v2417_v56, %v2418_v23  ;;  %v4676_v16 = vsel %vm576_vm0, %v4577_v54, %v2110_v32  ;;  %v2379_v54 = vsel %vm5043_vm5, %v2364_v30, %v2378_v38  ;;  %v2290_v56 = vsel %vm5046_vm9, %v4581_v0, %v2289_v19  ;;  %vm5053_vm5 = vmmov %vm5051_vm1 }
 0x373   : > { %v2330_v57 = vrot.slane %v2323_v47, 4  ;;  %v4681_v17 = vpop.permute.xlu0 %2324  ;;  %v2425_v13 = vsel %vm5041_vm8, %v2410_v9, %v2424_v5  ;;  %v3058_v60 = vcombine.low %v4672_v20, %v4676_v16  ;;  %v3059_v43 = vcombine.high %v4672_v20, %v4676_v16 }
 0x374   : > { %v2331_v21 = vrot.slane %v4681_v17, 4  ;;  %v3093_v48 = vcombine.high %v2425_v13, %v2425_v13  ;;  %v3092_v52 = vcombine.low %v2425_v13, %v2425_v13  ;;  %v3075_v12 = vcombine.high %v2244_v8, %v2290_v56 }
 0x375   : > { %v2335_v61 = vsel %vm428_vm2, %v2329_v59, %v2330_v57  ;;  %v2197_v59 = vrot.slane %v4647_v3, 4  ;;  %v3074_v32 = vcombine.low %v2244_v8, %v2290_v56  ;;  %v2426_v13 = vsel %vm428_vm2, %v2418_v23, %v2419_v42 }
 0x376   : > { %v4699_v51 = vpop.permute.xlu1 %2326  ;;  %v2336_v7 = vsel %vm5044_vm7, %v4588_v33, %v2335_v61  ;;  %v2337_v30 = vsel %vm428_vm2, %v2330_v57, %v2331_v21  ;;  %3100 = vmatprep.subr.msk.bf16.mxu0 %vm428_vm2, %v3093_v48  ;;  %v2677_v9 = vsel %vm428_vm2, %v3092_v52, 0  ;;  %v2245_v33 = vsel %vm428_vm2, %v2238_v25, %v2239_v63 }
 0x377   : > { %v3082_v41 = vcombine.low %v2336_v7, %v2377_v14  ;;  %v3083_v49 = vcombine.high %v2336_v7, %v2377_v14  ;;  %v4710_v11 = vpop.permute.xlu0 %2278  ;;  %2777 = vmatpush1.bf16.msra.mxu0 %v2677_v9  ;;  %v2338_v58 = vsel %vm5047_vm6, %v2323_v47, %v2337_v30  ;;  %v2202_v24 = vsel %vm428_vm2, %v2196_v62, %v2197_v59  ;;  %vm5058_vm6 = vmmov %vm5052_vm13 }
 0x378   : > { %v2285_v40 = vrot.slane %v4710_v11, 4  ;;  %v3084_v31 = vcombine.low %v2338_v58, %v2379_v54  ;;  %v3085_v15 = vcombine.high %v2338_v58, %v2379_v54  ;;  %v2246_v34 = vsel %vm5048_vm15, %v2231_v29, %v2245_v33 }
 0x379   : > { %2737 = vmatprep.subr.bf16.mxu1 %v3083_v49  ;;  %vm5054_vm7 = vcmask 515072  }
 0x37a   : > { %2738 = vmatpush1.bf16.msra.mxu1 %v3082_v41  ;;  %v2144_v6 = vpop.permute.xlu1 %2143  ;;  %v2291_v27 = vsel %vm428_vm2, %v2284_v44, %v2285_v40  ;;  %2778 = vmatprep.subr.bf16.mxu0 %v3085_v15 }
 0x37b   : > { %v2151_v0 = vrot.slane %v2144_v6, 4  ;;  %2739 = vmatprep.subr.bf16.mxu1 %v3075_v12  ;;  %v4726_v25 = vpop.permute.xlu0 %2145  ;;  %v2292_v38 = vsel %vm5049_vm11, %v4641_v46, %v2291_v27  ;;  %2779 = vmatpush1.bf16.msra.mxu0 %v3084_v31  ;;  %v2203_v46 = vsel %vm5051_vm1, %v4602_v35, %v2202_v24  ;;  %v2427_v35 = vsel %vm5041_vm8, %v4653_v53, %v2426_v13 }
 0x37c   : > { %v2152_v47 = vrot.slane %v4726_v25, 4  ;;  %v3076_v5 = vcombine.low %v2246_v34, %v2292_v38  ;;  %v3077_v44 = vcombine.high %v2246_v34, %v2292_v38  ;;  %v3094_v9 = vcombine.low %v2427_v35, %v2427_v35 }
 0x37d   : > { %v2156_v62 = vsel %vm428_vm2, %v2150_v26, %v2151_v0  ;;  %v3095_v53 = vcombine.high %v2427_v35, %v2427_v35 }
 0x37e   : > { %2740 = vmatpush1.bf16.msra.mxu1 %v3074_v32  ;;  %v2368_v57 = vpop.permute.xlu1 %2367  ;;  %v2157_v29 = vsel %vm5050_vm14, %v4606_v50, %v2156_v62  ;;  %2780 = vmatprep.subr.bf16.mxu0 %v3077_v44  ;;  %v2158_v26 = vsel %vm428_vm2, %v2151_v0, %v2152_v47  ;;  %v2332_v50 = vrot.slane %v4699_v51, 4  ;;  %v2683_v28 = vsel %vm428_vm2, %v3094_v9, 0 }
 0x37f   : > { %v2373_v14 = vrot.slane %v2368_v57, 4  ;;  %v3066_v48 = vcombine.low %v2157_v29, %v2203_v46  ;;  %v3067_v22 = vcombine.high %v2157_v29, %v2203_v46  ;;  %v4743_v54 = vpop.permute.xlu0 %2191  ;;  %2781 = vmatpush1.bf16.msra.mxu0 %v3076_v5  ;;  %v2159_v30 = vsel %vm5052_vm13, %v2144_v6, %v2158_v26 }
 0x380   : > { %v2198_v19 = vrot.slane %v4743_v54, 4 }
 0x381   : > { %2741 = vmatprep.subr.bf16.mxu1 %v3067_v22  ;;  %v2380_v52 = vsel %vm428_vm2, %v2372_v18, %v2373_v14 }
 0x382   : > { %2742 = vmatpush1.bf16.msra.mxu1 %v3066_v48  ;;  %v2235_v23 = vpop.permute.xlu1 %2234  ;;  %v2204_v61 = vsel %vm428_vm2, %v2197_v59, %v2198_v19  ;;  %v2339_v59 = vsel %vm428_vm2, %v2331_v21, %v2332_v50  ;;  %v2077_v21 = vsel %vm3289_vm4, %v4489_v39, 0  ;;  %vm5056_vm4 = vmmov %vm5046_vm9 }
 0x383   : > { %2743 = vmatprep.subr.bf16.mxu1 %v3059_v43  ;;  %v2100_v7 = vpop.permute.xlu0 %2099  ;;  %v2205_v8 = vsel %vm5053_vm5, %v4647_v3, %v2204_v61  ;;  %v2240_v33 = vrot.slane %v2235_v23, 4  ;;  %v2381_v3 = vsel %vm5054_vm7, %v4639_v36, %v2380_v52  ;;  %v2340_v16 = vsel %vm5055_vm10, %v4681_v17, %v2339_v59  ;;  %vm5057_vm9 = vmmov %vm5048_vm15 }
 0x384   : > { %v2106_v51 = vrot.slane %v2100_v7, 4  ;;  %v3068_v41 = vcombine.low %v2159_v30, %v2205_v8  ;;  %v3069_v49 = vcombine.high %v2159_v30, %v2205_v8  ;;  %v3087_v39 = vcombine.high %v2340_v16, %v2381_v3  ;;  %vm5059_vm15 = vmmov %vm5051_vm1 }
 0x385   : > { %v2247_v36 = vsel %vm428_vm2, %v2239_v63, %v2240_v33  ;;  %v3086_v63 = vcombine.low %v2340_v16, %v2381_v3 }
 0x386   : > { %2744 = vmatpush1.bf16.msra.mxu1 %v3058_v60  ;;  %v2281_v18 = vpop.permute.xlu1 %2280  ;;  %v2112_v43 = vsel %vm428_vm2, %v2105_v2, %v2106_v51  ;;  %2782 = vmatprep.subr.bf16.mxu0 %v3069_v49  ;;  %v2248_v31 = vsel %vm5057_vm9, %v4645_v4, %v2247_v36 }
 0x387   : > { %v2286_v56 = vrot.slane %v2281_v18, 4  ;;  %3102 = vmatprep.subr.msk.bf16.mxu1 %vm428_vm2, %v3095_v53  ;;  %2783 = vmatpush1.bf16.msra.mxu0 %v3068_v41  ;;  %v2113_v20 = vsel %vm576_vm0, %v4650_v55, %v2112_v43 }
 0x388   : > { %v3060_v60 = vcombine.low %v2077_v21, %v2113_v20  ;;  %v3061_v2 = vcombine.high %v2077_v21, %v2113_v20 }
 0x389   : > { %v2293_v58 = vsel %vm428_vm2, %v2285_v40, %v2286_v56  ;;  %3099 = vmatmul.mubr.msk.bf16.vlgmr.msra.gmra.mxu1 %vm2659_vm3, %v4630_v1 }
 0x38a   : > { %2818 = vmatpush1.bf16.msra.mxu1 %v2683_v28  ;;  %v2148_v55 = vpop.permute.xlu1 %2147  ;;  %v2294_v17 = vsel %vm5056_vm4, %v4710_v11, %v2293_v58  ;;  %2784 = vmatprep.subr.bf16.mxu0 %v3061_v2 }
 0x38b   : > { %v2153_v12 = vrot.slane %v2148_v55, 4  ;;  %2819 = vmatprep.subr.bf16.mxu1 %v3087_v39  ;;  %2785 = vmatpush1.bf16.msra.mxu0 %v3060_v60  ;;  %v3079_v40 = vcombine.high %v2248_v31, %v2294_v17  ;;  %v3078_v27 = vcombine.low %v2248_v31, %v2294_v17 }
 0x38c   : > { %2843 = vmatprep.mubr.bf16.mxu1 %v4982_v10 }
 0x38d   : > { %v2160_v11 = vsel %vm428_vm2, %v2152_v47, %v2153_v12  ;;  %v2078_v47 = vsel %vm3307_vm12, %v4500_v45, 0 }
 0x38e   : > { %2820 = vmatpush1.bf16.msra.mxu1 %v3086_v63  ;;  %v2194_v15 = vpop.permute.xlu1 %2193  ;;  %3101 = vmatmul.mubr.msk.bf16.vlgmr.msra.gmra.mxu0 %vm2659_vm3, %v4630_v1  ;;  %v2161_v10 = vsel %vm5058_vm6, %v4726_v25, %v2160_v11 }
 0x38f   : > { %v2199_v6 = vrot.slane %v2194_v15, 4  ;;  %2821 = vmatprep.subr.bf16.mxu1 %v3079_v40 }
 0x390   : > { %v2477_v25 = vpop.permute.xlu0 %2476 }
 0x391   : > { %v2206_v24 = vsel %vm428_vm2, %v2198_v19, %v2199_v6 }
 0x392   : > { %2822 = vmatpush1.bf16.msra.mxu1 %v3078_v27  ;;  %v2102_v0 = vpop.permute.xlu1 %2101  ;;  %v2207_v4 = vsel %vm5059_vm15, %v4743_v54, %v2206_v24 }
 0x393   : > { %v2107_v34 = vrot.slane %v2102_v0, 4  ;;  %v3070_v38 = vcombine.low %v2161_v10, %v2207_v4  ;;  %v3071_v32 = vcombine.high %v2161_v10, %v2207_v4 }
 0x395   : > { %v2114_v5 = vsel %vm428_vm2, %v2106_v51, %v2107_v34  ;;  %2823 = vmatprep.subr.bf16.mxu1 %v3071_v32 }
 0x396   : > { %2824 = vmatpush1.bf16.msra.mxu1 %v3070_v38  ;;  %v2115_v44 = vsel %vm576_vm0, %v2100_v7, %v2114_v5 }
 0x397   : > { %v3062_v42 = vcombine.low %v2078_v47, %v2115_v44  ;;  %v3063_v62 = vcombine.high %v2078_v47, %v2115_v44 }
 0x399   : > { %2825 = vmatprep.subr.bf16.mxu1 %v3063_v62 }
 0x39a   : > { %2826 = vmatpush1.bf16.msra.mxu1 %v3062_v42 }
 0x39d   : > { %3103 = vmatmul.mubr.msk.bf16.vlgmr.msra.gmra.mxu1 %vm2659_vm3, %v4630_v1 }
 0x416   : > { %v2722_v57 = vpop.f32.mrf.mxu0 }
 0x417   : > { %v2723_v29 = vadd.f32 %v2722_v57, %v2477_v25 }
 0x418   : > { %v2724_v46 = vpop.f32.mrf.mxu0 }
 0x419   : > { %v2725_v13 = vadd.f32 %v2724_v46, %v2477_v25  ;;  %v2852_v48 = vmax.f32 %v2723_v29, 0.0 }
 0x41a   : > { %v2726_v14 = vpop.f32.mrf.mxu0 }
 0x41b   : > { %v2853_v22 = vmax.f32 %v2725_v13, 0.0 }
 0x41c   : > { %v2727_v37 = vpop.f32.mrf.mxu0 }
 0x41d   : > { %v3117_v45 = vpack.c.bf16 %v2853_v22, %v2852_v48 }
 0x41f   : > { %2892 = vst [vmem:[%s4813_s7] sm:$0xff] %v3117_v45 }
 0x449   : > { %v2763_v54 = vpop.f32.mrf.mxu1 }
 0x44a   : > { %v2764_v1 = vadd.f32 %v2763_v54, %v2477_v25 }
 0x44b   : > { %v2765_v26 = vpop.f32.mrf.mxu1 }
 0x44c   : > { %v2766_v19 = vadd.f32 %v2765_v26, %v2477_v25  ;;  %v2854_v35 = vmax.f32 %v2764_v1, 0.0 }
 0x44d   : > { %v2767_v50 = vpop.f32.mrf.mxu1 }
 0x44e   : > { %v2855_v23 = vmax.f32 %v2766_v19, 0.0  ;;  %v2804_v61 = vpop.f32.mrf.mxu0 }
 0x44f   : > { %v2768_v52 = vpop.f32.mrf.mxu1  ;;  %v2805_v7 = vadd.f32 %v2804_v61, %v2477_v25 }
 0x450   : > { %v3118_v30 = vpack.c.bf16 %v2855_v23, %v2854_v35  ;;  %v2806_v8 = vpop.f32.mrf.mxu0 }
 0x451   : > { %v2807_v51 = vadd.f32 %v2806_v8, %v2477_v25  ;;  %v2856_v49 = vmax.f32 %v2805_v7, 0.0 }
 0x452   : > { %2893 = vst [vmem:[%s4813_s7 + $0x8] sm:$0xff] %v3118_v30  ;;  %v2808_v41 = vpop.f32.mrf.mxu0 }
 0x453   : > { %v2857_v9 = vmax.f32 %v2807_v51, 0.0 }
 0x454   : > { %v2809_v53 = vpop.f32.mrf.mxu0 }
 0x455   : > { %v3119_v59 = vpack.c.bf16 %v2857_v9, %v2856_v49 }
 0x457   : > { %2894 = vst [vmem:[%s4813_s7 + $0x10] sm:$0xff] %v3119_v59 }
 0x45d   : > { %v2845_v33 = vpop.f32.mrf.mxu1 }
 0x45e   : > { %v2846_v18 = vadd.f32 %v2845_v33, %v2477_v25 }
 0x45f   : > { %v2847_v43 = vpop.f32.mrf.mxu1 }
 0x460   : > { %v2848_v3 = vadd.f32 %v2847_v43, %v2477_v25  ;;  %v2858_v21 = vmax.f32 %v2846_v18, 0.0 }
 0x461   : > { %v2849_v56 = vpop.f32.mrf.mxu1 }
 0x462   : > { %v2859_v20 = vmax.f32 %v2848_v3, 0.0 }
 0x463   : > { %v2850_v16 = vpop.f32.mrf.mxu1 }
 0x464   : > { %v3120_v60 = vpack.c.bf16 %v2859_v20, %v2858_v21 }
 0x466   : > { %2895 = vst [vmem:[%s4813_s7 + $0x18] sm:$0xff] %v3120_v60 }
 0x467 PF: > { %s16_s21 = sadd.s32 1, %s3152_s21  }
 0x468   : > { %p13_p4 = scmp.ge.s32.totalorder %s16_s21, 4  }
 0x46a   :  { %15 = sbr.rel (!%p13_p4) target bundleno = 1 (0x1), region = 77 }

</bundles_post_ra>
